<compile_context>
chip_gen: v7x
topology: tpu7x:2x2x1
jax: 0.10.0
libtpu: 0.0.40
codegen_flags: <defaults>
</compile_context>

<pallas_src>
import math

import jax
import jax.numpy as jnp
from jax.experimental import pallas as pl
from jax.experimental.pallas import tpu as pltpu

BN_EPS = 1e-5


# ---------------------------------------------------------------------------
# Fused FEM kernel: value/key/query 1x1 convs -> attention -> Trans_s (conv+BN
# folded) -> ChannelGate (avg-pool MLP sigmoid) -> gated residual add.
# One grid step == one batch element; the whole working set lives in VMEM.
# ---------------------------------------------------------------------------
def fem_kernel(x_ref, wv_ref, bv_ref, wk_ref, bk_ref, wq_ref, bq_ref,
               ws_ref, bs_ref, wg1_ref, bg1_ref, wg2_ref, bg2_ref, o_ref):
    x = x_ref[0]                                               # (TV, C)

    # 1x1 convolutions (common_v / key / query) as lane-dim matmuls on the MXU.
    v = jnp.dot(x, wv_ref[...], preferred_element_type=jnp.float32) + bv_ref[...]
    k = jnp.dot(x, wk_ref[...], preferred_element_type=jnp.float32) + bk_ref[...]
    q = jnp.dot(x, wq_ref[...], preferred_element_type=jnp.float32) + bq_ref[...]

    # A = k @ q^T : contract the inter-channel dim of both (no explicit transpose).
    a = jax.lax.dot_general(k, q, (((1,), (1,)), ((), ())),
                            preferred_element_type=jnp.float32)   # (TV, TV)

    # Numerically stable softmax, kept UNNORMALISED until after attn @ v:
    #   softmax(A) @ v == (exp(A - max) @ v) / rowsum(exp(A - max))
    # -> TV*IC divides instead of TV*TV, done via EUP approx reciprocal.
    e = jnp.exp(a - jnp.max(a, axis=-1, keepdims=True))
    denom = jnp.sum(e, axis=-1, keepdims=True)                    # (TV, 1), >= 1
    p = jnp.dot(e, v, preferred_element_type=jnp.float32)         # (TV, IC)
    p = p * pl.reciprocal(denom, approx=True)

    # Trans_s: 1x1 conv (IC -> C) with eval-mode BatchNorm folded into ws/bs.
    p = jnp.dot(p, ws_ref[...], preferred_element_type=jnp.float32) + bs_ref[...]

    # ChannelGate (avg-pool only): mean over (T, V) -> Linear -> ReLU -> Linear
    # -> sigmoid, applied to the ORIGINAL input x.
    pooled = jnp.mean(x, axis=0, keepdims=True)                   # (1, C)
    g = jnp.maximum(
        jnp.dot(pooled, wg1_ref[...], preferred_element_type=jnp.float32)
        + bg1_ref[...], 0.0)
    g = jnp.dot(g, wg2_ref[...], preferred_element_type=jnp.float32) + bg2_ref[...]
    scale = jax.nn.sigmoid(g)                                     # (1, C)

    # p_x = ChannelGate(x) * p_x + x
    o_ref[0] = x + scale * p


# ---------------------------------------------------------------------------
# Wrapper
# ---------------------------------------------------------------------------
def fem_forward(x, params):
    """x: (N, C, T, V) float32  ->  (N, C, T, V) float32 (same as the PyTorch FEM)."""
    N, C, T, V = x.shape
    TV = T * V
    IC = params['wv'].shape[1]
    H = params['wg1'].shape[1]

    # channels-last: (N, C, T, V) -> (N, T*V, C)
    xcl = jnp.transpose(x, (0, 2, 3, 1)).reshape(N, TV, C)

    const = lambda n: (0, 0)
    out = pl.pallas_call(
        fem_kernel,
        out_shape=jax.ShapeDtypeStruct((N, TV, C), jnp.float32),
        grid=(N,),
        in_specs=[
            pl.BlockSpec((1, TV, C), lambda n: (n, 0, 0)),   # x (one batch row)
            pl.BlockSpec((C, IC), const),                     # common_v weight
            pl.BlockSpec((1, IC), const),                     # common_v bias
            pl.BlockSpec((C, IC), const),                     # key weight
            pl.BlockSpec((1, IC), const),                     # key bias
            pl.BlockSpec((C, IC), const),                     # query weight
            pl.BlockSpec((1, IC), const),                     # query bias
            pl.BlockSpec((IC, C), const),                     # Trans_s conv (BN folded)
            pl.BlockSpec((1, C), const),                      # Trans_s bias (BN folded)
            pl.BlockSpec((C, H), const),                      # gate MLP Linear1 W
            pl.BlockSpec((1, H), const),                      # gate MLP Linear1 b
            pl.BlockSpec((H, C), const),                      # gate MLP Linear2 W
            pl.BlockSpec((1, C), const),                      # gate MLP Linear2 b
        ],
        out_specs=pl.BlockSpec((1, TV, C), lambda n: (n, 0, 0)),
        compiler_params=pltpu.CompilerParams(
            dimension_semantics=("parallel",),
            vmem_limit_bytes=32 * 1024 * 1024),
    )(xcl, params['wv'], params['bv'], params['wk'], params['bk'],
      params['wq'], params['bq'], params['ws'], params['bs'],
      params['wg1'], params['bg1'], params['wg2'], params['bg2'])

    # back to PyTorch layout (N, C, T, V)
    return jnp.transpose(out.reshape(N, T, V, C), (0, 3, 1, 2))


# ---------------------------------------------------------------------------
# Pure-JAX reference (same math, for a correctness check in __main__).
# ---------------------------------------------------------------------------
def fem_reference(x, params):
    N, C, T, V = x.shape
    xcl = jnp.transpose(x, (0, 2, 3, 1)).reshape(N, T * V, C)
    with jax.default_matmul_precision('highest'):
        v = xcl @ params['wv'] + params['bv']
        k = xcl @ params['wk'] + params['bk']
        q = xcl @ params['wq'] + params['bq']
        a = jnp.einsum('nik,njk->nij', k, q)
        attn = jax.nn.softmax(a, axis=-1)
        p = jnp.einsum('nij,njc->nic', attn, v)
        p = p @ params['ws'] + params['bs']
        pooled = jnp.mean(xcl, axis=1)
        g = jnp.maximum(pooled @ params['wg1'] + params['bg1'], 0.0)
        scale = jax.nn.sigmoid(g @ params['wg2'] + params['bg2'])
        out = xcl + scale[:, None, :] * p
    return jnp.transpose(out.reshape(N, T, V, C), (0, 3, 1, 2))


# ---------------------------------------------------------------------------
# Deterministic synthetic parameters (no checkpoint).
# ---------------------------------------------------------------------------
def init_params(key, C, channel_rate=2, reduction_ratio=16):
    IC = max(C // channel_rate, 1)
    H = max(C // reduction_ratio, 1)
    keys = iter(jax.random.split(key, 16))

    def dense(fin, fout):
        return jax.random.normal(next(keys), (fin, fout), jnp.float32) / math.sqrt(fin)

    def bias(fout):
        return 0.05 * jax.random.normal(next(keys), (1, fout), jnp.float32)

    p = {}
    p['wv'], p['bv'] = dense(C, IC), bias(IC)
    p['wk'], p['bk'] = dense(C, IC), bias(IC)
    p['wq'], p['bq'] = dense(C, IC), bias(IC)

    # Trans_s = Conv2d(IC->C, 1x1) + BatchNorm2d(C) in eval mode (running mean=0,
    # var=1) folded into a single matmul weight/bias.
    # TODO(synk): the reference zero-initialises this BN's gamma/beta (making the
    # attention branch 0 at init); we use non-zero synthetic gamma/beta so the
    # kernel's full datapath is exercised.
    ws = dense(IC, C)
    bs = 0.05 * jax.random.normal(next(keys), (C,), jnp.float32)
    gamma = 1.0 + 0.1 * jax.random.normal(next(keys), (C,), jnp.float32)
    beta = 0.1 * jax.random.normal(next(keys), (C,), jnp.float32)
    s = gamma / jnp.sqrt(1.0 + BN_EPS)
    p['ws'] = ws * s[None, :]
    p['bs'] = (bs * s + beta)[None, :]

    p['wg1'], p['bg1'] = dense(C, H), bias(H)
    p['wg2'], p['bg2'] = dense(H, C), bias(C)
    return p


# ---------------------------------------------------------------------------
if __name__ == "__main__":
    # Small shapes consistent with FEM: skeleton feature map (N, C, T, V).
    # C=128 keeps every matmul / HBM store lane-dense (last dim a multiple of 128)
    # and gives inter_channels=64, gate hidden=8 (reduction_ratio=16).
    N, C, T, V = 2, 128, 16, 25

    key = jax.random.PRNGKey(0)
    kx, kp = jax.random.split(key)
    x = jax.random.normal(kx, (N, C, T, V), jnp.float32)
    params = init_params(kp, C)

    out = fem_forward(x, params)
    jax.block_until_ready(out)

    ref = fem_reference(x, params)
    assert out.shape == (N, C, T, V)
    assert bool(jnp.all(jnp.isfinite(out)))
    assert bool(jnp.allclose(out, ref, atol=5e-2, rtol=5e-2))
    print("KERNEL_OK")
</pallas_src>

<mosaic_0001>
module attributes {stable_mosaic.version = 11 : i64} {
  func.func @fem_kernel(%arg0: i32, %arg1: memref<1x400x128xf32, #tpu.memory_space<vmem>>, %arg2: memref<128x64xf32, #tpu.memory_space<vmem>>, %arg3: memref<1x64xf32, #tpu.memory_space<vmem>>, %arg4: memref<128x64xf32, #tpu.memory_space<vmem>>, %arg5: memref<1x64xf32, #tpu.memory_space<vmem>>, %arg6: memref<128x64xf32, #tpu.memory_space<vmem>>, %arg7: memref<1x64xf32, #tpu.memory_space<vmem>>, %arg8: memref<64x128xf32, #tpu.memory_space<vmem>>, %arg9: memref<1x128xf32, #tpu.memory_space<vmem>>, %arg10: memref<128x8xf32, #tpu.memory_space<vmem>>, %arg11: memref<1x8xf32, #tpu.memory_space<vmem>>, %arg12: memref<8x128xf32, #tpu.memory_space<vmem>>, %arg13: memref<1x128xf32, #tpu.memory_space<vmem>>, %arg14: memref<1x400x128xf32, #tpu.memory_space<vmem>>) attributes {dimension_semantics = [#tpu.dimension_semantics<parallel>], iteration_bounds = array<i64: 2>, scalar_prefetch = 0 : i64, scratch_operands = 0 : i64, tpu.core_type = #tpu.core_type<tc>, window_params = [{transform_indices = @transform_0, window_bounds = array<i64: 1, 400, 128>}, {pipeline_mode = #tpu.pipeline_mode<synchronous>, transform_indices = @transform_1, window_bounds = array<i64: 128, 64>}, {pipeline_mode = #tpu.pipeline_mode<synchronous>, transform_indices = @transform_2, window_bounds = array<i64: 1, 64>}, {pipeline_mode = #tpu.pipeline_mode<synchronous>, transform_indices = @transform_3, window_bounds = array<i64: 128, 64>}, {pipeline_mode = #tpu.pipeline_mode<synchronous>, transform_indices = @transform_4, window_bounds = array<i64: 1, 64>}, {pipeline_mode = #tpu.pipeline_mode<synchronous>, transform_indices = @transform_5, window_bounds = array<i64: 128, 64>}, {pipeline_mode = #tpu.pipeline_mode<synchronous>, transform_indices = @transform_6, window_bounds = array<i64: 1, 64>}, {pipeline_mode = #tpu.pipeline_mode<synchronous>, transform_indices = @transform_7, window_bounds = array<i64: 64, 128>}, {pipeline_mode = #tpu.pipeline_mode<synchronous>, transform_indices = @transform_8, window_bounds = array<i64: 1, 128>}, {pipeline_mode = #tpu.pipeline_mode<synchronous>, transform_indices = @transform_9, window_bounds = array<i64: 128, 8>}, {pipeline_mode = #tpu.pipeline_mode<synchronous>, transform_indices = @transform_10, window_bounds = array<i64: 1, 8>}, {pipeline_mode = #tpu.pipeline_mode<synchronous>, transform_indices = @transform_11, window_bounds = array<i64: 8, 128>}, {pipeline_mode = #tpu.pipeline_mode<synchronous>, transform_indices = @transform_12, window_bounds = array<i64: 1, 128>}, {transform_indices = @transform_13, window_bounds = array<i64: 1, 400, 128>}]} {
    %c0 = arith.constant 0 : index
    %c0_0 = arith.constant 0 : index
    %c0_1 = arith.constant 0 : index
    %0 = vector.load %arg1[%c0, %c0_0, %c0_1] : memref<1x400x128xf32, #tpu.memory_space<vmem>>, vector<1x400x128xf32>
    %1 = vector.shape_cast %0 : vector<1x400x128xf32> to vector<400x128xf32>
    %c0_2 = arith.constant 0 : index
    %c0_3 = arith.constant 0 : index
    %2 = vector.load %arg2[%c0_2, %c0_3] : memref<128x64xf32, #tpu.memory_space<vmem>>, vector<128x64xf32>
    %cst = arith.constant dense<0.000000e+00> : vector<400x64xf32>
    %3 = tpu.matmul %1, %2, %cst {dimension_numbers = #tpu.dot_dimension_numbers<[1], [0], [0], [1], [0, 0, 1, 1], [], []>} : vector<400x128xf32>, vector<128x64xf32>, vector<400x64xf32> -> vector<400x64xf32>
    %c0_4 = arith.constant 0 : index
    %c0_5 = arith.constant 0 : index
    %4 = vector.load %arg3[%c0_4, %c0_5] : memref<1x64xf32, #tpu.memory_space<vmem>>, vector<1x64xf32>
    %5 = vector.broadcast %4 : vector<1x64xf32> to vector<400x64xf32>
    %6 = arith.addf %3, %5 : vector<400x64xf32>
    %c0_6 = arith.constant 0 : index
    %c0_7 = arith.constant 0 : index
    %7 = vector.load %arg4[%c0_6, %c0_7] : memref<128x64xf32, #tpu.memory_space<vmem>>, vector<128x64xf32>
    %cst_8 = arith.constant dense<0.000000e+00> : vector<400x64xf32>
    %8 = tpu.matmul %1, %7, %cst_8 {dimension_numbers = #tpu.dot_dimension_numbers<[1], [0], [0], [1], [0, 0, 1, 1], [], []>} : vector<400x128xf32>, vector<128x64xf32>, vector<400x64xf32> -> vector<400x64xf32>
    %c0_9 = arith.constant 0 : index
    %c0_10 = arith.constant 0 : index
    %9 = vector.load %arg5[%c0_9, %c0_10] : memref<1x64xf32, #tpu.memory_space<vmem>>, vector<1x64xf32>
    %10 = vector.broadcast %9 : vector<1x64xf32> to vector<400x64xf32>
    %11 = arith.addf %8, %10 : vector<400x64xf32>
    %c0_11 = arith.constant 0 : index
    %c0_12 = arith.constant 0 : index
    %12 = vector.load %arg6[%c0_11, %c0_12] : memref<128x64xf32, #tpu.memory_space<vmem>>, vector<128x64xf32>
    %cst_13 = arith.constant dense<0.000000e+00> : vector<400x64xf32>
    %13 = tpu.matmul %1, %12, %cst_13 {dimension_numbers = #tpu.dot_dimension_numbers<[1], [0], [0], [1], [0, 0, 1, 1], [], []>} : vector<400x128xf32>, vector<128x64xf32>, vector<400x64xf32> -> vector<400x64xf32>
    %c0_14 = arith.constant 0 : index
    %c0_15 = arith.constant 0 : index
    %14 = vector.load %arg7[%c0_14, %c0_15] : memref<1x64xf32, #tpu.memory_space<vmem>>, vector<1x64xf32>
    %15 = vector.broadcast %14 : vector<1x64xf32> to vector<400x64xf32>
    %16 = arith.addf %13, %15 : vector<400x64xf32>
    %cst_16 = arith.constant dense<0.000000e+00> : vector<400x400xf32>
    %17 = tpu.matmul %11, %16, %cst_16 {dimension_numbers = #tpu.dot_dimension_numbers<[1], [1], [0], [0], [0, 0, 1, 0], [], []>} : vector<400x64xf32>, vector<400x64xf32>, vector<400x400xf32> -> vector<400x400xf32>
    %cst_17 = arith.constant dense<0xFF800000> : vector<400xf32>
    %18 = vector.multi_reduction <maximumf>, %17, %cst_17 [1] : vector<400x400xf32> to vector<400xf32>
    %19 = vector.shape_cast %18 : vector<400xf32> to vector<400x1xf32>
    %20 = vector.broadcast %19 : vector<400x1xf32> to vector<400x400xf32>
    %21 = arith.subf %17, %20 : vector<400x400xf32>
    %22 = math.exp %21 : vector<400x400xf32>
    %cst_18 = arith.constant dense<0.000000e+00> : vector<400xf32>
    %23 = vector.multi_reduction <add>, %22, %cst_18 [1] : vector<400x400xf32> to vector<400xf32>
    %24 = vector.shape_cast %23 : vector<400xf32> to vector<400x1xf32>
    %cst_19 = arith.constant dense<0.000000e+00> : vector<400x64xf32>
    %25 = tpu.matmul %22, %6, %cst_19 {dimension_numbers = #tpu.dot_dimension_numbers<[1], [0], [0], [1], [0, 0, 1, 1], [], []>} : vector<400x400xf32>, vector<400x64xf32>, vector<400x64xf32> -> vector<400x64xf32>
    %26 = tpu.reciprocal %24 {approx = true} : vector<400x1xf32> -> vector<400x1xf32>
    %27 = vector.broadcast %26 : vector<400x1xf32> to vector<400x64xf32>
    %28 = arith.mulf %25, %27 : vector<400x64xf32>
    %c0_20 = arith.constant 0 : index
    %c0_21 = arith.constant 0 : index
    %29 = vector.load %arg8[%c0_20, %c0_21] : memref<64x128xf32, #tpu.memory_space<vmem>>, vector<64x128xf32>
    %cst_22 = arith.constant dense<0.000000e+00> : vector<400x128xf32>
    %30 = tpu.matmul %28, %29, %cst_22 {dimension_numbers = #tpu.dot_dimension_numbers<[1], [0], [0], [1], [0, 0, 1, 1], [], []>} : vector<400x64xf32>, vector<64x128xf32>, vector<400x128xf32> -> vector<400x128xf32>
    %c0_23 = arith.constant 0 : index
    %c0_24 = arith.constant 0 : index
    %31 = vector.load %arg9[%c0_23, %c0_24] : memref<1x128xf32, #tpu.memory_space<vmem>>, vector<1x128xf32>
    %32 = vector.broadcast %31 : vector<1x128xf32> to vector<400x128xf32>
    %33 = arith.addf %30, %32 : vector<400x128xf32>
    %cst_25 = arith.constant dense<0.000000e+00> : vector<128xf32>
    %34 = vector.multi_reduction <add>, %1, %cst_25 [0] : vector<400x128xf32> to vector<128xf32>
    %35 = vector.shape_cast %34 : vector<128xf32> to vector<1x128xf32>
    %cst_26 = arith.constant 4.000000e+02 : f32
    %36 = vector.broadcast %cst_26 : f32 to vector<1x128xf32>
    %37 = arith.divf %35, %36 : vector<1x128xf32>
    %c0_27 = arith.constant 0 : index
    %c0_28 = arith.constant 0 : index
    %38 = vector.load %arg10[%c0_27, %c0_28] : memref<128x8xf32, #tpu.memory_space<vmem>>, vector<128x8xf32>
    %cst_29 = arith.constant dense<0.000000e+00> : vector<1x8xf32>
    %39 = tpu.matmul %37, %38, %cst_29 {dimension_numbers = #tpu.dot_dimension_numbers<[1], [0], [0], [1], [0, 0, 1, 1], [], []>} : vector<1x128xf32>, vector<128x8xf32>, vector<1x8xf32> -> vector<1x8xf32>
    %c0_30 = arith.constant 0 : index
    %c0_31 = arith.constant 0 : index
    %40 = vector.load %arg11[%c0_30, %c0_31] : memref<1x8xf32, #tpu.memory_space<vmem>>, vector<1x8xf32>
    %41 = arith.addf %39, %40 : vector<1x8xf32>
    %cst_32 = arith.constant 0.000000e+00 : f32
    %42 = vector.broadcast %cst_32 : f32 to vector<1x8xf32>
    %43 = arith.maximumf %41, %42 : vector<1x8xf32>
    %c0_33 = arith.constant 0 : index
    %c0_34 = arith.constant 0 : index
    %44 = vector.load %arg12[%c0_33, %c0_34] : memref<8x128xf32, #tpu.memory_space<vmem>>, vector<8x128xf32>
    %cst_35 = arith.constant dense<0.000000e+00> : vector<1x128xf32>
    %45 = tpu.matmul %43, %44, %cst_35 {dimension_numbers = #tpu.dot_dimension_numbers<[1], [0], [0], [1], [0, 0, 1, 1], [], []>} : vector<1x8xf32>, vector<8x128xf32>, vector<1x128xf32> -> vector<1x128xf32>
    %c0_36 = arith.constant 0 : index
    %c0_37 = arith.constant 0 : index
    %46 = vector.load %arg13[%c0_36, %c0_37] : memref<1x128xf32, #tpu.memory_space<vmem>>, vector<1x128xf32>
    %47 = arith.addf %45, %46 : vector<1x128xf32>
    %48 = arith.negf %47 : vector<1x128xf32>
    %49 = math.exp %48 : vector<1x128xf32>
    %cst_38 = arith.constant 1.000000e+00 : f32
    %50 = vector.broadcast %cst_38 : f32 to vector<1x128xf32>
    %51 = arith.addf %50, %49 : vector<1x128xf32>
    %52 = arith.divf %50, %51 : vector<1x128xf32>
    %53 = vector.broadcast %52 : vector<1x128xf32> to vector<400x128xf32>
    %54 = arith.mulf %53, %33 : vector<400x128xf32>
    %55 = arith.addf %1, %54 : vector<400x128xf32>
    %c0_39 = arith.constant 0 : index
    %c0_40 = arith.constant 0 : index
    %c0_41 = arith.constant 0 : index
    %56 = vector.load %arg14[%c0_39, %c0_40, %c0_41] : memref<1x400x128xf32, #tpu.memory_space<vmem>>, vector<1x400x128xf32>
    %57 = vector.shape_cast %56 : vector<1x400x128xf32> to vector<400x128xf32>
    %58 = vector.shape_cast %55 : vector<400x128xf32> to vector<1x400x128xf32>
    tpu.vector_store %arg14[%c0_39, %c0_40, %c0_41], %58 {strides = array<i32>} : memref<1x400x128xf32, #tpu.memory_space<vmem>>, vector<1x400x128xf32>,
    return
  }
  func.func @transform_0(%arg0: i32) -> (i32, i32, i32) {
    %c0_i32 = arith.constant 0 : i32
    %c0_i32_0 = arith.constant 0 : i32
    %c0_i32_1 = arith.constant 0 : i32
    return %arg0, %c0_i32, %c0_i32_0 : i32, i32, i32
  }
  func.func @transform_1(%arg0: i32) -> (i32, i32) {
    %c0_i32 = arith.constant 0 : i32
    %c0_i32_0 = arith.constant 0 : i32
    %c0_i32_1 = arith.constant 0 : i32
    return %c0_i32, %c0_i32_0 : i32, i32
  }
  func.func @transform_2(%arg0: i32) -> (i32, i32) {
    %c0_i32 = arith.constant 0 : i32
    %c0_i32_0 = arith.constant 0 : i32
    %c0_i32_1 = arith.constant 0 : i32
    return %c0_i32, %c0_i32_0 : i32, i32
  }
  func.func @transform_3(%arg0: i32) -> (i32, i32) {
    %c0_i32 = arith.constant 0 : i32
    %c0_i32_0 = arith.constant 0 : i32
    %c0_i32_1 = arith.constant 0 : i32
    return %c0_i32, %c0_i32_0 : i32, i32
  }
  func.func @transform_4(%arg0: i32) -> (i32, i32) {
    %c0_i32 = arith.constant 0 : i32
    %c0_i32_0 = arith.constant 0 : i32
    %c0_i32_1 = arith.constant 0 : i32
    return %c0_i32, %c0_i32_0 : i32, i32
  }
  func.func @transform_5(%arg0: i32) -> (i32, i32) {
    %c0_i32 = arith.constant 0 : i32
    %c0_i32_0 = arith.constant 0 : i32
    %c0_i32_1 = arith.constant 0 : i32
    return %c0_i32, %c0_i32_0 : i32, i32
  }
  func.func @transform_6(%arg0: i32) -> (i32, i32) {
    %c0_i32 = arith.constant 0 : i32
    %c0_i32_0 = arith.constant 0 : i32
    %c0_i32_1 = arith.constant 0 : i32
    return %c0_i32, %c0_i32_0 : i32, i32
  }
  func.func @transform_7(%arg0: i32) -> (i32, i32) {
    %c0_i32 = arith.constant 0 : i32
    %c0_i32_0 = arith.constant 0 : i32
    %c0_i32_1 = arith.constant 0 : i32
    return %c0_i32, %c0_i32_0 : i32, i32
  }
  func.func @transform_8(%arg0: i32) -> (i32, i32) {
    %c0_i32 = arith.constant 0 : i32
    %c0_i32_0 = arith.constant 0 : i32
    %c0_i32_1 = arith.constant 0 : i32
    return %c0_i32, %c0_i32_0 : i32, i32
  }
  func.func @transform_9(%arg0: i32) -> (i32, i32) {
    %c0_i32 = arith.constant 0 : i32
    %c0_i32_0 = arith.constant 0 : i32
    %c0_i32_1 = arith.constant 0 : i32
    return %c0_i32, %c0_i32_0 : i32, i32
  }
  func.func @transform_10(%arg0: i32) -> (i32, i32) {
    %c0_i32 = arith.constant 0 : i32
    %c0_i32_0 = arith.constant 0 : i32
    %c0_i32_1 = arith.constant 0 : i32
    return %c0_i32, %c0_i32_0 : i32, i32
  }
  func.func @transform_11(%arg0: i32) -> (i32, i32) {
    %c0_i32 = arith.constant 0 : i32
    %c0_i32_0 = arith.constant 0 : i32
    %c0_i32_1 = arith.constant 0 : i32
    return %c0_i32, %c0_i32_0 : i32, i32
  }
  func.func @transform_12(%arg0: i32) -> (i32, i32) {
    %c0_i32 = arith.constant 0 : i32
    %c0_i32_0 = arith.constant 0 : i32
    %c0_i32_1 = arith.constant 0 : i32
    return %c0_i32, %c0_i32_0 : i32, i32
  }
  func.func @transform_13(%arg0: i32) -> (i32, i32, i32) {
    %c0_i32 = arith.constant 0 : i32
    %c0_i32_0 = arith.constant 0 : i32
    %c0_i32_1 = arith.constant 0 : i32
    return %arg0, %c0_i32, %c0_i32_0 : i32, i32, i32
  }
}

</mosaic_0001>

<bundles_post_ra>
// kernel: tpu_custom_call.1
= control target key start
LH: loop header
LB: loop body
LE: loop exit
PB: predicated region body
PF: predicated region fallthrough
CT: control target
= control target key end

     0   :  { %18 = vsyncpa [#allocation3], 0  ;;  %s11990_s0 = inlined_call_operand.hbm [shape: f32[2,400,128], index: 0, kind: input, shape index: {}]   ;;  %s11991_s1 = inlined_call_operand.vmem [shape: f32[128,64], index: 1, kind: input, shape index: {}]   ;;  %s11992_s2 = inlined_call_operand.vmem [shape: f32[1,64], index: 2, kind: input, shape index: {}]   ;;  %s11993_s3 = inlined_call_operand.vmem [shape: f32[128,64], index: 3, kind: input, shape index: {}]   ;;  %s11994_s4 = inlined_call_operand.vmem [shape: f32[1,64], index: 4, kind: input, shape index: {}]   ;;  %s11995_s5 = inlined_call_operand.vmem [shape: f32[128,64], index: 5, kind: input, shape index: {}]   ;;  %s11996_s6 = inlined_call_operand.vmem [shape: f32[1,64], index: 6, kind: input, shape index: {}]   ;;  %s11997_s7 = inlined_call_operand.vmem [shape: f32[64,128], index: 7, kind: input, shape index: {}]   ;;  %s11998_s8 = inlined_call_operand.vmem [shape: f32[1,128], index: 8, kind: input, shape index: {}]   ;;  %s11999_s9 = inlined_call_operand.vmem [shape: f32[128,8], index: 9, kind: input, shape index: {}]   ;;  %s12000_s10 = inlined_call_operand.vmem [shape: f32[1,8], index: 10, kind: input, shape index: {}]   ;;  %s12001_s11 = inlined_call_operand.vmem [shape: f32[8,128], index: 11, kind: input, shape index: {}]   ;;  %s12002_s12 = inlined_call_operand.vmem [shape: f32[1,128], index: 12, kind: input, shape index: {}]   ;;  %s12003_s13 = inlined_call_operand.hbm [shape: f32[2,400,128], index: 13, kind: output, shape index: {}]  }
   0x1   :  { %20 = vsyncpa [#allocation3 + $0x1], 0 }
   0x2   :  { %21 = vsyncpa [#allocation4], 0 }
   0x3   :  { %23 = vsyncpa [#allocation4 + $0x1], 0  ;;  %s7926_s25 = smov 0   ;;  %s7928_s26 = smov 0  }
   0x4   :  { %s7930_s27 = smov 0   ;;  %s7932_s28 = smov 0  }
   0x5 LB: > { %12332 = sst [smem:[#allocation8_spill]] %s7833_s25  ;;  %s7947_s29 = sadd.s32 4294967295, %s7845_s28   ;;  %s7845_s28 = sphi %s7932_s28, %s13073_s28   ;;  %s7841_s27 = sphi %s7930_s27, %s13075_s27   ;;  %s7837_s26 = sphi %s7928_s26, %s13077_s26   ;;  %s7833_s25 = sphi %s7926_s25, %s13076_s25  }
   0x6   : > { %12333 = sst [smem:[#allocation9_spill]] %s7841_s27  ;;  %s5583_s30 = sadd.s32 4294967294, %s7845_s28  }
   0x7   : > { %s7951_s14 = sadd.s32 1, %s7845_s28   ;;  %s36_s15 = sadd.s32 1, %s7841_s27 }
   0x8   : > { %12334 = sst [smem:[#allocation10_spill]] %s7951_s14  ;;  %s33_s16 = ssub.s32 %s7845_s28, %s7951_s14 }
   0x9   : > { %p43_p0 = scmp.ne.s32.totalorder %s7841_s27, %s7837_s26  ;;  %p34_p1 = scmp.eq.s32.totalorder %s33_s16, 0 }
   0xa   : > { %p44_p2 = scmp.eq.s32.totalorder %s7845_s28, 0  ;;  %p49_p3 = scmp.ne.s32.totalorder %s7837_s26, %s7833_s25 }
   0xb   : > { %p50_p4 = scmp.eq.s32.totalorder %s7947_s29, 0  ;;  %p325_p7 = scmp.eq.s32.totalorder %s7947_s29, 1 }
   0xc   : > { %s7963_s17 = scalar_select %p34_p1, %s7841_s27, %s36_s15  }
   0xd   : > { %p45_p5 = por %p44_p2, %p43_p0  ;;  %p7965_p6 = por %p50_p4, %p49_p3 }
   0xe   : > { %12335 = sst [smem:[#allocation11_spill]] %s7963_s17  ;;  %p331_p8 = scmp.eq.s32.totalorder %s5583_s30, 1 }
   0xf   : > { %p7133_p10 = scmp.lt.s32.totalorder %s7845_s28, 2  ;;  %p7972_p11 = por %p325_p7, %p43_p0 }
  0x10   : > { %p7976_p12 = por %p331_p8, %p49_p3  ;;  %s387_s21 = sand.u32 1, %s7841_s27  }
  0x11   : > { %s12337_s19 = scalar_select %p7972_p11, 1, 0 }
  0x12   : > { %s12339_s20 = scalar_select %p7976_p12, 1, 0 }
  0x13   : > { %12338 = sst [smem:[#allocation12_spill]] %s12337_s19  ;;  %s7118_s22 = smul.u32 6400, %s7845_s28 }
  0x14   : > { %12340 = sst [smem:[#allocation13_spill]] %s12339_s20  ;;  %s7117_s23 = smul.u32 400, %s387_s21 }
  0x15   : > { %s7985_s16 = scalar_lea.hbm %s11990_s0, %s7118_s22  ;;  %p7987_p13 = pnand %p7133_p10, %p45_p5 }
  0x16   : > { %s391_s17 = scalar_lea.vmem [#allocation2], %s7117_s23  ;;  %s7993_s27 = scalar_lea.sflag [#allocation3], %s387_s21 }
  0x17   : > { %s398_s14 = sshll.u32 %s391_s17, 4  ;;  %s7749_s20 = scalar_lea.hbm %s7985_s16, 6400  ;;  %s7991_s14 = int_to_ptr.vmem [resolvable:$true] %s398_s14 }
  0x18   : > { %p7750_p0 = scmp.ne.s32.totalorder %s7985_s16, %s7749_s20  ;;  %p7751_p1 = pneg %p7987_p13 }
  0x19   : > { %s7754_s15 = scalar_lea.hbm %s11990_s0, 12800  ;;  %p7755_p4 = scmp.lt.u32.totalorder %s7985_s16, %s11990_s0 }
  0x1a   : > { %p7752_p2 = pnand %p7751_p1, %p7750_p0  ;;  %p7756_p5 = scmp.lt.u32.totalorder %s7754_s15, %s7749_s20 }
  0x1b   : > { %p7758_p8 = scmp.lt.u32.totalorder %s7749_s20, %s7985_s16 }
  0x1c   : > { %p7753_p3 = pneg %p7752_p2  ;;  %p7757_p7 = por %p7756_p5, %p7755_p4 }
  0x1e   : > { %p7759_p10 = por %p7758_p8, %p7757_p7 }
  0x20   : > { %p7760_p9 = pnand %p7759_p10, %p7753_p3 }
  0x22   : > { %7763 = shalt.err (!%p7760_p9)
}
  0x23   : > { %s7764_s17 = scalar_lea.vmem %s7991_s14, 6400  ;;  %s7847_s21 = smov [#allocation2]  }
  0x24   : > { %p7765_p0 = scmp.ne.s32.totalorder %s7991_s14, %s7764_s17  ;;  %s7769_s23 = sshll.u32 %s7847_s21, 4  ;;  %s7770_s23 = int_to_ptr.vmem [resolvable:$false] %s7769_s23 }
  0x25   : > { %s7771_s25 = scalar_lea.vmem %s7770_s23, 12800  ;;  %p7772_p11 = scmp.lt.s32.totalorder %s7991_s14, %s7770_s23 }
  0x26   : > { %p7767_p2 = pnand %p7765_p0, %p7751_p1  ;;  %p7773_p4 = scmp.lt.s32.totalorder %s7771_s25, %s7764_s17 }
  0x28   : > { %p7768_p12 = pneg %p7767_p2  ;;  %p7774_p5 = por %p7773_p4, %p7772_p11 }
  0x2a   : > { %p7775_p7 = pnand %p7774_p5, %p7768_p12 }
  0x2c   : > { %7778 = shalt.err (!%p7775_p7)
}
  0x2d   : > { %s7848_s19 = smov 128   ;;  %s7849_s20 = smov 8  }
  0x2e   : > { %7128 = dma.hbm_to_vmem [thread:$0]  (!%p7987_p13), %s7985_s16, 6400, %s7991_s14, %s7993_s27, %s7848_s19, %s7848_s19, %s7849_s20  }
  0x2f   : > { %p5587_p9 = scmp.ge.s32.totalorder %s7845_s28, 1  ;;  %p406_p1 = scmp.lt.s32.totalorder %s7845_s28, 3 }
  0x31   : > { %p407_p3 = pnand %p5587_p9, %p406_p1 }
  0x33   : > { %410 = sbr.rel (%p407_p3) target bundleno = 2119 (0x847), region = 72 }
  0x3a   : > { %s8024_s22 = sand.u32 1, %s7837_s26  }
  0x3b   : > { %s7119_s24 = smul.u32 400, %s8024_s22  ;;  %s413_s15 = scalar_lea.sflag [#allocation3], %s8024_s22 }
  0x3d   : > { %s8030_s17 = scalar_lea.vmem [#allocation2], %s7119_s24 }
  0x3e   : > { %7824 = dma.done.wait (%p7965_p6), %s413_s15, 6400  }
  0x3f   : > { %7826 = vsyncadd (%p7965_p6), %s413_s15, 4294960896  ;;  %v509_v0 = vld [vmem:[%s11991_s1] sm:$0xff]  ;;  %v510_v1 = vld [vmem:[%s11991_s1 + $0x8] sm:$0xff]  ;;  %vm1523_vm0 = vcmask 523264   ;;  %vm2556_vm2 = vcmask 130048   ;;  %vm7852_vm3 = vmmov 0  }
  0x40   : > { %v511_v2 = vld [vmem:[%s11991_s1 + $0x10] sm:$0xff]  ;;  %v6706_v3 = vpack.c.bf16 %v510_v1, %v509_v0  ;;  %v512_v4 = vld [vmem:[%s11991_s1 + $0x18] sm:$0xff]  ;;  %v513_v6 = vld [vmem:[%s11991_s1 + $0x20] sm:$0xff]  ;;  %vm5262_vm4 = vcmask 64512   ;;  %s11805_s21 = scalar_lea.vmem [#allocation5], %s7119_s24  ;;  %s7120_s24 = smul.u32 6400, %s7947_s29 }
  0x41   : > { %v6710_v5 = vpack.c.bf16 %v512_v4, %v511_v2  ;;  %v514_v7 = vld [vmem:[%s11991_s1 + $0x28] sm:$0xff]  ;;  %v8055_v9 = vld [vmem:[%s8030_s17] sm:$0xff]  ;;  %v516_v11 = vld [vmem:[%s11991_s1 + $0x38] sm:$0xff]  ;;  %s13067_s29 = sld [smem:[#allocation12_spill]]  ;;  %s5497_s18 = scalar_lea.sflag [#allocation4], %s8024_s22 }
  0x42   : > { %6707 = vmatprep.subr.bf16.mxu0 %v6706_v3  ;;  %v6714_v8 = vpack.c.bf16 %v514_v7, %v513_v6  ;;  %v515_v10 = vld [vmem:[%s11991_s1 + $0x30] sm:$0xff]  ;;  %6286 = vmatprep.mubr.f32.mxu0 %v8055_v9  ;;  %v517_v13 = vld [vmem:[%s11991_s1 + $0x40] sm:$0xff]  ;;  %v518_v14 = vld [vmem:[%s11991_s1 + $0x48] sm:$0xff]  ;;  %s11924_s19 = scalar_lea.hbm %s12003_s13, %s7120_s24  ;;  %s7853_s15 = smov [#allocation5]  }
  0x43   : > { %6709 = vmatpush3.bf16.msra.mxu0 %v6706_v3  ;;  %6393 = vmatprep.mubr.f32.mxu1 %v8055_v9  ;;  %v6718_v12 = vpack.c.bf16 %v516_v11, %v515_v10  ;;  %v6722_v15 = vpack.c.bf16 %v518_v14, %v517_v13  ;;  %v519_v16 = vld [vmem:[%s11991_s1 + $0x50] sm:$0xff]  ;;  %v520_v17 = vld [vmem:[%s11991_s1 + $0x58] sm:$0xff]  ;;  %v521_v19 = vld [vmem:[%s11991_s1 + $0x60] sm:$0xff]  ;;  %s7783_s27 = sshll.u32 %s7853_s15, 4  ;;  %s7784_s27 = int_to_ptr.vmem [resolvable:$false] %s7783_s27 }
  0x44   : > { %6711 = vmatprep.subr.bf16.mxu0 %v6710_v5  ;;  %v6726_v18 = vpack.c.bf16 %v520_v17, %v519_v16  ;;  %v522_v20 = vld [vmem:[%s11991_s1 + $0x68] sm:$0xff]  ;;  %v523_v22 = vld [vmem:[%s11991_s1 + $0x70] sm:$0xff]  ;;  %v524_v23 = vld [vmem:[%s11991_s1 + $0x78] sm:$0xff]  ;;  %s7785_s14 = scalar_lea.vmem %s7784_s27, 12800 }
  0x45   : > { %v6730_v21 = vpack.c.bf16 %v522_v20, %v521_v19  ;;  %v6734_v24 = vpack.c.bf16 %v524_v23, %v523_v22  ;;  %v1185_v25 = vld [vmem:[%s11995_s5] sm:$0xff]  ;;  %v1186_v26 = vld [vmem:[%s11995_s5 + $0x8] sm:$0xff]  ;;  %v849_v30 = vld [vmem:[%s11993_s3 + $0x10] sm:$0xff] }
  0x46   : > { %v847_v27 = vld [vmem:[%s11993_s3] sm:$0xff]  ;;  %v848_v28 = vld [vmem:[%s11993_s3 + $0x8] sm:$0xff]  ;;  %v850_v31 = vld [vmem:[%s11993_s3 + $0x18] sm:$0xff]  ;;  %v6770_v32 = vpack.c.bf16 %v1186_v26, %v1185_v25 }
  0x47   : > { %6713 = vmatpush3.bf16.msra.mxu0 %v6710_v5  ;;  %v6738_v29 = vpack.c.bf16 %v848_v28, %v847_v27  ;;  %v1187_v33 = vld [vmem:[%s11995_s5 + $0x10] sm:$0xff]  ;;  %v6742_v34 = vpack.c.bf16 %v850_v31, %v849_v30  ;;  %v1188_v35 = vld [vmem:[%s11995_s5 + $0x18] sm:$0xff]  ;;  %v851_v36 = vld [vmem:[%s11993_s3 + $0x20] sm:$0xff]  ;;  %p13068_p11 = scmp.ne.s32.totalorder %s13067_s29, 0 }
  0x48   : > { %6715 = vmatprep.subr.bf16.mxu0 %v6714_v8  ;;  %v852_v37 = vld [vmem:[%s11993_s3 + $0x28] sm:$0xff]  ;;  %v8123_v39 = vld [vmem:[%s8030_s17 + $0x10] sm:$0xff]  ;;  %v6774_v40 = vpack.c.bf16 %v1188_v35, %v1187_v33  ;;  %v854_v45 = vld [vmem:[%s11993_s3 + $0x38] sm:$0xff] }
  0x49   : > { %6739 = vmatprep.subr.bf16.mxu1 %v6738_v29  ;;  %v8120_v38 = vld [vmem:[%s8030_s17 + $0x8] sm:$0xff]  ;;  %v1189_v41 = vld [vmem:[%s11995_s5 + $0x20] sm:$0xff]  ;;  %v6746_v42 = vpack.c.bf16 %v852_v37, %v851_v36  ;;  %v853_v44 = vld [vmem:[%s11993_s3 + $0x30] sm:$0xff] }
  0x4a   : > { %6741 = vmatpush3.bf16.msra.mxu1 %v6738_v29  ;;  %v1190_v43 = vld [vmem:[%s11995_s5 + $0x28] sm:$0xff]  ;;  %v8143_v47 = vld [vmem:[%s8030_s17 + $0x20] sm:$0xff]  ;;  %v6750_v50 = vpack.c.bf16 %v854_v45, %v853_v44  ;;  %v1192_v51 = vld [vmem:[%s11995_s5 + $0x38] sm:$0xff] }
  0x4b   : > { %6717 = vmatpush3.bf16.msra.mxu0 %v6714_v8  ;;  %6743 = vmatprep.subr.bf16.mxu1 %v6742_v34  ;;  %v8140_v46 = vld [vmem:[%s8030_s17 + $0x18] sm:$0xff]  ;;  %v6778_v48 = vpack.c.bf16 %v1190_v43, %v1189_v41  ;;  %v1191_v49 = vld [vmem:[%s11995_s5 + $0x30] sm:$0xff]  ;;  %v855_v52 = vld [vmem:[%s11993_s3 + $0x40] sm:$0xff] }
  0x4c   : > { %6719 = vmatprep.subr.bf16.mxu0 %v6718_v12  ;;  %v856_v53 = vld [vmem:[%s11993_s3 + $0x48] sm:$0xff]  ;;  %v8163_v55 = vld [vmem:[%s8030_s17 + $0x30] sm:$0xff]  ;;  %v6782_v56 = vpack.c.bf16 %v1192_v51, %v1191_v49  ;;  %v858_v61 = vld [vmem:[%s11993_s3 + $0x58] sm:$0xff] }
  0x4d   : > { %v8160_v54 = vld [vmem:[%s8030_s17 + $0x28] sm:$0xff]  ;;  %v1193_v57 = vld [vmem:[%s11995_s5 + $0x40] sm:$0xff]  ;;  %v6754_v58 = vpack.c.bf16 %v856_v53, %v855_v52  ;;  %v857_v60 = vld [vmem:[%s11993_s3 + $0x50] sm:$0xff] }
  0x4e   : > { %6745 = vmatpush3.bf16.msra.mxu1 %v6742_v34  ;;  %v1194_v59 = vld [vmem:[%s11995_s5 + $0x48] sm:$0xff]  ;;  %v8183_v63 = vld [vmem:[%s8030_s17 + $0x40] sm:$0xff]  ;;  %v6758_v2 = vpack.c.bf16 %v858_v61, %v857_v60  ;;  %v1196_v3 = vld [vmem:[%s11995_s5 + $0x58] sm:$0xff] }
  0x4f   : > { %6721 = vmatpush3.bf16.msra.mxu0 %v6718_v12  ;;  %6747 = vmatprep.subr.bf16.mxu1 %v6746_v42  ;;  %v8180_v62 = vld [vmem:[%s8030_s17 + $0x38] sm:$0xff]  ;;  %v6786_v0 = vpack.c.bf16 %v1194_v59, %v1193_v57  ;;  %v1195_v1 = vld [vmem:[%s11995_s5 + $0x50] sm:$0xff]  ;;  %v859_v4 = vld [vmem:[%s11993_s3 + $0x60] sm:$0xff] }
  0x50   : > { %6723 = vmatprep.subr.bf16.mxu0 %v6722_v15  ;;  %v860_v5 = vld [vmem:[%s11993_s3 + $0x68] sm:$0xff]  ;;  %v8203_v7 = vld [vmem:[%s8030_s17 + $0x50] sm:$0xff]  ;;  %v6790_v8 = vpack.c.bf16 %v1196_v3, %v1195_v1  ;;  %v862_v14 = vld [vmem:[%s11993_s3 + $0x78] sm:$0xff] }
  0x51   : > { %v8200_v6 = vld [vmem:[%s8030_s17 + $0x48] sm:$0xff]  ;;  %v1197_v10 = vld [vmem:[%s11995_s5 + $0x60] sm:$0xff]  ;;  %v6762_v11 = vpack.c.bf16 %v860_v5, %v859_v4  ;;  %v861_v13 = vld [vmem:[%s11993_s3 + $0x70] sm:$0xff] }
  0x52   : > { %6749 = vmatpush3.bf16.msra.mxu1 %v6746_v42  ;;  %v1198_v12 = vld [vmem:[%s11995_s5 + $0x68] sm:$0xff]  ;;  %v8223_v16 = vld [vmem:[%s8030_s17 + $0x60] sm:$0xff]  ;;  %v1200_v20 = vld [vmem:[%s11995_s5 + $0x78] sm:$0xff] }
  0x53   : > { %6725 = vmatpush3.bf16.msra.mxu0 %v6722_v15  ;;  %6751 = vmatprep.subr.bf16.mxu1 %v6750_v50  ;;  %v8220_v15 = vld [vmem:[%s8030_s17 + $0x58] sm:$0xff]  ;;  %v6794_v17 = vpack.c.bf16 %v1198_v12, %v1197_v10  ;;  %v1199_v19 = vld [vmem:[%s11995_s5 + $0x70] sm:$0xff]  ;;  %v8252_v26 = vld [vmem:[%s8030_s17 + $0x88] sm:$0xff] }
  0x54   : > { %6727 = vmatprep.subr.bf16.mxu0 %v6726_v18  ;;  %v8237_v22 = vld [vmem:[%s8030_s17 + $0x70] sm:$0xff]  ;;  %v6798_v23 = vpack.c.bf16 %v1200_v20, %v1199_v19  ;;  %v8245_v25 = vld [vmem:[%s8030_s17 + $0x80] sm:$0xff]  ;;  %v8262_v28 = vld [vmem:[%s8030_s17 + $0x98] sm:$0xff] }
  0x55   : > { %v8255_v27 = vld [vmem:[%s8030_s17 + $0x90] sm:$0xff]  ;;  %v8265_v29 = vld [vmem:[%s8030_s17 + $0xa0] sm:$0xff]  ;;  %v8272_v30 = vld [vmem:[%s8030_s17 + $0xa8] sm:$0xff] }
  0x56   : > { %6753 = vmatpush3.bf16.msra.mxu1 %v6750_v50  ;;  %v8275_v31 = vld [vmem:[%s8030_s17 + $0xb0] sm:$0xff]  ;;  %v8285_v33 = vld [vmem:[%s8030_s17 + $0xc0] sm:$0xff]  ;;  %v8292_v34 = vld [vmem:[%s8030_s17 + $0xc8] sm:$0xff] }
  0x57   : > { %6729 = vmatpush3.bf16.msra.mxu0 %v6726_v18  ;;  %6755 = vmatprep.subr.bf16.mxu1 %v6754_v58  ;;  %v6766_v18 = vpack.c.bf16 %v862_v14, %v861_v13  ;;  %v8295_v35 = vld [vmem:[%s8030_s17 + $0xd0] sm:$0xff]  ;;  %v8302_v36 = vld [vmem:[%s8030_s17 + $0xd8] sm:$0xff]  ;;  %v8305_v37 = vld [vmem:[%s8030_s17 + $0xe0] sm:$0xff] }
  0x58   : > { %6731 = vmatprep.subr.bf16.mxu0 %v6730_v21  ;;  %v8315_v41 = vld [vmem:[%s8030_s17 + $0xf0] sm:$0xff]  ;;  %v8322_v42 = vld [vmem:[%s8030_s17 + $0xf8] sm:$0xff]  ;;  %v8325_v43 = vld [vmem:[%s8030_s17 + $0x100] sm:$0xff] }
  0x59   : > { %v8332_v44 = vld [vmem:[%s8030_s17 + $0x108] sm:$0xff]  ;;  %v8335_v45 = vld [vmem:[%s8030_s17 + $0x110] sm:$0xff]  ;;  %v8345_v49 = vld [vmem:[%s8030_s17 + $0x120] sm:$0xff] }
  0x5a   : > { %6757 = vmatpush3.bf16.msra.mxu1 %v6754_v58  ;;  %v8352_v50 = vld [vmem:[%s8030_s17 + $0x128] sm:$0xff]  ;;  %v8355_v51 = vld [vmem:[%s8030_s17 + $0x130] sm:$0xff]  ;;  %v8362_v52 = vld [vmem:[%s8030_s17 + $0x138] sm:$0xff] }
  0x5b   : > { %6733 = vmatpush3.bf16.msra.mxu0 %v6730_v21  ;;  %6759 = vmatprep.subr.bf16.mxu1 %v6758_v2  ;;  %v8234_v21 = vld [vmem:[%s8030_s17 + $0x68] sm:$0xff]  ;;  %v8365_v53 = vld [vmem:[%s8030_s17 + $0x140] sm:$0xff]  ;;  %v8375_v57 = vld [vmem:[%s8030_s17 + $0x150] sm:$0xff] }
  0x5c   : > { %6735 = vmatprep.subr.bf16.mxu0 %v6734_v24  ;;  %v8382_v58 = vld [vmem:[%s8030_s17 + $0x158] sm:$0xff]  ;;  %v8385_v59 = vld [vmem:[%s8030_s17 + $0x160] sm:$0xff]  ;;  %v8392_v60 = vld [vmem:[%s8030_s17 + $0x168] sm:$0xff] }
  0x5d   : > { %v8395_v61 = vld [vmem:[%s8030_s17 + $0x170] sm:$0xff]  ;;  %v8405_v1 = vld [vmem:[%s8030_s17 + $0x180] sm:$0xff]  ;;  %vm8785_vm1 = vmpackc.low %vm1523_vm0, %vm1523_vm0 }
  0x5e   : > { %6761 = vmatpush3.bf16.msra.mxu1 %v6758_v2  ;;  %v8412_v2 = vld [vmem:[%s8030_s17 + $0x188] sm:$0xff] }
  0x5f   : > { %6737 = vmatpush3.bf16.msra.mxu0 %v6734_v24  ;;  %6763 = vmatprep.subr.bf16.mxu1 %v6762_v11  ;;  %v8242_v24 = vld [vmem:[%s8030_s17 + $0x78] sm:$0xff] }
  0x60   : > { %6771 = vmatprep.subr.bf16.mxu0 %v6770_v32 }
  0x62   : > { %6287 = vmatmul.mubr.f32.vlgmr.msra.gmra.mrb[0].mxu0 %v8120_v38  ;;  %6765 = vmatpush3.bf16.msra.mxu1 %v6762_v11 }
  0x63   : > { %6289 = vmatprep.mubr.f32.mxu0 %v8123_v39  ;;  %6773 = vmatpush3.bf16.msra.mxu0 %v6770_v32  ;;  %v8282_v32 = vld [vmem:[%s8030_s17 + $0xb8] sm:$0xff] }
  0x64   : > { %6775 = vmatprep.subr.bf16.mxu0 %v6774_v40  ;;  %6767 = vmatprep.subr.bf16.mxu1 %v6766_v18 }
  0x66   : > { %6290 = vmatmul.mubr.f32.gmra.mrb[2].mxu0 %v8140_v46  ;;  %6769 = vmatpush3.bf16.msra.mxu1 %v6766_v18 }
  0x67   : > { %6292 = vmatprep.mubr.f32.mxu0 %v8143_v47  ;;  %6777 = vmatpush3.bf16.msra.mxu0 %v6774_v40  ;;  %v8312_v40 = vld [vmem:[%s8030_s17 + $0xe8] sm:$0xff] }
  0x68   : > { %6779 = vmatprep.subr.bf16.mxu0 %v6778_v48 }
  0x69   : > { %6394 = vmatmul.mubr.f32.vlgmr.msra.gmra.mrb[0].mxu1 %v8120_v38 }
  0x6a   : > { %6293 = vmatmul.mubr.f32.gmra.mrb[4].mxu0 %v8160_v54  ;;  %6396 = vmatprep.mubr.f32.mxu1 %v8123_v39 }
  0x6b   : > { %6295 = vmatprep.mubr.f32.mxu0 %v8163_v55  ;;  %6781 = vmatpush3.bf16.msra.mxu0 %v6778_v48  ;;  %v8342_v48 = vld [vmem:[%s8030_s17 + $0x118] sm:$0xff] }
  0x6c   : > { %6783 = vmatprep.subr.bf16.mxu0 %v6782_v56 }
  0x6d   : > { %6397 = vmatmul.mubr.f32.gmra.mrb[2].mxu1 %v8140_v46 }
  0x6e   : > { %6296 = vmatmul.mubr.f32.gmra.mrb[6].mxu0 %v8180_v62  ;;  %6399 = vmatprep.mubr.f32.mxu1 %v8143_v47 }
  0x6f   : > { %6298 = vmatprep.mubr.f32.mxu0 %v8183_v63  ;;  %6785 = vmatpush3.bf16.msra.mxu0 %v6782_v56  ;;  %v8372_v56 = vld [vmem:[%s8030_s17 + $0x148] sm:$0xff] }
  0x70   : > { %6787 = vmatprep.subr.bf16.mxu0 %v6786_v0 }
  0x71   : > { %6400 = vmatmul.mubr.f32.gmra.mrb[4].mxu1 %v8160_v54 }
  0x72   : > { %6299 = vmatmul.mubr.f32.gmra.mrb[8].mxu0 %v8200_v6  ;;  %6402 = vmatprep.mubr.f32.mxu1 %v8163_v55 }
  0x73   : > { %6301 = vmatprep.mubr.f32.mxu0 %v8203_v7  ;;  %6789 = vmatpush3.bf16.msra.mxu0 %v6786_v0  ;;  %v8402_v0 = vld [vmem:[%s8030_s17 + $0x178] sm:$0xff] }
  0x74   : > { %6791 = vmatprep.subr.bf16.mxu0 %v6790_v8 }
  0x75   : > { %6403 = vmatmul.mubr.f32.gmra.mrb[6].mxu1 %v8180_v62 }
  0x76   : > { %6302 = vmatmul.mubr.f32.gmra.mrb[10].mxu0 %v8220_v15  ;;  %6405 = vmatprep.mubr.f32.mxu1 %v8183_v63 }
  0x77   : > { %6304 = vmatprep.mubr.f32.mxu0 %v8223_v16  ;;  %6793 = vmatpush3.bf16.msra.mxu0 %v6790_v8 }
  0x78   : > { %6795 = vmatprep.subr.bf16.mxu0 %v6794_v17 }
  0x79   : > { %6406 = vmatmul.mubr.f32.gmra.mrb[8].mxu1 %v8200_v6 }
  0x7a   : > { %6305 = vmatmul.mubr.f32.gmra.mrb[12].mxu0 %v8234_v21  ;;  %6408 = vmatprep.mubr.f32.mxu1 %v8203_v7 }
  0x7b   : > { %6307 = vmatprep.mubr.f32.mxu0 %v8237_v22  ;;  %6797 = vmatpush3.bf16.msra.mxu0 %v6794_v17 }
  0x7c   : > { %6799 = vmatprep.subr.bf16.mxu0 %v6798_v23 }
  0x7d   : > { %6409 = vmatmul.mubr.f32.gmra.mrb[10].mxu1 %v8220_v15 }
  0x7e   : > { %6308 = vmatmul.mubr.f32.gmra.mrb[14].mxu0 %v8242_v24  ;;  %6411 = vmatprep.mubr.f32.mxu1 %v8223_v16 }
  0x7f   : > { %6310 = vmatprep.mubr.f32.mxu0 %v8245_v25  ;;  %6801 = vmatpush3.bf16.msra.mxu0 %v6798_v23 }
  0x81   : > { %6412 = vmatmul.mubr.f32.gmra.mrb[12].mxu1 %v8234_v21 }
  0x82   : > { %6311 = vmatmul.mubr.f32.gmra.mrb[16].mxu0 %v8252_v26  ;;  %6414 = vmatprep.mubr.f32.mxu1 %v8237_v22 }
  0x83   : > { %6313 = vmatprep.mubr.f32.mxu0 %v8255_v27 }
  0x85   : > { %6415 = vmatmul.mubr.f32.gmra.mrb[14].mxu1 %v8242_v24 }
  0x86   : > { %6314 = vmatmul.mubr.f32.gmra.mrb[18].mxu0 %v8262_v28  ;;  %6417 = vmatprep.mubr.f32.mxu1 %v8245_v25 }
  0x87   : > { %6316 = vmatprep.mubr.f32.mxu0 %v8265_v29 }
  0x89   : > { %6418 = vmatmul.mubr.f32.gmra.mrb[16].mxu1 %v8252_v26 }
  0x8a   : > { %6317 = vmatmul.mubr.f32.gmra.mrb[20].mxu0 %v8272_v30  ;;  %6420 = vmatprep.mubr.f32.mxu1 %v8255_v27 }
  0x8b   : > { %6319 = vmatprep.mubr.f32.mxu0 %v8275_v31 }
  0x8d   : > { %6421 = vmatmul.mubr.f32.gmra.mrb[18].mxu1 %v8262_v28 }
  0x8e   : > { %6320 = vmatmul.mubr.f32.gmra.mrb[22].mxu0 %v8282_v32  ;;  %6423 = vmatprep.mubr.f32.mxu1 %v8265_v29 }
  0x8f   : > { %6322 = vmatprep.mubr.f32.mxu0 %v8285_v33 }
  0x91   : > { %6424 = vmatmul.mubr.f32.gmra.mrb[20].mxu1 %v8272_v30 }
  0x92   : > { %6323 = vmatmul.mubr.f32.gmra.mrb[24].mxu0 %v8292_v34  ;;  %6426 = vmatprep.mubr.f32.mxu1 %v8275_v31 }
  0x93   : > { %6325 = vmatprep.mubr.f32.mxu0 %v8295_v35 }
  0x95   : > { %6427 = vmatmul.mubr.f32.gmra.mrb[22].mxu1 %v8282_v32 }
  0x96   : > { %6326 = vmatmul.mubr.f32.gmra.mrb[26].mxu0 %v8302_v36  ;;  %6429 = vmatprep.mubr.f32.mxu1 %v8285_v33 }
  0x97   : > { %6328 = vmatprep.mubr.f32.mxu0 %v8305_v37 }
  0x99   : > { %6430 = vmatmul.mubr.f32.gmra.mrb[24].mxu1 %v8292_v34 }
  0x9a   : > { %6329 = vmatmul.mubr.f32.gmra.mrb[28].mxu0 %v8312_v40  ;;  %6432 = vmatprep.mubr.f32.mxu1 %v8295_v35 }
  0x9b   : > { %6331 = vmatprep.mubr.f32.mxu0 %v8315_v41 }
  0x9d   : > { %6433 = vmatmul.mubr.f32.gmra.mrb[26].mxu1 %v8302_v36 }
  0x9e   : > { %6332 = vmatmul.mubr.f32.gmra.mrb[30].mxu0 %v8322_v42  ;;  %6435 = vmatprep.mubr.f32.mxu1 %v8305_v37 }
  0x9f   : > { %6334 = vmatprep.mubr.f32.mxu0 %v8325_v43 }
  0xa1   : > { %6436 = vmatmul.mubr.f32.gmra.mrb[28].mxu1 %v8312_v40 }
  0xa2   : > { %6335 = vmatmul.mubr.f32.gmra.mrb[32].mxu0 %v8332_v44  ;;  %6438 = vmatprep.mubr.f32.mxu1 %v8315_v41 }
  0xa3   : > { %6337 = vmatprep.mubr.f32.mxu0 %v8335_v45 }
  0xa5   : > { %6439 = vmatmul.mubr.f32.gmra.mrb[30].mxu1 %v8322_v42 }
  0xa6   : > { %6338 = vmatmul.mubr.f32.gmra.mrb[34].mxu0 %v8342_v48  ;;  %6441 = vmatprep.mubr.f32.mxu1 %v8325_v43 }
  0xa7   : > { %6340 = vmatprep.mubr.f32.mxu0 %v8345_v49 }
  0xa9   : > { %6442 = vmatmul.mubr.f32.gmra.mrb[32].mxu1 %v8332_v44 }
  0xaa   : > { %6341 = vmatmul.mubr.f32.gmra.mrb[36].mxu0 %v8352_v50  ;;  %6444 = vmatprep.mubr.f32.mxu1 %v8335_v45 }
  0xab   : > { %6343 = vmatprep.mubr.f32.mxu0 %v8355_v51 }
  0xad   : > { %6445 = vmatmul.mubr.f32.gmra.mrb[34].mxu1 %v8342_v48 }
  0xae   : > { %6344 = vmatmul.mubr.f32.gmra.mrb[38].mxu0 %v8362_v52  ;;  %6447 = vmatprep.mubr.f32.mxu1 %v8345_v49 }
  0xaf   : > { %6346 = vmatprep.mubr.f32.mxu0 %v8365_v53 }
  0xb1   : > { %6448 = vmatmul.mubr.f32.gmra.mrb[36].mxu1 %v8352_v50 }
  0xb2   : > { %6347 = vmatmul.mubr.f32.gmra.mrb[40].mxu0 %v8372_v56  ;;  %6450 = vmatprep.mubr.f32.mxu1 %v8355_v51 }
  0xb3   : > { %6349 = vmatprep.mubr.f32.mxu0 %v8375_v57 }
  0xb5   : > { %6451 = vmatmul.mubr.f32.gmra.mrb[38].mxu1 %v8362_v52 }
  0xb6   : > { %6350 = vmatmul.mubr.f32.gmra.mrb[42].mxu0 %v8382_v58  ;;  %6453 = vmatprep.mubr.f32.mxu1 %v8365_v53 }
  0xb7   : > { %6352 = vmatprep.mubr.f32.mxu0 %v8385_v59 }
  0xb9   : > { %6454 = vmatmul.mubr.f32.gmra.mrb[40].mxu1 %v8372_v56 }
  0xba   : > { %6353 = vmatmul.mubr.f32.gmra.mrb[44].mxu0 %v8392_v60  ;;  %6456 = vmatprep.mubr.f32.mxu1 %v8375_v57 }
  0xbb   : > { %6355 = vmatprep.mubr.f32.mxu0 %v8395_v61 }
  0xbd   : > { %6457 = vmatmul.mubr.f32.gmra.mrb[42].mxu1 %v8382_v58 }
  0xbe   : > { %6356 = vmatmul.mubr.f32.gmra.mrb[46].mxu0 %v8402_v0  ;;  %6459 = vmatprep.mubr.f32.mxu1 %v8385_v59 }
  0xbf   : > { %6358 = vmatprep.mubr.f32.mxu0 %v8405_v1 }
  0xc1   : > { %6460 = vmatmul.mubr.f32.gmra.mrb[44].mxu1 %v8392_v60 }
  0xc2   : > { %6359 = vmatmul.mubr.f32.gmra.mrb[48].mxu0 %v8412_v2  ;;  %6462 = vmatprep.mubr.f32.mxu1 %v8395_v61 }
  0xc3   : > { %6500 = vmatprep.mubr.f32.mxu0 %v8055_v9  ;;  %v8483_v9 = vld [vmem:[%s11992_s2] ss:$0 sm:$0xff] }
  0xc5   : > { %6463 = vmatmul.mubr.f32.gmra.mrb[46].mxu1 %v8402_v0 }
  0xc6   : > { %6501 = vmatmul.mubr.f32.vlgmr.msra.gmra.mrb[50].mxu0 %v8120_v38  ;;  %6465 = vmatprep.mubr.f32.mxu1 %v8405_v1 }
  0xc7   : > { %6503 = vmatprep.mubr.f32.mxu0 %v8123_v39 }
  0xc9   : > { %6466 = vmatmul.mubr.f32.gmra.mrb[48].mxu1 %v8412_v2 }
  0xca   : > { %6504 = vmatmul.mubr.f32.gmra.mrb[52].mxu0 %v8140_v46 }
  0xcb   : > { %6506 = vmatprep.mubr.f32.mxu0 %v8143_v47 }
  0xce   : > { %6507 = vmatmul.mubr.f32.gmra.mrb[54].mxu0 %v8160_v54 }
  0xcf   : > { %6509 = vmatprep.mubr.f32.mxu0 %v8163_v55 }
  0xd2   : > { %6510 = vmatmul.mubr.f32.gmra.mrb[56].mxu0 %v8180_v62 }
  0xd3   : > { %6512 = vmatprep.mubr.f32.mxu0 %v8183_v63 }
  0xd6   : > { %6513 = vmatmul.mubr.f32.gmra.mrb[58].mxu0 %v8200_v6 }
  0xd7   : > { %6515 = vmatprep.mubr.f32.mxu0 %v8203_v7 }
  0xda   : > { %6516 = vmatmul.mubr.f32.gmra.mrb[60].mxu0 %v8220_v15 }
  0xdb   : > { %6518 = vmatprep.mubr.f32.mxu0 %v8223_v16 }
  0xde   : > { %6519 = vmatmul.mubr.f32.gmra.mrb[62].mxu0 %v8234_v21 }
  0xdf   : > { %6521 = vmatprep.mubr.f32.mxu0 %v8237_v22 }
  0xe2   : > { %6522 = vmatmul.mubr.f32.gmra.mrb[64].mxu0 %v8242_v24 }
  0xe3   : > { %6524 = vmatprep.mubr.f32.mxu0 %v8245_v25 }
  0xe6   : > { %6525 = vmatmul.mubr.f32.gmra.mrb[66].mxu0 %v8252_v26 }
  0xe7   : > { %6527 = vmatprep.mubr.f32.mxu0 %v8255_v27 }
  0xea   : > { %6528 = vmatmul.mubr.f32.gmra.mrb[68].mxu0 %v8262_v28 }
  0xeb   : > { %6530 = vmatprep.mubr.f32.mxu0 %v8265_v29 }
  0xee   : > { %6531 = vmatmul.mubr.f32.gmra.mrb[70].mxu0 %v8272_v30 }
  0xef   : > { %6533 = vmatprep.mubr.f32.mxu0 %v8275_v31 }
  0xf2   : > { %6534 = vmatmul.mubr.f32.gmra.mrb[72].mxu0 %v8282_v32 }
  0xf3   : > { %6536 = vmatprep.mubr.f32.mxu0 %v8285_v33 }
  0xf6   : > { %6537 = vmatmul.mubr.f32.gmra.mrb[74].mxu0 %v8292_v34 }
  0xf7   : > { %6539 = vmatprep.mubr.f32.mxu0 %v8295_v35 }
  0xfa   : > { %6540 = vmatmul.mubr.f32.gmra.mrb[76].mxu0 %v8302_v36 }
  0xfb   : > { %6542 = vmatprep.mubr.f32.mxu0 %v8305_v37 }
  0xfe   : > { %6543 = vmatmul.mubr.f32.gmra.mrb[78].mxu0 %v8312_v40 }
  0xff   : > { %6545 = vmatprep.mubr.f32.mxu0 %v8315_v41 }
 0x102   : > { %6546 = vmatmul.mubr.f32.gmra.mrb[80].mxu0 %v8322_v42 }
 0x103   : > { %6548 = vmatprep.mubr.f32.mxu0 %v8325_v43 }
 0x106   : > { %6549 = vmatmul.mubr.f32.gmra.mrb[82].mxu0 %v8332_v44 }
 0x107   : > { %6551 = vmatprep.mubr.f32.mxu0 %v8335_v45 }
 0x10a   : > { %6552 = vmatmul.mubr.f32.gmra.mrb[84].mxu0 %v8342_v48 }
 0x10b   : > { %6554 = vmatprep.mubr.f32.mxu0 %v8345_v49 }
 0x10e   : > { %6555 = vmatmul.mubr.f32.gmra.mrb[86].mxu0 %v8352_v50 }
 0x10f   : > { %6557 = vmatprep.mubr.f32.mxu0 %v8355_v51 }
 0x112   : > { %6558 = vmatmul.mubr.f32.gmra.mrb[88].mxu0 %v8362_v52 }
 0x113   : > { %6560 = vmatprep.mubr.f32.mxu0 %v8365_v53 }
 0x116   : > { %6561 = vmatmul.mubr.f32.gmra.mrb[90].mxu0 %v8372_v56 }
 0x117   : > { %6563 = vmatprep.mubr.f32.mxu0 %v8375_v57  ;;  %v8576_v57 = vld [vmem:[%s11994_s4] ss:$0 sm:$0xff] }
 0x11a   : > { %6564 = vmatmul.mubr.f32.gmra.mrb[92].mxu0 %v8382_v58 }
 0x11b   : > { %6566 = vmatprep.mubr.f32.mxu0 %v8385_v59 }
 0x11e   : > { %6567 = vmatmul.mubr.f32.gmra.mrb[94].mxu0 %v8392_v60 }
 0x11f   : > { %6569 = vmatprep.mubr.f32.mxu0 %v8395_v61 }
 0x122   : > { %6570 = vmatmul.mubr.f32.gmra.mrb[96].mxu0 %v8402_v0 }
 0x123   : > { %6572 = vmatprep.mubr.f32.mxu0 %v8405_v1 }
 0x126   : > { %6573 = vmatmul.mubr.f32.gmra.mrb[98].mxu0 %v8412_v2 }
 0x135   : > { %v6288_v38 = vpop.f32.mrb[0].mxu0 }
 0x136   : > { %v8486_v39 = vadd.f32 %v6288_v38, %v8483_v9  ;;  %v598_v46 = vpop.f32.mrb[1].mxu0 }
 0x137   : > { %v8489_v47 = vadd.f32 %v8483_v9, %v598_v46 }
 0x139   : > { %v6291_v55 = vpop.f32.mrb[2].mxu0 }
 0x13a   : > { %v8494_v62 = vadd.f32 %v6291_v55, %v8483_v9  ;;  %v608_v63 = vpop.f32.mrb[3].mxu0 }
 0x13b   : > { %v8497_v3 = vadd.f32 %v8483_v9, %v608_v63 }
 0x13c   : > { %v8571_v56 = vpop.f32.mrb[0].mxu1 }
 0x13d   : > { %v6294_v5 = vpop.f32.mrb[4].mxu0  ;;  %v936_v60 = vpop.f32.mrb[1].mxu1 }
 0x13e   : > { %v8502_v6 = vadd.f32 %v6294_v5, %v8483_v9  ;;  %v618_v7 = vpop.f32.mrb[5].mxu0  ;;  %v8584_v1 = vadd.f32 %v8576_v57, %v936_v60 }
 0x13f   : > { %v8505_v8 = vadd.f32 %v8483_v9, %v618_v7 }
 0x140   : > { %v8586_v2 = vpop.f32.mrb[2].mxu1  ;;  %6077 = vmatprep.mubr.msk.f32.mxu0 %vm1523_vm0, %v8584_v1 }
 0x141   : > { %v6297_v11 = vpop.f32.mrb[6].mxu0  ;;  %v8591_v46 = vpop.f32.mrb[3].mxu1 }
 0x142   : > { %v8510_v12 = vadd.f32 %v6297_v11, %v8483_v9  ;;  %v628_v13 = vpop.f32.mrb[7].mxu0 }
 0x143   : > { %v8513_v14 = vadd.f32 %v8483_v9, %v628_v13 }
 0x144   : > { %v8593_v55 = vpop.f32.mrb[4].mxu1 }
 0x145   : > { %v6300_v16 = vpop.f32.mrb[8].mxu0  ;;  %v8599_v7 = vpop.f32.mrb[5].mxu1 }
 0x146   : > { %v8518_v17 = vadd.f32 %v6300_v16, %v8483_v9  ;;  %v638_v18 = vpop.f32.mrb[9].mxu0 }
 0x147   : > { %v8521_v19 = vadd.f32 %v8483_v9, %v638_v18 }
 0x148   : > { %v8607_v18 = vpop.f32.mrb[6].mxu1 }
 0x149   : > { %v6303_v21 = vpop.f32.mrb[10].mxu0 }
 0x14a   : > { %v8526_v22 = vadd.f32 %v6303_v21, %v8483_v9  ;;  %v648_v23 = vpop.f32.mrb[11].mxu0 }
 0x14b   : > { %v8529_v24 = vadd.f32 %v8483_v9, %v648_v23 }
 0x14d   : > { %v6306_v26 = vpop.f32.mrb[12].mxu0 }
 0x14e   : > { %v8534_v27 = vadd.f32 %v6306_v26, %v8483_v9  ;;  %v658_v28 = vpop.f32.mrb[13].mxu0  ;;  %v8611_v26 = vpop.f32.mrb[7].mxu1 }
 0x14f   : > { %v8537_v29 = vadd.f32 %v8483_v9, %v658_v28 }
 0x151   : > { %v6309_v31 = vpop.f32.mrb[14].mxu0 }
 0x152   : > { %v8542_v32 = vadd.f32 %v6309_v31, %v8483_v9  ;;  %v668_v33 = vpop.f32.mrb[15].mxu0 }
 0x153   : > { %v8545_v34 = vadd.f32 %v8483_v9, %v668_v33  ;;  %v8616_v33 = vpop.f32.mrb[8].mxu1 }
 0x155   : > { %v6312_v36 = vpop.f32.mrb[16].mxu0 }
 0x156   : > { %v8550_v37 = vadd.f32 %v6312_v36, %v8483_v9  ;;  %v678_v40 = vpop.f32.mrb[17].mxu0 }
 0x157   : > { %v8553_v41 = vadd.f32 %v8483_v9, %v678_v40  ;;  %v8621_v40 = vpop.f32.mrb[9].mxu1 }
 0x159   : > { %v6315_v43 = vpop.f32.mrb[18].mxu0 }
 0x15a   : > { %v8558_v44 = vadd.f32 %v6315_v43, %v8483_v9  ;;  %v688_v45 = vpop.f32.mrb[19].mxu0  ;;  %v8623_v43 = vpop.f32.mrb[10].mxu1 }
 0x15b   : > { %v8561_v48 = vadd.f32 %v8483_v9, %v688_v45 }
 0x15d   : > { %v6318_v50 = vpop.f32.mrb[20].mxu0 }
 0x15e   : > { %v8566_v51 = vadd.f32 %v6318_v50, %v8483_v9  ;;  %v698_v52 = vpop.f32.mrb[21].mxu0 }
 0x15f   : > { %v8569_v53 = vadd.f32 %v8483_v9, %v698_v52  ;;  %v8627_v52 = vpop.f32.mrb[11].mxu1 }
 0x161   : > { %v6321_v59 = vpop.f32.mrb[22].mxu0 }
 0x162   : > { %v8581_v61 = vadd.f32 %v6321_v59, %v8483_v9  ;;  %v708_v0 = vpop.f32.mrb[23].mxu0 }
 0x163   : > { %v8589_v38 = vadd.f32 %v8483_v9, %v708_v0  ;;  %v8632_v0 = vpop.f32.mrb[12].mxu1 }
 0x164   : > { %12348 = vst [vmem:[#allocation20_spill] sm:$0xff] %v8632_v0 }
 0x165   : > { %12342 = vst [vmem:[#allocation14_spill] sm:$0xff] %v8589_v38  ;;  %v6324_v5 = vpop.f32.mrb[24].mxu0 }
 0x166   : > { %v8602_v11 = vadd.f32 %v6324_v5, %v8483_v9  ;;  %v718_v13 = vpop.f32.mrb[25].mxu0 }
 0x167   : > { %v8605_v16 = vadd.f32 %v8483_v9, %v718_v13  ;;  %v8637_v13 = vpop.f32.mrb[13].mxu1 }
 0x168   : > { %12343 = vst [vmem:[#allocation15_spill] sm:$0xff] %v8602_v11 }
 0x169   : > { %12344 = vst [vmem:[#allocation16_spill] sm:$0xff] %v8605_v16  ;;  %v6327_v23 = vpop.f32.mrb[26].mxu0 }
 0x16a   : > { %v8614_v28 = vadd.f32 %v6327_v23, %v8483_v9  ;;  %v728_v31 = vpop.f32.mrb[27].mxu0  ;;  %v8639_v23 = vpop.f32.mrb[14].mxu1 }
 0x16b   : > { %v8619_v36 = vadd.f32 %v8483_v9, %v728_v31  ;;  %12350 = vst [vmem:[#allocation22_spill] sm:$0xff] %v8639_v23  ;;  %v8643_v21 = vpop.f32.mrb[15].mxu1 }
 0x16c   : > { %12345 = vst [vmem:[#allocation17_spill] sm:$0xff] %v8614_v28  ;;  %12351 = vst [vmem:[#allocation23_spill] sm:$0xff] %v8643_v21  ;;  %v8648_v58 = vpop.f32.mrb[16].mxu1 }
 0x16d   : > { %12346 = vst [vmem:[#allocation18_spill] sm:$0xff] %v8619_v36  ;;  %v6330_v50 = vpop.f32.mrb[28].mxu0  ;;  %12353 = vst [vmem:[#allocation25_spill] sm:$0xff] %v8648_v58 }
 0x16e   : > { %v8630_v59 = vadd.f32 %v6330_v50, %v8483_v9  ;;  %v738_v60 = vpop.f32.mrb[29].mxu0 }
 0x16f   : > { %v8635_v5 = vadd.f32 %v8483_v9, %v738_v60  ;;  %v8653_v60 = vpop.f32.mrb[17].mxu1 }
 0x170   : > { %12347 = vst [vmem:[#allocation19_spill] sm:$0xff] %v8630_v59  ;;  %12355 = vst [vmem:[#allocation27_spill] sm:$0xff] %v8653_v60  ;;  %v8655_v42 = vpop.f32.mrb[18].mxu1 }
 0x171   : > { %12349 = vst [vmem:[#allocation21_spill] sm:$0xff] %v8635_v5  ;;  %v6333_v45 = vpop.f32.mrb[30].mxu0  ;;  %12356 = vst [vmem:[#allocation28_spill] sm:$0xff] %v8655_v42  ;;  %v8659_v30 = vpop.f32.mrb[19].mxu1 }
 0x172   : > { %v8646_v63 = vadd.f32 %v6333_v45, %v8483_v9  ;;  %v748_v50 = vpop.f32.mrb[31].mxu0  ;;  %12357 = vst [vmem:[#allocation29_spill] sm:$0xff] %v8659_v30  ;;  %v8667_v15 = vpop.f32.mrb[20].mxu1 }
 0x173   : > { %v8651_v49 = vadd.f32 %v8483_v9, %v748_v50  ;;  %12360 = vst [vmem:[#allocation32_spill] sm:$0xff] %v8667_v15  ;;  %v8671_v4 = vpop.f32.mrb[21].mxu1 }
 0x174   : > { %12352 = vst [vmem:[#allocation24_spill] sm:$0xff] %v8646_v63  ;;  %12361 = vst [vmem:[#allocation33_spill] sm:$0xff] %v8671_v4 }
 0x175   : > { %12354 = vst [vmem:[#allocation26_spill] sm:$0xff] %v8651_v49  ;;  %v6336_v31 = vpop.f32.mrb[32].mxu0 }
 0x176   : > { %v8662_v25 = vadd.f32 %v6336_v31, %v8483_v9  ;;  %v758_v45 = vpop.f32.mrb[33].mxu0  ;;  %v8679_v31 = vpop.f32.mrb[22].mxu1 }
 0x177   : > { %v8665_v20 = vadd.f32 %v8483_v9, %v758_v45  ;;  %12364 = vst [vmem:[#allocation36_spill] sm:$0xff] %v8679_v31  ;;  %v8683_v15 = vpop.f32.mrb[23].mxu1 }
 0x178   : > { %12358 = vst [vmem:[#allocation30_spill] sm:$0xff] %v8662_v25  ;;  %12365 = vst [vmem:[#allocation37_spill] sm:$0xff] %v8683_v15 }
 0x179   : > { %12359 = vst [vmem:[#allocation31_spill] sm:$0xff] %v8665_v20  ;;  %v6339_v10 = vpop.f32.mrb[34].mxu0 }
 0x17a   : > { %v8674_v35 = vadd.f32 %v6339_v10, %v8483_v9  ;;  %v768_v54 = vpop.f32.mrb[35].mxu0  ;;  %v8691_v10 = vpop.f32.mrb[24].mxu1 }
 0x17b   : > { %v8677_v42 = vadd.f32 %v8483_v9, %v768_v54  ;;  %v1056_v31 = vpop.f32.mrb[25].mxu1 }
 0x17c   : > { %12362 = vst [vmem:[#allocation34_spill] sm:$0xff] %v8674_v35 }
 0x17d   : > { %12363 = vst [vmem:[#allocation35_spill] sm:$0xff] %v8677_v42  ;;  %v6342_v30 = vpop.f32.mrb[36].mxu0  ;;  %v8699_v42 = vadd.f32 %v8576_v57, %v1056_v31 }
 0x17e   : > { %v8686_v50 = vadd.f32 %v6342_v30, %v8483_v9  ;;  %v778_v20 = vpop.f32.mrb[37].mxu0 }
 0x17f   : > { %v8689_v25 = vadd.f32 %v8483_v9, %v778_v20  ;;  %6125 = vmatprep.mubr.msk.f32.mxu1 %vm1523_vm0, %v8699_v42 }
 0x180   : > { %12366 = vst [vmem:[#allocation38_spill] sm:$0xff] %v8686_v50 }
 0x181   : > { %12367 = vst [vmem:[#allocation39_spill] sm:$0xff] %v8689_v25  ;;  %v6345_v4 = vpop.f32.mrb[38].mxu0 }
 0x182   : > { %v8696_v58 = vadd.f32 %v6345_v4, %v8483_v9  ;;  %v788_v45 = vpop.f32.mrb[39].mxu0 }
 0x183   : > { %v8702_v30 = vadd.f32 %v8483_v9, %v788_v45 }
 0x184   : > { %12368 = vst [vmem:[#allocation40_spill] sm:$0xff] %v8696_v58 }
 0x185   : > { %12369 = vst [vmem:[#allocation41_spill] sm:$0xff] %v8702_v30  ;;  %v6348_v35 = vpop.f32.mrb[40].mxu0 }
 0x186   : > { %v8709_v54 = vadd.f32 %v6348_v35, %v8483_v9  ;;  %v798_v25 = vpop.f32.mrb[41].mxu0 }
 0x187   : > { %v8712_v4 = vadd.f32 %v8483_v9, %v798_v25 }
 0x188   : > { %12370 = vst [vmem:[#allocation42_spill] sm:$0xff] %v8709_v54 }
 0x189   : > { %12371 = vst [vmem:[#allocation43_spill] sm:$0xff] %v8712_v4  ;;  %v6351_v50 = vpop.f32.mrb[42].mxu0 }
 0x18a   : > { %v8717_v45 = vadd.f32 %v6351_v50, %v8483_v9  ;;  %v808_v15 = vpop.f32.mrb[43].mxu0 }
 0x18b   : > { %v8720_v49 = vadd.f32 %v8483_v9, %v808_v15 }
 0x18c   : > { %12372 = vst [vmem:[#allocation44_spill] sm:$0xff] %v8717_v45 }
 0x18d   : > { %12373 = vst [vmem:[#allocation45_spill] sm:$0xff] %v8720_v49  ;;  %v6354_v35 = vpop.f32.mrb[44].mxu0 }
 0x18e   : > { %v8725_v30 = vadd.f32 %v6354_v35, %v8483_v9  ;;  %v818_v25 = vpop.f32.mrb[45].mxu0 }
 0x18f   : > { %v8728_v58 = vadd.f32 %v8483_v9, %v818_v25 }
 0x190   : > { %12374 = vst [vmem:[#allocation46_spill] sm:$0xff] %v8725_v30 }
 0x191   : > { %12375 = vst [vmem:[#allocation47_spill] sm:$0xff] %v8728_v58  ;;  %v6357_v50 = vpop.f32.mrb[46].mxu0 }
 0x192   : > { %v8733_v4 = vadd.f32 %v6357_v50, %v8483_v9  ;;  %v828_v15 = vpop.f32.mrb[47].mxu0  ;;  %v8749_v50 = vld [vmem:[%s11996_s6] ss:$0 sm:$0xff] }
 0x193   : > { %v8736_v54 = vadd.f32 %v8483_v9, %v828_v15 }
 0x194   : > { %12376 = vst [vmem:[#allocation48_spill] sm:$0xff] %v8733_v4 }
 0x195   : > { %12377 = vst [vmem:[#allocation49_spill] sm:$0xff] %v8736_v54  ;;  %v6360_v35 = vpop.f32.mrb[48].mxu0 }
 0x196   : > { %v8741_v49 = vadd.f32 %v6360_v35, %v8483_v9  ;;  %v838_v25 = vpop.f32.mrb[49].mxu0 }
 0x197   : > { %v8744_v45 = vadd.f32 %v8483_v9, %v838_v25 }
 0x198   : > { %12378 = vst [vmem:[#allocation50_spill] sm:$0xff] %v8741_v49 }
 0x199   : > { %12379 = vst [vmem:[#allocation51_spill] sm:$0xff] %v8744_v45  ;;  %v6502_v31 = vpop.f32.mrb[50].mxu0 }
 0x19a   : > { %v1280_v58 = vadd.f32 %v6502_v31, %v8749_v50  ;;  %v1274_v20 = vpop.f32.mrb[51].mxu0 }
 0x19b   : > { %v1275_v54 = vadd.f32 %v8749_v50, %v1274_v20 }
 0x19d   : > { %v6805_v35 = vpack.c.bf16 %v1280_v58, %v1275_v54  ;;  %v6505_v4 = vpop.f32.mrb[52].mxu0 }
 0x19e   : > { %v1290_v30 = vadd.f32 %v6505_v4, %v8749_v50  ;;  %v1284_v9 = vpop.f32.mrb[53].mxu0 }
 0x19f   : > { %v1285_v25 = vadd.f32 %v8749_v50, %v1284_v9 }
 0x1a1   : > { %v6811_v63 = vpack.c.bf16 %v1290_v30, %v1285_v25  ;;  %v6508_v5 = vpop.f32.mrb[54].mxu0 }
 0x1a2   : > { %v1300_v59 = vadd.f32 %v6508_v5, %v8749_v50  ;;  %v1294_v60 = vpop.f32.mrb[55].mxu0 }
 0x1a3   : > { %v1295_v15 = vadd.f32 %v8749_v50, %v1294_v60 }
 0x1a5   : > { %v8759_v45 = vpack.c.bf16 %v1300_v59, %v1295_v15  ;;  %v6511_v31 = vpop.f32.mrb[56].mxu0 }
 0x1a6   : > { %v1310_v49 = vadd.f32 %v6511_v31, %v8749_v50  ;;  %v1304_v20 = vpop.f32.mrb[57].mxu0 }
 0x1a7   : > { %v1305_v58 = vadd.f32 %v8749_v50, %v1304_v20 }
 0x1a9   : > { %v8763_v54 = vpack.c.bf16 %v1310_v49, %v1305_v58  ;;  %v6514_v4 = vpop.f32.mrb[58].mxu0 }
 0x1aa   : > { %v1320_v9 = vadd.f32 %v6514_v4, %v8749_v50  ;;  %v1314_v30 = vpop.f32.mrb[59].mxu0 }
 0x1ab   : > { %v1315_v25 = vadd.f32 %v8749_v50, %v1314_v30 }
 0x1ad   : > { %v8767_v5 = vpack.c.bf16 %v1320_v9, %v1315_v25  ;;  %v6517_v23 = vpop.f32.mrb[60].mxu0 }
 0x1ae   : > { %v1330_v59 = vadd.f32 %v6517_v23, %v8749_v50  ;;  %v1324_v60 = vpop.f32.mrb[61].mxu0 }
 0x1af   : > { %v1325_v15 = vadd.f32 %v8749_v50, %v1324_v60 }
 0x1b1   : > { %v8771_v31 = vpack.c.bf16 %v1330_v59, %v1325_v15  ;;  %v6520_v36 = vpop.f32.mrb[62].mxu0 }
 0x1b2   : > { %v1340_v49 = vadd.f32 %v6520_v36, %v8749_v50  ;;  %v1334_v20 = vpop.f32.mrb[63].mxu0  ;;  %v12423_v36 = vld [vmem:[#allocation28_spill] sm:$0xff] }
 0x1b3   : > { %v1335_v58 = vadd.f32 %v8749_v50, %v1334_v20 }
 0x1b5   : > { %v8775_v4 = vpack.c.bf16 %v1340_v49, %v1335_v58  ;;  %v6523_v28 = vpop.f32.mrb[64].mxu0 }
 0x1b6   : > { %v1350_v9 = vadd.f32 %v6523_v28, %v8749_v50  ;;  %v1344_v30 = vpop.f32.mrb[65].mxu0 }
 0x1b7   : > { %v1345_v25 = vadd.f32 %v8749_v50, %v1344_v30 }
 0x1b9   : > { %v8779_v23 = vpack.c.bf16 %v1350_v9, %v1345_v25  ;;  %v6526_v16 = vpop.f32.mrb[66].mxu0 }
 0x1ba   : > { %v1360_v59 = vadd.f32 %v6526_v16, %v8749_v50  ;;  %v1354_v60 = vpop.f32.mrb[67].mxu0 }
 0x1bb   : > { %v1355_v15 = vadd.f32 %v8749_v50, %v1354_v60 }
 0x1bd   : > { %v6802_v49 = vpack.c.bf16 %v1360_v59, %v1355_v15  ;;  %v6529_v20 = vpop.f32.mrb[68].mxu0 }
 0x1be   : > { %v1370_v28 = vadd.f32 %v6529_v20, %v8749_v50  ;;  %v1364_v58 = vpop.f32.mrb[69].mxu0 }
 0x1bf   : > { %6804 = vmatprep.subr.msk.bf16.mxu0 %vm8785_vm1, %v6802_v49  ;;  %7001 = vmatprep.subr.msk.bf16.mxu1 %vm8785_vm1, %v6802_v49  ;;  %v1365_v16 = vadd.f32 %v8749_v50, %v1364_v58 }
 0x1c0   : > { %6807 = vmatpush3.bf16.xpose.msk.msra.mxu0 %vm8785_vm1, %v6805_v35  ;;  %7009 = vmatpush3.bf16.xpose.msk.msra.mxu1 %vm8785_vm1, %v6805_v35 }
 0x1c1   : > { %v6808_v9 = vpack.c.bf16 %v1370_v28, %v1365_v16  ;;  %v6532_v30 = vpop.f32.mrb[70].mxu0 }
 0x1c2   : > { %v1380_v25 = vadd.f32 %v6532_v30, %v8749_v50  ;;  %v1374_v59 = vpop.f32.mrb[71].mxu0 }
 0x1c3   : > { %6810 = vmatprep.subr.msk.bf16.mxu0 %vm8785_vm1, %v6808_v9  ;;  %7002 = vmatprep.subr.msk.bf16.mxu1 %vm8785_vm1, %v6808_v9  ;;  %v1375_v60 = vadd.f32 %v8749_v50, %v1374_v59 }
 0x1c5   : > { %v6814_v15 = vpack.c.bf16 %v1380_v25, %v1375_v60  ;;  %v6535_v49 = vpop.f32.mrb[72].mxu0 }
 0x1c6   : > { %v1390_v20 = vadd.f32 %v6535_v49, %v8749_v50  ;;  %v1384_v58 = vpop.f32.mrb[73].mxu0 }
 0x1c7   : > { %v1385_v35 = vadd.f32 %v8749_v50, %v1384_v58 }
 0x1c8   : > { %6813 = vmatpush3.bf16.xpose.msk.msra.mxu0 %vm8785_vm1, %v6811_v63  ;;  %7010 = vmatpush3.bf16.xpose.msk.msra.mxu1 %vm8785_vm1, %v6811_v63 }
 0x1c9   : > { %6816 = vmatprep.subr.msk.bf16.mxu0 %vm8785_vm1, %v6814_v15  ;;  %7003 = vmatprep.subr.msk.bf16.mxu1 %vm8785_vm1, %v6814_v15  ;;  %v6820_v28 = vpack.c.bf16 %v1390_v20, %v1385_v35  ;;  %v6538_v16 = vpop.f32.mrb[74].mxu0 }
 0x1ca   : > { %v1400_v9 = vadd.f32 %v6538_v16, %v8749_v50  ;;  %v1394_v30 = vpop.f32.mrb[75].mxu0 }
 0x1cb   : > { %v1395_v25 = vadd.f32 %v8749_v50, %v1394_v30 }
 0x1cd   : > { %v6826_v59 = vpack.c.bf16 %v1400_v9, %v1395_v25  ;;  %v6541_v60 = vpop.f32.mrb[76].mxu0 }
 0x1ce   : > { %v1410_v49 = vadd.f32 %v6541_v60, %v8749_v50  ;;  %v1404_v58 = vpop.f32.mrb[77].mxu0 }
 0x1cf   : > { %v1405_v63 = vadd.f32 %v8749_v50, %v1404_v58 }
 0x1d0   : > { %6819 = vmatpush3.bf16.xpose.msk.msra.mxu0 %vm8785_vm1, %v8759_v45  ;;  %7011 = vmatpush3.bf16.xpose.msk.msra.mxu1 %vm8785_vm1, %v8759_v45 }
 0x1d1   : > { %6822 = vmatprep.subr.msk.bf16.mxu0 %vm8785_vm1, %v6820_v28  ;;  %7004 = vmatprep.subr.msk.bf16.mxu1 %vm8785_vm1, %v6820_v28  ;;  %v6832_v15 = vpack.c.bf16 %v1410_v49, %v1405_v63  ;;  %v6544_v20 = vpop.f32.mrb[78].mxu0 }
 0x1d2   : > { %v1420_v35 = vadd.f32 %v6544_v20, %v8749_v50  ;;  %v1414_v16 = vpop.f32.mrb[79].mxu0 }
 0x1d3   : > { %v1415_v9 = vadd.f32 %v8749_v50, %v1414_v16 }
 0x1d5   : > { %v6838_v30 = vpack.c.bf16 %v1420_v35, %v1415_v9  ;;  %v6547_v25 = vpop.f32.mrb[80].mxu0 }
 0x1d6   : > { %v1430_v60 = vadd.f32 %v6547_v25, %v8749_v50  ;;  %v1424_v58 = vpop.f32.mrb[81].mxu0 }
 0x1d7   : > { %v1425_v45 = vadd.f32 %v8749_v50, %v1424_v58 }
 0x1d8   : > { %6825 = vmatpush3.bf16.xpose.msk.msra.mxu0 %vm8785_vm1, %v8763_v54  ;;  %7012 = vmatpush3.bf16.xpose.msk.msra.mxu1 %vm8785_vm1, %v8763_v54 }
 0x1d9   : > { %6828 = vmatprep.subr.msk.bf16.mxu0 %vm8785_vm1, %v6826_v59  ;;  %7005 = vmatprep.subr.msk.bf16.mxu1 %vm8785_vm1, %v6826_v59  ;;  %v6844_v28 = vpack.c.bf16 %v1430_v60, %v1425_v45  ;;  %v6550_v49 = vpop.f32.mrb[82].mxu0 }
 0x1da   : > { %v8844_v63 = vadd.f32 %v6550_v49, %v8749_v50  ;;  %v1434_v20 = vpop.f32.mrb[83].mxu0 }
 0x1db   : > { %v8847_v35 = vadd.f32 %v8749_v50, %v1434_v20 }
 0x1dd   : > { %v6553_v9 = vpop.f32.mrb[84].mxu0 }
 0x1de   : > { %v8852_v54 = vadd.f32 %v6553_v9, %v8749_v50  ;;  %v1444_v25 = vpop.f32.mrb[85].mxu0 }
 0x1df   : > { %v8855_v58 = vadd.f32 %v8749_v50, %v1444_v25 }
 0x1e0   : > { %6831 = vmatpush3.bf16.xpose.msk.msra.mxu0 %vm8785_vm1, %v8767_v5  ;;  %7013 = vmatpush3.bf16.xpose.msk.msra.mxu1 %vm8785_vm1, %v8767_v5 }
 0x1e1   : > { %6834 = vmatprep.subr.msk.bf16.mxu0 %vm8785_vm1, %v6832_v15  ;;  %7006 = vmatprep.subr.msk.bf16.mxu1 %vm8785_vm1, %v6832_v15  ;;  %v6556_v60 = vpop.f32.mrb[86].mxu0 }
 0x1e2   : > { %v8870_v45 = vadd.f32 %v6556_v60, %v8749_v50  ;;  %v1454_v49 = vpop.f32.mrb[87].mxu0 }
 0x1e3   : > { %v8873_v20 = vadd.f32 %v8749_v50, %v1454_v49 }
 0x1e5   : > { %v6559_v9 = vpop.f32.mrb[88].mxu0 }
 0x1e6   : > { %v8878_v25 = vadd.f32 %v6559_v9, %v8749_v50  ;;  %v1464_v16 = vpop.f32.mrb[89].mxu0 }
 0x1e7   : > { %v8881_v15 = vadd.f32 %v8749_v50, %v1464_v16 }
 0x1e8   : > { %6837 = vmatpush3.bf16.xpose.msk.msra.mxu0 %vm8785_vm1, %v8771_v31  ;;  %7014 = vmatpush3.bf16.xpose.msk.msra.mxu1 %vm8785_vm1, %v8771_v31 }
 0x1e9   : > { %6840 = vmatprep.subr.msk.bf16.mxu0 %vm8785_vm1, %v6838_v30  ;;  %7007 = vmatprep.subr.msk.bf16.mxu1 %vm8785_vm1, %v6838_v30  ;;  %v6562_v49 = vpop.f32.mrb[90].mxu0 }
 0x1ea   : > { %v8896_v16 = vadd.f32 %v6562_v49, %v8749_v50  ;;  %v1474_v9 = vpop.f32.mrb[91].mxu0 }
 0x1eb   : > { %v8899_v5 = vadd.f32 %v8749_v50, %v1474_v9 }
 0x1ed   : > { %v6565_v59 = vpop.f32.mrb[92].mxu0 }
 0x1ee   : > { %v8904_v11 = vadd.f32 %v6565_v59, %v8749_v50  ;;  %v1484_v21 = vpop.f32.mrb[93].mxu0 }
 0x1ef   : > { %v8907_v30 = vadd.f32 %v8749_v50, %v1484_v21 }
 0x1f0   : > { %6843 = vmatpush3.bf16.xpose.msk.msra.mxu0 %vm8785_vm1, %v8775_v4  ;;  %7015 = vmatpush3.bf16.xpose.msk.msra.mxu1 %vm8785_vm1, %v8775_v4 }
 0x1f1   : > { %6846 = vmatprep.subr.msk.bf16.mxu0 %vm8785_vm1, %v6844_v28  ;;  %7008 = vmatprep.subr.msk.bf16.mxu1 %vm8785_vm1, %v6844_v28  ;;  %v6568_v49 = vpop.f32.mrb[94].mxu0 }
 0x1f2   : > { %v8922_v21 = vadd.f32 %v6568_v49, %v8749_v50  ;;  %v1494_v9 = vpop.f32.mrb[95].mxu0  ;;  %v12040_v49 = vmov 0.0|0.0  }
 0x1f3   : > { %v8925_v31 = vadd.f32 %v8749_v50, %v1494_v9 }
 0x1f5   : > { %12382 = vst [vmem:[#allocation52_spill] sm:$0xff] %v8925_v31  ;;  %v6571_v60 = vpop.f32.mrb[96].mxu0 }
 0x1f6   : > { %v8930_v0 = vadd.f32 %v6571_v60, %v8749_v50  ;;  %v1504_v38 = vpop.f32.mrb[97].mxu0 }
 0x1f7   : > { %v8933_v28 = vadd.f32 %v8749_v50, %v1504_v38 }
 0x1f8   : > { %6849 = vmatpush3.bf16.xpose.msk.msra.mxu0 %vm8785_vm1, %v8779_v23  ;;  %7016 = vmatpush3.bf16.xpose.msk.msra.mxu1 %vm8785_vm1, %v8779_v23  ;;  %v8955_v23 = vadd.f32 %v8571_v56, %v8576_v57  ;;  %v12384_v56 = vmov 0.0|0.0  }
 0x1f9   : > { %6886 = vmatprep.subr.bf16.mxu1 %v12040_v49  ;;  %6850 = vmatprep.subr.bf16.mxu0 %v12040_v49  ;;  %v6879_v60 = vpack.c.bf16 %v8930_v0, %v8933_v28  ;;  %v6574_v9 = vpop.f32.mrb[98].mxu0  ;;  %v8959_v49 = vadd.f32 %v8691_v10, %v8576_v57  ;;  %v12385_v10 = vpack.c.bf16 %v8844_v63, %v8847_v35  ;;  %v12410_v35 = vld [vmem:[#allocation17_spill] sm:$0xff] }
 0x1fa   : > { %v8946_v38 = vadd.f32 %v6574_v9, %v8749_v50  ;;  %v1514_v4 = vpop.f32.mrb[99].mxu0  ;;  %v12421_v28 = vld [vmem:[#allocation25_spill] sm:$0xff] }
 0x1fb   : > { %v8949_v59 = vadd.f32 %v8749_v50, %v1514_v4  ;;  %v8967_v50 = vadd.f32 %v8576_v57, %v8591_v46  ;;  %v12383_v4 = vpack.c.bf16 %v8486_v39, %v8489_v47  ;;  %v12386_v39 = vpack.c.bf16 %v8494_v62, %v8497_v3 }
 0x1fc   : > { %v8995_v47 = vadd.f32 %v8586_v2, %v8576_v57  ;;  %v9001_v46 = vadd.f32 %v8576_v57, %v8599_v7  ;;  %v12387_v62 = vpack.c.bf16 %v8502_v6, %v8505_v8  ;;  %v12388_v3 = vpack.c.bf16 %v8852_v54, %v8855_v58  ;;  %v12411_v54 = vld [vmem:[#allocation18_spill] sm:$0xff] }
 0x1fd   : > { %v6883_v31 = vpack.c.bf16 %v8946_v38, %v8949_v59  ;;  %v12389_v6 = vpack.c.bf16 %v8510_v12, %v8513_v14  ;;  %v9025_v8 = vadd.f32 %v8593_v55, %v8576_v57  ;;  %v9031_v2 = vadd.f32 %v8576_v57, %v8611_v26  ;;  %v12401_v26 = vld [vmem:[#allocation14_spill] sm:$0xff]  ;;  %v12424_v59 = vld [vmem:[#allocation33_spill] sm:$0xff] }
 0x1fe   : > { %v12390_v12 = vpack.c.bf16 %v8518_v17, %v8521_v19  ;;  %v12391_v14 = vpack.c.bf16 %v8870_v45, %v8873_v20  ;;  %v12392_v17 = vpack.c.bf16 %v8526_v22, %v8529_v24  ;;  %v9055_v19 = vadd.f32 %v8607_v18, %v8576_v57  ;;  %v12413_v45 = vld [vmem:[#allocation22_spill] sm:$0xff] }
 0x1ff   : > { %6078 = vmatmul.mubr.msk.f32.vlgmr.msra.gmra.mrb[100].mxu0 %vm1523_vm0, %v8584_v1  ;;  %6126 = vmatmul.mubr.msk.f32.vlgmr.msra.gmra.mrb[50].mxu1 %vm1523_vm0, %v8699_v42  ;;  %v9061_v55 = vadd.f32 %v8576_v57, %v8621_v40  ;;  %v12393_v22 = vpack.c.bf16 %v8534_v27, %v8537_v29  ;;  %v12394_v24 = vpack.c.bf16 %v8878_v25, %v8881_v15  ;;  %v12415_v15 = vld [vmem:[#allocation19_spill] sm:$0xff] }
 0x200   : > { %6888 = vmatpush1.bf16.msra.mxu1 %v12383_v4  ;;  %6079 = vmatprep.mubr.msk.f32.mxu0 %vm1523_vm0, %v8955_v23  ;;  %v12395_v27 = vpack.c.bf16 %v8542_v32, %v8545_v34  ;;  %v9085_v29 = vadd.f32 %v8616_v33, %v8576_v57  ;;  %v9091_v7 = vadd.f32 %v8576_v57, %v8627_v52  ;;  %v12404_v33 = vld [vmem:[#allocation23_spill] sm:$0xff]  ;;  %v12406_v52 = vld [vmem:[#allocation16_spill] sm:$0xff] }
 0x201   : > { %6889 = vmatprep.subr.bf16.mxu1 %v12384_v56  ;;  %6853 = vmatpush1.bf16.xpose.msk.msra.mxu0 %vm8785_vm1, %v12385_v10  ;;  %v12396_v32 = vpack.c.bf16 %v8550_v37, %v8553_v41  ;;  %v12397_v34 = vpack.c.bf16 %v8896_v16, %v8899_v5  ;;  %v12398_v37 = vpack.c.bf16 %v8558_v44, %v8561_v48  ;;  %v12414_v5 = vld [vmem:[#allocation27_spill] sm:$0xff]  ;;  %v12416_v16 = vld [vmem:[#allocation21_spill] sm:$0xff]  ;;  %v12418_v10 = vld [vmem:[#allocation24_spill] sm:$0xff] }
 0x202   : > { %6854 = vmatprep.subr.bf16.mxu0 %v12384_v56  ;;  %6127 = vmatprep.mubr.msk.f32.mxu1 %vm1523_vm0, %v8959_v49  ;;  %v9115_v41 = vadd.f32 %v8623_v43, %v8576_v57  ;;  %v9121_v18 = vadd.f32 %v8576_v57, %v8637_v13  ;;  %v12399_v44 = vpack.c.bf16 %v8566_v51, %v8569_v53  ;;  %v12403_v53 = vld [vmem:[#allocation20_spill] sm:$0xff]  ;;  %v12405_v43 = vld [vmem:[#allocation15_spill] sm:$0xff] }
 0x203   : > { %6080 = vmatmul.mubr.msk.f32.gmra.mrb[102].mxu0 %vm1523_vm0, %v8955_v23  ;;  %6128 = vmatmul.mubr.msk.f32.gmra.mrb[52].mxu1 %vm1523_vm0, %v8959_v49  ;;  %v12400_v48 = vpack.c.bf16 %v8904_v11, %v8907_v30  ;;  %v12402_v51 = vpack.c.bf16 %v8581_v61, %v12401_v26  ;;  %v9145_v11 = vadd.f32 %v12403_v53, %v8576_v57  ;;  %v12408_v13 = vld [vmem:[#allocation52_spill] sm:$0xff] }
 0x204   : > { %6891 = vmatpush1.bf16.msra.mxu1 %v12386_v39  ;;  %6081 = vmatprep.mubr.msk.f32.mxu0 %vm1523_vm0, %v8967_v50  ;;  %v9151_v40 = vadd.f32 %v8576_v57, %v12404_v33  ;;  %v12407_v61 = vpack.c.bf16 %v12405_v43, %v12406_v52  ;;  %v12409_v63 = vpack.c.bf16 %v8922_v21, %v12408_v13  ;;  %v6434_v21 = vpop.f32.mrb[26].mxu1  ;;  %v12419_v39 = vld [vmem:[#allocation26_spill] sm:$0xff]  ;;  %v12427_v52 = vld [vmem:[#allocation36_spill] sm:$0xff] }
 0x205   : > { %6892 = vmatprep.subr.bf16.mxu1 %v12384_v56  ;;  %v12412_v58 = vpack.c.bf16 %v12410_v35, %v12411_v54  ;;  %v9175_v20 = vadd.f32 %v12413_v45, %v8576_v57  ;;  %v9181_v25 = vadd.f32 %v8576_v57, %v12414_v5  ;;  %v12417_v30 = vpack.c.bf16 %v12415_v15, %v12416_v16  ;;  %v1066_v9 = vpop.f32.mrb[27].mxu1 }
 0x206   : > { %v9196_v4 = vadd.f32 %v8576_v57, %v1066_v9  ;;  %v9206_v0 = vadd.f32 %v6434_v21, %v8576_v57  ;;  %v9258_v38 = vadd.f32 %v8576_v57, %v12424_v59  ;;  %v12042_v54 = vmov 0.0  }
 0x207   : > { %6082 = vmatmul.mubr.msk.f32.gmra.mrb[104].mxu0 %vm1523_vm0, %v8967_v50 }
 0x208   : > { %6894 = vmatpush1.bf16.msra.mxu1 %v12387_v62  ;;  %6083 = vmatprep.mubr.msk.f32.mxu0 %vm1523_vm0, %v8995_v47  ;;  %v12420_v62 = vpack.c.bf16 %v12418_v10, %v12419_v39 }
 0x209   : > { %6895 = vmatprep.subr.bf16.mxu1 %v12384_v56  ;;  %6857 = vmatpush1.bf16.xpose.msk.msra.mxu0 %vm8785_vm1, %v12388_v3  ;;  %v12422_v3 = vld [vmem:[#allocation29_spill] sm:$0xff] }
 0x20a   : > { %6858 = vmatprep.subr.bf16.mxu0 %v12384_v56  ;;  %6129 = vmatprep.mubr.msk.f32.mxu1 %vm1523_vm0, %v9196_v4 }
 0x20b   : > { %6084 = vmatmul.mubr.msk.f32.gmra.mrb[106].mxu0 %vm1523_vm0, %v8995_v47  ;;  %6130 = vmatmul.mubr.msk.f32.gmra.mrb[54].mxu1 %vm1523_vm0, %v9196_v4 }
 0x20c   : > { %6897 = vmatpush1.bf16.msra.mxu1 %v12389_v6  ;;  %6085 = vmatprep.mubr.msk.f32.mxu0 %vm1523_vm0, %v9001_v46  ;;  %v9223_v6 = vadd.f32 %v8576_v57, %v12422_v3 }
 0x20d   : > { %6898 = vmatprep.subr.bf16.mxu1 %v12384_v56  ;;  %6131 = vmatprep.mubr.msk.f32.mxu1 %vm1523_vm0, %v9206_v0 }
 0x20f   : > { %6086 = vmatmul.mubr.msk.f32.gmra.mrb[108].mxu0 %vm1523_vm0, %v9001_v46  ;;  %6132 = vmatmul.mubr.msk.f32.gmra.mrb[56].mxu1 %vm1523_vm0, %v9206_v0 }
 0x210   : > { %6900 = vmatpush1.bf16.msra.mxu1 %v12390_v12  ;;  %6087 = vmatprep.mubr.msk.f32.mxu0 %vm1523_vm0, %v9025_v8  ;;  %v6437_v12 = vpop.f32.mrb[28].mxu1 }
 0x211   : > { %6901 = vmatprep.subr.bf16.mxu1 %v12384_v56  ;;  %6861 = vmatpush1.bf16.xpose.msk.msra.mxu0 %vm8785_vm1, %v12391_v14  ;;  %v1076_v14 = vpop.f32.mrb[29].mxu1 }
 0x212   : > { %6862 = vmatprep.subr.bf16.mxu0 %v12384_v56 }
 0x213   : > { %6088 = vmatmul.mubr.msk.f32.gmra.mrb[110].mxu0 %vm1523_vm0, %v9025_v8 }
 0x214   : > { %6903 = vmatpush1.bf16.msra.mxu1 %v12392_v17  ;;  %6089 = vmatprep.mubr.msk.f32.mxu0 %vm1523_vm0, %v9031_v2  ;;  %v9233_v17 = vadd.f32 %v8576_v57, %v1076_v14 }
 0x215   : > { %6904 = vmatprep.subr.bf16.mxu1 %v12384_v56 }
 0x216   : > { %6133 = vmatprep.mubr.msk.f32.mxu1 %vm1523_vm0, %v9233_v17 }
 0x217   : > { %6090 = vmatmul.mubr.msk.f32.gmra.mrb[112].mxu0 %vm1523_vm0, %v9031_v2  ;;  %6134 = vmatmul.mubr.msk.f32.gmra.mrb[58].mxu1 %vm1523_vm0, %v9233_v17 }
 0x218   : > { %6906 = vmatpush1.bf16.msra.mxu1 %v12393_v22  ;;  %6091 = vmatprep.mubr.msk.f32.mxu0 %vm1523_vm0, %v9055_v19  ;;  %v9242_v22 = vadd.f32 %v6437_v12, %v8576_v57 }
 0x219   : > { %6907 = vmatprep.subr.bf16.mxu1 %v12384_v56  ;;  %6865 = vmatpush1.bf16.xpose.msk.msra.mxu0 %vm8785_vm1, %v12394_v24  ;;  %v6440_v24 = vpop.f32.mrb[30].mxu1 }
 0x21a   : > { %6866 = vmatprep.subr.bf16.mxu0 %v12384_v56  ;;  %6135 = vmatprep.mubr.msk.f32.mxu1 %vm1523_vm0, %v9242_v22 }
 0x21b   : > { %6092 = vmatmul.mubr.msk.f32.gmra.mrb[114].mxu0 %vm1523_vm0, %v9055_v19  ;;  %6136 = vmatmul.mubr.msk.f32.gmra.mrb[60].mxu1 %vm1523_vm0, %v9242_v22 }
 0x21c   : > { %6909 = vmatpush1.bf16.msra.mxu1 %v12395_v27  ;;  %6093 = vmatprep.mubr.msk.f32.mxu0 %vm1523_vm0, %v9061_v55  ;;  %v1086_v27 = vpop.f32.mrb[31].mxu1 }
 0x21d   : > { %6910 = vmatprep.subr.bf16.mxu1 %v12384_v56 }
 0x21f   : > { %6094 = vmatmul.mubr.msk.f32.gmra.mrb[116].mxu0 %vm1523_vm0, %v9061_v55 }
 0x220   : > { %6912 = vmatpush1.bf16.msra.mxu1 %v12396_v32  ;;  %6095 = vmatprep.mubr.msk.f32.mxu0 %vm1523_vm0, %v9085_v29  ;;  %v9263_v32 = vadd.f32 %v8576_v57, %v1086_v27 }
 0x221   : > { %6913 = vmatprep.subr.bf16.mxu1 %v12384_v56  ;;  %6869 = vmatpush1.bf16.xpose.msk.msra.mxu0 %vm8785_vm1, %v12397_v34  ;;  %v9272_v34 = vadd.f32 %v6440_v24, %v8576_v57 }
 0x222   : > { %6870 = vmatprep.subr.bf16.mxu0 %v12384_v56  ;;  %6137 = vmatprep.mubr.msk.f32.mxu1 %vm1523_vm0, %v9263_v32 }
 0x223   : > { %6096 = vmatmul.mubr.msk.f32.gmra.mrb[118].mxu0 %vm1523_vm0, %v9085_v29  ;;  %6138 = vmatmul.mubr.msk.f32.gmra.mrb[62].mxu1 %vm1523_vm0, %v9263_v32 }
 0x224   : > { %6915 = vmatpush1.bf16.msra.mxu1 %v12398_v37  ;;  %6097 = vmatprep.mubr.msk.f32.mxu0 %vm1523_vm0, %v9091_v7  ;;  %v12425_v37 = vld [vmem:[#allocation32_spill] sm:$0xff] }
 0x225   : > { %6916 = vmatprep.subr.bf16.mxu1 %v12384_v56  ;;  %6139 = vmatprep.mubr.msk.f32.mxu1 %vm1523_vm0, %v9272_v34 }
 0x227   : > { %6098 = vmatmul.mubr.msk.f32.gmra.mrb[120].mxu0 %vm1523_vm0, %v9091_v7  ;;  %6140 = vmatmul.mubr.msk.f32.gmra.mrb[64].mxu1 %vm1523_vm0, %v9272_v34 }
 0x228   : > { %6918 = vmatpush1.bf16.msra.mxu1 %v12399_v44  ;;  %6099 = vmatprep.mubr.msk.f32.mxu0 %vm1523_vm0, %v9115_v41  ;;  %v9278_v44 = vadd.f32 %v12425_v37, %v8576_v57 }
 0x229   : > { %6919 = vmatprep.subr.bf16.mxu1 %v12384_v56  ;;  %6873 = vmatpush1.bf16.xpose.msk.msra.mxu0 %vm8785_vm1, %v12400_v48  ;;  %v12426_v48 = vld [vmem:[#allocation37_spill] sm:$0xff] }
 0x22a   : > { %6874 = vmatprep.subr.bf16.mxu0 %v12384_v56  ;;  %v9288_v26 = vadd.f32 %v8576_v57, %v12426_v48 }
 0x22b   : > { %6100 = vmatmul.mubr.msk.f32.gmra.mrb[122].mxu0 %vm1523_vm0, %v9115_v41 }
 0x22c   : > { %6921 = vmatpush1.bf16.msra.mxu1 %v12402_v51  ;;  %6101 = vmatprep.mubr.msk.f32.mxu0 %vm1523_vm0, %v9121_v18  ;;  %v6443_v51 = vpop.f32.mrb[32].mxu1 }
 0x22d   : > { %6922 = vmatprep.subr.bf16.mxu1 %v12384_v56  ;;  %v1096_v53 = vpop.f32.mrb[33].mxu1  ;;  %v9302_v43 = vadd.f32 %v6443_v51, %v8576_v57 }
 0x22e   : > { %v9293_v33 = vadd.f32 %v8576_v57, %v1096_v53  ;;  %v6446_v13 = vpop.f32.mrb[34].mxu1 }
 0x22f   : > { %6102 = vmatmul.mubr.msk.f32.gmra.mrb[124].mxu0 %vm1523_vm0, %v9121_v18 }
 0x230   : > { %6924 = vmatpush1.bf16.msra.mxu1 %v12407_v61  ;;  %6103 = vmatprep.mubr.msk.f32.mxu0 %vm1523_vm0, %v9145_v11  ;;  %v9308_v61 = vadd.f32 %v12427_v52, %v8576_v57 }
 0x231   : > { %6925 = vmatprep.subr.bf16.mxu1 %v12384_v56  ;;  %6877 = vmatpush1.bf16.xpose.msk.msra.mxu0 %vm8785_vm1, %v12409_v63  ;;  %v1106_v63 = vpop.f32.mrb[35].mxu1 }
 0x232   : > { %6878 = vmatprep.subr.bf16.mxu0 %v12384_v56  ;;  %6141 = vmatprep.mubr.msk.f32.mxu1 %vm1523_vm0, %v9293_v33  ;;  %v9319_v35 = vadd.f32 %v8576_v57, %v1106_v63  ;;  %v6449_v45 = vpop.f32.mrb[36].mxu1 }
 0x233   : > { %6104 = vmatmul.mubr.msk.f32.gmra.mrb[126].mxu0 %vm1523_vm0, %v9145_v11  ;;  %6142 = vmatmul.mubr.msk.f32.gmra.mrb[66].mxu1 %vm1523_vm0, %v9293_v33  ;;  %v1116_v5 = vpop.f32.mrb[37].mxu1 }
 0x234   : > { %6927 = vmatpush1.bf16.msra.mxu1 %v12412_v58  ;;  %6105 = vmatprep.mubr.msk.f32.mxu0 %vm1523_vm0, %v9151_v40  ;;  %v9327_v58 = vadd.f32 %v6446_v13, %v8576_v57  ;;  %v9339_v15 = vadd.f32 %v8576_v57, %v1116_v5 }
 0x235   : > { %6928 = vmatprep.subr.bf16.mxu1 %v12384_v56  ;;  %6143 = vmatprep.mubr.msk.f32.mxu1 %vm1523_vm0, %v9302_v43 }
 0x237   : > { %6106 = vmatmul.mubr.msk.f32.gmra.mrb[128].mxu0 %vm1523_vm0, %v9151_v40  ;;  %6144 = vmatmul.mubr.msk.f32.gmra.mrb[68].mxu1 %vm1523_vm0, %v9302_v43 }
 0x238   : > { %6930 = vmatpush1.bf16.msra.mxu1 %v12417_v30  ;;  %6107 = vmatprep.mubr.msk.f32.mxu0 %vm1523_vm0, %v9175_v20 }
 0x239   : > { %6931 = vmatprep.subr.bf16.mxu1 %v12384_v56  ;;  %6881 = vmatpush1.bf16.xpose.msk.msra.mxu0 %vm8785_vm1, %v6879_v60  ;;  %v9213_v60 = vadd.f32 %v12421_v28, %v8576_v57 }
 0x23a   : > { %6882 = vmatprep.subr.bf16.mxu0 %v12384_v56  ;;  %6145 = vmatprep.mubr.msk.f32.mxu1 %vm1523_vm0, %v9319_v35 }
 0x23b   : > { %6108 = vmatmul.mubr.msk.f32.gmra.mrb[130].mxu0 %vm1523_vm0, %v9175_v20  ;;  %6146 = vmatmul.mubr.msk.f32.gmra.mrb[70].mxu1 %vm1523_vm0, %v9319_v35 }
 0x23c   : > { %6933 = vmatpush1.bf16.msra.mxu1 %v12420_v62  ;;  %6109 = vmatprep.mubr.msk.f32.mxu0 %vm1523_vm0, %v9181_v25 }
 0x23d   : > { %6934 = vmatprep.subr.bf16.mxu1 %v12384_v56  ;;  %6147 = vmatprep.mubr.msk.f32.mxu1 %vm1523_vm0, %v9327_v58 }
 0x23f   : > { %6110 = vmatmul.mubr.msk.f32.gmra.mrb[132].mxu0 %vm1523_vm0, %v9181_v25  ;;  %6148 = vmatmul.mubr.msk.f32.gmra.mrb[72].mxu1 %vm1523_vm0, %v9327_v58 }
 0x240   : > { %6111 = vmatprep.mubr.msk.f32.mxu0 %vm1523_vm0, %v9213_v60  ;;  %6149 = vmatprep.mubr.msk.f32.mxu1 %vm1523_vm0, %v9339_v15 }
 0x241   : > { %6885 = vmatpush1.bf16.xpose.msk.msra.mxu0 %vm8785_vm1, %v6883_v31  ;;  %v9248_v31 = vadd.f32 %v12423_v36, %v8576_v57 }
 0x243   : > { %6112 = vmatmul.mubr.msk.f32.gmra.mrb[134].mxu0 %vm1523_vm0, %v9213_v60  ;;  %6150 = vmatmul.mubr.msk.f32.gmra.mrb[74].mxu1 %vm1523_vm0, %v9339_v15 }
 0x244   : > { %6113 = vmatprep.mubr.msk.f32.mxu0 %vm1523_vm0, %v9223_v6 }
 0x247   : > { %6114 = vmatmul.mubr.msk.f32.gmra.mrb[136].mxu0 %vm1523_vm0, %v9223_v6 }
 0x248   : > { %6115 = vmatprep.mubr.msk.f32.mxu0 %vm1523_vm0, %v9248_v31 }
 0x24b   : > { %6116 = vmatmul.mubr.msk.f32.gmra.mrb[138].mxu0 %vm1523_vm0, %v9248_v31 }
 0x24c   : > { %6117 = vmatprep.mubr.msk.f32.mxu0 %vm1523_vm0, %v9258_v38 }
 0x24f   : > { %6118 = vmatmul.mubr.msk.f32.gmra.mrb[140].mxu0 %vm1523_vm0, %v9258_v38 }
 0x250   : > { %6119 = vmatprep.mubr.msk.f32.mxu0 %vm1523_vm0, %v9278_v44 }
 0x253   : > { %6120 = vmatmul.mubr.msk.f32.gmra.mrb[142].mxu0 %vm1523_vm0, %v9278_v44 }
 0x254   : > { %6121 = vmatprep.mubr.msk.f32.mxu0 %vm1523_vm0, %v9288_v26 }
 0x257   : > { %6122 = vmatmul.mubr.msk.f32.gmra.mrb[144].mxu0 %vm1523_vm0, %v9288_v26 }
 0x258   : > { %6123 = vmatprep.mubr.msk.f32.mxu0 %vm1523_vm0, %v9308_v61 }
 0x25b   : > { %6124 = vmatmul.mubr.msk.f32.gmra.mrb[146].mxu0 %vm1523_vm0, %v9308_v61 }
 0x25c   : > { %2253 = vmatprep.mubr.f32.mxu0 %v12042_v54 }
 0x25f   : > { %5691 = vmatmul.mubr.msk.f32.vlgmr.msra.gmra.mrb[148].mxu0 %vm1523_vm0, %v8584_v1  ;;  %v9347_v1 = vadd.f32 %v6449_v45, %v8576_v57 }
 0x260   : > { %2259 = vmatprep.mubr.f32.mxu0 %v12042_v54 }
 0x261   : > { %6151 = vmatprep.mubr.msk.f32.mxu1 %vm1523_vm0, %v9347_v1 }
 0x262   : > { %6152 = vmatmul.mubr.msk.f32.gmra.mrb[76].mxu1 %vm1523_vm0, %v9347_v1 }
 0x263   : > { %5692 = vmatmul.mubr.msk.f32.gmra.mrb[150].mxu0 %vm1523_vm0, %v8955_v23  ;;  %v6452_v23 = vpop.f32.mrb[38].mxu1 }
 0x264   : > { %2265 = vmatprep.mubr.f32.mxu0 %v12042_v54  ;;  %v1126_v16 = vpop.f32.mrb[39].mxu1 }
 0x265   : > { %v9359_v30 = vadd.f32 %v8576_v57, %v1126_v16 }
 0x267   : > { %5693 = vmatmul.mubr.msk.f32.gmra.mrb[152].mxu0 %vm1523_vm0, %v8967_v50  ;;  %v9367_v50 = vadd.f32 %v6452_v23, %v8576_v57  ;;  %6153 = vmatprep.mubr.msk.f32.mxu1 %vm1523_vm0, %v9359_v30 }
 0x268   : > { %2271 = vmatprep.mubr.f32.mxu0 %v12042_v54  ;;  %6154 = vmatmul.mubr.msk.f32.gmra.mrb[78].mxu1 %vm1523_vm0, %v9359_v30 }
 0x269   : > { %6155 = vmatprep.mubr.msk.f32.mxu1 %vm1523_vm0, %v9367_v50 }
 0x26b   : > { %5694 = vmatmul.mubr.msk.f32.gmra.mrb[154].mxu0 %vm1523_vm0, %v8995_v47  ;;  %v6455_v47 = vpop.f32.mrb[40].mxu1 }
 0x26c   : > { %2277 = vmatprep.mubr.f32.mxu0 %v12042_v54  ;;  %v1136_v21 = vpop.f32.mrb[41].mxu1  ;;  %6156 = vmatmul.mubr.msk.f32.gmra.mrb[80].mxu1 %vm1523_vm0, %v9367_v50 }
 0x26d   : > { %v9379_v9 = vadd.f32 %v8576_v57, %v1136_v21 }
 0x26f   : > { %5695 = vmatmul.mubr.msk.f32.gmra.mrb[156].mxu0 %vm1523_vm0, %v9001_v46  ;;  %v9387_v46 = vadd.f32 %v6455_v47, %v8576_v57  ;;  %6157 = vmatprep.mubr.msk.f32.mxu1 %vm1523_vm0, %v9379_v9 }
 0x270   : > { %2283 = vmatprep.mubr.f32.mxu0 %v12042_v54  ;;  %6158 = vmatmul.mubr.msk.f32.gmra.mrb[82].mxu1 %vm1523_vm0, %v9379_v9 }
 0x271   : > { %6159 = vmatprep.mubr.msk.f32.mxu1 %vm1523_vm0, %v9387_v46 }
 0x273   : > { %5696 = vmatmul.mubr.msk.f32.gmra.mrb[158].mxu0 %vm1523_vm0, %v9025_v8  ;;  %v6458_v8 = vpop.f32.mrb[42].mxu1 }
 0x274   : > { %2289 = vmatprep.mubr.f32.mxu0 %v12042_v54  ;;  %v1146_v10 = vpop.f32.mrb[43].mxu1  ;;  %6160 = vmatmul.mubr.msk.f32.gmra.mrb[84].mxu1 %vm1523_vm0, %v9387_v46 }
 0x275   : > { %v9399_v39 = vadd.f32 %v8576_v57, %v1146_v10 }
 0x277   : > { %5697 = vmatmul.mubr.msk.f32.gmra.mrb[160].mxu0 %vm1523_vm0, %v9031_v2  ;;  %v9407_v2 = vadd.f32 %v6458_v8, %v8576_v57  ;;  %6161 = vmatprep.mubr.msk.f32.mxu1 %vm1523_vm0, %v9399_v39 }
 0x278   : > { %2295 = vmatprep.mubr.f32.mxu0 %v12042_v54  ;;  %6162 = vmatmul.mubr.msk.f32.gmra.mrb[86].mxu1 %vm1523_vm0, %v9399_v39 }
 0x279   : > { %6163 = vmatprep.mubr.msk.f32.mxu1 %vm1523_vm0, %v9407_v2 }
 0x27b   : > { %5698 = vmatmul.mubr.msk.f32.gmra.mrb[162].mxu0 %vm1523_vm0, %v9055_v19  ;;  %v6461_v19 = vpop.f32.mrb[44].mxu1 }
 0x27c   : > { %2301 = vmatprep.mubr.f32.mxu0 %v12042_v54  ;;  %v1156_v62 = vpop.f32.mrb[45].mxu1  ;;  %6164 = vmatmul.mubr.msk.f32.gmra.mrb[88].mxu1 %vm1523_vm0, %v9407_v2 }
 0x27d   : > { %v9419_v28 = vadd.f32 %v8576_v57, %v1156_v62 }
 0x27f   : > { %5699 = vmatmul.mubr.msk.f32.gmra.mrb[164].mxu0 %vm1523_vm0, %v9061_v55  ;;  %v9427_v55 = vadd.f32 %v6461_v19, %v8576_v57  ;;  %6165 = vmatprep.mubr.msk.f32.mxu1 %vm1523_vm0, %v9419_v28 }
 0x280   : > { %2307 = vmatprep.mubr.f32.mxu0 %v12042_v54  ;;  %6166 = vmatmul.mubr.msk.f32.gmra.mrb[90].mxu1 %vm1523_vm0, %v9419_v28 }
 0x281   : > { %6167 = vmatprep.mubr.msk.f32.mxu1 %vm1523_vm0, %v9427_v55 }
 0x283   : > { %5700 = vmatmul.mubr.msk.f32.gmra.mrb[166].mxu0 %vm1523_vm0, %v9085_v29  ;;  %v6464_v29 = vpop.f32.mrb[46].mxu1 }
 0x284   : > { %2313 = vmatprep.mubr.f32.mxu0 %v12042_v54  ;;  %v1166_v3 = vpop.f32.mrb[47].mxu1  ;;  %6168 = vmatmul.mubr.msk.f32.gmra.mrb[92].mxu1 %vm1523_vm0, %v9427_v55 }
 0x285   : > { %v9439_v12 = vadd.f32 %v8576_v57, %v1166_v3 }
 0x287   : > { %5701 = vmatmul.mubr.msk.f32.gmra.mrb[168].mxu0 %vm1523_vm0, %v9091_v7  ;;  %v9447_v7 = vadd.f32 %v6464_v29, %v8576_v57  ;;  %6169 = vmatprep.mubr.msk.f32.mxu1 %vm1523_vm0, %v9439_v12 }
 0x288   : > { %2319 = vmatprep.mubr.f32.mxu0 %v12042_v54  ;;  %6170 = vmatmul.mubr.msk.f32.gmra.mrb[94].mxu1 %vm1523_vm0, %v9439_v12 }
 0x289   : > { %6171 = vmatprep.mubr.msk.f32.mxu1 %vm1523_vm0, %v9447_v7 }
 0x28b   : > { %5702 = vmatmul.mubr.msk.f32.gmra.mrb[170].mxu0 %vm1523_vm0, %v9115_v41  ;;  %v6467_v41 = vpop.f32.mrb[48].mxu1 }
 0x28c   : > { %2325 = vmatprep.mubr.f32.mxu0 %v12042_v54  ;;  %v1176_v14 = vpop.f32.mrb[49].mxu1  ;;  %6172 = vmatmul.mubr.msk.f32.gmra.mrb[96].mxu1 %vm1523_vm0, %v9447_v7 }
 0x28d   : > { %v9459_v36 = vadd.f32 %v8576_v57, %v1176_v14 }
 0x28f   : > { %5703 = vmatmul.mubr.msk.f32.gmra.mrb[172].mxu0 %vm1523_vm0, %v9121_v18  ;;  %v9467_v18 = vadd.f32 %v6467_v41, %v8576_v57  ;;  %6173 = vmatprep.mubr.msk.f32.mxu1 %vm1523_vm0, %v9459_v36 }
 0x290   : > { %2331 = vmatprep.mubr.f32.mxu0 %v12042_v54  ;;  %6174 = vmatmul.mubr.msk.f32.gmra.mrb[98].mxu1 %vm1523_vm0, %v9459_v36 }
 0x291   : > { %6175 = vmatprep.mubr.msk.f32.mxu1 %vm1523_vm0, %v9467_v18 }
 0x293   : > { %5704 = vmatmul.mubr.msk.f32.gmra.mrb[174].mxu0 %vm1523_vm0, %v9145_v11 }
 0x294   : > { %2337 = vmatprep.mubr.f32.mxu0 %v12042_v54  ;;  %6176 = vmatmul.mubr.msk.f32.gmra.mrb[100].mxu1 %vm1523_vm0, %v9467_v18 }
 0x297   : > { %5705 = vmatmul.mubr.msk.f32.gmra.mrb[176].mxu0 %vm1523_vm0, %v9151_v40 }
 0x298   : > { %2343 = vmatprep.mubr.f32.mxu0 %v12042_v54 }
 0x29b   : > { %5706 = vmatmul.mubr.msk.f32.gmra.mrb[178].mxu0 %vm1523_vm0, %v9175_v20 }
 0x29c   : > { %2349 = vmatprep.mubr.f32.mxu0 %v12042_v54 }
 0x29f   : > { %5707 = vmatmul.mubr.msk.f32.gmra.mrb[180].mxu0 %vm1523_vm0, %v9181_v25 }
 0x2a0   : > { %2355 = vmatprep.mubr.f32.mxu0 %v12042_v54 }
 0x2a3   : > { %5708 = vmatmul.mubr.msk.f32.gmra.mrb[182].mxu0 %vm1523_vm0, %v9213_v60 }
 0x2a4   : > { %2361 = vmatprep.mubr.f32.mxu0 %v12042_v54 }
 0x2a7   : > { %5709 = vmatmul.mubr.msk.f32.gmra.mrb[184].mxu0 %vm1523_vm0, %v9223_v6 }
 0x2a8   : > { %2367 = vmatprep.mubr.f32.mxu0 %v12042_v54 }
 0x2ab   : > { %5710 = vmatmul.mubr.msk.f32.gmra.mrb[186].mxu0 %vm1523_vm0, %v9248_v31 }
 0x2ac   : > { %2373 = vmatprep.mubr.f32.mxu0 %v12042_v54 }
 0x2af   : > { %5711 = vmatmul.mubr.msk.f32.gmra.mrb[188].mxu0 %vm1523_vm0, %v9258_v38 }
 0x2b0   : > { %2379 = vmatprep.mubr.f32.mxu0 %v12042_v54 }
 0x2b3   : > { %5712 = vmatmul.mubr.msk.f32.gmra.mrb[190].mxu0 %vm1523_vm0, %v9278_v44 }
 0x2b4   : > { %2385 = vmatprep.mubr.f32.mxu0 %v12042_v54 }
 0x2b7   : > { %5713 = vmatmul.mubr.msk.f32.gmra.mrb[192].mxu0 %vm1523_vm0, %v9288_v26 }
 0x2b8   : > { %2391 = vmatprep.mubr.f32.mxu0 %v12042_v54 }
 0x2bb   : > { %5714 = vmatmul.mubr.msk.f32.gmra.mrb[194].mxu0 %vm1523_vm0, %v9308_v61 }
 0x2bc   : > { %2397 = vmatprep.mubr.f32.mxu0 %v12042_v54 }
 0x2bf   : > { %5715 = vmatmul.mubr.msk.f32.gmra.mrb[196].mxu0 %vm1523_vm0, %v8699_v42 }
 0x2c0   : > { %2403 = vmatprep.mubr.f32.mxu0 %v12042_v54 }
 0x2c3   : > { %5716 = vmatmul.mubr.msk.f32.gmra.mrb[198].mxu0 %vm1523_vm0, %v8959_v49 }
 0x2c4   : > { %2409 = vmatprep.mubr.f32.mxu0 %v12042_v54 }
 0x2c7   : > { %5717 = vmatmul.mubr.msk.f32.gmra.mrb[200].mxu0 %vm1523_vm0, %v9196_v4 }
 0x2c8   : > { %2415 = vmatprep.mubr.f32.mxu0 %v12042_v54 }
 0x2cb   : > { %5718 = vmatmul.mubr.msk.f32.gmra.mrb[202].mxu0 %vm1523_vm0, %v9206_v0 }
 0x2cc   : > { %2421 = vmatprep.mubr.f32.mxu0 %v12042_v54 }
 0x2cf   : > { %5719 = vmatmul.mubr.msk.f32.gmra.mrb[204].mxu0 %vm1523_vm0, %v9233_v17 }
 0x2d0   : > { %2427 = vmatprep.mubr.f32.mxu0 %v12042_v54 }
 0x2d2   : > { %v9522_v42 = vpop.f32.mrb[100].mxu0  ;;  %v9650_v21 = vpop.f32.mrb[50].mxu1 }
 0x2d3   : > { %12428 = vst [vmem:[#allocation14_spill] sm:$0xff] %v9522_v42  ;;  %5720 = vmatmul.mubr.msk.f32.gmra.mrb[206].mxu0 %vm1523_vm0, %v9242_v22  ;;  %v9526_v57 = vpop.f32.mrb[101].mxu0  ;;  %12456 = vst [vmem:[#allocation60_spill] sm:$0xff] %v9650_v21 }
 0x2d4   : > { %12429 = vst [vmem:[#allocation20_spill] sm:$0xff] %v9526_v57  ;;  %2433 = vmatprep.mubr.f32.mxu0 %v12042_v54 }
 0x2d6   : > { %v9531_v11 = vpop.f32.mrb[102].mxu0 }
 0x2d7   : > { %12430 = vst [vmem:[#allocation23_spill] sm:$0xff] %v9531_v11  ;;  %5721 = vmatmul.mubr.msk.f32.gmra.mrb[208].mxu0 %vm1523_vm0, %v9263_v32  ;;  %v9535_v40 = vpop.f32.mrb[103].mxu0 }
 0x2d8   : > { %12431 = vst [vmem:[#allocation15_spill] sm:$0xff] %v9535_v40  ;;  %2439 = vmatprep.mubr.f32.mxu0 %v12042_v54 }
 0x2da   : > { %v9540_v25 = vpop.f32.mrb[104].mxu0 }
 0x2db   : > { %12432 = vst [vmem:[#allocation16_spill] sm:$0xff] %v9540_v25  ;;  %5722 = vmatmul.mubr.msk.f32.gmra.mrb[210].mxu0 %vm1523_vm0, %v9272_v34  ;;  %v9544_v4 = vpop.f32.mrb[105].mxu0 }
 0x2dc   : > { %12433 = vst [vmem:[#allocation52_spill] sm:$0xff] %v9544_v4  ;;  %2445 = vmatprep.mubr.f32.mxu0 %v12042_v54 }
 0x2de   : > { %v9549_v60 = vpop.f32.mrb[106].mxu0 }
 0x2df   : > { %5723 = vmatmul.mubr.msk.f32.gmra.mrb[212].mxu0 %vm1523_vm0, %v9293_v33  ;;  %v9553_v6 = vpop.f32.mrb[107].mxu0 }
 0x2e0   : > { %12434 = vst [vmem:[#allocation17_spill] sm:$0xff] %v9553_v6  ;;  %2451 = vmatprep.mubr.f32.mxu0 %v12042_v54 }
 0x2e2   : > { %v9558_v22 = vpop.f32.mrb[108].mxu0 }
 0x2e3   : > { %12435 = vst [vmem:[#allocation18_spill] sm:$0xff] %v9558_v22  ;;  %5724 = vmatmul.mubr.msk.f32.gmra.mrb[214].mxu0 %vm1523_vm0, %v9302_v43  ;;  %v9562_v31 = vpop.f32.mrb[109].mxu0 }
 0x2e4   : > { %12436 = vst [vmem:[#allocation22_spill] sm:$0xff] %v9562_v31  ;;  %2457 = vmatprep.mubr.f32.mxu0 %v12042_v54 }
 0x2e6   : > { %v9567_v38 = vpop.f32.mrb[110].mxu0 }
 0x2e7   : > { %12437 = vst [vmem:[#allocation27_spill] sm:$0xff] %v9567_v38  ;;  %5725 = vmatmul.mubr.msk.f32.gmra.mrb[216].mxu0 %vm1523_vm0, %v9319_v35  ;;  %v9571_v24 = vpop.f32.mrb[111].mxu0 }
 0x2e8   : > { %12438 = vst [vmem:[#allocation19_spill] sm:$0xff] %v9571_v24  ;;  %2463 = vmatprep.mubr.f32.mxu0 %v12042_v54 }
 0x2ea   : > { %v9576_v32 = vpop.f32.mrb[112].mxu0 }
 0x2eb   : > { %12439 = vst [vmem:[#allocation21_spill] sm:$0xff] %v9576_v32  ;;  %5726 = vmatmul.mubr.msk.f32.gmra.mrb[218].mxu0 %vm1523_vm0, %v9327_v58  ;;  %v9580_v34 = vpop.f32.mrb[113].mxu0 }
 0x2ec   : > { %12440 = vst [vmem:[#allocation24_spill] sm:$0xff] %v9580_v34  ;;  %2469 = vmatprep.mubr.f32.mxu0 %v12042_v54 }
 0x2ee   : > { %v9585_v44 = vpop.f32.mrb[114].mxu0 }
 0x2ef   : > { %12441 = vst [vmem:[#allocation26_spill] sm:$0xff] %v9585_v44  ;;  %5727 = vmatmul.mubr.msk.f32.gmra.mrb[220].mxu0 %vm1523_vm0, %v9339_v15  ;;  %v9589_v48 = vpop.f32.mrb[115].mxu0 }
 0x2f0   : > { %12442 = vst [vmem:[#allocation25_spill] sm:$0xff] %v9589_v48  ;;  %2475 = vmatprep.mubr.f32.mxu0 %v12042_v54 }
 0x2f2   : > { %v9594_v51 = vpop.f32.mrb[116].mxu0 }
 0x2f3   : > { %12443 = vst [vmem:[#allocation29_spill] sm:$0xff] %v9594_v51  ;;  %5728 = vmatmul.mubr.msk.f32.gmra.mrb[222].mxu0 %vm1523_vm0, %v9347_v1  ;;  %v9598_v53 = vpop.f32.mrb[117].mxu0 }
 0x2f4   : > { %12444 = vst [vmem:[#allocation28_spill] sm:$0xff] %v9598_v53  ;;  %2481 = vmatprep.mubr.f32.mxu0 %v12042_v54 }
 0x2f6   : > { %v9603_v43 = vpop.f32.mrb[118].mxu0 }
 0x2f7   : > { %12445 = vst [vmem:[#allocation33_spill] sm:$0xff] %v9603_v43  ;;  %5729 = vmatmul.mubr.msk.f32.gmra.mrb[224].mxu0 %vm1523_vm0, %v9359_v30  ;;  %v9607_v52 = vpop.f32.mrb[119].mxu0 }
 0x2f8   : > { %12446 = vst [vmem:[#allocation32_spill] sm:$0xff] %v9607_v52  ;;  %2487 = vmatprep.mubr.f32.mxu0 %v12042_v54 }
 0x2fa   : > { %v9612_v13 = vpop.f32.mrb[120].mxu0 }
 0x2fb   : > { %12447 = vst [vmem:[#allocation37_spill] sm:$0xff] %v9612_v13  ;;  %5730 = vmatmul.mubr.msk.f32.gmra.mrb[226].mxu0 %vm1523_vm0, %v9367_v50  ;;  %v9616_v63 = vpop.f32.mrb[121].mxu0 }
 0x2fc   : > { %12448 = vst [vmem:[#allocation36_spill] sm:$0xff] %v9616_v63  ;;  %2493 = vmatprep.mubr.f32.mxu0 %v12042_v54 }
 0x2fe   : > { %v9621_v58 = vpop.f32.mrb[122].mxu0 }
 0x2ff   : > { %12449 = vst [vmem:[#allocation53_spill] sm:$0xff] %v9621_v58  ;;  %5731 = vmatmul.mubr.msk.f32.gmra.mrb[228].mxu0 %vm1523_vm0, %v9379_v9  ;;  %v9625_v45 = vpop.f32.mrb[123].mxu0 }
 0x300   : > { %12450 = vst [vmem:[#allocation54_spill] sm:$0xff] %v9625_v45  ;;  %2499 = vmatprep.mubr.f32.mxu0 %v12042_v54 }
 0x302   : > { %v9630_v15 = vpop.f32.mrb[124].mxu0 }
 0x303   : > { %12451 = vst [vmem:[#allocation55_spill] sm:$0xff] %v9630_v15  ;;  %5732 = vmatmul.mubr.msk.f32.gmra.mrb[230].mxu0 %vm1523_vm0, %v9387_v46  ;;  %v9634_v1 = vpop.f32.mrb[125].mxu0  ;;  %v9656_v46 = vpop.f32.mrb[51].mxu1 }
 0x304   : > { %12452 = vst [vmem:[#allocation56_spill] sm:$0xff] %v9634_v1  ;;  %2505 = vmatprep.mubr.f32.mxu0 %v12042_v54  ;;  %12458 = vst [vmem:[#allocation62_spill] sm:$0xff] %v9656_v46  ;;  %v9661_v10 = vpop.f32.mrb[52].mxu1 }
 0x305   : > { %12459 = vst [vmem:[#allocation63_spill] sm:$0xff] %v9661_v10 }
 0x306   : > { %v9639_v16 = vpop.f32.mrb[126].mxu0 }
 0x307   : > { %12453 = vst [vmem:[#allocation57_spill] sm:$0xff] %v9639_v16  ;;  %5733 = vmatmul.mubr.msk.f32.gmra.mrb[232].mxu0 %vm1523_vm0, %v9399_v39  ;;  %v9643_v30 = vpop.f32.mrb[127].mxu0  ;;  %v9663_v39 = vpop.f32.mrb[53].mxu1 }
 0x308   : > { %12454 = vst [vmem:[#allocation58_spill] sm:$0xff] %v9643_v30  ;;  %2511 = vmatprep.mubr.f32.mxu0 %v12042_v54  ;;  %12460 = vst [vmem:[#allocation64_spill] sm:$0xff] %v9663_v39  ;;  %v9680_v14 = vpop.f32.mrb[54].mxu1 }
 0x309   : > { %12462 = vst [vmem:[#allocation66_spill] sm:$0xff] %v9680_v14 }
 0x30a   : > { %v9648_v47 = vpop.f32.mrb[128].mxu0 }
 0x30b   : > { %12455 = vst [vmem:[#allocation59_spill] sm:$0xff] %v9648_v47  ;;  %5734 = vmatmul.mubr.msk.f32.gmra.mrb[234].mxu0 %vm1523_vm0, %v9407_v2  ;;  %v9654_v9 = vpop.f32.mrb[129].mxu0  ;;  %v9686_v2 = vpop.f32.mrb[55].mxu1 }
 0x30c   : > { %12457 = vst [vmem:[#allocation61_spill] sm:$0xff] %v9654_v9  ;;  %2517 = vmatprep.mubr.f32.mxu0 %v12042_v54  ;;  %12463 = vst [vmem:[#allocation67_spill] sm:$0xff] %v9686_v2  ;;  %v9691_v8 = vpop.f32.mrb[56].mxu1 }
 0x30d   : > { %12464 = vst [vmem:[#allocation68_spill] sm:$0xff] %v9691_v8  ;;  %v9697_v23 = vpop.f32.mrb[57].mxu1  ;;  %v12486_v8 = vmax.f32 %v9522_v42, %v9526_v57 }
 0x30e   : > { %v9665_v19 = vpop.f32.mrb[130].mxu0  ;;  %12465 = vst [vmem:[#allocation69_spill] sm:$0xff] %v9697_v23  ;;  %v9710_v61 = vpop.f32.mrb[58].mxu1 }
 0x30f   : > { %5735 = vmatmul.mubr.msk.f32.gmra.mrb[236].mxu0 %vm1523_vm0, %v9419_v28  ;;  %v9673_v29 = vpop.f32.mrb[131].mxu0  ;;  %12466 = vst [vmem:[#allocation70_spill] sm:$0xff] %v9710_v61 }
 0x310   : > { %12461 = vst [vmem:[#allocation65_spill] sm:$0xff] %v9673_v29  ;;  %2523 = vmatprep.mubr.f32.mxu0 %v12042_v54 }
 0x312   : > { %v9678_v41 = vpop.f32.mrb[132].mxu0 }
 0x313   : > { %5736 = vmatmul.mubr.msk.f32.gmra.mrb[238].mxu0 %vm1523_vm0, %v9427_v55  ;;  %v9684_v62 = vpop.f32.mrb[133].mxu0 }
 0x314   : > { %2529 = vmatprep.mubr.f32.mxu0 %v12042_v54 }
 0x316   : > { %v9693_v50 = vpop.f32.mrb[134].mxu0 }
 0x317   : > { %5737 = vmatmul.mubr.msk.f32.gmra.mrb[240].mxu0 %vm1523_vm0, %v9439_v12  ;;  %v9701_v55 = vpop.f32.mrb[135].mxu0  ;;  %v9716_v12 = vpop.f32.mrb[59].mxu1 }
 0x318   : > { %2535 = vmatprep.mubr.f32.mxu0 %v12042_v54  ;;  %12467 = vst [vmem:[#allocation71_spill] sm:$0xff] %v9716_v12  ;;  %v9721_v33 = vpop.f32.mrb[60].mxu1 }
 0x319   : > { %12468 = vst [vmem:[#allocation72_spill] sm:$0xff] %v9721_v33  ;;  %v9727_v37 = vpop.f32.mrb[61].mxu1 }
 0x31a   : > { %v9708_v35 = vpop.f32.mrb[136].mxu0  ;;  %12469 = vst [vmem:[#allocation73_spill] sm:$0xff] %v9727_v37  ;;  %v9740_v17 = vpop.f32.mrb[62].mxu1 }
 0x31b   : > { %5738 = vmatmul.mubr.msk.f32.gmra.mrb[242].mxu0 %vm1523_vm0, %v9447_v7  ;;  %v9714_v3 = vpop.f32.mrb[137].mxu0  ;;  %12470 = vst [vmem:[#allocation74_spill] sm:$0xff] %v9740_v17 }
 0x31c   : > { %2541 = vmatprep.mubr.f32.mxu0 %v12042_v54 }
 0x31e   : > { %v9723_v26 = vpop.f32.mrb[138].mxu0 }
 0x31f   : > { %5739 = vmatmul.mubr.msk.f32.gmra.mrb[244].mxu0 %vm1523_vm0, %v9459_v36  ;;  %v9731_v7 = vpop.f32.mrb[139].mxu0  ;;  %v9746_v36 = vpop.f32.mrb[63].mxu1 }
 0x320   : > { %2547 = vmatprep.mubr.f32.mxu0 %v12042_v54  ;;  %12471 = vst [vmem:[#allocation75_spill] sm:$0xff] %v9746_v36  ;;  %v9750_v27 = vpop.f32.mrb[64].mxu1 }
 0x321   : > { %12472 = vst [vmem:[#allocation76_spill] sm:$0xff] %v9750_v27  ;;  %v9756_v20 = vpop.f32.mrb[65].mxu1 }
 0x322   : > { %v9738_v59 = vpop.f32.mrb[140].mxu0  ;;  %12474 = vst [vmem:[#allocation78_spill] sm:$0xff] %v9756_v20  ;;  %v9766_v0 = vpop.f32.mrb[66].mxu1 }
 0x323   : > { %5740 = vmatmul.mubr.msk.f32.gmra.mrb[246].mxu0 %vm1523_vm0, %v9467_v18  ;;  %v9744_v28 = vpop.f32.mrb[141].mxu0  ;;  %12477 = vst [vmem:[#allocation81_spill] sm:$0xff] %v9766_v0  ;;  %v9770_v12 = vpop.f32.mrb[67].mxu1 }
 0x324   : > { %12479 = vst [vmem:[#allocation83_spill] sm:$0xff] %v9770_v12  ;;  %v9774_v36 = vpop.f32.mrb[68].mxu1 }
 0x325   : > { %12480 = vst [vmem:[#allocation84_spill] sm:$0xff] %v9774_v36  ;;  %v9780_v20 = vpop.f32.mrb[69].mxu1 }
 0x326   : > { %v9752_v54 = vpop.f32.mrb[142].mxu0  ;;  %12482 = vst [vmem:[#allocation86_spill] sm:$0xff] %v9780_v20  ;;  %v9790_v5 = vpop.f32.mrb[70].mxu1 }
 0x327   : > { %12473 = vst [vmem:[#allocation77_spill] sm:$0xff] %v9752_v54  ;;  %v9758_v49 = vpop.f32.mrb[143].mxu0  ;;  %12485 = vst [vmem:[#allocation89_spill] sm:$0xff] %v9790_v5  ;;  %v9798_v0 = vpop.f32.mrb[71].mxu1 }
 0x328   : > { %12475 = vst [vmem:[#allocation79_spill] sm:$0xff] %v9758_v49  ;;  %12488 = vst [vmem:[#allocation91_spill] sm:$0xff] %v9798_v0  ;;  %v9802_v36 = vpop.f32.mrb[72].mxu1  ;;  %v12496_v0 = vmax.f32 %v9540_v25, %v9544_v4 }
 0x329   : > { %12489 = vst [vmem:[#allocation92_spill] sm:$0xff] %v9802_v36  ;;  %v9808_v14 = vpop.f32.mrb[73].mxu1 }
 0x32a   : > { %v9764_v37 = vpop.f32.mrb[144].mxu0  ;;  %12491 = vst [vmem:[#allocation94_spill] sm:$0xff] %v9808_v14  ;;  %v9822_v2 = vpop.f32.mrb[74].mxu1 }
 0x32b   : > { %12476 = vst [vmem:[#allocation80_spill] sm:$0xff] %v9764_v37  ;;  %v9768_v33 = vpop.f32.mrb[145].mxu0  ;;  %12495 = vst [vmem:[#allocation97_spill] sm:$0xff] %v9822_v2 }
 0x32c   : > { %12478 = vst [vmem:[#allocation82_spill] sm:$0xff] %v9768_v33 }
 0x32e   : > { %v9776_v17 = vpop.f32.mrb[146].mxu0 }
 0x32f   : > { %12481 = vst [vmem:[#allocation85_spill] sm:$0xff] %v9776_v17  ;;  %v9782_v56 = vpop.f32.mrb[147].mxu0 }
 0x330   : > { %12483 = vst [vmem:[#allocation87_spill] sm:$0xff] %v9782_v56 }
 0x332   : > { %v9788_v23 = vpop.f32.mrb[148].mxu0 }
 0x333   : > { %12484 = vst [vmem:[#allocation88_spill] sm:$0xff] %v9788_v23  ;;  %v2555_v18 = vmax.f32 %v12486_v8, %v9788_v23  ;;  %v9796_v12 = vpop.f32.mrb[149].mxu0  ;;  %v12492_v8 = vmax.f32 %v9531_v11, %v9535_v40 }
 0x334   : > { %12487 = vst [vmem:[#allocation90_spill] sm:$0xff] %v9796_v12  ;;  %v2557_v27 = vsel %vm2556_vm2, %v9796_v12, -inf }
 0x335   : > { %v2558_v20 = vmax.f32 %v2555_v18, %v2557_v27 }
 0x336   : > { %v9804_v61 = vpop.f32.mrb[150].mxu0 }
 0x337   : > { %12490 = vst [vmem:[#allocation93_spill] sm:$0xff] %v9804_v61  ;;  %v2562_v23 = vmax.f32 %v12492_v8, %v9804_v61  ;;  %2559 = vmax.xlane.f32.xlu0 %v2558_v20  ;;  %v9814_v57 = vpop.f32.mrb[151].mxu0  ;;  %v9830_v8 = vpop.f32.mrb[75].mxu1 }
 0x338   : > { %12493 = vst [vmem:[#allocation95_spill] sm:$0xff] %v9814_v57  ;;  %v2563_v18 = vsel %vm2556_vm2, %v9814_v57, -inf  ;;  %12498 = vst [vmem:[#allocation99_spill] sm:$0xff] %v9830_v8  ;;  %v9834_v57 = vpop.f32.mrb[76].mxu1 }
 0x339   : > { %v2564_v12 = vmax.f32 %v2562_v23, %v2563_v18  ;;  %12499 = vst [vmem:[#allocation100_spill] sm:$0xff] %v9834_v57  ;;  %v9840_v11 = vpop.f32.mrb[77].mxu1  ;;  %v12505_v18 = vmax.f32 %v9558_v22, %v9562_v31  ;;  %v12520_v31 = vmax.f32 %v9585_v44, %v9589_v48 }
 0x33a   : > { %v9820_v42 = vpop.f32.mrb[152].mxu0  ;;  %12501 = vst [vmem:[#allocation102_spill] sm:$0xff] %v9840_v11 }
 0x33b   : > { %12494 = vst [vmem:[#allocation96_spill] sm:$0xff] %v9820_v42  ;;  %v2568_v40 = vmax.f32 %v12496_v0, %v9820_v42  ;;  %2565 = vmax.xlane.f32.xlu0 %v2564_v12  ;;  %v9828_v20 = vpop.f32.mrb[153].mxu0  ;;  %v12502_v0 = vmax.f32 %v9549_v60, %v9553_v6 }
 0x33c   : > { %12497 = vst [vmem:[#allocation98_spill] sm:$0xff] %v9828_v20  ;;  %v2569_v27 = vsel %vm2556_vm2, %v9828_v20, -inf }
 0x33d   : > { %v2570_v61 = vmax.f32 %v2568_v40, %v2569_v27 }
 0x33e   : > { %v9836_v23 = vpop.f32.mrb[154].mxu0 }
 0x33f   : > { %12500 = vst [vmem:[#allocation101_spill] sm:$0xff] %v9836_v23  ;;  %v2574_v12 = vmax.f32 %v12502_v0, %v9836_v23  ;;  %2571 = vmax.xlane.f32.xlu1 %v2570_v61  ;;  %v9846_v42 = vpop.f32.mrb[155].mxu0  ;;  %v9862_v23 = vpop.f32.mrb[78].mxu1 }
 0x340   : > { %12503 = vst [vmem:[#allocation103_spill] sm:$0xff] %v9846_v42  ;;  %v2575_v27 = vsel %vm2556_vm2, %v9846_v42, -inf  ;;  %12507 = vst [vmem:[#allocation106_spill] sm:$0xff] %v9862_v23  ;;  %v9866_v42 = vpop.f32.mrb[79].mxu1 }
 0x341   : > { %v2576_v20 = vmax.f32 %v2574_v12, %v2575_v27  ;;  %12509 = vst [vmem:[#allocation108_spill] sm:$0xff] %v9866_v42  ;;  %v12510_v12 = vmax.f32 %v9567_v38, %v9571_v24 }
 0x342   : > { %v9852_v4 = vpop.f32.mrb[156].mxu0 }
 0x343   : > { %12504 = vst [vmem:[#allocation104_spill] sm:$0xff] %v9852_v4  ;;  %v2580_v25 = vmax.f32 %v12505_v18, %v9852_v4  ;;  %2577 = vmax.xlane.f32.xlu1 %v2576_v20  ;;  %v9858_v6 = vpop.f32.mrb[157].mxu0  ;;  %v9874_v20 = vpop.f32.mrb[80].mxu1 }
 0x344   : > { %12506 = vst [vmem:[#allocation105_spill] sm:$0xff] %v9858_v6  ;;  %v2581_v61 = vsel %vm2556_vm2, %v9858_v6, -inf  ;;  %12512 = vst [vmem:[#allocation110_spill] sm:$0xff] %v9874_v20 }
 0x345   : > { %v2582_v0 = vmax.f32 %v2580_v25, %v2581_v61  ;;  %v9878_v25 = vpop.f32.mrb[81].mxu1 }
 0x346   : > { %v9864_v40 = vpop.f32.mrb[158].mxu0  ;;  %12513 = vst [vmem:[#allocation111_spill] sm:$0xff] %v9878_v25 }
 0x347   : > { %12508 = vst [vmem:[#allocation107_spill] sm:$0xff] %v9864_v40  ;;  %v2586_v27 = vmax.f32 %v12510_v12, %v9864_v40  ;;  %2583 = vmax.xlane.f32.xlu0 %v2582_v0  ;;  %v9872_v18 = vpop.f32.mrb[159].mxu0  ;;  %v12515_v0 = vmax.f32 %v9576_v32, %v9580_v34  ;;  %v12530_v34 = vmax.f32 %v9603_v43, %v9607_v52 }
 0x348   : > { %12511 = vst [vmem:[#allocation109_spill] sm:$0xff] %v9872_v18  ;;  %v2587_v6 = vsel %vm2556_vm2, %v9872_v18, -inf }
 0x349   : > { %v2588_v61 = vmax.f32 %v2586_v27, %v2587_v6  ;;  %v9894_v27 = vpop.f32.mrb[82].mxu1 }
 0x34a   : > { %v9884_v22 = vpop.f32.mrb[160].mxu0  ;;  %12517 = vst [vmem:[#allocation114_spill] sm:$0xff] %v9894_v27  ;;  %v9898_v24 = vpop.f32.mrb[83].mxu1 }
 0x34b   : > { %12514 = vst [vmem:[#allocation112_spill] sm:$0xff] %v9884_v22  ;;  %v2592_v12 = vmax.f32 %v12515_v0, %v9884_v22  ;;  %2589 = vmax.xlane.f32.xlu1 %v2588_v61  ;;  %v9890_v40 = vpop.f32.mrb[161].mxu0  ;;  %12519 = vst [vmem:[#allocation116_spill] sm:$0xff] %v9898_v24  ;;  %v9906_v61 = vpop.f32.mrb[84].mxu1 }
 0x34c   : > { %12516 = vst [vmem:[#allocation113_spill] sm:$0xff] %v9890_v40  ;;  %v2593_v18 = vsel %vm2556_vm2, %v9890_v40, -inf  ;;  %12522 = vst [vmem:[#allocation118_spill] sm:$0xff] %v9906_v61 }
 0x34d   : > { %v2594_v6 = vmax.f32 %v2592_v12, %v2593_v18  ;;  %v9910_v18 = vpop.f32.mrb[85].mxu1 }
 0x34e   : > { %v9896_v4 = vpop.f32.mrb[162].mxu0  ;;  %12523 = vst [vmem:[#allocation119_spill] sm:$0xff] %v9910_v18 }
 0x34f   : > { %12518 = vst [vmem:[#allocation115_spill] sm:$0xff] %v9896_v4  ;;  %v2598_v38 = vmax.f32 %v12520_v31, %v9896_v4  ;;  %2595 = vmax.xlane.f32.xlu0 %v2594_v6  ;;  %v9904_v0 = vpop.f32.mrb[163].mxu0  ;;  %v12525_v31 = vmax.f32 %v9594_v51, %v9598_v53  ;;  %v12540_v53 = vmax.f32 %v9621_v58, %v9625_v45 }
 0x350   : > { %12521 = vst [vmem:[#allocation117_spill] sm:$0xff] %v9904_v0  ;;  %v2599_v40 = vsel %vm2556_vm2, %v9904_v0, -inf }
 0x351   : > { %v2600_v12 = vmax.f32 %v2598_v38, %v2599_v40  ;;  %v9926_v40 = vpop.f32.mrb[86].mxu1 }
 0x352   : > { %v9916_v32 = vpop.f32.mrb[164].mxu0  ;;  %12527 = vst [vmem:[#allocation122_spill] sm:$0xff] %v9926_v40  ;;  %v9930_v48 = vpop.f32.mrb[87].mxu1 }
 0x353   : > { %12524 = vst [vmem:[#allocation120_spill] sm:$0xff] %v9916_v32  ;;  %v2604_v6 = vmax.f32 %v12525_v31, %v9916_v32  ;;  %2601 = vmax.xlane.f32.xlu1 %v2600_v12  ;;  %v9922_v4 = vpop.f32.mrb[165].mxu0  ;;  %12529 = vst [vmem:[#allocation124_spill] sm:$0xff] %v9930_v48  ;;  %v9938_v12 = vpop.f32.mrb[88].mxu1 }
 0x354   : > { %12526 = vst [vmem:[#allocation121_spill] sm:$0xff] %v9922_v4  ;;  %v2605_v0 = vsel %vm2556_vm2, %v9922_v4, -inf  ;;  %12532 = vst [vmem:[#allocation126_spill] sm:$0xff] %v9938_v12 }
 0x355   : > { %v2606_v38 = vmax.f32 %v2604_v6, %v2605_v0  ;;  %v9942_v0 = vpop.f32.mrb[89].mxu1 }
 0x356   : > { %v9928_v22 = vpop.f32.mrb[166].mxu0  ;;  %12533 = vst [vmem:[#allocation127_spill] sm:$0xff] %v9942_v0 }
 0x357   : > { %12528 = vst [vmem:[#allocation123_spill] sm:$0xff] %v9928_v22  ;;  %v2610_v44 = vmax.f32 %v12530_v34, %v9928_v22  ;;  %2607 = vmax.xlane.f32.xlu0 %v2606_v38  ;;  %v9936_v31 = vpop.f32.mrb[167].mxu0  ;;  %v12535_v34 = vmax.f32 %v9612_v13, %v9616_v63  ;;  %v12550_v63 = vmax.f32 %v9639_v16, %v9643_v30 }
 0x358   : > { %12531 = vst [vmem:[#allocation125_spill] sm:$0xff] %v9936_v31  ;;  %v2611_v4 = vsel %vm2556_vm2, %v9936_v31, -inf }
 0x359   : > { %v2612_v6 = vmax.f32 %v2610_v44, %v2611_v4  ;;  %v9958_v44 = vpop.f32.mrb[90].mxu1 }
 0x35a   : > { %v9948_v51 = vpop.f32.mrb[168].mxu0  ;;  %12537 = vst [vmem:[#allocation130_spill] sm:$0xff] %v9958_v44  ;;  %v9962_v52 = vpop.f32.mrb[91].mxu1 }
 0x35b   : > { %12534 = vst [vmem:[#allocation128_spill] sm:$0xff] %v9948_v51  ;;  %v2616_v38 = vmax.f32 %v12535_v34, %v9948_v51  ;;  %2613 = vmax.xlane.f32.xlu1 %v2612_v6  ;;  %v9954_v22 = vpop.f32.mrb[169].mxu0  ;;  %12539 = vst [vmem:[#allocation132_spill] sm:$0xff] %v9962_v52  ;;  %v9970_v6 = vpop.f32.mrb[92].mxu1 }
 0x35c   : > { %12536 = vst [vmem:[#allocation129_spill] sm:$0xff] %v9954_v22  ;;  %v2617_v31 = vsel %vm2556_vm2, %v9954_v22, -inf  ;;  %12542 = vst [vmem:[#allocation134_spill] sm:$0xff] %v9970_v6 }
 0x35d   : > { %v2618_v4 = vmax.f32 %v2616_v38, %v2617_v31  ;;  %v9974_v31 = vpop.f32.mrb[93].mxu1 }
 0x35e   : > { %v9960_v32 = vpop.f32.mrb[170].mxu0  ;;  %12543 = vst [vmem:[#allocation135_spill] sm:$0xff] %v9974_v31 }
 0x35f   : > { %12538 = vst [vmem:[#allocation131_spill] sm:$0xff] %v9960_v32  ;;  %v2622_v43 = vmax.f32 %v12540_v53, %v9960_v32  ;;  %2619 = vmax.xlane.f32.xlu0 %v2618_v4  ;;  %v9968_v34 = vpop.f32.mrb[171].mxu0  ;;  %v12545_v53 = vmax.f32 %v9630_v15, %v9634_v1  ;;  %v12560_v1 = vmax.f32 %v9665_v19, %v9673_v29 }
 0x360   : > { %12541 = vst [vmem:[#allocation133_spill] sm:$0xff] %v9968_v34  ;;  %v2623_v22 = vsel %vm2556_vm2, %v9968_v34, -inf }
 0x361   : > { %v2624_v38 = vmax.f32 %v2622_v43, %v2623_v22  ;;  %v9990_v43 = vpop.f32.mrb[94].mxu1 }
 0x362   : > { %v9980_v13 = vpop.f32.mrb[172].mxu0  ;;  %12547 = vst [vmem:[#allocation138_spill] sm:$0xff] %v9990_v43  ;;  %v9994_v45 = vpop.f32.mrb[95].mxu1 }
 0x363   : > { %12544 = vst [vmem:[#allocation136_spill] sm:$0xff] %v9980_v13  ;;  %v2628_v4 = vmax.f32 %v12545_v53, %v9980_v13  ;;  %2625 = vmax.xlane.f32.xlu1 %v2624_v38  ;;  %v9986_v32 = vpop.f32.mrb[173].mxu0  ;;  %12549 = vst [vmem:[#allocation140_spill] sm:$0xff] %v9994_v45  ;;  %v10002_v38 = vpop.f32.mrb[96].mxu1 }
 0x364   : > { %12546 = vst [vmem:[#allocation137_spill] sm:$0xff] %v9986_v32  ;;  %v2629_v34 = vsel %vm2556_vm2, %v9986_v32, -inf  ;;  %12552 = vst [vmem:[#allocation142_spill] sm:$0xff] %v10002_v38 }
 0x365   : > { %v2630_v22 = vmax.f32 %v2628_v4, %v2629_v34  ;;  %v10006_v34 = vpop.f32.mrb[97].mxu1 }
 0x366   : > { %v9992_v51 = vpop.f32.mrb[174].mxu0  ;;  %12553 = vst [vmem:[#allocation143_spill] sm:$0xff] %v10006_v34 }
 0x367   : > { %12548 = vst [vmem:[#allocation139_spill] sm:$0xff] %v9992_v51  ;;  %v2634_v58 = vmax.f32 %v12550_v63, %v9992_v51  ;;  %2631 = vmax.xlane.f32.xlu0 %v2630_v22  ;;  %v10000_v53 = vpop.f32.mrb[175].mxu0  ;;  %v12555_v63 = vmax.f32 %v9648_v47, %v9654_v9  ;;  %v12567_v9 = vmax.f32 %v9693_v50, %v9701_v55 }
 0x368   : > { %12551 = vst [vmem:[#allocation141_spill] sm:$0xff] %v10000_v53  ;;  %v2635_v32 = vsel %vm2556_vm2, %v10000_v53, -inf }
 0x369   : > { %v2636_v4 = vmax.f32 %v2634_v58, %v2635_v32  ;;  %v10022_v58 = vpop.f32.mrb[98].mxu1 }
 0x36a   : > { %v10012_v15 = vpop.f32.mrb[176].mxu0  ;;  %12557 = vst [vmem:[#allocation146_spill] sm:$0xff] %v10022_v58  ;;  %v10026_v30 = vpop.f32.mrb[99].mxu1 }
 0x36b   : > { %12554 = vst [vmem:[#allocation144_spill] sm:$0xff] %v10012_v15  ;;  %v2640_v22 = vmax.f32 %v12555_v63, %v10012_v15  ;;  %2637 = vmax.xlane.f32.xlu1 %v2636_v4  ;;  %v10018_v51 = vpop.f32.mrb[177].mxu0  ;;  %12559 = vst [vmem:[#allocation148_spill] sm:$0xff] %v10026_v30  ;;  %v10034_v4 = vpop.f32.mrb[100].mxu1 }
 0x36c   : > { %12556 = vst [vmem:[#allocation145_spill] sm:$0xff] %v10018_v51  ;;  %v2641_v53 = vsel %vm2556_vm2, %v10018_v51, -inf }
 0x36d   : > { %v2642_v32 = vmax.f32 %v2640_v22, %v2641_v53  ;;  %v10038_v53 = vpop.f32.mrb[101].mxu1 }
 0x36e   : > { %v10024_v13 = vpop.f32.mrb[178].mxu0  ;;  %12562 = vst [vmem:[#allocation150_spill] sm:$0xff] %v10038_v53 }
 0x36f   : > { %12558 = vst [vmem:[#allocation147_spill] sm:$0xff] %v10024_v13  ;;  %v2646_v16 = vmax.f32 %v12560_v1, %v10024_v13  ;;  %2643 = vmax.xlane.f32.xlu0 %v2642_v32  ;;  %v10032_v63 = vpop.f32.mrb[179].mxu0  ;;  %v12564_v1 = vmax.f32 %v9678_v41, %v9684_v62 }
 0x370   : > { %12561 = vst [vmem:[#allocation149_spill] sm:$0xff] %v10032_v63  ;;  %v2647_v51 = vsel %vm2556_vm2, %v10032_v63, -inf }
 0x371   : > { %v2648_v22 = vmax.f32 %v2646_v16, %v2647_v51 }
 0x372   : > { %v10044_v47 = vpop.f32.mrb[180].mxu0 }
 0x373   : > { %12563 = vst [vmem:[#allocation151_spill] sm:$0xff] %v10044_v47  ;;  %v2652_v32 = vmax.f32 %v12564_v1, %v10044_v47  ;;  %2649 = vmax.xlane.f32.xlu1 %v2648_v22  ;;  %v10050_v13 = vpop.f32.mrb[181].mxu0 }
 0x374   : > { %12565 = vst [vmem:[#allocation152_spill] sm:$0xff] %v10050_v13  ;;  %v2653_v63 = vsel %vm2556_vm2, %v10050_v13, -inf }
 0x375   : > { %v2654_v51 = vmax.f32 %v2652_v32, %v2653_v63  ;;  %v12570_v63 = vmax.f32 %v9708_v35, %v9714_v3 }
 0x376   : > { %v10054_v16 = vpop.f32.mrb[182].mxu0 }
 0x377   : > { %12566 = vst [vmem:[#allocation153_spill] sm:$0xff] %v10054_v16  ;;  %v2658_v15 = vmax.f32 %v12567_v9, %v10054_v16  ;;  %2655 = vmax.xlane.f32.xlu0 %v2654_v51  ;;  %v10060_v29 = vpop.f32.mrb[183].mxu0 }
 0x378   : > { %12568 = vst [vmem:[#allocation154_spill] sm:$0xff] %v10060_v29  ;;  %v2659_v1 = vsel %vm2556_vm2, %v10060_v29, -inf }
 0x379   : > { %v2660_v22 = vmax.f32 %v2658_v15, %v2659_v1  ;;  %v12573_v15 = vmax.f32 %v9723_v26, %v9731_v7 }
 0x37a   : > { %v10064_v47 = vpop.f32.mrb[184].mxu0 }
 0x37b   : > { %12569 = vst [vmem:[#allocation155_spill] sm:$0xff] %v10064_v47  ;;  %v2664_v32 = vmax.f32 %v12570_v63, %v10064_v47  ;;  %2661 = vmax.xlane.f32.xlu1 %v2660_v22  ;;  %v10070_v13 = vpop.f32.mrb[185].mxu0 }
 0x37c   : > { %12571 = vst [vmem:[#allocation156_spill] sm:$0xff] %v10070_v13  ;;  %v2665_v9 = vsel %vm2556_vm2, %v10070_v13, -inf }
 0x37d   : > { %v2666_v51 = vmax.f32 %v2664_v32, %v2665_v9  ;;  %v12576_v32 = vmax.f32 %v9738_v59, %v9744_v28 }
 0x37e   : > { %v10074_v16 = vpop.f32.mrb[186].mxu0 }
 0x37f   : > { %12572 = vst [vmem:[#allocation157_spill] sm:$0xff] %v10074_v16  ;;  %v2670_v1 = vmax.f32 %v12573_v15, %v10074_v16  ;;  %2667 = vmax.xlane.f32.xlu0 %v2666_v51  ;;  %v10080_v29 = vpop.f32.mrb[187].mxu0 }
 0x380   : > { %12574 = vst [vmem:[#allocation158_spill] sm:$0xff] %v10080_v29  ;;  %v2671_v63 = vsel %vm2556_vm2, %v10080_v29, -inf }
 0x381   : > { %v2672_v22 = vmax.f32 %v2670_v1, %v2671_v63  ;;  %v12579_v1 = vmax.f32 %v9752_v54, %v9758_v49  ;;  %v12763_v49 = vld [vmem:[#allocation51_spill] sm:$0xff] }
 0x382   : > { %v10084_v47 = vpop.f32.mrb[188].mxu0 }
 0x383   : > { %12575 = vst [vmem:[#allocation159_spill] sm:$0xff] %v10084_v47  ;;  %v2676_v9 = vmax.f32 %v12576_v32, %v10084_v47  ;;  %2673 = vmax.xlane.f32.xlu1 %v2672_v22  ;;  %v10090_v13 = vpop.f32.mrb[189].mxu0 }
 0x384   : > { %12577 = vst [vmem:[#allocation160_spill] sm:$0xff] %v10090_v13  ;;  %v2677_v15 = vsel %vm2556_vm2, %v10090_v13, -inf }
 0x385   : > { %v2678_v51 = vmax.f32 %v2676_v9, %v2677_v15  ;;  %v12582_v9 = vmax.f32 %v9764_v37, %v9768_v33  ;;  %v12743_v33 = vld [vmem:[#allocation47_spill] sm:$0xff] }
 0x386   : > { %v10094_v16 = vpop.f32.mrb[190].mxu0 }
 0x387   : > { %12578 = vst [vmem:[#allocation161_spill] sm:$0xff] %v10094_v16  ;;  %v2682_v63 = vmax.f32 %v12579_v1, %v10094_v16  ;;  %2679 = vmax.xlane.f32.xlu0 %v2678_v51  ;;  %v10100_v29 = vpop.f32.mrb[191].mxu0 }
 0x388   : > { %12580 = vst [vmem:[#allocation162_spill] sm:$0xff] %v10100_v29  ;;  %v2683_v32 = vsel %vm2556_vm2, %v10100_v29, -inf }
 0x389   : > { %v2684_v22 = vmax.f32 %v2682_v63, %v2683_v32  ;;  %v12585_v63 = vmax.f32 %v9776_v17, %v9782_v56  ;;  %v12723_v56 = vld [vmem:[#allocation43_spill] sm:$0xff] }
 0x38a   : > { %v10104_v47 = vpop.f32.mrb[192].mxu0 }
 0x38b   : > { %12581 = vst [vmem:[#allocation163_spill] sm:$0xff] %v10104_v47  ;;  %v2688_v15 = vmax.f32 %v12582_v9, %v10104_v47  ;;  %2685 = vmax.xlane.f32.xlu1 %v2684_v22  ;;  %v10110_v13 = vpop.f32.mrb[193].mxu0 }
 0x38c   : > { %12583 = vst [vmem:[#allocation164_spill] sm:$0xff] %v10110_v13  ;;  %v2689_v1 = vsel %vm2556_vm2, %v10110_v13, -inf }
 0x38d   : > { %v2690_v51 = vmax.f32 %v2688_v15, %v2689_v1  ;;  %v12588_v15 = vmax.f32 %v9650_v21, %v9656_v46  ;;  %v12594_v46 = vld [vmem:[#allocation66_spill] sm:$0xff] }
 0x38e   : > { %v10114_v16 = vpop.f32.mrb[194].mxu0 }
 0x38f   : > { %12584 = vst [vmem:[#allocation165_spill] sm:$0xff] %v10114_v16  ;;  %v2694_v32 = vmax.f32 %v12585_v63, %v10114_v16  ;;  %2691 = vmax.xlane.f32.xlu0 %v2690_v51  ;;  %v10120_v29 = vpop.f32.mrb[195].mxu0 }
 0x390   : > { %12586 = vst [vmem:[#allocation166_spill] sm:$0xff] %v10120_v29  ;;  %v2695_v9 = vsel %vm2556_vm2, %v10120_v29, -inf }
 0x391   : > { %v2696_v22 = vmax.f32 %v2694_v32, %v2695_v9  ;;  %v12591_v32 = vmax.f32 %v9661_v10, %v9663_v39  ;;  %v12599_v39 = vld [vmem:[#allocation68_spill] sm:$0xff] }
 0x392   : > { %v10124_v47 = vpop.f32.mrb[196].mxu0 }
 0x393   : > { %12587 = vst [vmem:[#allocation167_spill] sm:$0xff] %v10124_v47  ;;  %v2700_v1 = vmax.f32 %v12588_v15, %v10124_v47  ;;  %2697 = vmax.xlane.f32.xlu1 %v2696_v22  ;;  %v10130_v13 = vpop.f32.mrb[197].mxu0 }
 0x394   : > { %12589 = vst [vmem:[#allocation168_spill] sm:$0xff] %v10130_v13  ;;  %v2701_v63 = vsel %vm2556_vm2, %v10130_v13, -inf  ;;  %v12595_v13 = vld [vmem:[#allocation67_spill] sm:$0xff] }
 0x395   : > { %v2702_v51 = vmax.f32 %v2700_v1, %v2701_v63  ;;  %v12596_v1 = vmax.f32 %v12594_v46, %v12595_v13  ;;  %v12604_v13 = vld [vmem:[#allocation70_spill] sm:$0xff] }
 0x396   : > { %v10134_v16 = vpop.f32.mrb[198].mxu0 }
 0x397   : > { %12590 = vst [vmem:[#allocation169_spill] sm:$0xff] %v10134_v16  ;;  %v2706_v9 = vmax.f32 %v12591_v32, %v10134_v16  ;;  %2703 = vmax.xlane.f32.xlu0 %v2702_v51  ;;  %v10140_v29 = vpop.f32.mrb[199].mxu0 }
 0x398   : > { %12592 = vst [vmem:[#allocation170_spill] sm:$0xff] %v10140_v29  ;;  %v2707_v15 = vsel %vm2556_vm2, %v10140_v29, -inf  ;;  %v12600_v29 = vld [vmem:[#allocation69_spill] sm:$0xff] }
 0x399   : > { %v2708_v22 = vmax.f32 %v2706_v9, %v2707_v15  ;;  %v12601_v9 = vmax.f32 %v12599_v39, %v12600_v29  ;;  %v12609_v29 = vld [vmem:[#allocation72_spill] sm:$0xff] }
 0x39a   : > { %v10144_v47 = vpop.f32.mrb[200].mxu0 }
 0x39b   : > { %12593 = vst [vmem:[#allocation171_spill] sm:$0xff] %v10144_v47  ;;  %v2712_v63 = vmax.f32 %v12596_v1, %v10144_v47  ;;  %2709 = vmax.xlane.f32.xlu1 %v2708_v22  ;;  %v10150_v21 = vpop.f32.mrb[201].mxu0 }
 0x39c   : > { %12597 = vst [vmem:[#allocation172_spill] sm:$0xff] %v10150_v21  ;;  %v2713_v32 = vsel %vm2556_vm2, %v10150_v21, -inf  ;;  %v12605_v21 = vld [vmem:[#allocation71_spill] sm:$0xff] }
 0x39d   : > { %v2714_v51 = vmax.f32 %v2712_v63, %v2713_v32  ;;  %v12606_v63 = vmax.f32 %v12604_v13, %v12605_v21  ;;  %v12614_v21 = vld [vmem:[#allocation74_spill] sm:$0xff] }
 0x39e   : > { %v10154_v16 = vpop.f32.mrb[202].mxu0 }
 0x39f   : > { %12598 = vst [vmem:[#allocation173_spill] sm:$0xff] %v10154_v16  ;;  %v2718_v15 = vmax.f32 %v12601_v9, %v10154_v16  ;;  %2715 = vmax.xlane.f32.xlu0 %v2714_v51  ;;  %v10160_v10 = vpop.f32.mrb[203].mxu0 }
 0x3a0   : > { %12602 = vst [vmem:[#allocation174_spill] sm:$0xff] %v10160_v10  ;;  %v2719_v1 = vsel %vm2556_vm2, %v10160_v10, -inf  ;;  %v12610_v10 = vld [vmem:[#allocation73_spill] sm:$0xff] }
 0x3a1   : > { %v2720_v22 = vmax.f32 %v2718_v15, %v2719_v1  ;;  %v12611_v15 = vmax.f32 %v12609_v29, %v12610_v10  ;;  %v12619_v10 = vld [vmem:[#allocation76_spill] sm:$0xff] }
 0x3a2   : > { %v10164_v47 = vpop.f32.mrb[204].mxu0 }
 0x3a3   : > { %12603 = vst [vmem:[#allocation175_spill] sm:$0xff] %v10164_v47  ;;  %v2724_v32 = vmax.f32 %v12606_v63, %v10164_v47  ;;  %2721 = vmax.xlane.f32.xlu1 %v2720_v22  ;;  %v10170_v46 = vpop.f32.mrb[205].mxu0 }
 0x3a4   : > { %12607 = vst [vmem:[#allocation176_spill] sm:$0xff] %v10170_v46  ;;  %v2725_v9 = vsel %vm2556_vm2, %v10170_v46, -inf  ;;  %v12615_v46 = vld [vmem:[#allocation75_spill] sm:$0xff] }
 0x3a5   : > { %v2726_v51 = vmax.f32 %v2724_v32, %v2725_v9  ;;  %v12616_v32 = vmax.f32 %v12614_v21, %v12615_v46  ;;  %v12624_v46 = vld [vmem:[#allocation81_spill] sm:$0xff] }
 0x3a6   : > { %v10174_v16 = vpop.f32.mrb[206].mxu0 }
 0x3a7   : > { %12608 = vst [vmem:[#allocation177_spill] sm:$0xff] %v10174_v16  ;;  %v2730_v1 = vmax.f32 %v12611_v15, %v10174_v16  ;;  %2727 = vmax.xlane.f32.xlu0 %v2726_v51  ;;  %v10180_v39 = vpop.f32.mrb[207].mxu0 }
 0x3a8   : > { %12612 = vst [vmem:[#allocation178_spill] sm:$0xff] %v10180_v39  ;;  %v2731_v63 = vsel %vm2556_vm2, %v10180_v39, -inf  ;;  %v12620_v39 = vld [vmem:[#allocation78_spill] sm:$0xff] }
 0x3a9   : > { %v2732_v22 = vmax.f32 %v2730_v1, %v2731_v63  ;;  %v12621_v1 = vmax.f32 %v12619_v10, %v12620_v39  ;;  %v12629_v39 = vld [vmem:[#allocation84_spill] sm:$0xff] }
 0x3aa   : > { %v10184_v47 = vpop.f32.mrb[208].mxu0 }
 0x3ab   : > { %12613 = vst [vmem:[#allocation179_spill] sm:$0xff] %v10184_v47  ;;  %v2736_v9 = vmax.f32 %v12616_v32, %v10184_v47  ;;  %2733 = vmax.xlane.f32.xlu1 %v2732_v22  ;;  %v10190_v13 = vpop.f32.mrb[209].mxu0 }
 0x3ac   : > { %12617 = vst [vmem:[#allocation180_spill] sm:$0xff] %v10190_v13  ;;  %v2737_v15 = vsel %vm2556_vm2, %v10190_v13, -inf  ;;  %v12625_v13 = vld [vmem:[#allocation83_spill] sm:$0xff] }
 0x3ad   : > { %v2738_v51 = vmax.f32 %v2736_v9, %v2737_v15  ;;  %v12626_v9 = vmax.f32 %v12624_v46, %v12625_v13 }
 0x3ae   : > { %v10194_v16 = vpop.f32.mrb[210].mxu0 }
 0x3af   : > { %12618 = vst [vmem:[#allocation181_spill] sm:$0xff] %v10194_v16  ;;  %v2742_v63 = vmax.f32 %v12621_v1, %v10194_v16  ;;  %2739 = vmax.xlane.f32.xlu0 %v2738_v51  ;;  %v10200_v29 = vpop.f32.mrb[211].mxu0 }
 0x3b0   : > { %12622 = vst [vmem:[#allocation182_spill] sm:$0xff] %v10200_v29  ;;  %v2743_v32 = vsel %vm2556_vm2, %v10200_v29, -inf  ;;  %v12630_v29 = vld [vmem:[#allocation86_spill] sm:$0xff] }
 0x3b1   : > { %v2744_v22 = vmax.f32 %v2742_v63, %v2743_v32  ;;  %v12631_v63 = vmax.f32 %v12629_v39, %v12630_v29 }
 0x3b2   : > { %v10204_v47 = vpop.f32.mrb[212].mxu0 }
 0x3b3   : > { %12623 = vst [vmem:[#allocation183_spill] sm:$0xff] %v10204_v47  ;;  %v2748_v15 = vmax.f32 %v12626_v9, %v10204_v47  ;;  %2745 = vmax.xlane.f32.xlu1 %v2744_v22  ;;  %v10210_v21 = vpop.f32.mrb[213].mxu0 }
 0x3b4   : > { %12627 = vst [vmem:[#allocation184_spill] sm:$0xff] %v10210_v21  ;;  %v2749_v1 = vsel %vm2556_vm2, %v10210_v21, -inf  ;;  %v12634_v21 = vld [vmem:[#allocation91_spill] sm:$0xff] }
 0x3b5   : > { %v2750_v51 = vmax.f32 %v2748_v15, %v2749_v1  ;;  %v12635_v15 = vmax.f32 %v9790_v5, %v12634_v21 }
 0x3b6   : > { %v10214_v16 = vpop.f32.mrb[214].mxu0 }
 0x3b7   : > { %12628 = vst [vmem:[#allocation185_spill] sm:$0xff] %v10214_v16  ;;  %v2754_v32 = vmax.f32 %v12631_v63, %v10214_v16  ;;  %2751 = vmax.xlane.f32.xlu0 %v2750_v51  ;;  %v10220_v10 = vpop.f32.mrb[215].mxu0 }
 0x3b8   : > { %12632 = vst [vmem:[#allocation186_spill] sm:$0xff] %v10220_v10  ;;  %v2755_v9 = vsel %vm2556_vm2, %v10220_v10, -inf }
 0x3b9   : > { %v2756_v22 = vmax.f32 %v2754_v32, %v2755_v9  ;;  %v12638_v32 = vmax.f32 %v9802_v36, %v9808_v14  ;;  %v12644_v36 = vld [vmem:[#allocation20_spill] sm:$0xff] }
 0x3ba   : > { %v10224_v47 = vpop.f32.mrb[216].mxu0 }
 0x3bb   : > { %12633 = vst [vmem:[#allocation187_spill] sm:$0xff] %v10224_v47  ;;  %v2760_v1 = vmax.f32 %v12635_v15, %v10224_v47  ;;  %2757 = vmax.xlane.f32.xlu1 %v2756_v22  ;;  %v10230_v13 = vpop.f32.mrb[217].mxu0 }
 0x3bc   : > { %12636 = vst [vmem:[#allocation188_spill] sm:$0xff] %v10230_v13  ;;  %v2761_v63 = vsel %vm2556_vm2, %v10230_v13, -inf }
 0x3bd   : > { %v2762_v51 = vmax.f32 %v2760_v1, %v2761_v63  ;;  %v12641_v1 = vmax.f32 %v9822_v2, %v9830_v8 }
 0x3be   : > { %v10234_v16 = vpop.f32.mrb[218].mxu0 }
 0x3bf   : > { %12637 = vst [vmem:[#allocation189_spill] sm:$0xff] %v10234_v16  ;;  %v2766_v9 = vmax.f32 %v12638_v32, %v10234_v16  ;;  %2763 = vmax.xlane.f32.xlu0 %v2762_v51  ;;  %v10240_v10 = vpop.f32.mrb[219].mxu0  ;;  %v12643_v16 = vld [vmem:[#allocation14_spill] sm:$0xff] }
 0x3c0   : > { %12639 = vst [vmem:[#allocation190_spill] sm:$0xff] %v10240_v10  ;;  %v2767_v15 = vsel %vm2556_vm2, %v10240_v10, -inf  ;;  %v12645_v10 = vld [vmem:[#allocation88_spill] sm:$0xff] }
 0x3c1   : > { %v2768_v22 = vmax.f32 %v2766_v9, %v2767_v15  ;;  %v12646_v15 = vld [vmem:[#allocation90_spill] sm:$0xff] }
 0x3c2   : > { %v10244_v47 = vpop.f32.mrb[220].mxu0 }
 0x3c3   : > { %12640 = vst [vmem:[#allocation191_spill] sm:$0xff] %v10244_v47  ;;  %v2772_v63 = vmax.f32 %v12641_v1, %v10244_v47  ;;  %2769 = vmax.xlane.f32.xlu1 %v2768_v22  ;;  %v10250_v13 = vpop.f32.mrb[221].mxu0  ;;  %v12648_v47 = vmax.f32 %v9834_v57, %v9840_v11  ;;  %v12722_v57 = vld [vmem:[#allocation42_spill] sm:$0xff] }
 0x3c4   : > { %12642 = vst [vmem:[#allocation192_spill] sm:$0xff] %v10250_v13  ;;  %v2773_v32 = vsel %vm2556_vm2, %v10250_v13, -inf  ;;  %v2560_v51 = vpop.xlane.xlu0 %2559  ;;  %v12724_v17 = vpack.c.bf16 %v12722_v57, %v12723_v56  ;;  %v12727_v57 = vld [vmem:[#allocation33_spill] sm:$0xff] }
 0x3c5   : > { %v2855_v14 = vsub.f32 %v12643_v16, %v2560_v51  ;;  %v2856_v21 = vsub.f32 %v12644_v36, %v2560_v51  ;;  %v2857_v9 = vsub.f32 %v12645_v10, %v2560_v51  ;;  %v2858_v5 = vsub.f32 %v12646_v15, %v2560_v51  ;;  %v12650_v51 = vld [vmem:[#allocation23_spill] sm:$0xff] }
 0x3c6   : > { %v10258_v29 = vpop.f32.mrb[222].mxu0  ;;  %v2774_v39 = vmax.f32 %v2772_v63, %v2773_v32  ;;  %v12651_v63 = vld [vmem:[#allocation15_spill] sm:$0xff] }
 0x3c7   : > { %12647 = vst [vmem:[#allocation14_spill] sm:$0xff] %v10258_v29  ;;  %v3055_v8 = vmul.f32 1.442695, %v2855_v14  ;;  %v3057_v1 = vmul.f32 1.442695, %v2856_v21  ;;  %v2778_v13 = vmax.f32 %v12648_v47, %v10258_v29  ;;  %v10264_v16 = vpop.f32.mrb[223].mxu0 }
 0x3c8   : > { %v3059_v22 = vmul.f32 1.442695, %v2857_v9  ;;  %v3061_v2 = vmul.f32 1.442695, %v2858_v5  ;;  %2775 = vmax.xlane.f32.xlu0 %v2774_v39  ;;  %12649 = vst [vmem:[#allocation20_spill] sm:$0xff] %v10264_v16  ;;  %v2566_v36 = vpop.xlane.xlu0 %2565  ;;  %v2779_v10 = vsel %vm2556_vm2, %v10264_v16, -inf }
 0x3c9   : > { %7174 = vpow2.f32 %v3055_v8  ;;  %v2859_v15 = vsub.f32 %v12650_v51, %v2566_v36  ;;  %v2860_v14 = vsub.f32 %v12651_v63, %v2566_v36  ;;  %v12652_v21 = vld [vmem:[#allocation93_spill] sm:$0xff]  ;;  %v12653_v9 = vld [vmem:[#allocation95_spill] sm:$0xff]  ;;  %v2780_v5 = vmax.f32 %v2778_v13, %v2779_v10  ;;  %v12657_v13 = vld [vmem:[#allocation16_spill] sm:$0xff] }
 0x3ca   : > { %7176 = vpow2.f32 %v3057_v1  ;;  %v2861_v32 = vsub.f32 %v12652_v21, %v2566_v36  ;;  %v2862_v46 = vsub.f32 %v12653_v9, %v2566_v36  ;;  %v10272_v11 = vpop.f32.mrb[224].mxu0  ;;  %v12655_v8 = vmax.f32 %v9862_v23, %v9866_v42  ;;  %v12658_v10 = vld [vmem:[#allocation52_spill] sm:$0xff]  ;;  %v12660_v9 = vld [vmem:[#allocation98_spill] sm:$0xff]  ;;  %v12703_v42 = vld [vmem:[#allocation39_spill] sm:$0xff] }
 0x3cb   : > { %12654 = vst [vmem:[#allocation88_spill] sm:$0xff] %v10272_v11  ;;  %7178 = vpow2.f32 %v3059_v22  ;;  %v3063_v47 = vmul.f32 1.442695, %v2859_v15  ;;  %v3065_v39 = vmul.f32 1.442695, %v2860_v14  ;;  %v10278_v29 = vpop.f32.mrb[225].mxu0  ;;  %2781 = vmax.xlane.f32.xlu1 %v2780_v5 }
 0x3cc   : > { %v2784_v16 = vmax.f32 %v12655_v8, %v10272_v11  ;;  %12656 = vst [vmem:[#allocation90_spill] sm:$0xff] %v10278_v29  ;;  %7180 = vpow2.f32 %v3061_v2  ;;  %v3067_v51 = vmul.f32 1.442695, %v2861_v32  ;;  %v3069_v1 = vmul.f32 1.442695, %v2862_v46  ;;  %v2572_v63 = vpop.xlane.xlu1 %2571  ;;  %v12659_v14 = vld [vmem:[#allocation96_spill] sm:$0xff] }
 0x3cd   : > { %v2785_v36 = vsel %vm2556_vm2, %v10278_v29, -inf  ;;  %7182 = vpow2.f32 %v3063_v47  ;;  %v2863_v22 = vsub.f32 %v12657_v13, %v2572_v63  ;;  %v2864_v15 = vsub.f32 %v12658_v10, %v2572_v63 }
 0x3ce   : > { %v2865_v21 = vsub.f32 %v12659_v14, %v2572_v63  ;;  %7184 = vpow2.f32 %v3065_v39  ;;  %v2866_v8 = vsub.f32 %v12660_v9, %v2572_v63  ;;  %v10286_v11 = vpop.f32.mrb[226].mxu0  ;;  %v2786_v2 = vmax.f32 %v2784_v16, %v2785_v36 }
 0x3cf   : > { %12661 = vst [vmem:[#allocation23_spill] sm:$0xff] %v10286_v11  ;;  %7186 = vpow2.f32 %v3067_v51  ;;  %v3071_v46 = vmul.f32 1.442695, %v2863_v22  ;;  %v3073_v32 = vmul.f32 1.442695, %v2864_v15  ;;  %v12662_v47 = vmax.f32 %v9874_v20, %v9878_v25  ;;  %v10292_v10 = vpop.f32.mrb[227].mxu0 }
 0x3d0   : > { %v3075_v5 = vmul.f32 1.442695, %v2865_v21  ;;  %7188 = vpow2.f32 %v3069_v1  ;;  %v3077_v29 = vmul.f32 1.442695, %v2866_v8  ;;  %2787 = vmax.xlane.f32.xlu0 %v2786_v2  ;;  %12663 = vst [vmem:[#allocation15_spill] sm:$0xff] %v10292_v10  ;;  %v2578_v39 = vpop.xlane.xlu1 %2577  ;;  %v2791_v63 = vsel %vm2556_vm2, %v10292_v10, -inf }
 0x3d1   : > { %v2790_v13 = vmax.f32 %v12662_v47, %v10286_v11  ;;  %7190 = vpow2.f32 %v3071_v46  ;;  %v2867_v16 = vsub.f32 %v9549_v60, %v2578_v39  ;;  %v12664_v51 = vld [vmem:[#allocation17_spill] sm:$0xff]  ;;  %v12666_v15 = vld [vmem:[#allocation103_spill] sm:$0xff]  ;;  %v12668_v46 = vmax.f32 %v9894_v27, %v9898_v24  ;;  %v12677_v25 = vld [vmem:[#allocation30_spill] sm:$0xff] }
 0x3d2   : > { %v2868_v36 = vsub.f32 %v12664_v51, %v2578_v39  ;;  %7192 = vpow2.f32 %v3073_v32  ;;  %v12665_v1 = vld [vmem:[#allocation101_spill] sm:$0xff]  ;;  %v2870_v14 = vsub.f32 %v12666_v15, %v2578_v39  ;;  %v10300_v21 = vpop.f32.mrb[228].mxu0 }
 0x3d3   : > { %v2869_v22 = vsub.f32 %v12665_v1, %v2578_v39  ;;  %12667 = vst [vmem:[#allocation93_spill] sm:$0xff] %v10300_v21  ;;  %v2792_v9 = vmax.f32 %v2790_v13, %v2791_v63  ;;  %v7175_v8 = vpop.eup %7174  ;;  %7194 = vpow2.f32 %v3075_v5  ;;  %v3079_v2 = vmul.f32 1.442695, %v2867_v16  ;;  %v10306_v60 = vpop.f32.mrb[229].mxu0  ;;  %v12671_v5 = vld [vmem:[#allocation18_spill] sm:$0xff] }
 0x3d4   : > { %v3081_v47 = vmul.f32 1.442695, %v2868_v36  ;;  %v2796_v10 = vmax.f32 %v12668_v46, %v10300_v21  ;;  %12669 = vst [vmem:[#allocation95_spill] sm:$0xff] %v10306_v60  ;;  %v7177_v51 = vpop.eup %7176  ;;  %7196 = vpow2.f32 %v3077_v29  ;;  %v3085_v1 = vmul.f32 1.442695, %v2870_v14  ;;  %v2584_v13 = vpop.xlane.xlu0 %2583  ;;  %v12672_v36 = vld [vmem:[#allocation22_spill] sm:$0xff] }
 0x3d5   : > { %v3083_v32 = vmul.f32 1.442695, %v2869_v22  ;;  %2793 = vmax.xlane.f32.xlu1 %v2792_v9  ;;  %v2797_v39 = vsel %vm2556_vm2, %v10306_v60, -inf  ;;  %v10310_v63 = vpop.eup %7178  ;;  %7198 = vpow2.f32 %v3079_v2  ;;  %3969 = vmatprep.mubr.f32.mxu1 %v7177_v51  ;;  %v2871_v16 = vsub.f32 %v12671_v5, %v2584_v13  ;;  %v12673_v46 = vld [vmem:[#allocation104_spill] sm:$0xff]  ;;  %v12675_v29 = vld [vmem:[#allocation105_spill] sm:$0xff] }
 0x3d6   : > { %12670 = vst [vmem:[#allocation16_spill] sm:$0xff] %v10310_v63  ;;  %v2872_v15 = vsub.f32 %v12672_v36, %v2584_v13  ;;  %v2873_v21 = vsub.f32 %v12673_v46, %v2584_v13  ;;  %v10315_v24 = vpop.eup %7180  ;;  %7200 = vpow2.f32 %v3081_v47  ;;  %v2874_v22 = vsub.f32 %v12675_v29, %v2584_v13  ;;  %3970 = vmatmul.mubr.f32.vlgmr.msra.gmra.mrb[102].mxu1 %v7175_v8  ;;  %v10318_v14 = vpop.f32.mrb[230].mxu0  ;;  %v12678_v36 = vld [vmem:[#allocation31_spill] sm:$0xff] }
 0x3d7   : > { %12674 = vst [vmem:[#allocation52_spill] sm:$0xff] %v10315_v24  ;;  %12676 = vst [vmem:[#allocation96_spill] sm:$0xff] %v10318_v14  ;;  %v2798_v9 = vmax.f32 %v2796_v10, %v2797_v39  ;;  %v3455_v60 = vadd.f32 %v7177_v51, %v7175_v8  ;;  %v10320_v27 = vpop.eup %7182  ;;  %7202 = vpow2.f32 %v3083_v32  ;;  %v3087_v2 = vmul.f32 1.442695, %v2871_v16  ;;  %v10331_v8 = vpop.f32.mrb[231].mxu0  ;;  %v12685_v16 = vld [vmem:[#allocation19_spill] sm:$0xff] }
 0x3d8   : > { %v3089_v11 = vmul.f32 1.442695, %v2872_v15  ;;  %v3091_v5 = vmul.f32 1.442695, %v2873_v21  ;;  %v12679_v20 = vpack.c.bf16 %v12677_v25, %v12678_v36  ;;  %v10325_v46 = vpop.eup %7184  ;;  %7204 = vpow2.f32 %v3085_v1  ;;  %12681 = vst [vmem:[#allocation98_spill] sm:$0xff] %v10331_v8  ;;  %v2590_v51 = vpop.xlane.xlu1 %2589  ;;  %v12684_v25 = vld [vmem:[#allocation27_spill] sm:$0xff] }
 0x3d9   : > { %v3093_v47 = vmul.f32 1.442695, %v2874_v22  ;;  %v12680_v13 = vmax.f32 %v9906_v61, %v9910_v18  ;;  %2799 = vmax.xlane.f32.xlu0 %v2798_v9  ;;  %v12682_v32 = vmov 0.0|0.0   ;;  %v3456_v21 = vadd.f32 %v10310_v63, %v3455_v60  ;;  %v10335_v39 = vpop.eup %7186  ;;  %3974 = vmatprep.mubr.f32.mxu1 %v10325_v46  ;;  %v12687_v22 = vld [vmem:[#allocation107_spill] sm:$0xff]  ;;  %v12688_v36 = vld [vmem:[#allocation109_spill] sm:$0xff]  ;;  %v12702_v61 = vld [vmem:[#allocation38_spill] sm:$0xff] }
 0x3da   : > { %6936 = vmatpush1.bf16.msra.mxu1 %v12679_v20  ;;  %12683 = vst [vmem:[#allocation17_spill] sm:$0xff] %v10335_v39  ;;  %7206 = vpow2.f32 %v3087_v2  ;;  %v2803_v20 = vsel %vm2556_vm2, %v10331_v8, -inf  ;;  %v2875_v1 = vsub.f32 %v12684_v25, %v2590_v51  ;;  %v2876_v15 = vsub.f32 %v12685_v16, %v2590_v51  ;;  %v10342_v29 = vpop.eup %7188  ;;  %v10347_v60 = vpop.f32.mrb[232].mxu0  ;;  %v12690_v16 = vld [vmem:[#allocation34_spill] sm:$0xff] }
 0x3db   : > { %v2802_v10 = vmax.f32 %v12680_v13, %v10318_v14  ;;  %6937 = vmatprep.subr.bf16.mxu1 %v12682_v32  ;;  %12686 = vst [vmem:[#allocation101_spill] sm:$0xff] %v10342_v29  ;;  %7208 = vpow2.f32 %v3089_v11  ;;  %v2877_v9 = vsub.f32 %v12687_v22, %v2590_v51  ;;  %v2878_v13 = vsub.f32 %v12688_v36, %v2590_v51  ;;  %v10349_v63 = vpop.eup %7190  ;;  %v12691_v14 = vld [vmem:[#allocation35_spill] sm:$0xff]  ;;  %v10358_v51 = vpop.f32.mrb[233].mxu0 }
 0x3dc   : > { %3975 = vmatmul.mubr.f32.gmra.mrb[104].mxu1 %v10320_v27  ;;  %12689 = vst [vmem:[#allocation103_spill] sm:$0xff] %v10347_v60  ;;  %7210 = vpow2.f32 %v3091_v5  ;;  %v3095_v25 = vmul.f32 1.442695, %v2875_v1  ;;  %v3097_v8 = vmul.f32 1.442695, %v2876_v15  ;;  %v12692_v18 = vpack.c.bf16 %v12690_v16, %v12691_v14  ;;  %12694 = vst [vmem:[#allocation18_spill] sm:$0xff] %v10358_v51  ;;  %v10360_v36 = vpop.eup %7192  ;;  %v2596_v1 = vpop.xlane.xlu0 %2595 }
 0x3dd   : > { %v2804_v2 = vmax.f32 %v2802_v10, %v2803_v20  ;;  %v12693_v11 = vmax.f32 %v9926_v40, %v9930_v48  ;;  %7212 = vpow2.f32 %v3093_v47  ;;  %v3099_v10 = vmul.f32 1.442695, %v2877_v9  ;;  %v12696_v14 = vld [vmem:[#allocation21_spill] sm:$0xff]  ;;  %v12697_v16 = vld [vmem:[#allocation24_spill] sm:$0xff]  ;;  %3979 = vmatprep.mubr.f32.mxu1 %v10360_v36 }
 0x3de   : > { %6939 = vmatpush1.bf16.msra.mxu1 %v12692_v18  ;;  %v3101_v20 = vmul.f32 1.442695, %v2878_v13  ;;  %v2809_v5 = vsel %vm2556_vm2, %v10358_v51, -inf  ;;  %v10365_v18 = vpop.eup %7194  ;;  %7214 = vpow2.f32 %v3095_v25  ;;  %v2879_v15 = vsub.f32 %v12696_v14, %v2596_v1  ;;  %v12700_v9 = vld [vmem:[#allocation113_spill] sm:$0xff] }
 0x3df   : > { %v2808_v22 = vmax.f32 %v12693_v11, %v10347_v60  ;;  %2805 = vmax.xlane.f32.xlu1 %v2804_v2  ;;  %6940 = vmatprep.subr.bf16.mxu1 %v12682_v32  ;;  %12695 = vst [vmem:[#allocation22_spill] sm:$0xff] %v10365_v18  ;;  %v2880_v11 = vsub.f32 %v12697_v16, %v2596_v1  ;;  %v12698_v60 = vld [vmem:[#allocation112_spill] sm:$0xff]  ;;  %v10371_v47 = vpop.eup %7196  ;;  %7216 = vpow2.f32 %v3097_v8  ;;  %v10375_v2 = vpop.f32.mrb[234].mxu0  ;;  %v3457_v25 = vsel %vm2556_vm2, %v10315_v24, 0.0  ;;  %v12710_v24 = vld [vmem:[#allocation117_spill] sm:$0xff] }
 0x3e0   : > { %v2881_v48 = vsub.f32 %v12698_v60, %v2596_v1  ;;  %12699 = vst [vmem:[#allocation104_spill] sm:$0xff] %v10371_v47  ;;  %v2882_v13 = vsub.f32 %v12700_v9, %v2596_v1  ;;  %3980 = vmatmul.mubr.f32.gmra.mrb[106].mxu1 %v10349_v63  ;;  %12701 = vst [vmem:[#allocation105_spill] sm:$0xff] %v10375_v2  ;;  %v10379_v14 = vpop.eup %7198  ;;  %7218 = vpow2.f32 %v3099_v10  ;;  %v3103_v16 = vmul.f32 1.442695, %v2879_v15  ;;  %v10390_v9 = vpop.f32.mrb[235].mxu0 }
 0x3e1   : > { %v2810_v51 = vmax.f32 %v2808_v22, %v2809_v5  ;;  %v3105_v60 = vmul.f32 1.442695, %v2880_v11  ;;  %v12704_v23 = vpack.c.bf16 %v12702_v61, %v12703_v42  ;;  %v10384_v8 = vpop.eup %7200  ;;  %7220 = vpow2.f32 %v3101_v20  ;;  %12706 = vst [vmem:[#allocation30_spill] sm:$0xff] %v10390_v9  ;;  %v2602_v10 = vpop.xlane.xlu1 %2601  ;;  %v12708_v20 = vld [vmem:[#allocation25_spill] sm:$0xff] }
 0x3e2   : > { %v3107_v40 = vmul.f32 1.442695, %v2881_v48  ;;  %v3109_v1 = vmul.f32 1.442695, %v2882_v13  ;;  %v12705_v22 = vmax.f32 %v9938_v12, %v9942_v0  ;;  %v10393_v48 = vadd.f32 %v3457_v25, %v3456_v21  ;;  %v10395_v15 = vpop.eup %7202  ;;  %3984 = vmatprep.mubr.f32.mxu1 %v10384_v8  ;;  %v12709_v13 = vld [vmem:[#allocation115_spill] sm:$0xff]  ;;  %v10407_v25 = vpop.f32.mrb[236].mxu0 }
 0x3e3   : > { %6942 = vmatpush1.bf16.msra.mxu1 %v12704_v23  ;;  %2811 = vmax.xlane.f32.xlu0 %v2810_v51  ;;  %7222 = vpow2.f32 %v3103_v16  ;;  %v2815_v42 = vsel %vm2556_vm2, %v10390_v9, -inf  ;;  %v12707_v23 = vld [vmem:[#allocation26_spill] sm:$0xff]  ;;  %v2884_v11 = vsub.f32 %v12708_v20, %v2602_v10  ;;  %v10402_v51 = vpop.eup %7204  ;;  %v2886_v21 = vsub.f32 %v12710_v24, %v2602_v10  ;;  %12711 = vst [vmem:[#allocation31_spill] sm:$0xff] %v10407_v25  ;;  %v12712_v20 = vld [vmem:[#allocation40_spill] sm:$0xff]  ;;  %v12713_v0 = vld [vmem:[#allocation41_spill] sm:$0xff]  ;;  %v10418_v24 = vpop.f32.mrb[237].mxu0 }
 0x3e4   : > { %v2814_v5 = vmax.f32 %v12705_v22, %v10375_v2  ;;  %6943 = vmatprep.subr.bf16.mxu1 %v12682_v32  ;;  %v2883_v61 = vsub.f32 %v12707_v23, %v2602_v10  ;;  %7224 = vpow2.f32 %v3105_v60  ;;  %v2885_v22 = vsub.f32 %v12709_v13, %v2602_v10  ;;  %3985 = vmatmul.mubr.f32.gmra.mrb[108].mxu1 %v10379_v14  ;;  %v10409_v2 = vpop.eup %7206 }
 0x3e5   : > { %7226 = vpow2.f32 %v3107_v40  ;;  %v3113_v9 = vmul.f32 1.442695, %v2884_v11  ;;  %v12714_v12 = vpack.c.bf16 %v12712_v20, %v12713_v0  ;;  %v12715_v60 = vmax.f32 %v9958_v44, %v9962_v52  ;;  %12716 = vst [vmem:[#allocation27_spill] sm:$0xff] %v10418_v24  ;;  %v10420_v10 = vpop.eup %7208  ;;  %v12717_v0 = vld [vmem:[#allocation29_spill] sm:$0xff]  ;;  %v12718_v20 = vld [vmem:[#allocation28_spill] sm:$0xff] }
 0x3e6   : > { %v2816_v16 = vmax.f32 %v2814_v5, %v2815_v42  ;;  %v3111_v23 = vmul.f32 1.442695, %v2883_v61  ;;  %7228 = vpow2.f32 %v3109_v1  ;;  %v3115_v5 = vmul.f32 1.442695, %v2885_v22  ;;  %v2608_v61 = vpop.xlane.xlu0 %2607  ;;  %3989 = vmatprep.mubr.f32.mxu1 %v10420_v10  ;;  %v12720_v22 = vld [vmem:[#allocation121_spill] sm:$0xff] }
 0x3e7   : > { %6945 = vmatpush1.bf16.msra.mxu1 %v12714_v12  ;;  %v2820_v13 = vmax.f32 %v12715_v60, %v10407_v25  ;;  %v3117_v42 = vmul.f32 1.442695, %v2886_v21  ;;  %v2821_v40 = vsel %vm2556_vm2, %v10418_v24, -inf  ;;  %v10425_v12 = vpop.eup %7210  ;;  %v2887_v11 = vsub.f32 %v12717_v0, %v2608_v61  ;;  %v12719_v25 = vld [vmem:[#allocation120_spill] sm:$0xff] }
 0x3e8   : > { %2817 = vmax.xlane.f32.xlu1 %v2816_v16  ;;  %6946 = vmatprep.subr.bf16.mxu1 %v12682_v32  ;;  %7230 = vpow2.f32 %v3111_v23  ;;  %v2888_v60 = vsub.f32 %v12718_v20, %v2608_v61  ;;  %v2889_v52 = vsub.f32 %v12719_v25, %v2608_v61  ;;  %v10431_v1 = vpop.eup %7212  ;;  %v2890_v21 = vsub.f32 %v12720_v22, %v2608_v61  ;;  %v10435_v16 = vpop.f32.mrb[238].mxu0 }
 0x3e9   : > { %7232 = vpow2.f32 %v3113_v9  ;;  %3990 = vmatmul.mubr.f32.gmra.mrb[110].mxu1 %v10409_v2  ;;  %12721 = vst [vmem:[#allocation19_spill] sm:$0xff] %v10435_v16  ;;  %v2822_v24 = vmax.f32 %v2820_v13, %v2821_v40  ;;  %v3467_v23 = vadd.f32 %v10360_v36, %v10349_v63  ;;  %v10439_v0 = vpop.eup %7214  ;;  %v3119_v20 = vmul.f32 1.442695, %v2887_v11  ;;  %v10450_v63 = vpop.f32.mrb[239].mxu0 }
 0x3ea   : > { %7234 = vpow2.f32 %v3115_v5  ;;  %v3121_v25 = vmul.f32 1.442695, %v2888_v60  ;;  %v3123_v44 = vmul.f32 1.442695, %v2889_v52  ;;  %v10444_v9 = vpop.eup %7216  ;;  %v3125_v61 = vmul.f32 1.442695, %v2890_v21  ;;  %v2614_v36 = vpop.xlane.xlu1 %2613 }
 0x3eb   : > { %6948 = vmatpush1.bf16.msra.mxu1 %v12724_v17  ;;  %7236 = vpow2.f32 %v3117_v42  ;;  %v12725_v13 = vmax.f32 %v9970_v6, %v9974_v31  ;;  %2823 = vmax.xlane.f32.xlu0 %v2822_v24  ;;  %12726 = vst [vmem:[#allocation107_spill] sm:$0xff] %v10450_v63  ;;  %v3468_v52 = vadd.f32 %v10365_v18, %v3467_v23  ;;  %v10454_v5 = vpop.eup %7218  ;;  %v2827_v56 = vsel %vm2556_vm2, %v10450_v63, -inf  ;;  %v12728_v42 = vld [vmem:[#allocation32_spill] sm:$0xff]  ;;  %v12729_v60 = vld [vmem:[#allocation123_spill] sm:$0xff]  ;;  %v12730_v21 = vld [vmem:[#allocation125_spill] sm:$0xff]  ;;  %v10466_v23 = vpop.f32.mrb[240].mxu0 }
 0x3ec   : > { %6949 = vmatprep.subr.bf16.mxu1 %v12682_v32  ;;  %7238 = vpow2.f32 %v3119_v20  ;;  %v2891_v17 = vsub.f32 %v12727_v57, %v2614_v36  ;;  %v2892_v11 = vsub.f32 %v12728_v42, %v2614_v36  ;;  %3994 = vmatprep.mubr.f32.mxu1 %v10444_v9  ;;  %v10461_v24 = vpop.eup %7220  ;;  %v2893_v22 = vsub.f32 %v12729_v60, %v2614_v36  ;;  %v12732_v42 = vld [vmem:[#allocation44_spill] sm:$0xff]  ;;  %v12742_v6 = vld [vmem:[#allocation46_spill] sm:$0xff] }
 0x3ed   : > { %v2826_v40 = vmax.f32 %v12725_v13, %v10435_v16  ;;  %7240 = vpow2.f32 %v3121_v25  ;;  %v2894_v13 = vsub.f32 %v12730_v21, %v2614_v36  ;;  %3995 = vmatmul.mubr.f32.gmra.mrb[112].mxu1 %v10439_v0  ;;  %12731 = vst [vmem:[#allocation109_spill] sm:$0xff] %v10466_v23  ;;  %v10468_v18 = vpop.eup %7222  ;;  %v12733_v16 = vld [vmem:[#allocation45_spill] sm:$0xff]  ;;  %v12735_v25 = vmax.f32 %v9990_v43, %v9994_v45  ;;  %v10477_v36 = vpop.f32.mrb[241].mxu0 }
 0x3ee   : > { %7242 = vpow2.f32 %v3123_v44  ;;  %v3127_v57 = vmul.f32 1.442695, %v2891_v17  ;;  %v3129_v63 = vmul.f32 1.442695, %v2892_v11  ;;  %v12734_v31 = vpack.c.bf16 %v12732_v42, %v12733_v16  ;;  %12736 = vst [vmem:[#allocation34_spill] sm:$0xff] %v10477_v36  ;;  %v10479_v21 = vpop.eup %7224  ;;  %v2620_v17 = vpop.xlane.xlu0 %2619  ;;  %v12737_v16 = vld [vmem:[#allocation37_spill] sm:$0xff] }
 0x3ef   : > { %v2828_v20 = vmax.f32 %v2826_v40, %v2827_v56  ;;  %v2832_v60 = vmax.f32 %v12735_v25, %v10466_v23  ;;  %7244 = vpow2.f32 %v3125_v61  ;;  %v3131_v40 = vmul.f32 1.442695, %v2893_v22  ;;  %v12738_v42 = vld [vmem:[#allocation36_spill] sm:$0xff]  ;;  %3999 = vmatprep.mubr.f32.mxu1 %v10479_v21  ;;  %v12740_v22 = vld [vmem:[#allocation129_spill] sm:$0xff] }
 0x3f0   : > { %6951 = vmatpush1.bf16.msra.mxu1 %v12734_v31  ;;  %v3133_v56 = vmul.f32 1.442695, %v2894_v13  ;;  %v2833_v44 = vsel %vm2556_vm2, %v10477_v36, -inf  ;;  %v10484_v31 = vpop.eup %7226  ;;  %7246 = vpow2.f32 %v3127_v57  ;;  %v2895_v11 = vsub.f32 %v12737_v16, %v2620_v17  ;;  %v12739_v23 = vld [vmem:[#allocation128_spill] sm:$0xff] }
 0x3f1   : > { %2829 = vmax.xlane.f32.xlu1 %v2828_v20  ;;  %6952 = vmatprep.subr.bf16.mxu1 %v12682_v32  ;;  %v2896_v25 = vsub.f32 %v12738_v42, %v2620_v17  ;;  %v2897_v45 = vsub.f32 %v12739_v23, %v2620_v17  ;;  %v10490_v61 = vpop.eup %7228  ;;  %7248 = vpow2.f32 %v3129_v63  ;;  %v2898_v13 = vsub.f32 %v12740_v22, %v2620_v17  ;;  %v10494_v20 = vpop.f32.mrb[242].mxu0 }
 0x3f2   : > { %4000 = vmatmul.mubr.f32.gmra.mrb[114].mxu1 %v10468_v18  ;;  %12741 = vst [vmem:[#allocation35_spill] sm:$0xff] %v10494_v20  ;;  %v2834_v36 = vmax.f32 %v2832_v60, %v2833_v44  ;;  %v3469_v57 = vsel %vm2556_vm2, %v10371_v47, 0.0  ;;  %v10498_v16 = vpop.eup %7230  ;;  %7250 = vpow2.f32 %v3131_v40  ;;  %v3135_v42 = vmul.f32 1.442695, %v2895_v11  ;;  %v10509_v22 = vpop.f32.mrb[243].mxu0  ;;  %v12750_v47 = vld [vmem:[#allocation133_spill] sm:$0xff] }
 0x3f3   : > { %v3137_v23 = vmul.f32 1.442695, %v2896_v25  ;;  %v3139_v43 = vmul.f32 1.442695, %v2897_v45  ;;  %v12744_v37 = vpack.c.bf16 %v12742_v6, %v12743_v33  ;;  %v10503_v63 = vpop.eup %7232  ;;  %7252 = vpow2.f32 %v3133_v56  ;;  %12746 = vst [vmem:[#allocation21_spill] sm:$0xff] %v10509_v22  ;;  %v2626_v40 = vpop.xlane.xlu1 %2625  ;;  %v12747_v33 = vld [vmem:[#allocation53_spill] sm:$0xff] }
 0x3f4   : > { %v3141_v17 = vmul.f32 1.442695, %v2898_v13  ;;  %v12745_v60 = vmax.f32 %v10002_v38, %v10006_v34  ;;  %2835 = vmax.xlane.f32.xlu0 %v2834_v36  ;;  %v10512_v45 = vadd.f32 %v3469_v57, %v3468_v52  ;;  %v10514_v11 = vpop.eup %7234  ;;  %7254 = vpow2.f32 %v3135_v42  ;;  %v12748_v56 = vld [vmem:[#allocation54_spill] sm:$0xff]  ;;  %4004 = vmatprep.mubr.f32.mxu1 %v10503_v63  ;;  %v12749_v13 = vld [vmem:[#allocation131_spill] sm:$0xff]  ;;  %v10526_v57 = vpop.f32.mrb[244].mxu0  ;;  %v12753_v34 = vld [vmem:[#allocation49_spill] sm:$0xff] }
 0x3f5   : > { %6954 = vmatpush1.bf16.msra.mxu1 %v12744_v37  ;;  %v2839_v37 = vsel %vm2556_vm2, %v10509_v22, -inf  ;;  %v2899_v6 = vsub.f32 %v12747_v33, %v2626_v40  ;;  %v2900_v25 = vsub.f32 %v12748_v56, %v2626_v40  ;;  %v10521_v36 = vpop.eup %7236  ;;  %7256 = vpow2.f32 %v3137_v23  ;;  %12751 = vst [vmem:[#allocation24_spill] sm:$0xff] %v10526_v57  ;;  %v12752_v56 = vld [vmem:[#allocation48_spill] sm:$0xff] }
 0x3f6   : > { %v2838_v44 = vmax.f32 %v12745_v60, %v10494_v20  ;;  %6955 = vmatprep.subr.bf16.mxu1 %v12682_v32  ;;  %v2901_v60 = vsub.f32 %v12749_v13, %v2626_v40  ;;  %v2902_v52 = vsub.f32 %v12750_v47, %v2626_v40  ;;  %4005 = vmatmul.mubr.f32.gmra.mrb[116].mxu1 %v10498_v16  ;;  %v10528_v20 = vpop.eup %7238  ;;  %7258 = vpow2.f32 %v3139_v43  ;;  %v10537_v47 = vpop.f32.mrb[245].mxu0 }
 0x3f7   : > { %v3143_v33 = vmul.f32 1.442695, %v2899_v6  ;;  %v3145_v22 = vmul.f32 1.442695, %v2900_v25  ;;  %v12754_v38 = vpack.c.bf16 %v12752_v56, %v12753_v34  ;;  %v12755_v23 = vmax.f32 %v10022_v58, %v10026_v30  ;;  %12756 = vst [vmem:[#allocation112_spill] sm:$0xff] %v10537_v47  ;;  %v10539_v40 = vpop.eup %7240  ;;  %v2632_v6 = vpop.xlane.xlu0 %2631  ;;  %v12757_v34 = vld [vmem:[#allocation55_spill] sm:$0xff] }
 0x3f8   : > { %v2840_v42 = vmax.f32 %v2838_v44, %v2839_v37  ;;  %7260 = vpow2.f32 %v3141_v17  ;;  %v3147_v44 = vmul.f32 1.442695, %v2901_v60  ;;  %v3149_v37 = vmul.f32 1.442695, %v2902_v52  ;;  %v12758_v56 = vld [vmem:[#allocation56_spill] sm:$0xff]  ;;  %4009 = vmatprep.mubr.f32.mxu1 %v10539_v40  ;;  %v12760_v60 = vld [vmem:[#allocation137_spill] sm:$0xff] }
 0x3f9   : > { %6957 = vmatpush1.bf16.msra.mxu1 %v12754_v38  ;;  %v2844_v13 = vmax.f32 %v12755_v23, %v10526_v57  ;;  %v2845_v43 = vsel %vm2556_vm2, %v10537_v47, -inf  ;;  %v10544_v38 = vpop.eup %7242  ;;  %7262 = vpow2.f32 %v3143_v33  ;;  %v2903_v25 = vsub.f32 %v12757_v34, %v2632_v6  ;;  %v12759_v57 = vld [vmem:[#allocation136_spill] sm:$0xff]  ;;  %v12762_v58 = vld [vmem:[#allocation50_spill] sm:$0xff] }
 0x3fa   : > { %2841 = vmax.xlane.f32.xlu1 %v2840_v42  ;;  %6958 = vmatprep.subr.bf16.mxu1 %v12682_v32  ;;  %v2904_v23 = vsub.f32 %v12758_v56, %v2632_v6  ;;  %v2905_v30 = vsub.f32 %v12759_v57, %v2632_v6  ;;  %v10550_v17 = vpop.eup %7244  ;;  %7264 = vpow2.f32 %v3145_v22  ;;  %v2906_v52 = vsub.f32 %v12760_v60, %v2632_v6  ;;  %v10554_v42 = vpop.f32.mrb[246].mxu0 }
 0x3fb   : > { %4010 = vmatmul.mubr.f32.gmra.mrb[118].mxu1 %v10528_v20  ;;  %12761 = vst [vmem:[#allocation113_spill] sm:$0xff] %v10554_v42  ;;  %v2846_v32 = vmax.f32 %v2844_v13, %v2845_v43  ;;  %v3461_v33 = vadd.f32 %v10325_v46, %v10320_v27  ;;  %v10558_v34 = vpop.eup %7246  ;;  %7266 = vpow2.f32 %v3147_v44  ;;  %v3151_v56 = vmul.f32 1.442695, %v2903_v25  ;;  %v10569_v27 = vpop.f32.mrb[247].mxu0 }
 0x3fc   : > { %v3153_v57 = vmul.f32 1.442695, %v2904_v23  ;;  %v3155_v47 = vmul.f32 1.442695, %v2905_v30  ;;  %v12764_v54 = vpack.c.bf16 %v12762_v58, %v12763_v49  ;;  %v10563_v22 = vpop.eup %7248  ;;  %7268 = vpow2.f32 %v3149_v37  ;;  %12766 = vst [vmem:[#allocation38_spill] sm:$0xff] %v10569_v27  ;;  %v2638_v46 = vpop.xlane.xlu1 %2637  ;;  %v12767_v49 = vld [vmem:[#allocation57_spill] sm:$0xff] }
 0x3fd   : > { %v3157_v6 = vmul.f32 1.442695, %v2906_v52  ;;  %v12765_v13 = vmax.f32 %v10034_v4, %v10038_v53  ;;  %2847 = vmax.xlane.f32.xlu0 %v2846_v32  ;;  %v3462_v44 = vadd.f32 %v10335_v39, %v3461_v33  ;;  %v10572_v30 = vpop.eup %7250  ;;  %7270 = vpow2.f32 %v3151_v56  ;;  %v12768_v37 = vld [vmem:[#allocation58_spill] sm:$0xff]  ;;  %4014 = vmatprep.mubr.f32.mxu1 %v10563_v22  ;;  %v12769_v32 = vld [vmem:[#allocation139_spill] sm:$0xff]  ;;  %v12770_v52 = vld [vmem:[#allocation141_spill] sm:$0xff] }
 0x3fe   : > { %6960 = vmatpush1.bf16.msra.mxu1 %v12764_v54  ;;  %v2851_v54 = vsel %vm2556_vm2, %v10569_v27, -inf  ;;  %v2907_v58 = vsub.f32 %v12767_v49, %v2638_v46  ;;  %v2908_v25 = vsub.f32 %v12768_v37, %v2638_v46  ;;  %v10579_v23 = vpop.eup %7252  ;;  %7272 = vpow2.f32 %v3153_v57 }
 0x3ff   : > { %v2850_v43 = vmax.f32 %v12765_v13, %v10554_v42  ;;  %v2909_v60 = vsub.f32 %v12769_v32, %v2638_v46  ;;  %v2910_v13 = vsub.f32 %v12770_v52, %v2638_v46  ;;  %4015 = vmatmul.mubr.f32.gmra.mrb[120].mxu1 %v10558_v34  ;;  %v10584_v56 = vpop.eup %7254  ;;  %7274 = vpow2.f32 %v3155_v47  ;;  %v2644_v46 = vpop.xlane.xlu0 %2643 }
 0x400   : > { %v3159_v39 = vmul.f32 1.442695, %v2907_v58  ;;  %v3161_v27 = vmul.f32 1.442695, %v2908_v25  ;;  %v3463_v49 = vsel %vm2556_vm2, %v10342_v29, 0.0  ;;  %v10588_v37 = vpop.eup %7256  ;;  %7276 = vpow2.f32 %v3157_v6  ;;  %v12773_v25 = vld [vmem:[#allocation144_spill] sm:$0xff] }
 0x401   : > { %v2852_v33 = vmax.f32 %v2850_v43, %v2851_v54  ;;  %v3163_v42 = vmul.f32 1.442695, %v2909_v60  ;;  %v3165_v57 = vmul.f32 1.442695, %v2910_v13  ;;  %3459 = vadd.xlane.f32.xlu0 %v10393_v48  ;;  %v3464_v32 = vadd.f32 %v3463_v49, %v3462_v44  ;;  %v10591_v52 = vpop.eup %7258  ;;  %v12771_v43 = vld [vmem:[#allocation59_spill] sm:$0xff]  ;;  %v12772_v54 = vld [vmem:[#allocation61_spill] sm:$0xff]  ;;  %4019 = vmatprep.mubr.f32.mxu1 %v10588_v37 }
 0x402   : > { %7278 = vpow2.f32 %v3159_v39  ;;  %v2911_v47 = vsub.f32 %v12771_v43, %v2644_v46  ;;  %v2912_v58 = vsub.f32 %v12772_v54, %v2644_v46  ;;  %v2913_v53 = vsub.f32 %v12773_v25, %v2644_v46  ;;  %v10597_v29 = vpop.eup %7260  ;;  %v12774_v6 = vld [vmem:[#allocation145_spill] sm:$0xff] }
 0x403   : > { %2853 = vmax.xlane.f32.xlu1 %v2852_v33  ;;  %7280 = vpow2.f32 %v3161_v27  ;;  %v2914_v60 = vsub.f32 %v12774_v6, %v2644_v46  ;;  %4020 = vmatmul.mubr.f32.gmra.mrb[122].mxu1 %v10584_v56  ;;  %v3479_v48 = vadd.f32 %v10420_v10, %v10409_v2  ;;  %v3481_v39 = vsel %vm2556_vm2, %v10431_v1, 0.0  ;;  %v10605_v44 = vpop.eup %7262  ;;  %v2650_v46 = vpop.xlane.xlu1 %2649 }
 0x404   : > { %7282 = vpow2.f32 %v3163_v42  ;;  %v3167_v13 = vmul.f32 1.442695, %v2911_v47  ;;  %v3169_v33 = vmul.f32 1.442695, %v2912_v58  ;;  %v3171_v49 = vmul.f32 1.442695, %v2913_v53  ;;  %v10607_v43 = vpop.eup %7264 }
 0x405   : > { %7284 = vpow2.f32 %v3165_v57  ;;  %v3173_v27 = vmul.f32 1.442695, %v2914_v60  ;;  %3471 = vadd.xlane.f32.xlu0 %v10512_v45  ;;  %v3480_v54 = vadd.f32 %v10425_v12, %v3479_v48  ;;  %v3473_v2 = vadd.f32 %v10384_v8, %v10379_v14  ;;  %v10613_v10 = vpop.eup %7266  ;;  %v12775_v47 = vld [vmem:[#allocation65_spill] sm:$0xff]  ;;  %v12776_v58 = vld [vmem:[#allocation147_spill] sm:$0xff]  ;;  %4024 = vmatprep.mubr.f32.mxu1 %v10607_v43 }
 0x406   : > { %7286 = vpow2.f32 %v3167_v13  ;;  %v2915_v42 = vsub.f32 %v9665_v19, %v2650_v46  ;;  %v2916_v53 = vsub.f32 %v12775_v47, %v2650_v46  ;;  %v2917_v25 = vsub.f32 %v12776_v58, %v2650_v46  ;;  %v10619_v57 = vpop.eup %7268  ;;  %v12777_v45 = vld [vmem:[#allocation149_spill] sm:$0xff] }
 0x407   : > { %3465 = vadd.xlane.f32.xlu1 %v3464_v32  ;;  %7288 = vpow2.f32 %v3169_v33  ;;  %v2918_v32 = vsub.f32 %v12777_v45, %v2650_v46  ;;  %4025 = vmatmul.mubr.f32.gmra.mrb[124].mxu1 %v10605_v44  ;;  %v3482_v6 = vadd.f32 %v3481_v39, %v3480_v54  ;;  %v3474_v14 = vadd.f32 %v10395_v15, %v3473_v2  ;;  %v10624_v8 = vpop.eup %7270  ;;  %v2656_v46 = vpop.xlane.xlu0 %2655 }
 0x408   : > { %7290 = vpow2.f32 %v3171_v49  ;;  %v3175_v19 = vmul.f32 1.442695, %v2915_v42  ;;  %v3177_v60 = vmul.f32 1.442695, %v2916_v53  ;;  %v3179_v48 = vmul.f32 1.442695, %v2917_v25  ;;  %v10626_v13 = vpop.eup %7272 }
 0x409   : > { %7292 = vpow2.f32 %v3173_v27  ;;  %v3181_v47 = vmul.f32 1.442695, %v2918_v32  ;;  %3483 = vadd.xlane.f32.xlu0 %v3482_v6  ;;  %v3475_v33 = vsel %vm2556_vm2, %v10402_v51, 0.0  ;;  %v3491_v39 = vadd.f32 %v10479_v21, %v10468_v18  ;;  %v10632_v54 = vpop.eup %7274  ;;  %4029 = vmatprep.mubr.f32.mxu1 %v10626_v13  ;;  %v12778_v53 = vld [vmem:[#allocation151_spill] sm:$0xff]  ;;  %v12779_v25 = vld [vmem:[#allocation152_spill] sm:$0xff] }
 0x40a   : > { %7294 = vpow2.f32 %v3175_v19  ;;  %v3476_v2 = vadd.f32 %v3475_v33, %v3474_v14  ;;  %v2919_v49 = vsub.f32 %v9678_v41, %v2656_v46  ;;  %v2920_v42 = vsub.f32 %v9684_v62, %v2656_v46  ;;  %v10637_v27 = vpop.eup %7276  ;;  %v2662_v33 = vpop.xlane.xlu1 %2661 }
 0x40b   : > { %7296 = vpow2.f32 %v3177_v60  ;;  %v2921_v58 = vsub.f32 %v12778_v53, %v2656_v46  ;;  %v2922_v45 = vsub.f32 %v12779_v25, %v2656_v46  ;;  %4030 = vmatmul.mubr.f32.gmra.mrb[126].mxu1 %v10624_v8  ;;  %v3492_v18 = vadd.f32 %v10484_v31, %v3491_v39 }
 0x40c   : > { %v10643_v21 = vpop.eup %7278  ;;  %7298 = vpow2.f32 %v3179_v48  ;;  %3477 = vadd.xlane.f32.xlu1 %v3476_v2  ;;  %v3183_v41 = vmul.f32 1.442695, %v2919_v49  ;;  %v3185_v32 = vmul.f32 1.442695, %v2920_v42  ;;  %v3493_v62 = vsel %vm2556_vm2, %v10490_v61, 0.0  ;;  %v12780_v42 = vld [vmem:[#allocation153_spill] sm:$0xff] }
 0x40d   : > { %v10647_v6 = vpop.eup %7280  ;;  %7300 = vpow2.f32 %v3181_v47  ;;  %v3187_v14 = vmul.f32 1.442695, %v2921_v58  ;;  %v3189_v19 = vmul.f32 1.442695, %v2922_v45  ;;  %v3494_v60 = vadd.f32 %v3493_v62, %v3492_v18  ;;  %v12781_v58 = vld [vmem:[#allocation154_spill] sm:$0xff]  ;;  %v2668_v62 = vpop.xlane.xlu0 %2667 }
 0x40e   : > { %v10649_v46 = vpop.eup %7282  ;;  %7302 = vpow2.f32 %v3183_v41  ;;  %v3485_v39 = vadd.f32 %v10444_v9, %v10439_v0  ;;  %v3487_v48 = vsel %vm2556_vm2, %v10461_v24, 0.0  ;;  %v2923_v2 = vsub.f32 %v9693_v50, %v2662_v33  ;;  %4034 = vmatprep.mubr.f32.mxu1 %v10647_v6 }
 0x40f   : > { %v10657_v49 = vpop.eup %7284  ;;  %7304 = vpow2.f32 %v3185_v32  ;;  %3495 = vadd.xlane.f32.xlu0 %v3494_v60  ;;  %v2924_v47 = vsub.f32 %v9701_v55, %v2662_v33  ;;  %v2925_v53 = vsub.f32 %v12780_v42, %v2662_v33  ;;  %v2926_v25 = vsub.f32 %v12781_v58, %v2662_v33  ;;  %4035 = vmatmul.mubr.f32.gmra.mrb[128].mxu1 %v10643_v21 }
 0x410   : > { %v10663_v0 = vpop.eup %7286  ;;  %7306 = vpow2.f32 %v3187_v14  ;;  %v3486_v9 = vadd.f32 %v10454_v5, %v3485_v39  ;;  %v3191_v50 = vmul.f32 1.442695, %v2923_v2  ;;  %v3503_v45 = vadd.f32 %v10539_v40, %v10528_v20 }
 0x411   : > { %v10668_v18 = vpop.eup %7288  ;;  %7308 = vpow2.f32 %v3189_v19  ;;  %v3193_v41 = vmul.f32 1.442695, %v2924_v47  ;;  %v3195_v55 = vmul.f32 1.442695, %v2925_v53  ;;  %v3197_v32 = vmul.f32 1.442695, %v2926_v25 }
 0x412   : > { %v10670_v60 = vpop.eup %7290  ;;  %v3488_v33 = vadd.f32 %v3487_v48, %v3486_v9  ;;  %7310 = vpow2.f32 %v3191_v50  ;;  %v3504_v42 = vadd.f32 %v10544_v38, %v3503_v45  ;;  %v3505_v14 = vsel %vm2556_vm2, %v10550_v17, 0.0  ;;  %4039 = vmatprep.mubr.f32.mxu1 %v10668_v18  ;;  %v12782_v53 = vld [vmem:[#allocation155_spill] sm:$0xff] }
 0x413   : > { %v10676_v39 = vpop.eup %7292  ;;  %7312 = vpow2.f32 %v3193_v41  ;;  %v3497_v20 = vadd.f32 %v10503_v63, %v10498_v16  ;;  %v3499_v40 = vsel %vm2556_vm2, %v10521_v36, 0.0  ;;  %v2927_v19 = vsub.f32 %v9708_v35, %v2668_v62  ;;  %4040 = vmatmul.mubr.f32.gmra.mrb[130].mxu1 %v10663_v0  ;;  %v12783_v63 = vld [vmem:[#allocation156_spill] sm:$0xff]  ;;  %v2674_v35 = vpop.xlane.xlu1 %2673 }
 0x414   : > { %v10684_v48 = vpop.eup %7294  ;;  %3489 = vadd.xlane.f32.xlu1 %v3488_v33  ;;  %7314 = vpow2.f32 %v3195_v55  ;;  %v3506_v2 = vadd.f32 %v3505_v14, %v3504_v42  ;;  %v2928_v47 = vsub.f32 %v9714_v3, %v2668_v62  ;;  %v2929_v58 = vsub.f32 %v12782_v53, %v2668_v62 }
 0x415   : > { %v10688_v25 = vpop.eup %7296  ;;  %7316 = vpow2.f32 %v3197_v32  ;;  %v3498_v16 = vadd.f32 %v10514_v11, %v3497_v20  ;;  %v2930_v9 = vsub.f32 %v12783_v63, %v2668_v62  ;;  %v3199_v50 = vmul.f32 1.442695, %v2927_v19 }
 0x416   : > { %v10692_v45 = vpop.eup %7298  ;;  %3507 = vadd.xlane.f32.xlu0 %v3506_v2  ;;  %v3201_v41 = vmul.f32 1.442695, %v2928_v47  ;;  %v3203_v33 = vmul.f32 1.442695, %v2929_v58  ;;  %v3515_v55 = vadd.f32 %v10588_v37, %v10584_v56  ;;  %v3517_v3 = vsel %vm2556_vm2, %v10597_v29, 0.0  ;;  %4044 = vmatprep.mubr.f32.mxu1 %v10688_v25 }
 0x417   : > { %v10699_v32 = vpop.eup %7300  ;;  %v3500_v42 = vadd.f32 %v3499_v40, %v3498_v16  ;;  %7318 = vpow2.f32 %v3199_v50  ;;  %v3205_v62 = vmul.f32 1.442695, %v2930_v9  ;;  %v3509_v14 = vadd.f32 %v10563_v22, %v10558_v34  ;;  %4045 = vmatmul.mubr.f32.gmra.mrb[132].mxu1 %v10684_v48  ;;  %v12784_v22 = vld [vmem:[#allocation157_spill] sm:$0xff]  ;;  %v12785_v16 = vld [vmem:[#allocation158_spill] sm:$0xff]  ;;  %v2680_v50 = vpop.xlane.xlu0 %2679 }
 0x418   : > { %v10704_v20 = vpop.eup %7302  ;;  %7320 = vpow2.f32 %v3201_v41  ;;  %v3516_v56 = vadd.f32 %v10591_v52, %v3515_v55  ;;  %v3511_v37 = vsel %vm2556_vm2, %v10579_v23, 0.0  ;;  %v2931_v19 = vsub.f32 %v9723_v26, %v2674_v35 }
 0x419   : > { %v10710_v2 = vpop.eup %7304  ;;  %3501 = vadd.xlane.f32.xlu1 %v3500_v42  ;;  %7322 = vpow2.f32 %v3203_v33  ;;  %v3510_v40 = vadd.f32 %v10572_v30, %v3509_v14  ;;  %v2932_v34 = vsub.f32 %v9731_v7, %v2674_v35  ;;  %v2933_v47 = vsub.f32 %v12784_v22, %v2674_v35 }
 0x41a   : > { %v10715_v53 = vpop.eup %7306  ;;  %7324 = vpow2.f32 %v3205_v62  ;;  %v3518_v58 = vadd.f32 %v3517_v3, %v3516_v56  ;;  %v2934_v63 = vsub.f32 %v12785_v16, %v2674_v35  ;;  %v3207_v9 = vmul.f32 1.442695, %v2931_v19  ;;  %4049 = vmatprep.mubr.f32.mxu1 %v10710_v2 }
 0x41b   : > { %v10719_v26 = vpop.eup %7308  ;;  %v3512_v41 = vadd.f32 %v3511_v37, %v3510_v40  ;;  %v3209_v33 = vmul.f32 1.442695, %v2932_v34  ;;  %v3211_v55 = vmul.f32 1.442695, %v2933_v47  ;;  %v3527_v7 = vadd.f32 %v10626_v13, %v10624_v8  ;;  %4050 = vmatmul.mubr.f32.gmra.mrb[134].mxu1 %v10704_v20  ;;  %v12786_v34 = vld [vmem:[#allocation159_spill] sm:$0xff]  ;;  %v12787_v47 = vld [vmem:[#allocation160_spill] sm:$0xff] }
 0x41c   : > { %v10724_v42 = vpop.eup %7310  ;;  %3519 = vadd.xlane.f32.xlu0 %v3518_v58  ;;  %7326 = vpow2.f32 %v3207_v9  ;;  %v3213_v3 = vmul.f32 1.442695, %v2934_v63  ;;  %v3529_v35 = vsel %vm2556_vm2, %v10637_v27, 0.0  ;;  %v3521_v62 = vadd.f32 %v10607_v43, %v10605_v44  ;;  %v2686_v63 = vpop.xlane.xlu1 %2685 }
 0x41d   : > { %v10730_v14 = vpop.eup %7312  ;;  %3513 = vadd.xlane.f32.xlu1 %v3512_v41  ;;  %7328 = vpow2.f32 %v3209_v33  ;;  %v3528_v56 = vadd.f32 %v10632_v54, %v3527_v7  ;;  %v3523_v8 = vsel %vm2556_vm2, %v10619_v57, 0.0  ;;  %v2935_v13 = vsub.f32 %v9738_v59, %v2680_v50 }
 0x41e   : > { %v10736_v37 = vpop.eup %7314  ;;  %7330 = vpow2.f32 %v3211_v55  ;;  %v3522_v19 = vadd.f32 %v10613_v10, %v3521_v62  ;;  %v2936_v40 = vsub.f32 %v9744_v28, %v2680_v50  ;;  %v2937_v44 = vsub.f32 %v12786_v34, %v2680_v50  ;;  %4054 = vmatprep.mubr.f32.mxu1 %v10730_v14 }
 0x41f   : > { %v10742_v43 = vpop.eup %7316  ;;  %7332 = vpow2.f32 %v3213_v3  ;;  %v3530_v22 = vadd.f32 %v3529_v35, %v3528_v56  ;;  %v2938_v58 = vsub.f32 %v12787_v47, %v2680_v50  ;;  %v3215_v16 = vmul.f32 1.442695, %v2935_v13  ;;  %4055 = vmatmul.mubr.f32.gmra.mrb[136].mxu1 %v10724_v42  ;;  %v12790_v13 = vld [vmem:[#allocation79_spill] sm:$0xff] }
 0x420   : > { %v3524_v59 = vadd.f32 %v3523_v8, %v3522_v19  ;;  %v3217_v9 = vmul.f32 1.442695, %v2936_v40  ;;  %v3219_v41 = vmul.f32 1.442695, %v2937_v44  ;;  %v3539_v28 = vadd.f32 %v10668_v18, %v10663_v0  ;;  %v12788_v18 = vld [vmem:[#allocation77_spill] sm:$0xff]  ;;  %v12792_v44 = vld [vmem:[#allocation162_spill] sm:$0xff] }
 0x421   : > { %v10748_v33 = vpop.eup %7318  ;;  %3531 = vadd.xlane.f32.xlu0 %v3530_v22  ;;  %7334 = vpow2.f32 %v3215_v16  ;;  %v3221_v55 = vmul.f32 1.442695, %v2938_v58  ;;  %v3541_v7 = vsel %vm2556_vm2, %v10676_v39, 0.0  ;;  %v3533_v50 = vadd.f32 %v10647_v6, %v10643_v21  ;;  %v12791_v40 = vld [vmem:[#allocation161_spill] sm:$0xff]  ;;  %v2692_v58 = vpop.xlane.xlu0 %2691 }
 0x422   : > { %v10754_v3 = vpop.eup %7320  ;;  %3525 = vadd.xlane.f32.xlu1 %v3524_v59  ;;  %7336 = vpow2.f32 %v3217_v9  ;;  %v3540_v35 = vadd.f32 %v10670_v60, %v3539_v28  ;;  %v3535_v0 = vsel %vm2556_vm2, %v10657_v49, 0.0  ;;  %v2939_v62 = vsub.f32 %v12788_v18, %v2686_v63 }
 0x423   : > { %v10760_v56 = vpop.eup %7322  ;;  %7338 = vpow2.f32 %v3219_v41  ;;  %v3534_v8 = vadd.f32 %v10649_v46, %v3533_v50  ;;  %v2940_v19 = vsub.f32 %v12790_v13, %v2686_v63  ;;  %v2941_v21 = vsub.f32 %v12791_v40, %v2686_v63  ;;  %4059 = vmatprep.mubr.f32.mxu1 %v10754_v3 }
 0x424   : > { %12789 = vst [vmem:[#allocation39_spill] sm:$0xff] %v10760_v56  ;;  %v10766_v6 = vpop.eup %7324  ;;  %7340 = vpow2.f32 %v3221_v55  ;;  %v3542_v34 = vadd.f32 %v3541_v7, %v3540_v35  ;;  %v2942_v22 = vsub.f32 %v12792_v44, %v2686_v63  ;;  %v3223_v47 = vmul.f32 1.442695, %v2939_v62  ;;  %4060 = vmatmul.mubr.f32.gmra.mrb[138].mxu1 %v10748_v33 }
 0x425   : > { %v3536_v16 = vadd.f32 %v3535_v0, %v3534_v8  ;;  %v3225_v59 = vmul.f32 1.442695, %v2940_v19  ;;  %v3227_v9 = vmul.f32 1.442695, %v2941_v21  ;;  %v3551_v41 = vadd.f32 %v10710_v2, %v10704_v20  ;;  %v12793_v2 = vld [vmem:[#allocation80_spill] sm:$0xff]  ;;  %v12795_v8 = vld [vmem:[#allocation82_spill] sm:$0xff] }
 0x426   : > { %v10772_v28 = vpop.eup %7326  ;;  %3543 = vadd.xlane.f32.xlu0 %v3542_v34  ;;  %7342 = vpow2.f32 %v3223_v47  ;;  %v3229_v50 = vmul.f32 1.442695, %v2942_v22  ;;  %v3553_v55 = vsel %vm2556_vm2, %v10719_v26, 0.0  ;;  %v3545_v63 = vadd.f32 %v10688_v25, %v10684_v48  ;;  %v12796_v19 = vld [vmem:[#allocation163_spill] sm:$0xff]  ;;  %v2698_v25 = vpop.xlane.xlu1 %2697  ;;  %v12798_v34 = vld [vmem:[#allocation164_spill] sm:$0xff] }
 0x427   : > { %v10778_v7 = vpop.eup %7328  ;;  %3537 = vadd.xlane.f32.xlu1 %v3536_v16  ;;  %7344 = vpow2.f32 %v3225_v59  ;;  %v3552_v35 = vadd.f32 %v10715_v53, %v3551_v41  ;;  %v3547_v20 = vsel %vm2556_vm2, %v10699_v32, 0.0  ;;  %v2943_v0 = vsub.f32 %v12793_v2, %v2692_v58  ;;  %v12800_v2 = vld [vmem:[#allocation87_spill] sm:$0xff] }
 0x428   : > { %v10784_v18 = vpop.eup %7330  ;;  %7346 = vpow2.f32 %v3227_v9  ;;  %v3546_v62 = vadd.f32 %v10692_v45, %v3545_v63  ;;  %v2944_v13 = vsub.f32 %v12795_v8, %v2692_v58  ;;  %v2945_v48 = vsub.f32 %v12796_v19, %v2692_v58  ;;  %4064 = vmatprep.mubr.f32.mxu1 %v10778_v7 }
 0x429   : > { %12794 = vst [vmem:[#allocation26_spill] sm:$0xff] %v10784_v18  ;;  %v10790_v40 = vpop.eup %7332  ;;  %7348 = vpow2.f32 %v3229_v50  ;;  %v3554_v21 = vadd.f32 %v3553_v55, %v3552_v35  ;;  %v2946_v44 = vsub.f32 %v12798_v34, %v2692_v58  ;;  %v3231_v22 = vmul.f32 1.442695, %v2943_v0  ;;  %4065 = vmatmul.mubr.f32.gmra.mrb[140].mxu1 %v10772_v28  ;;  %v12799_v55 = vld [vmem:[#allocation85_spill] sm:$0xff] }
 0x42a   : > { %12797 = vst [vmem:[#allocation25_spill] sm:$0xff] %v10790_v40  ;;  %v3548_v47 = vadd.f32 %v3547_v20, %v3546_v62  ;;  %v3233_v16 = vmul.f32 1.442695, %v2944_v13  ;;  %v3235_v59 = vmul.f32 1.442695, %v2945_v48  ;;  %v3557_v9 = vadd.f32 %v10730_v14, %v10724_v42  ;;  %v12801_v62 = vld [vmem:[#allocation165_spill] sm:$0xff] }
 0x42b   : > { %v10796_v41 = vpop.eup %7334  ;;  %3555 = vadd.xlane.f32.xlu0 %v3554_v21  ;;  %7350 = vpow2.f32 %v3231_v22  ;;  %v3237_v63 = vmul.f32 1.442695, %v2946_v44  ;;  %v3559_v50 = vsel %vm2556_vm2, %v10742_v43, 0.0  ;;  %v2947_v35 = vsub.f32 %v12799_v55, %v2698_v25  ;;  %v12803_v14 = vld [vmem:[#allocation166_spill] sm:$0xff]  ;;  %v2704_v21 = vpop.xlane.xlu0 %2703 }
 0x42c   : > { %v7337_v58 = vpop.eup %7336  ;;  %3549 = vadd.xlane.f32.xlu1 %v3548_v47  ;;  %7352 = vpow2.f32 %v3233_v16  ;;  %v3558_v20 = vadd.f32 %v10736_v37, %v3557_v9  ;;  %v2948_v0 = vsub.f32 %v12800_v2, %v2698_v25  ;;  %v2949_v8 = vsub.f32 %v12801_v62, %v2698_v25  ;;  %v12806_v55 = vld [vmem:[#allocation62_spill] sm:$0xff]  ;;  %v12808_v62 = vld [vmem:[#allocation168_spill] sm:$0xff] }
 0x42d   : > { %v10804_v42 = vpop.eup %7338  ;;  %7354 = vpow2.f32 %v3235_v59  ;;  %v2950_v13 = vsub.f32 %v12803_v14, %v2698_v25  ;;  %v3239_v19 = vmul.f32 1.442695, %v2947_v35  ;;  %v3563_v48 = vadd.f32 %v10754_v3, %v10748_v33  ;;  %4069 = vmatprep.mubr.f32.mxu1 %v7337_v58  ;;  %v12805_v33 = vld [vmem:[#allocation60_spill] sm:$0xff] }
 0x42e   : > { %12802 = vst [vmem:[#allocation115_spill] sm:$0xff] %v10804_v42  ;;  %v10809_v34 = vpop.eup %7340  ;;  %7356 = vpow2.f32 %v3237_v63  ;;  %v3560_v44 = vadd.f32 %v3559_v50, %v3558_v20  ;;  %v3241_v22 = vmul.f32 1.442695, %v2948_v0  ;;  %v3243_v47 = vmul.f32 1.442695, %v2949_v8  ;;  %4070 = vmatmul.mubr.f32.gmra.mrb[142].mxu1 %v10796_v41  ;;  %v12807_v63 = vld [vmem:[#allocation167_spill] sm:$0xff]  ;;  %v2710_v20 = vpop.xlane.xlu1 %2709 }
 0x42f   : > { %12804 = vst [vmem:[#allocation117_spill] sm:$0xff] %v10809_v34  ;;  %7358 = vpow2.f32 %v3239_v19  ;;  %v3245_v16 = vmul.f32 1.442695, %v2950_v13  ;;  %v3564_v59 = vadd.f32 %v10760_v56, %v3563_v48  ;;  %v3565_v25 = vsel %vm2556_vm2, %v10766_v6, 0.0 }
 0x430   : > { %v7343_v9 = vpop.eup %7342  ;;  %3561 = vadd.xlane.f32.xlu1 %v3560_v44  ;;  %7360 = vpow2.f32 %v3241_v22  ;;  %v2951_v3 = vsub.f32 %v12805_v33, %v2704_v21  ;;  %v2952_v35 = vsub.f32 %v12806_v55, %v2704_v21  ;;  %v2953_v50 = vsub.f32 %v12807_v63, %v2704_v21  ;;  %v2716_v63 = vpop.xlane.xlu0 %2715 }
 0x431   : > { %v7345_v2 = vpop.eup %7344  ;;  %7362 = vpow2.f32 %v3243_v47  ;;  %v3566_v0 = vadd.f32 %v3565_v25, %v3564_v59  ;;  %v2954_v8 = vsub.f32 %v12808_v62, %v2704_v21  ;;  %v3569_v14 = vadd.f32 %v10778_v7, %v10772_v28  ;;  %v12810_v21 = vld [vmem:[#allocation63_spill] sm:$0xff]  ;;  %v12811_v28 = vld [vmem:[#allocation64_spill] sm:$0xff] }
 0x432   : > { %v10821_v13 = vpop.eup %7346  ;;  %7364 = vpow2.f32 %v3245_v16  ;;  %v3247_v19 = vmul.f32 1.442695, %v2951_v3  ;;  %v3249_v48 = vmul.f32 1.442695, %v2952_v35  ;;  %v3251_v44 = vmul.f32 1.442695, %v2953_v50  ;;  %4074 = vmatprep.mubr.f32.mxu1 %v7345_v2 }
 0x433   : > { %12809 = vst [vmem:[#allocation40_spill] sm:$0xff] %v10821_v13  ;;  %v10823_v22 = vpop.eup %7348  ;;  %3567 = vadd.xlane.f32.xlu0 %v3566_v0  ;;  %v3253_v33 = vmul.f32 1.442695, %v2954_v8  ;;  %v3570_v55 = vadd.f32 %v10784_v18, %v3569_v14  ;;  %v3571_v47 = vsel %vm2556_vm2, %v10790_v40, 0.0  ;;  %v2955_v59 = vsub.f32 %v12810_v21, %v2710_v20  ;;  %4075 = vmatmul.mubr.f32.gmra.mrb[144].mxu1 %v7343_v9  ;;  %v12812_v16 = vld [vmem:[#allocation169_spill] sm:$0xff]  ;;  %v12813_v3 = vld [vmem:[#allocation170_spill] sm:$0xff] }
 0x434   : > { %7366 = vpow2.f32 %v3247_v19  ;;  %v2956_v7 = vsub.f32 %v12811_v28, %v2710_v20  ;;  %v2957_v25 = vsub.f32 %v12812_v16, %v2710_v20  ;;  %v2958_v35 = vsub.f32 %v12813_v3, %v2710_v20  ;;  %v12815_v28 = vld [vmem:[#allocation66_spill] sm:$0xff] }
 0x435   : > { %v7351_v50 = vpop.eup %7350  ;;  %7368 = vpow2.f32 %v3249_v48  ;;  %v3572_v0 = vadd.f32 %v3571_v47, %v3570_v55  ;;  %v3255_v62 = vmul.f32 1.442695, %v2955_v59  ;;  %v3575_v8 = vadd.f32 %v7337_v58, %v10796_v41  ;;  %v12816_v41 = vld [vmem:[#allocation67_spill] sm:$0xff]  ;;  %v12818_v59 = vld [vmem:[#allocation172_spill] sm:$0xff] }
 0x436   : > { %v7353_v14 = vpop.eup %7352  ;;  %7370 = vpow2.f32 %v3251_v44  ;;  %v3257_v18 = vmul.f32 1.442695, %v2956_v7  ;;  %v3259_v40 = vmul.f32 1.442695, %v2957_v25  ;;  %v3261_v21 = vmul.f32 1.442695, %v2958_v35 }
 0x437   : > { %v10833_v56 = vpop.eup %7354  ;;  %7372 = vpow2.f32 %v3253_v33  ;;  %3573 = vadd.xlane.f32.xlu1 %v3572_v0  ;;  %v3576_v19 = vadd.f32 %v10804_v42, %v3575_v8  ;;  %v3577_v20 = vsel %vm2556_vm2, %v10809_v34, 0.0  ;;  %v2959_v48 = vsub.f32 %v12815_v28, %v2716_v63  ;;  %4079 = vmatprep.mubr.f32.mxu1 %v7353_v14  ;;  %v12817_v44 = vld [vmem:[#allocation171_spill] sm:$0xff]  ;;  %v2722_v33 = vpop.xlane.xlu1 %2721 }
 0x438   : > { %12814 = vst [vmem:[#allocation41_spill] sm:$0xff] %v10833_v56  ;;  %v10839_v55 = vpop.eup %7356  ;;  %7374 = vpow2.f32 %v3255_v62  ;;  %v2960_v58 = vsub.f32 %v12816_v41, %v2716_v63  ;;  %v2961_v47 = vsub.f32 %v12817_v44, %v2716_v63  ;;  %v2962_v7 = vsub.f32 %v12818_v59, %v2716_v63  ;;  %4080 = vmatmul.mubr.f32.gmra.mrb[146].mxu1 %v7351_v50  ;;  %v12820_v41 = vld [vmem:[#allocation68_spill] sm:$0xff] }
 0x439   : > { %v7359_v16 = vpop.eup %7358  ;;  %7376 = vpow2.f32 %v3257_v18  ;;  %v3578_v25 = vadd.f32 %v3577_v20, %v3576_v19  ;;  %v3263_v3 = vmul.f32 1.442695, %v2959_v48  ;;  %v3581_v35 = vadd.f32 %v7345_v2, %v7343_v9  ;;  %v12822_v9 = vld [vmem:[#allocation69_spill] sm:$0xff]  ;;  %v12824_v20 = vld [vmem:[#allocation174_spill] sm:$0xff] }
 0x43a   : > { %v7361_v0 = vpop.eup %7360  ;;  %7378 = vpow2.f32 %v3259_v40  ;;  %v3265_v8 = vmul.f32 1.442695, %v2960_v58  ;;  %v3267_v28 = vmul.f32 1.442695, %v2961_v47  ;;  %v3269_v42 = vmul.f32 1.442695, %v2962_v7 }
 0x43b   : > { %v10844_v34 = vpop.eup %7362  ;;  %7380 = vpow2.f32 %v3261_v21  ;;  %3579 = vadd.xlane.f32.xlu0 %v3578_v25  ;;  %v3582_v62 = vadd.f32 %v10821_v13, %v3581_v35  ;;  %v3583_v63 = vsel %vm2556_vm2, %v10823_v22, 0.0  ;;  %v2963_v44 = vsub.f32 %v12820_v41, %v2722_v33  ;;  %4084 = vmatprep.mubr.f32.mxu1 %v7361_v0  ;;  %v12823_v2 = vld [vmem:[#allocation173_spill] sm:$0xff]  ;;  %v2728_v21 = vpop.xlane.xlu0 %2727 }
 0x43c   : > { %12819 = vst [vmem:[#allocation29_spill] sm:$0xff] %v10844_v34  ;;  %v10850_v18 = vpop.eup %7364  ;;  %7382 = vpow2.f32 %v3263_v3  ;;  %v2964_v40 = vsub.f32 %v12822_v9, %v2722_v33  ;;  %v2965_v19 = vsub.f32 %v12823_v2, %v2722_v33  ;;  %v2966_v48 = vsub.f32 %v12824_v20, %v2722_v33  ;;  %4085 = vmatmul.mubr.f32.gmra.mrb[148].mxu1 %v7359_v16  ;;  %v12825_v33 = vld [vmem:[#allocation70_spill] sm:$0xff] }
 0x43d   : > { %12821 = vst [vmem:[#allocation28_spill] sm:$0xff] %v10850_v18  ;;  %7384 = vpow2.f32 %v3265_v8  ;;  %v3584_v58 = vadd.f32 %v3583_v63, %v3582_v62  ;;  %v3271_v47 = vmul.f32 1.442695, %v2963_v44  ;;  %v3587_v59 = vadd.f32 %v7353_v14, %v7351_v50  ;;  %v12827_v8 = vld [vmem:[#allocation71_spill] sm:$0xff]  ;;  %v12829_v62 = vld [vmem:[#allocation176_spill] sm:$0xff]  ;;  %v2734_v44 = vpop.xlane.xlu1 %2733 }
 0x43e   : > { %v7367_v7 = vpop.eup %7366  ;;  %7386 = vpow2.f32 %v3267_v28  ;;  %v3273_v25 = vmul.f32 1.442695, %v2964_v40  ;;  %v3275_v35 = vmul.f32 1.442695, %v2965_v19  ;;  %v3277_v41 = vmul.f32 1.442695, %v2966_v48 }
 0x43f   : > { %v7369_v13 = vpop.eup %7368  ;;  %7388 = vpow2.f32 %v3269_v42  ;;  %3585 = vadd.xlane.f32.xlu1 %v3584_v58  ;;  %v3588_v3 = vadd.f32 %v10833_v56, %v3587_v59  ;;  %v3589_v9 = vsel %vm2556_vm2, %v10839_v55, 0.0  ;;  %v2967_v2 = vsub.f32 %v12825_v33, %v2728_v21  ;;  %v12828_v14 = vld [vmem:[#allocation175_spill] sm:$0xff] }
 0x440   : > { %v10859_v20 = vpop.eup %7370  ;;  %7390 = vpow2.f32 %v3271_v47  ;;  %v2968_v50 = vsub.f32 %v12827_v8, %v2728_v21  ;;  %v2969_v28 = vsub.f32 %v12828_v14, %v2728_v21  ;;  %v2970_v63 = vsub.f32 %v12829_v62, %v2728_v21  ;;  %4089 = vmatprep.mubr.f32.mxu1 %v7369_v13  ;;  %v12831_v14 = vld [vmem:[#allocation72_spill] sm:$0xff] }
 0x441   : > { %12826 = vst [vmem:[#allocation120_spill] sm:$0xff] %v10859_v20  ;;  %v10864_v42 = vpop.eup %7372  ;;  %7392 = vpow2.f32 %v3273_v25  ;;  %v3590_v40 = vadd.f32 %v3589_v9, %v3588_v3  ;;  %v3279_v19 = vmul.f32 1.442695, %v2967_v2  ;;  %4090 = vmatmul.mubr.f32.gmra.mrb[150].mxu1 %v7367_v7  ;;  %v3593_v48 = vadd.f32 %v7361_v0, %v7359_v16  ;;  %v12833_v3 = vld [vmem:[#allocation73_spill] sm:$0xff]  ;;  %v12835_v9 = vld [vmem:[#allocation178_spill] sm:$0xff] }
 0x442   : > { %12830 = vst [vmem:[#allocation121_spill] sm:$0xff] %v10864_v42  ;;  %v7375_v58 = vpop.eup %7374  ;;  %7394 = vpow2.f32 %v3275_v35  ;;  %v3281_v59 = vmul.f32 1.442695, %v2968_v50  ;;  %v3283_v33 = vmul.f32 1.442695, %v2969_v28  ;;  %v3595_v21 = vsel %vm2556_vm2, %v10850_v18, 0.0  ;;  %v2740_v50 = vpop.xlane.xlu0 %2739 }
 0x443   : > { %v3285_v47 = vmul.f32 1.442695, %v2970_v63  ;;  %v7377_v56 = vpop.eup %7376  ;;  %7396 = vpow2.f32 %v3277_v41  ;;  %3591 = vadd.xlane.f32.xlu0 %v3590_v40  ;;  %v3594_v8 = vadd.f32 %v10844_v34, %v3593_v48  ;;  %v2971_v62 = vsub.f32 %v12831_v14, %v2734_v44  ;;  %v12834_v0 = vld [vmem:[#allocation177_spill] sm:$0xff] }
 0x444   : > { %v10870_v25 = vpop.eup %7378  ;;  %7398 = vpow2.f32 %v3279_v19  ;;  %v2972_v16 = vsub.f32 %v12833_v3, %v2734_v44  ;;  %v2973_v35 = vsub.f32 %v12834_v0, %v2734_v44  ;;  %v2974_v2 = vsub.f32 %v12835_v9, %v2734_v44  ;;  %4094 = vmatprep.mubr.f32.mxu1 %v7377_v56  ;;  %v12837_v0 = vld [vmem:[#allocation74_spill] sm:$0xff] }
 0x445   : > { %12832 = vst [vmem:[#allocation42_spill] sm:$0xff] %v10870_v25  ;;  %v10875_v41 = vpop.eup %7380  ;;  %7400 = vpow2.f32 %v3281_v59  ;;  %v3596_v28 = vadd.f32 %v3595_v21, %v3594_v8  ;;  %v3287_v63 = vmul.f32 1.442695, %v2971_v62  ;;  %4095 = vmatmul.mubr.f32.gmra.mrb[152].mxu1 %v7375_v58  ;;  %v3599_v40 = vadd.f32 %v7369_v13, %v7367_v7  ;;  %v12839_v8 = vld [vmem:[#allocation75_spill] sm:$0xff]  ;;  %v12841_v21 = vld [vmem:[#allocation180_spill] sm:$0xff] }
 0x446   : > { %12836 = vst [vmem:[#allocation43_spill] sm:$0xff] %v10875_v41  ;;  %v7383_v48 = vpop.eup %7382  ;;  %7402 = vpow2.f32 %v3283_v33  ;;  %v3289_v14 = vmul.f32 1.442695, %v2972_v16  ;;  %v3291_v34 = vmul.f32 1.442695, %v2973_v35  ;;  %v3601_v44 = vsel %vm2556_vm2, %v10864_v42, 0.0  ;;  %v2746_v16 = vpop.xlane.xlu1 %2745 }
 0x447   : > { %v3293_v19 = vmul.f32 1.442695, %v2974_v2  ;;  %v7385_v18 = vpop.eup %7384  ;;  %7404 = vpow2.f32 %v3285_v47  ;;  %3597 = vadd.xlane.f32.xlu1 %v3596_v28  ;;  %v3600_v3 = vadd.f32 %v10859_v20, %v3599_v40  ;;  %v2975_v9 = vsub.f32 %v12837_v0, %v2740_v50  ;;  %v12840_v7 = vld [vmem:[#allocation179_spill] sm:$0xff] }
 0x448   : > { %v10881_v59 = vpop.eup %7386  ;;  %7406 = vpow2.f32 %v3287_v63  ;;  %v2976_v13 = vsub.f32 %v12839_v8, %v2740_v50  ;;  %v2977_v33 = vsub.f32 %v12840_v7, %v2740_v50  ;;  %v2978_v62 = vsub.f32 %v12841_v21, %v2740_v50  ;;  %4099 = vmatprep.mubr.f32.mxu1 %v7385_v18  ;;  %v12843_v7 = vld [vmem:[#allocation76_spill] sm:$0xff] }
 0x449   : > { %12838 = vst [vmem:[#allocation33_spill] sm:$0xff] %v10881_v59  ;;  %v10886_v47 = vpop.eup %7388  ;;  %7408 = vpow2.f32 %v3289_v14  ;;  %v3602_v35 = vadd.f32 %v3601_v44, %v3600_v3  ;;  %v3295_v2 = vmul.f32 1.442695, %v2975_v9  ;;  %4100 = vmatmul.mubr.f32.gmra.mrb[154].mxu1 %v7383_v48  ;;  %v3605_v28 = vadd.f32 %v7377_v56, %v7375_v58  ;;  %v12845_v3 = vld [vmem:[#allocation78_spill] sm:$0xff]  ;;  %v12846_v58 = vld [vmem:[#allocation181_spill] sm:$0xff] }
 0x44a   : > { %12842 = vst [vmem:[#allocation32_spill] sm:$0xff] %v10886_v47  ;;  %v7391_v40 = vpop.eup %7390  ;;  %7410 = vpow2.f32 %v3291_v34  ;;  %v3297_v0 = vmul.f32 1.442695, %v2976_v13  ;;  %v3299_v20 = vmul.f32 1.442695, %v2977_v33  ;;  %v3607_v50 = vsel %vm2556_vm2, %v10875_v41, 0.0  ;;  %v2752_v13 = vpop.xlane.xlu0 %2751 }
 0x44b   : > { %v3301_v63 = vmul.f32 1.442695, %v2978_v62  ;;  %v7393_v42 = vpop.eup %7392  ;;  %7412 = vpow2.f32 %v3293_v19  ;;  %3603 = vadd.xlane.f32.xlu0 %v3602_v35  ;;  %v3606_v8 = vadd.f32 %v10870_v25, %v3605_v28  ;;  %v2979_v21 = vsub.f32 %v12843_v7, %v2746_v16  ;;  %v12847_v44 = vld [vmem:[#allocation182_spill] sm:$0xff] }
 0x44c   : > { %v10892_v14 = vpop.eup %7394  ;;  %7414 = vpow2.f32 %v3295_v2  ;;  %v2980_v56 = vsub.f32 %v12845_v3, %v2746_v16  ;;  %v2981_v34 = vsub.f32 %v12846_v58, %v2746_v16  ;;  %v2982_v9 = vsub.f32 %v12847_v44, %v2746_v16  ;;  %4104 = vmatprep.mubr.f32.mxu1 %v7393_v42  ;;  %v12849_v58 = vld [vmem:[#allocation81_spill] sm:$0xff] }
 0x44d   : > { %12844 = vst [vmem:[#allocation123_spill] sm:$0xff] %v10892_v14  ;;  %v10897_v19 = vpop.eup %7396  ;;  %7416 = vpow2.f32 %v3297_v0  ;;  %v3608_v33 = vadd.f32 %v3607_v50, %v3606_v8  ;;  %v3303_v62 = vmul.f32 1.442695, %v2979_v21  ;;  %4105 = vmatmul.mubr.f32.gmra.mrb[156].mxu1 %v7391_v40  ;;  %v3611_v35 = vadd.f32 %v7385_v18, %v7383_v48  ;;  %v12851_v8 = vld [vmem:[#allocation83_spill] sm:$0xff]  ;;  %v12853_v50 = vld [vmem:[#allocation184_spill] sm:$0xff] }
 0x44e   : > { %12848 = vst [vmem:[#allocation125_spill] sm:$0xff] %v10897_v19  ;;  %v7399_v28 = vpop.eup %7398  ;;  %7418 = vpow2.f32 %v3299_v20  ;;  %v3305_v7 = vmul.f32 1.442695, %v2980_v56  ;;  %v3307_v25 = vmul.f32 1.442695, %v2981_v34  ;;  %v3613_v16 = vsel %vm2556_vm2, %v10886_v47, 0.0  ;;  %v2758_v56 = vpop.xlane.xlu1 %2757 }
 0x44f   : > { %v3309_v2 = vmul.f32 1.442695, %v2982_v9  ;;  %v7401_v41 = vpop.eup %7400  ;;  %7420 = vpow2.f32 %v3301_v63  ;;  %3609 = vadd.xlane.f32.xlu1 %v3608_v33  ;;  %v3612_v3 = vadd.f32 %v10881_v59, %v3611_v35  ;;  %v2983_v44 = vsub.f32 %v12849_v58, %v2752_v13  ;;  %v12852_v48 = vld [vmem:[#allocation183_spill] sm:$0xff] }
 0x450   : > { %v10903_v0 = vpop.eup %7402  ;;  %7422 = vpow2.f32 %v3303_v62  ;;  %v2984_v18 = vsub.f32 %v12851_v8, %v2752_v13  ;;  %v2985_v20 = vsub.f32 %v12852_v48, %v2752_v13  ;;  %v2986_v21 = vsub.f32 %v12853_v50, %v2752_v13  ;;  %4109 = vmatprep.mubr.f32.mxu1 %v7401_v41  ;;  %v12855_v48 = vld [vmem:[#allocation84_spill] sm:$0xff] }
 0x451   : > { %12850 = vst [vmem:[#allocation44_spill] sm:$0xff] %v10903_v0  ;;  %v10908_v63 = vpop.eup %7404  ;;  %7424 = vpow2.f32 %v3305_v7  ;;  %v3614_v34 = vadd.f32 %v3613_v16, %v3612_v3  ;;  %v3311_v9 = vmul.f32 1.442695, %v2983_v44  ;;  %4110 = vmatmul.mubr.f32.gmra.mrb[158].mxu1 %v7399_v28  ;;  %v3617_v33 = vadd.f32 %v7393_v42, %v7391_v40  ;;  %v12857_v3 = vld [vmem:[#allocation86_spill] sm:$0xff]  ;;  %v12858_v40 = vld [vmem:[#allocation185_spill] sm:$0xff] }
 0x452   : > { %12854 = vst [vmem:[#allocation45_spill] sm:$0xff] %v10908_v63  ;;  %v7407_v35 = vpop.eup %7406  ;;  %7426 = vpow2.f32 %v3307_v25  ;;  %v3313_v58 = vmul.f32 1.442695, %v2984_v18  ;;  %v3315_v59 = vmul.f32 1.442695, %v2985_v20  ;;  %v3619_v13 = vsel %vm2556_vm2, %v10897_v19, 0.0  ;;  %v2764_v18 = vpop.xlane.xlu0 %2763 }
 0x453   : > { %v3317_v62 = vmul.f32 1.442695, %v2986_v21  ;;  %v7409_v47 = vpop.eup %7408  ;;  %7428 = vpow2.f32 %v3309_v2  ;;  %3615 = vadd.xlane.f32.xlu0 %v3614_v34  ;;  %v3618_v8 = vadd.f32 %v10892_v14, %v3617_v33  ;;  %v2987_v50 = vsub.f32 %v12855_v48, %v2758_v56  ;;  %v12859_v16 = vld [vmem:[#allocation186_spill] sm:$0xff] }
 0x454   : > { %v10914_v7 = vpop.eup %7410  ;;  %7430 = vpow2.f32 %v3311_v9  ;;  %v2988_v42 = vsub.f32 %v12857_v3, %v2758_v56  ;;  %v2989_v25 = vsub.f32 %v12858_v40, %v2758_v56  ;;  %v2990_v44 = vsub.f32 %v12859_v16, %v2758_v56  ;;  %4114 = vmatprep.mubr.f32.mxu1 %v7409_v47  ;;  %v12861_v40 = vld [vmem:[#allocation89_spill] sm:$0xff] }
 0x455   : > { %12856 = vst [vmem:[#allocation37_spill] sm:$0xff] %v10914_v7  ;;  %v10919_v2 = vpop.eup %7412  ;;  %7432 = vpow2.f32 %v3313_v58  ;;  %v3620_v20 = vadd.f32 %v3619_v13, %v3618_v8  ;;  %v3319_v21 = vmul.f32 1.442695, %v2987_v50  ;;  %4115 = vmatmul.mubr.f32.gmra.mrb[160].mxu1 %v7407_v35  ;;  %v3623_v34 = vadd.f32 %v7401_v41, %v7399_v28  ;;  %v12863_v8 = vld [vmem:[#allocation91_spill] sm:$0xff]  ;;  %v12865_v13 = vld [vmem:[#allocation188_spill] sm:$0xff] }
 0x456   : > { %12860 = vst [vmem:[#allocation36_spill] sm:$0xff] %v10919_v2  ;;  %v7415_v33 = vpop.eup %7414  ;;  %7434 = vpow2.f32 %v3315_v59  ;;  %v3321_v48 = vmul.f32 1.442695, %v2988_v42  ;;  %v3323_v14 = vmul.f32 1.442695, %v2989_v25  ;;  %v3625_v56 = vsel %vm2556_vm2, %v10908_v63, 0.0  ;;  %v2770_v42 = vpop.xlane.xlu1 %2769 }
 0x457   : > { %v3325_v9 = vmul.f32 1.442695, %v2990_v44  ;;  %v7417_v19 = vpop.eup %7416  ;;  %7436 = vpow2.f32 %v3317_v62  ;;  %3621 = vadd.xlane.f32.xlu1 %v3620_v20  ;;  %v3624_v3 = vadd.f32 %v10903_v0, %v3623_v34  ;;  %v2991_v16 = vsub.f32 %v12861_v40, %v2764_v18  ;;  %v12864_v28 = vld [vmem:[#allocation187_spill] sm:$0xff] }
 0x458   : > { %v10925_v58 = vpop.eup %7418  ;;  %7438 = vpow2.f32 %v3319_v21  ;;  %v2992_v41 = vsub.f32 %v12863_v8, %v2764_v18  ;;  %v2993_v59 = vsub.f32 %v12864_v28, %v2764_v18  ;;  %v2994_v50 = vsub.f32 %v12865_v13, %v2764_v18  ;;  %4119 = vmatprep.mubr.f32.mxu1 %v7417_v19  ;;  %v12867_v28 = vld [vmem:[#allocation92_spill] sm:$0xff] }
 0x459   : > { %12862 = vst [vmem:[#allocation128_spill] sm:$0xff] %v10925_v58  ;;  %v10930_v62 = vpop.eup %7420  ;;  %7440 = vpow2.f32 %v3321_v48  ;;  %v3626_v25 = vadd.f32 %v3625_v56, %v3624_v3  ;;  %v3327_v44 = vmul.f32 1.442695, %v2991_v16  ;;  %4120 = vmatmul.mubr.f32.gmra.mrb[162].mxu1 %v7415_v33  ;;  %v3629_v20 = vadd.f32 %v7409_v47, %v7407_v35  ;;  %v12869_v3 = vld [vmem:[#allocation94_spill] sm:$0xff]  ;;  %v12870_v35 = vld [vmem:[#allocation189_spill] sm:$0xff] }
 0x45a   : > { %12866 = vst [vmem:[#allocation129_spill] sm:$0xff] %v10930_v62  ;;  %v7423_v34 = vpop.eup %7422  ;;  %7442 = vpow2.f32 %v3323_v14  ;;  %v3329_v40 = vmul.f32 1.442695, %v2992_v41  ;;  %v3331_v0 = vmul.f32 1.442695, %v2993_v59  ;;  %v3631_v18 = vsel %vm2556_vm2, %v10919_v2, 0.0  ;;  %v2776_v41 = vpop.xlane.xlu0 %2775 }
 0x45b   : > { %v3333_v21 = vmul.f32 1.442695, %v2994_v50  ;;  %v7425_v63 = vpop.eup %7424  ;;  %7444 = vpow2.f32 %v3325_v9  ;;  %3627 = vadd.xlane.f32.xlu0 %v3626_v25  ;;  %v3630_v8 = vadd.f32 %v10914_v7, %v3629_v20  ;;  %v2995_v13 = vsub.f32 %v12867_v28, %v2770_v42  ;;  %v12871_v56 = vld [vmem:[#allocation190_spill] sm:$0xff] }
 0x45c   : > { %v10936_v48 = vpop.eup %7426  ;;  %7446 = vpow2.f32 %v3327_v44  ;;  %v2996_v47 = vsub.f32 %v12869_v3, %v2770_v42  ;;  %v2997_v14 = vsub.f32 %v12870_v35, %v2770_v42  ;;  %v2998_v16 = vsub.f32 %v12871_v56, %v2770_v42  ;;  %4124 = vmatprep.mubr.f32.mxu1 %v7425_v63  ;;  %v12873_v35 = vld [vmem:[#allocation97_spill] sm:$0xff] }
 0x45d   : > { %12868 = vst [vmem:[#allocation46_spill] sm:$0xff] %v10936_v48  ;;  %v10941_v9 = vpop.eup %7428  ;;  %7448 = vpow2.f32 %v3329_v40  ;;  %v3632_v59 = vadd.f32 %v3631_v18, %v3630_v8  ;;  %v3335_v50 = vmul.f32 1.442695, %v2995_v13  ;;  %4125 = vmatmul.mubr.f32.gmra.mrb[164].mxu1 %v7423_v34  ;;  %v3635_v25 = vadd.f32 %v7417_v19, %v7415_v33  ;;  %v12875_v8 = vld [vmem:[#allocation99_spill] sm:$0xff]  ;;  %v12877_v18 = vld [vmem:[#allocation192_spill] sm:$0xff] }
 0x45e   : > { %12872 = vst [vmem:[#allocation47_spill] sm:$0xff] %v10941_v9  ;;  %v7431_v20 = vpop.eup %7430  ;;  %7450 = vpow2.f32 %v3331_v0  ;;  %v3337_v28 = vmul.f32 1.442695, %v2996_v47  ;;  %v3339_v7 = vmul.f32 1.442695, %v2997_v14  ;;  %v3637_v42 = vsel %vm2556_vm2, %v10930_v62, 0.0  ;;  %v2782_v47 = vpop.xlane.xlu1 %2781 }
 0x45f   : > { %v3341_v44 = vmul.f32 1.442695, %v2998_v16  ;;  %v7433_v2 = vpop.eup %7432  ;;  %7452 = vpow2.f32 %v3333_v21  ;;  %3633 = vadd.xlane.f32.xlu1 %v3632_v59  ;;  %v3636_v3 = vadd.f32 %v10925_v58, %v3635_v25  ;;  %v2999_v56 = vsub.f32 %v12873_v35, %v2776_v41  ;;  %v12876_v33 = vld [vmem:[#allocation191_spill] sm:$0xff] }
 0x460   : > { %v10947_v40 = vpop.eup %7434  ;;  %7454 = vpow2.f32 %v3335_v50  ;;  %v3000_v19 = vsub.f32 %v12875_v8, %v2776_v41  ;;  %v3001_v0 = vsub.f32 %v12876_v33, %v2776_v41  ;;  %v3002_v13 = vsub.f32 %v12877_v18, %v2776_v41  ;;  %4129 = vmatprep.mubr.f32.mxu1 %v7433_v2  ;;  %v12879_v33 = vld [vmem:[#allocation100_spill] sm:$0xff] }
 0x461   : > { %12874 = vst [vmem:[#allocation53_spill] sm:$0xff] %v10947_v40  ;;  %v10952_v21 = vpop.eup %7436  ;;  %7456 = vpow2.f32 %v3337_v28  ;;  %v3638_v14 = vadd.f32 %v3637_v42, %v3636_v3  ;;  %v3343_v16 = vmul.f32 1.442695, %v2999_v56  ;;  %4130 = vmatmul.mubr.f32.gmra.mrb[166].mxu1 %v7431_v20  ;;  %v3641_v59 = vadd.f32 %v7425_v63, %v7423_v34  ;;  %v12881_v3 = vld [vmem:[#allocation102_spill] sm:$0xff]  ;;  %v12883_v42 = vld [vmem:[#allocation20_spill] sm:$0xff] }
 0x462   : > { %12878 = vst [vmem:[#allocation54_spill] sm:$0xff] %v10952_v21  ;;  %v7439_v25 = vpop.eup %7438  ;;  %7458 = vpow2.f32 %v3339_v7  ;;  %v3345_v35 = vmul.f32 1.442695, %v3000_v19  ;;  %v3347_v58 = vmul.f32 1.442695, %v3001_v0  ;;  %v3643_v41 = vsel %vm2556_vm2, %v10941_v9, 0.0  ;;  %v2788_v19 = vpop.xlane.xlu0 %2787 }
 0x463   : > { %v3349_v50 = vmul.f32 1.442695, %v3002_v13  ;;  %v7441_v62 = vpop.eup %7440  ;;  %7460 = vpow2.f32 %v3341_v44  ;;  %3639 = vadd.xlane.f32.xlu0 %v3638_v14  ;;  %v3642_v8 = vadd.f32 %v10936_v48, %v3641_v59  ;;  %v3003_v18 = vsub.f32 %v12879_v33, %v2782_v47  ;;  %v12882_v34 = vld [vmem:[#allocation14_spill] sm:$0xff] }
 0x464   : > { %v10958_v28 = vpop.eup %7442  ;;  %7462 = vpow2.f32 %v3343_v16  ;;  %v3004_v63 = vsub.f32 %v12881_v3, %v2782_v47  ;;  %v3005_v7 = vsub.f32 %v12882_v34, %v2782_v47  ;;  %v3006_v56 = vsub.f32 %v12883_v42, %v2782_v47  ;;  %4134 = vmatprep.mubr.f32.mxu1 %v7441_v62  ;;  %v12885_v34 = vld [vmem:[#allocation106_spill] sm:$0xff] }
 0x465   : > { %12880 = vst [vmem:[#allocation131_spill] sm:$0xff] %v10958_v28  ;;  %v10963_v44 = vpop.eup %7444  ;;  %7464 = vpow2.f32 %v3345_v35  ;;  %v3644_v0 = vadd.f32 %v3643_v41, %v3642_v8  ;;  %v3351_v13 = vmul.f32 1.442695, %v3003_v18  ;;  %4135 = vmatmul.mubr.f32.gmra.mrb[168].mxu1 %v7439_v25  ;;  %v3647_v14 = vadd.f32 %v7433_v2, %v7431_v20  ;;  %v12887_v8 = vld [vmem:[#allocation108_spill] sm:$0xff]  ;;  %v12889_v41 = vld [vmem:[#allocation90_spill] sm:$0xff] }
 0x466   : > { %12884 = vst [vmem:[#allocation133_spill] sm:$0xff] %v10963_v44  ;;  %v7447_v59 = vpop.eup %7446  ;;  %7466 = vpow2.f32 %v3347_v58  ;;  %v3353_v33 = vmul.f32 1.442695, %v3004_v63  ;;  %v3355_v48 = vmul.f32 1.442695, %v3005_v7  ;;  %v3649_v47 = vsel %vm2556_vm2, %v10952_v21, 0.0  ;;  %v2794_v63 = vpop.xlane.xlu1 %2793 }
 0x467   : > { %v3357_v16 = vmul.f32 1.442695, %v3006_v56  ;;  %v7449_v9 = vpop.eup %7448  ;;  %7468 = vpow2.f32 %v3349_v50  ;;  %3645 = vadd.xlane.f32.xlu1 %v3644_v0  ;;  %v3648_v3 = vadd.f32 %v10947_v40, %v3647_v14  ;;  %v3007_v42 = vsub.f32 %v12885_v34, %v2788_v19  ;;  %v12888_v20 = vld [vmem:[#allocation88_spill] sm:$0xff] }
 0x468   : > { %v10969_v35 = vpop.eup %7450  ;;  %7470 = vpow2.f32 %v3351_v13  ;;  %v3008_v2 = vsub.f32 %v12887_v8, %v2788_v19  ;;  %v3009_v58 = vsub.f32 %v12888_v20, %v2788_v19  ;;  %v3010_v18 = vsub.f32 %v12889_v41, %v2788_v19  ;;  %4139 = vmatprep.mubr.f32.mxu1 %v7449_v9  ;;  %v12891_v20 = vld [vmem:[#allocation110_spill] sm:$0xff] }
 0x469   : > { %12886 = vst [vmem:[#allocation48_spill] sm:$0xff] %v10969_v35  ;;  %v10974_v50 = vpop.eup %7452  ;;  %7472 = vpow2.f32 %v3353_v33  ;;  %v3650_v7 = vadd.f32 %v3649_v47, %v3648_v3  ;;  %v3359_v56 = vmul.f32 1.442695, %v3007_v42  ;;  %4140 = vmatmul.mubr.f32.gmra.mrb[170].mxu1 %v7447_v59  ;;  %v3653_v0 = vadd.f32 %v7441_v62, %v7439_v25  ;;  %v12893_v3 = vld [vmem:[#allocation111_spill] sm:$0xff] }
 0x46a   : > { %12890 = vst [vmem:[#allocation49_spill] sm:$0xff] %v10974_v50  ;;  %v7455_v14 = vpop.eup %7454  ;;  %7474 = vpow2.f32 %v3355_v48  ;;  %v3361_v34 = vmul.f32 1.442695, %v3008_v2  ;;  %v3363_v40 = vmul.f32 1.442695, %v3009_v58  ;;  %v3655_v19 = vsel %vm2556_vm2, %v10963_v44, 0.0  ;;  %v2800_v2 = vpop.xlane.xlu0 %2799 }
 0x46b   : > { %v3365_v13 = vmul.f32 1.442695, %v3010_v18  ;;  %v7457_v21 = vpop.eup %7456  ;;  %7476 = vpow2.f32 %v3357_v16  ;;  %3651 = vadd.xlane.f32.xlu0 %v3650_v7  ;;  %v3654_v8 = vadd.f32 %v10958_v28, %v3653_v0  ;;  %v3011_v41 = vsub.f32 %v12891_v20, %v2794_v63  ;;  %v12894_v25 = vld [vmem:[#allocation23_spill] sm:$0xff] }
 0x46c   : > { %v10980_v33 = vpop.eup %7458  ;;  %7478 = vpow2.f32 %v3359_v56  ;;  %v3012_v62 = vsub.f32 %v12893_v3, %v2794_v63  ;;  %v3013_v48 = vsub.f32 %v12894_v25, %v2794_v63  ;;  %v12895_v47 = vld [vmem:[#allocation15_spill] sm:$0xff]  ;;  %4144 = vmatprep.mubr.f32.mxu1 %v7457_v21  ;;  %v3659_v7 = vadd.f32 %v7449_v9, %v7447_v59  ;;  %v12897_v25 = vld [vmem:[#allocation114_spill] sm:$0xff]  ;;  %v12900_v59 = vld [vmem:[#allocation93_spill] sm:$0xff] }
 0x46d   : > { %12892 = vst [vmem:[#allocation55_spill] sm:$0xff] %v10980_v33  ;;  %v3014_v42 = vsub.f32 %v12895_v47, %v2794_v63  ;;  %v10985_v16 = vpop.eup %7460  ;;  %7480 = vpow2.f32 %v3361_v34  ;;  %v3656_v58 = vadd.f32 %v3655_v19, %v3654_v8  ;;  %v3367_v18 = vmul.f32 1.442695, %v3011_v41  ;;  %4145 = vmatmul.mubr.f32.gmra.mrb[172].mxu1 %v7455_v14  ;;  %v12899_v8 = vld [vmem:[#allocation116_spill] sm:$0xff]  ;;  %v12901_v19 = vld [vmem:[#allocation95_spill] sm:$0xff] }
 0x46e   : > { %12896 = vst [vmem:[#allocation56_spill] sm:$0xff] %v10985_v16  ;;  %v7463_v0 = vpop.eup %7462  ;;  %7482 = vpow2.f32 %v3363_v40  ;;  %v3369_v20 = vmul.f32 1.442695, %v3012_v62  ;;  %v3371_v28 = vmul.f32 1.442695, %v3013_v48  ;;  %v3660_v3 = vadd.f32 %v10969_v35, %v3659_v7  ;;  %v2806_v62 = vpop.xlane.xlu1 %2805 }
 0x46f   : > { %v3373_v56 = vmul.f32 1.442695, %v3014_v42  ;;  %v7465_v44 = vpop.eup %7464  ;;  %7484 = vpow2.f32 %v3365_v13  ;;  %3657 = vadd.xlane.f32.xlu1 %v3656_v58  ;;  %v3661_v63 = vsel %vm2556_vm2, %v10974_v50, 0.0  ;;  %v3015_v47 = vsub.f32 %v12897_v25, %v2800_v2 }
 0x470   : > { %v10991_v34 = vpop.eup %7466  ;;  %7486 = vpow2.f32 %v3367_v18  ;;  %v3016_v9 = vsub.f32 %v12899_v8, %v2800_v2  ;;  %v3017_v40 = vsub.f32 %v12900_v59, %v2800_v2  ;;  %v3018_v41 = vsub.f32 %v12901_v19, %v2800_v2  ;;  %4149 = vmatprep.mubr.f32.mxu1 %v7465_v44  ;;  %v12903_v59 = vld [vmem:[#allocation118_spill] sm:$0xff] }
 0x471   : > { %12898 = vst [vmem:[#allocation136_spill] sm:$0xff] %v10991_v34  ;;  %v10996_v13 = vpop.eup %7468  ;;  %7488 = vpow2.f32 %v3369_v20  ;;  %v3662_v48 = vadd.f32 %v3661_v63, %v3660_v3  ;;  %v3375_v42 = vmul.f32 1.442695, %v3015_v47  ;;  %4150 = vmatmul.mubr.f32.gmra.mrb[174].mxu1 %v7463_v0  ;;  %v3665_v58 = vadd.f32 %v7457_v21, %v7455_v14  ;;  %v12905_v3 = vld [vmem:[#allocation119_spill] sm:$0xff]  ;;  %v12906_v14 = vld [vmem:[#allocation96_spill] sm:$0xff]  ;;  %v12907_v63 = vld [vmem:[#allocation98_spill] sm:$0xff] }
 0x472   : > { %12902 = vst [vmem:[#allocation137_spill] sm:$0xff] %v10996_v13  ;;  %v7471_v7 = vpop.eup %7470  ;;  %7490 = vpow2.f32 %v3371_v28  ;;  %v3377_v25 = vmul.f32 1.442695, %v3016_v9  ;;  %v3379_v35 = vmul.f32 1.442695, %v3017_v40  ;;  %v3667_v2 = vsel %vm2556_vm2, %v10985_v16, 0.0  ;;  %v2812_v9 = vpop.xlane.xlu0 %2811 }
 0x473   : > { %v3381_v18 = vmul.f32 1.442695, %v3018_v41  ;;  %v7473_v50 = vpop.eup %7472  ;;  %7492 = vpow2.f32 %v3373_v56  ;;  %3663 = vadd.xlane.f32.xlu0 %v3662_v48  ;;  %v3666_v8 = vadd.f32 %v10980_v33, %v3665_v58  ;;  %v3019_v19 = vsub.f32 %v12903_v59, %v2806_v62 }
 0x474   : > { %v11002_v20 = vpop.eup %7474  ;;  %7494 = vpow2.f32 %v3375_v42  ;;  %v3020_v21 = vsub.f32 %v12905_v3, %v2806_v62  ;;  %v3021_v28 = vsub.f32 %v12906_v14, %v2806_v62  ;;  %v3022_v47 = vsub.f32 %v12907_v63, %v2806_v62  ;;  %4154 = vmatprep.mubr.f32.mxu1 %v7473_v50  ;;  %v12909_v14 = vld [vmem:[#allocation122_spill] sm:$0xff] }
 0x475   : > { %12904 = vst [vmem:[#allocation50_spill] sm:$0xff] %v11002_v20  ;;  %v11007_v56 = vpop.eup %7476  ;;  %7496 = vpow2.f32 %v3377_v25  ;;  %v3668_v40 = vadd.f32 %v3667_v2, %v3666_v8  ;;  %v3383_v41 = vmul.f32 1.442695, %v3019_v19  ;;  %4155 = vmatmul.mubr.f32.gmra.mrb[176].mxu1 %v7471_v7  ;;  %v3671_v48 = vadd.f32 %v7465_v44, %v7463_v0  ;;  %v12911_v8 = vld [vmem:[#allocation124_spill] sm:$0xff]  ;;  %v12912_v0 = vld [vmem:[#allocation103_spill] sm:$0xff]  ;;  %v12913_v2 = vld [vmem:[#allocation18_spill] sm:$0xff] }
 0x476   : > { %12908 = vst [vmem:[#allocation51_spill] sm:$0xff] %v11007_v56  ;;  %v7479_v58 = vpop.eup %7478  ;;  %7498 = vpow2.f32 %v3379_v35  ;;  %v3385_v59 = vmul.f32 1.442695, %v3020_v21  ;;  %v3387_v33 = vmul.f32 1.442695, %v3021_v28  ;;  %v3673_v62 = vsel %vm2556_vm2, %v10996_v13, 0.0  ;;  %v2818_v21 = vpop.xlane.xlu1 %2817 }
 0x477   : > { %v3389_v42 = vmul.f32 1.442695, %v3022_v47  ;;  %v7481_v16 = vpop.eup %7480  ;;  %7500 = vpow2.f32 %v3381_v18  ;;  %3669 = vadd.xlane.f32.xlu1 %v3668_v40  ;;  %v3672_v3 = vadd.f32 %v10991_v34, %v3671_v48  ;;  %v3023_v63 = vsub.f32 %v12909_v14, %v2812_v9 }
 0x478   : > { %v11013_v25 = vpop.eup %7482  ;;  %7502 = vpow2.f32 %v3383_v41  ;;  %v3024_v44 = vsub.f32 %v12911_v8, %v2812_v9  ;;  %v3025_v35 = vsub.f32 %v12912_v0, %v2812_v9  ;;  %v3026_v19 = vsub.f32 %v12913_v2, %v2812_v9  ;;  %4159 = vmatprep.mubr.f32.mxu1 %v7481_v16  ;;  %v12915_v0 = vld [vmem:[#allocation126_spill] sm:$0xff] }
 0x479   : > { %12910 = vst [vmem:[#allocation57_spill] sm:$0xff] %v11013_v25  ;;  %v11018_v18 = vpop.eup %7484  ;;  %7504 = vpow2.f32 %v3385_v59  ;;  %v3674_v28 = vadd.f32 %v3673_v62, %v3672_v3  ;;  %v3391_v47 = vmul.f32 1.442695, %v3023_v63  ;;  %4160 = vmatmul.mubr.f32.gmra.mrb[178].mxu1 %v7479_v58  ;;  %v3677_v40 = vadd.f32 %v7473_v50, %v7471_v7  ;;  %v12917_v3 = vld [vmem:[#allocation127_spill] sm:$0xff]  ;;  %v12918_v7 = vld [vmem:[#allocation105_spill] sm:$0xff]  ;;  %v12919_v62 = vld [vmem:[#allocation30_spill] sm:$0xff] }
 0x47a   : > { %12914 = vst [vmem:[#allocation58_spill] sm:$0xff] %v11018_v18  ;;  %v7487_v48 = vpop.eup %7486  ;;  %7506 = vpow2.f32 %v3387_v33  ;;  %v3393_v14 = vmul.f32 1.442695, %v3024_v44  ;;  %v3395_v34 = vmul.f32 1.442695, %v3025_v35  ;;  %v3679_v9 = vsel %vm2556_vm2, %v11007_v56, 0.0  ;;  %v2824_v44 = vpop.xlane.xlu0 %2823 }
 0x47b   : > { %v3397_v41 = vmul.f32 1.442695, %v3026_v19  ;;  %v7489_v13 = vpop.eup %7488  ;;  %7508 = vpow2.f32 %v3389_v42  ;;  %3675 = vadd.xlane.f32.xlu0 %v3674_v28  ;;  %v3678_v8 = vadd.f32 %v11002_v20, %v3677_v40  ;;  %v3027_v2 = vsub.f32 %v12915_v0, %v2818_v21 }
 0x47c   : > { %v11024_v59 = vpop.eup %7490  ;;  %7510 = vpow2.f32 %v3391_v47  ;;  %v3028_v50 = vsub.f32 %v12917_v3, %v2818_v21  ;;  %v3029_v33 = vsub.f32 %v12918_v7, %v2818_v21  ;;  %v3030_v63 = vsub.f32 %v12919_v62, %v2818_v21  ;;  %4164 = vmatprep.mubr.f32.mxu1 %v7489_v13  ;;  %v12921_v7 = vld [vmem:[#allocation130_spill] sm:$0xff] }
 0x47d   : > { %12916 = vst [vmem:[#allocation139_spill] sm:$0xff] %v11024_v59  ;;  %v11029_v42 = vpop.eup %7492  ;;  %7512 = vpow2.f32 %v3393_v14  ;;  %v3680_v35 = vadd.f32 %v3679_v9, %v3678_v8  ;;  %v3399_v19 = vmul.f32 1.442695, %v3027_v2  ;;  %4165 = vmatmul.mubr.f32.gmra.mrb[180].mxu1 %v7487_v48  ;;  %v3683_v28 = vadd.f32 %v7481_v16, %v7479_v58  ;;  %v12923_v8 = vld [vmem:[#allocation132_spill] sm:$0xff]  ;;  %v12924_v58 = vld [vmem:[#allocation31_spill] sm:$0xff] }
 0x47e   : > { %12920 = vst [vmem:[#allocation141_spill] sm:$0xff] %v11029_v42  ;;  %v7495_v40 = vpop.eup %7494  ;;  %7514 = vpow2.f32 %v3395_v34  ;;  %v3401_v0 = vmul.f32 1.442695, %v3028_v50  ;;  %v3403_v20 = vmul.f32 1.442695, %v3029_v33  ;;  %v3685_v21 = vsel %vm2556_vm2, %v11018_v18, 0.0  ;;  %v2830_v50 = vpop.xlane.xlu1 %2829 }
 0x47f   : > { %v3405_v47 = vmul.f32 1.442695, %v3030_v63  ;;  %v7497_v56 = vpop.eup %7496  ;;  %7516 = vpow2.f32 %v3397_v41  ;;  %3681 = vadd.xlane.f32.xlu1 %v3680_v35  ;;  %v3684_v3 = vadd.f32 %v11013_v25, %v3683_v28  ;;  %v3031_v62 = vsub.f32 %v12921_v7, %v2824_v44  ;;  %v12925_v9 = vld [vmem:[#allocation27_spill] sm:$0xff] }
 0x480   : > { %v11035_v14 = vpop.eup %7498  ;;  %7518 = vpow2.f32 %v3399_v19  ;;  %v3032_v16 = vsub.f32 %v12923_v8, %v2824_v44  ;;  %v3033_v34 = vsub.f32 %v12924_v58, %v2824_v44  ;;  %v3034_v2 = vsub.f32 %v12925_v9, %v2824_v44  ;;  %4169 = vmatprep.mubr.f32.mxu1 %v7497_v56  ;;  %v12927_v58 = vld [vmem:[#allocation134_spill] sm:$0xff] }
 0x481   : > { %12922 = vst [vmem:[#allocation59_spill] sm:$0xff] %v11035_v14  ;;  %v11040_v41 = vpop.eup %7500  ;;  %7520 = vpow2.f32 %v3401_v0  ;;  %v3686_v33 = vadd.f32 %v3685_v21, %v3684_v3  ;;  %v3407_v63 = vmul.f32 1.442695, %v3031_v62  ;;  %4170 = vmatmul.mubr.f32.gmra.mrb[182].mxu1 %v7495_v40  ;;  %v3689_v35 = vadd.f32 %v7489_v13, %v7487_v48  ;;  %v12929_v3 = vld [vmem:[#allocation135_spill] sm:$0xff] }
 0x482   : > { %12926 = vst [vmem:[#allocation61_spill] sm:$0xff] %v11040_v41  ;;  %v7503_v28 = vpop.eup %7502  ;;  %7522 = vpow2.f32 %v3403_v20  ;;  %v3409_v7 = vmul.f32 1.442695, %v3032_v16  ;;  %v3411_v25 = vmul.f32 1.442695, %v3033_v34  ;;  %v3691_v44 = vsel %vm2556_vm2, %v11029_v42, 0.0  ;;  %v2836_v16 = vpop.xlane.xlu0 %2835 }
 0x483   : > { %v3413_v19 = vmul.f32 1.442695, %v3034_v2  ;;  %v7505_v18 = vpop.eup %7504  ;;  %7524 = vpow2.f32 %v3405_v47  ;;  %3687 = vadd.xlane.f32.xlu0 %v3686_v33  ;;  %v3690_v8 = vadd.f32 %v11024_v59, %v3689_v35  ;;  %v3035_v9 = vsub.f32 %v12927_v58, %v2830_v50  ;;  %v12930_v48 = vld [vmem:[#allocation19_spill] sm:$0xff] }
 0x484   : > { %v11046_v0 = vpop.eup %7506  ;;  %7526 = vpow2.f32 %v3407_v63  ;;  %v3036_v13 = vsub.f32 %v12929_v3, %v2830_v50  ;;  %v3037_v20 = vsub.f32 %v12930_v48, %v2830_v50  ;;  %v12931_v21 = vld [vmem:[#allocation107_spill] sm:$0xff]  ;;  %4174 = vmatprep.mubr.f32.mxu1 %v7505_v18  ;;  %v3695_v33 = vadd.f32 %v7497_v56, %v7495_v40  ;;  %v12933_v48 = vld [vmem:[#allocation138_spill] sm:$0xff]  ;;  %v12936_v40 = vld [vmem:[#allocation109_spill] sm:$0xff] }
 0x485   : > { %12928 = vst [vmem:[#allocation144_spill] sm:$0xff] %v11046_v0  ;;  %v3038_v62 = vsub.f32 %v12931_v21, %v2830_v50  ;;  %v11051_v47 = vpop.eup %7508  ;;  %7528 = vpow2.f32 %v3409_v7  ;;  %v3692_v34 = vadd.f32 %v3691_v44, %v3690_v8  ;;  %v3415_v2 = vmul.f32 1.442695, %v3035_v9  ;;  %4175 = vmatmul.mubr.f32.gmra.mrb[184].mxu1 %v7503_v28  ;;  %v12935_v8 = vld [vmem:[#allocation140_spill] sm:$0xff]  ;;  %v12937_v44 = vld [vmem:[#allocation34_spill] sm:$0xff] }
 0x486   : > { %12932 = vst [vmem:[#allocation145_spill] sm:$0xff] %v11051_v47  ;;  %v7511_v35 = vpop.eup %7510  ;;  %7530 = vpow2.f32 %v3411_v25  ;;  %v3417_v58 = vmul.f32 1.442695, %v3036_v13  ;;  %v3419_v59 = vmul.f32 1.442695, %v3037_v20  ;;  %v3696_v3 = vadd.f32 %v11035_v14, %v3695_v33 }
 0x487   : > { %v3421_v63 = vmul.f32 1.442695, %v3038_v62  ;;  %v7513_v42 = vpop.eup %7512  ;;  %7532 = vpow2.f32 %v3413_v19  ;;  %3693 = vadd.xlane.f32.xlu1 %v3692_v34  ;;  %v3697_v50 = vsel %vm2556_vm2, %v11040_v41, 0.0  ;;  %v3039_v21 = vsub.f32 %v12933_v48, %v2836_v16  ;;  %v2842_v13 = vpop.xlane.xlu1 %2841 }
 0x488   : > { %v11057_v7 = vpop.eup %7514  ;;  %7534 = vpow2.f32 %v3415_v2  ;;  %v3040_v56 = vsub.f32 %v12935_v8, %v2836_v16  ;;  %v3041_v25 = vsub.f32 %v12936_v40, %v2836_v16  ;;  %v3042_v9 = vsub.f32 %v12937_v44, %v2836_v16  ;;  %4179 = vmatprep.mubr.f32.mxu1 %v7513_v42  ;;  %v12939_v40 = vld [vmem:[#allocation142_spill] sm:$0xff] }
 0x489   : > { %12934 = vst [vmem:[#allocation65_spill] sm:$0xff] %v11057_v7  ;;  %v11062_v19 = vpop.eup %7516  ;;  %7536 = vpow2.f32 %v3417_v58  ;;  %v3698_v20 = vadd.f32 %v3697_v50, %v3696_v3  ;;  %v3423_v62 = vmul.f32 1.442695, %v3039_v21  ;;  %4180 = vmatmul.mubr.f32.gmra.mrb[186].mxu1 %v7511_v35  ;;  %v3701_v34 = vadd.f32 %v7505_v18, %v7503_v28  ;;  %v12940_v3 = vld [vmem:[#allocation143_spill] sm:$0xff]  ;;  %v12942_v50 = vld [vmem:[#allocation21_spill] sm:$0xff] }
 0x48a   : > { %12938 = vst [vmem:[#allocation147_spill] sm:$0xff] %v11062_v19  ;;  %v7519_v33 = vpop.eup %7518  ;;  %7538 = vpow2.f32 %v3419_v59  ;;  %v3425_v48 = vmul.f32 1.442695, %v3040_v56  ;;  %v3427_v14 = vmul.f32 1.442695, %v3041_v25  ;;  %v3703_v16 = vsel %vm2556_vm2, %v11051_v47, 0.0  ;;  %v2848_v56 = vpop.xlane.xlu0 %2847 }
 0x48b   : > { %v3429_v2 = vmul.f32 1.442695, %v3042_v9  ;;  %v7521_v41 = vpop.eup %7520  ;;  %7540 = vpow2.f32 %v3421_v63  ;;  %3699 = vadd.xlane.f32.xlu0 %v3698_v20  ;;  %v3702_v8 = vadd.f32 %v11046_v0, %v3701_v34  ;;  %v3043_v44 = vsub.f32 %v12939_v40, %v2842_v13  ;;  %v12941_v28 = vld [vmem:[#allocation35_spill] sm:$0xff] }
 0x48c   : > { %v11068_v58 = vpop.eup %7522  ;;  %7542 = vpow2.f32 %v3423_v62  ;;  %v3044_v18 = vsub.f32 %v12940_v3, %v2842_v13  ;;  %v3045_v59 = vsub.f32 %v12941_v28, %v2842_v13  ;;  %v3046_v21 = vsub.f32 %v12942_v50, %v2842_v13  ;;  %4184 = vmatprep.mubr.f32.mxu1 %v7521_v41  ;;  %v12943_v28 = vld [vmem:[#allocation146_spill] sm:$0xff] }
 0x48d   : > { %v11073_v63 = vpop.eup %7524  ;;  %7544 = vpow2.f32 %v3425_v48  ;;  %v3704_v25 = vadd.f32 %v3703_v16, %v3702_v8  ;;  %v3431_v9 = vmul.f32 1.442695, %v3043_v44  ;;  %4185 = vmatmul.mubr.f32.gmra.mrb[188].mxu1 %v7519_v33  ;;  %v3707_v20 = vadd.f32 %v7513_v42, %v7511_v35  ;;  %v12944_v8 = vld [vmem:[#allocation148_spill] sm:$0xff] }
 0x48e   : > { %v7527_v34 = vpop.eup %7526  ;;  %7546 = vpow2.f32 %v3427_v14  ;;  %v3433_v40 = vmul.f32 1.442695, %v3044_v18  ;;  %v3435_v0 = vmul.f32 1.442695, %v3045_v59  ;;  %v3437_v62 = vmul.f32 1.442695, %v3046_v21 }
 0x48f   : > { %v7529_v47 = vpop.eup %7528  ;;  %7548 = vpow2.f32 %v3429_v2  ;;  %3705 = vadd.xlane.f32.xlu1 %v3704_v25  ;;  %v3708_v3 = vadd.f32 %v11057_v7, %v3707_v20  ;;  %v3709_v13 = vsel %vm2556_vm2, %v11062_v19, 0.0  ;;  %v3047_v50 = vsub.f32 %v12943_v28, %v2848_v56  ;;  %v12945_v35 = vld [vmem:[#allocation24_spill] sm:$0xff] }
 0x490   : > { %v11079_v48 = vpop.eup %7530  ;;  %7550 = vpow2.f32 %v3431_v9  ;;  %v3048_v42 = vsub.f32 %v12944_v8, %v2848_v56  ;;  %v3049_v14 = vsub.f32 %v12945_v35, %v2848_v56  ;;  %v12946_v16 = vld [vmem:[#allocation112_spill] sm:$0xff]  ;;  %4189 = vmatprep.mubr.f32.mxu1 %v7529_v47  ;;  %v2854_v18 = vpop.xlane.xlu1 %2853  ;;  %v3713_v25 = vadd.f32 %v7521_v41, %v7519_v33  ;;  %v12948_v33 = vld [vmem:[#allocation113_spill] sm:$0xff] }
 0x491   : > { %v3050_v44 = vsub.f32 %v12946_v16, %v2848_v56  ;;  %v11084_v2 = vpop.eup %7532  ;;  %7552 = vpow2.f32 %v3433_v40  ;;  %v3710_v59 = vadd.f32 %v3709_v13, %v3708_v3  ;;  %v3439_v21 = vmul.f32 1.442695, %v3047_v50  ;;  %4190 = vmatmul.mubr.f32.gmra.mrb[190].mxu1 %v7527_v34  ;;  %v12947_v3 = vld [vmem:[#allocation150_spill] sm:$0xff] }
 0x492   : > { %v7535_v20 = vpop.eup %7534  ;;  %7554 = vpow2.f32 %v3435_v0  ;;  %v3441_v28 = vmul.f32 1.442695, %v3048_v42  ;;  %v3443_v7 = vmul.f32 1.442695, %v3049_v14  ;;  %v3714_v8 = vadd.f32 %v11068_v58, %v3713_v25  ;;  %v12949_v13 = vld [vmem:[#allocation38_spill] sm:$0xff] }
 0x493   : > { %v3445_v9 = vmul.f32 1.442695, %v3050_v44  ;;  %v7537_v19 = vpop.eup %7536  ;;  %7556 = vpow2.f32 %v3437_v62  ;;  %3711 = vadd.xlane.f32.xlu0 %v3710_v59  ;;  %v3715_v56 = vsel %vm2556_vm2, %v11073_v63, 0.0  ;;  %v3051_v35 = vsub.f32 %v10034_v4, %v2854_v18 }
 0x494   : > { %v11090_v40 = vpop.eup %7538  ;;  %7558 = vpow2.f32 %v3439_v21  ;;  %v3052_v41 = vsub.f32 %v12947_v3, %v2854_v18  ;;  %v3053_v0 = vsub.f32 %v12948_v33, %v2854_v18  ;;  %v3054_v50 = vsub.f32 %v12949_v13, %v2854_v18  ;;  %4194 = vmatprep.mubr.f32.mxu1 %v7537_v19 }
 0x495   : > { %v11095_v42 = vpop.eup %7540  ;;  %7560 = vpow2.f32 %v3441_v28  ;;  %v3716_v62 = vadd.f32 %v3715_v56, %v3714_v8  ;;  %v3447_v14 = vmul.f32 1.442695, %v3051_v35  ;;  %4195 = vmatmul.mubr.f32.gmra.mrb[192].mxu1 %v7535_v20  ;;  %v3719_v16 = vadd.f32 %v7529_v47, %v7527_v34 }
 0x496   : > { %v7543_v44 = vpop.eup %7542  ;;  %7562 = vpow2.f32 %v3443_v7  ;;  %v3449_v4 = vmul.f32 1.442695, %v3052_v41  ;;  %v3451_v21 = vmul.f32 1.442695, %v3053_v0  ;;  %v3725_v3 = vadd.f32 %v7537_v19, %v7535_v20 }
 0x497   : > { %v7545_v59 = vpop.eup %7544  ;;  %7564 = vpow2.f32 %v3445_v9  ;;  %3717 = vadd.xlane.f32.xlu1 %v3716_v62  ;;  %v3720_v25 = vadd.f32 %v11079_v48, %v3719_v16  ;;  %v3453_v18 = vmul.f32 1.442695, %v3054_v50  ;;  %v3721_v28 = vsel %vm2556_vm2, %v11084_v2, 0.0 }
 0x498   : > { %v11098_v33 = vpop.eup %7546  ;;  %4199 = vmatprep.mubr.f32.mxu1 %v7545_v59  ;;  %v3731_v8 = vadd.f32 %v7545_v59, %v7543_v44  ;;  %7566 = vpow2.f32 %v3447_v14  ;;  %v3726_v7 = vadd.f32 %v11090_v40, %v3725_v3  ;;  %v3727_v19 = vsel %vm2556_vm2, %v11095_v42, 0.0 }
 0x499   : > { %v11102_v56 = vpop.eup %7548  ;;  %v3722_v47 = vadd.f32 %v3721_v28, %v3720_v25  ;;  %4200 = vmatmul.mubr.f32.gmra.mrb[194].mxu1 %v7543_v44  ;;  %7568 = vpow2.f32 %v3449_v4 }
 0x49a   : > { %v7551_v34 = vpop.eup %7550  ;;  %v3732_v20 = vadd.f32 %v11098_v33, %v3731_v8  ;;  %7570 = vpow2.f32 %v3451_v21  ;;  %v3728_v35 = vadd.f32 %v3727_v19, %v3726_v7  ;;  %v3733_v41 = vsel %vm2556_vm2, %v11102_v56, 0.0 }
 0x49b   : > { %v7553_v9 = vpop.eup %7552  ;;  %3723 = vadd.xlane.f32.xlu0 %v3722_v47  ;;  %7572 = vpow2.f32 %v3453_v18 }
 0x49c   : > { %v11110_v0 = vpop.eup %7554  ;;  %4204 = vmatprep.mubr.f32.mxu1 %v7553_v9  ;;  %v3734_v13 = vadd.f32 %v3733_v41, %v3732_v20  ;;  %v3737_v50 = vadd.f32 %v7553_v9, %v7551_v34  ;;  %3729 = vadd.xlane.f32.xlu1 %v3728_v35  ;;  %v12950_v9 = vld [vmem:[#allocation52_spill] sm:$0xff] }
 0x49d   : > { %v11112_v62 = vpop.eup %7556  ;;  %4205 = vmatmul.mubr.f32.gmra.mrb[196].mxu1 %v7551_v34 }
 0x49e   : > { %v7559_v14 = vpop.eup %7558  ;;  %v3738_v16 = vadd.f32 %v11110_v0, %v3737_v50  ;;  %v3739_v4 = vsel %vm2556_vm2, %v11112_v62, 0.0  ;;  %v12951_v50 = vld [vmem:[#allocation16_spill] sm:$0xff] }
 0x49f   : > { %v7561_v44 = vpop.eup %7560  ;;  %3735 = vadd.xlane.f32.xlu0 %v3734_v13 }
 0x4a0   : > { %v11117_v59 = vpop.eup %7562  ;;  %4209 = vmatprep.mubr.f32.mxu1 %v7561_v44  ;;  %v3740_v21 = vadd.f32 %v3739_v4, %v3738_v16  ;;  %v3743_v25 = vadd.f32 %v7561_v44, %v7559_v14  ;;  %v12953_v16 = vld [vmem:[#allocation17_spill] sm:$0xff]  ;;  %v12954_v44 = vld [vmem:[#allocation104_spill] sm:$0xff]  ;;  %v12955_v4 = vld [vmem:[#allocation22_spill] sm:$0xff] }
 0x4a1   : > { %v11119_v3 = vpop.eup %7564  ;;  %4210 = vmatmul.mubr.f32.gmra.mrb[198].mxu1 %v7559_v14  ;;  %v12952_v14 = vld [vmem:[#allocation101_spill] sm:$0xff] }
 0x4a2   : > { %3741 = vadd.xlane.f32.xlu1 %v3740_v21  ;;  %v3744_v18 = vadd.f32 %v11117_v59, %v3743_v25  ;;  %v7567_v28 = vpop.eup %7566  ;;  %v3745_v8 = vsel %vm2556_vm2, %v11119_v3, 0.0  ;;  %v4635_v21 = vld [vmem:[%s11997_s7] sm:$0xff]  ;;  %v12978_v25 = vld [vmem:[#allocation129_spill] sm:$0xff] }
 0x4a3   : > { %v7569_v47 = vpop.eup %7568 }
 0x4a4   : > { %v3746_v7 = vadd.f32 %v3745_v8, %v3744_v18  ;;  %v11124_v34 = vpop.eup %7570  ;;  %4214 = vmatprep.mubr.f32.mxu1 %v7569_v47  ;;  %v3749_v19 = vadd.f32 %v7569_v47, %v7567_v28  ;;  %v12979_v18 = vld [vmem:[#allocation128_spill] sm:$0xff]  ;;  %v12981_v8 = vld [vmem:[#allocation46_spill] sm:$0xff] }
 0x4a5   : > { %v11126_v20 = vpop.eup %7572  ;;  %4215 = vmatmul.mubr.f32.gmra.mrb[200].mxu1 %v7567_v28  ;;  %v12980_v28 = vld [vmem:[#allocation47_spill] sm:$0xff]  ;;  %v12982_v47 = vld [vmem:[#allocation54_spill] sm:$0xff] }
 0x4a6   : > { %3747 = vadd.xlane.f32.xlu0 %v3746_v7  ;;  %5741 = vmatprep.mubr.msk.f32.mxu1 %vm2556_vm2, %v12950_v9  ;;  %v3750_v35 = vadd.f32 %v11124_v34, %v3749_v19  ;;  %v3751_v41 = vsel %vm2556_vm2, %v11126_v20, 0.0  ;;  %v12983_v7 = vld [vmem:[#allocation53_spill] sm:$0xff]  ;;  %v12985_v9 = vld [vmem:[#allocation131_spill] sm:$0xff] }
 0x4a7   : > { %v12984_v19 = vld [vmem:[#allocation133_spill] sm:$0xff] }
 0x4a8   : > { %v3752_v13 = vadd.f32 %v3751_v41, %v3750_v35  ;;  %v12986_v35 = vld [vmem:[#allocation49_spill] sm:$0xff]  ;;  %v12987_v41 = vld [vmem:[#allocation48_spill] sm:$0xff] }
 0x4a9   : > { %4285 = vmatmul.mubr.f32.vlgmr.msra.gmra.mrb[102].mxu1 %v12951_v50  ;;  %v12989_v50 = vld [vmem:[#allocation55_spill] sm:$0xff] }
 0x4aa   : > { %3753 = vadd.xlane.f32.xlu1 %v3752_v13  ;;  %5742 = vmatprep.mubr.msk.f32.mxu1 %vm2556_vm2, %v12952_v14  ;;  %v12988_v13 = vld [vmem:[#allocation56_spill] sm:$0xff]  ;;  %v12990_v14 = vld [vmem:[#allocation137_spill] sm:$0xff] }
 0x4ad   : > { %4290 = vmatmul.mubr.f32.gmra.mrb[104].mxu1 %v12953_v16  ;;  %v12991_v16 = vld [vmem:[#allocation136_spill] sm:$0xff] }
 0x4ae   : > { %5743 = vmatprep.mubr.msk.f32.mxu1 %vm2556_vm2, %v12954_v44  ;;  %v12992_v44 = vld [vmem:[#allocation51_spill] sm:$0xff] }
 0x4b1   : > { %4295 = vmatmul.mubr.f32.gmra.mrb[106].mxu1 %v12955_v4  ;;  %v12993_v4 = vld [vmem:[#allocation50_spill] sm:$0xff] }
 0x4b2   : > { %5744 = vmatprep.mubr.msk.f32.mxu1 %vm2556_vm2, %v10402_v51 }
 0x4b5   : > { %4300 = vmatmul.mubr.f32.gmra.mrb[108].mxu1 %v10395_v15  ;;  %v4636_v15 = vld [vmem:[%s11997_s7 + $0x8] sm:$0xff] }
 0x4b6   : > { %5745 = vmatprep.mubr.msk.f32.mxu1 %vm2556_vm2, %v10431_v1  ;;  %v6961_v51 = vpack.c.bf16 %v4636_v15, %v4635_v21  ;;  %v4639_v1 = vld [vmem:[%s11997_s7 + $0x20] sm:$0xff]  ;;  %v12995_v15 = vld [vmem:[#allocation57_spill] sm:$0xff] }
 0x4b7   : > { %v12994_v21 = vld [vmem:[#allocation58_spill] sm:$0xff] }
 0x4b8   : > { %6962 = vmatprep.subr.bf16.mxu0 %v6961_v51 }
 0x4b9   : > { %4305 = vmatmul.mubr.f32.gmra.mrb[110].mxu1 %v10425_v12  ;;  %6964 = vmatpush3.bf16.msra.mxu0 %v6961_v51  ;;  %v4638_v12 = vld [vmem:[%s11997_s7 + $0x18] sm:$0xff] }
 0x4ba   : > { %5746 = vmatprep.mubr.msk.f32.mxu1 %vm2556_vm2, %v10461_v24  ;;  %v4640_v24 = vld [vmem:[%s11997_s7 + $0x28] sm:$0xff]  ;;  %v12996_v51 = vld [vmem:[#allocation141_spill] sm:$0xff] }
 0x4bd   : > { %4310 = vmatmul.mubr.f32.gmra.mrb[112].mxu1 %v10454_v5 }
 0x4be   : > { %5747 = vmatprep.mubr.msk.f32.mxu1 %vm2556_vm2, %v10490_v61  ;;  %v12956_v61 = vld [vmem:[#allocation39_spill] sm:$0xff] }
 0x4c1   : > { %4315 = vmatmul.mubr.f32.gmra.mrb[114].mxu1 %v10484_v31  ;;  %v6969_v31 = vpack.c.bf16 %v4640_v24, %v4639_v1  ;;  %v12999_v1 = vld [vmem:[#allocation59_spill] sm:$0xff]  ;;  %v13001_v24 = vld [vmem:[#allocation144_spill] sm:$0xff] }
 0x4c2   : > { %5748 = vmatprep.mubr.msk.f32.mxu1 %vm2556_vm2, %v10521_v36  ;;  %v12958_v36 = vld [vmem:[#allocation26_spill] sm:$0xff] }
 0x4c5   : > { %4320 = vmatmul.mubr.f32.gmra.mrb[116].mxu1 %v10514_v11  ;;  %v12957_v11 = vld [vmem:[#allocation25_spill] sm:$0xff] }
 0x4c6   : > { %5749 = vmatprep.mubr.msk.f32.mxu1 %vm2556_vm2, %v10550_v17  ;;  %v12960_v17 = vld [vmem:[#allocation115_spill] sm:$0xff] }
 0x4c9   : > { %4325 = vmatmul.mubr.f32.gmra.mrb[118].mxu1 %v10544_v38  ;;  %v12959_v38 = vld [vmem:[#allocation117_spill] sm:$0xff] }
 0x4ca   : > { %5750 = vmatprep.mubr.msk.f32.mxu1 %vm2556_vm2, %v10579_v23  ;;  %v4641_v23 = vld [vmem:[%s11997_s7 + $0x30] sm:$0xff] }
 0x4cd   : > { %4330 = vmatmul.mubr.f32.gmra.mrb[120].mxu1 %v10572_v30  ;;  %v12961_v30 = vld [vmem:[#allocation40_spill] sm:$0xff] }
 0x4ce   : > { %5751 = vmatprep.mubr.msk.f32.mxu1 %vm2556_vm2, %v10597_v29  ;;  %v4637_v29 = vld [vmem:[%s11997_s7 + $0x10] sm:$0xff] }
 0x4cf   : > { %v6965_v5 = vpack.c.bf16 %v4638_v12, %v4637_v29  ;;  %v12997_v29 = vld [vmem:[#allocation139_spill] sm:$0xff]  ;;  %v12998_v12 = vld [vmem:[#allocation61_spill] sm:$0xff] }
 0x4d1   : > { %4335 = vmatmul.mubr.f32.gmra.mrb[122].mxu1 %v10591_v52  ;;  %6966 = vmatprep.subr.bf16.mxu0 %v6965_v5  ;;  %v4642_v52 = vld [vmem:[%s11997_s7 + $0x38] sm:$0xff] }
 0x4d2   : > { %5752 = vmatprep.mubr.msk.f32.mxu1 %vm2556_vm2, %v10619_v57  ;;  %6968 = vmatpush3.bf16.msra.mxu0 %v6965_v5  ;;  %v12962_v57 = vld [vmem:[#allocation41_spill] sm:$0xff] }
 0x4d3   : > { %6970 = vmatprep.subr.bf16.mxu0 %v6969_v31  ;;  %v13000_v5 = vld [vmem:[#allocation145_spill] sm:$0xff] }
 0x4d5   : > { %4340 = vmatmul.mubr.f32.gmra.mrb[124].mxu1 %v10613_v10  ;;  %v6973_v10 = vpack.c.bf16 %v4642_v52, %v4641_v23 }
 0x4d6   : > { %5753 = vmatprep.mubr.msk.f32.mxu1 %vm2556_vm2, %v10637_v27  ;;  %6972 = vmatpush3.bf16.msra.mxu0 %v6969_v31  ;;  %v12964_v27 = vmov 0.0|0.0   ;;  %v13002_v31 = vld [vmem:[#allocation147_spill] sm:$0xff] }
 0x4d7   : > { %6974 = vmatprep.subr.bf16.mxu0 %v6973_v10 }
 0x4d9   : > { %4345 = vmatmul.mubr.f32.gmra.mrb[126].mxu1 %v10632_v54  ;;  %v12963_v54 = vld [vmem:[#allocation28_spill] sm:$0xff] }
 0x4da   : > { %5754 = vmatprep.mubr.msk.f32.mxu1 %vm2556_vm2, %v10657_v49  ;;  %6976 = vmatpush3.bf16.msra.mxu0 %v6973_v10  ;;  %v12966_v49 = vld [vmem:[#allocation121_spill] sm:$0xff] }
 0x4db   : > { %6977 = vmatprep.subr.bf16.mxu0 %v12964_v27  ;;  %v7685_v10 = vld [vmem:[%s8030_s17 + $0x38] sm:$0xff] }
 0x4dd   : > { %4350 = vmatmul.mubr.f32.gmra.mrb[128].mxu1 %v10649_v46  ;;  %v12965_v46 = vld [vmem:[#allocation29_spill] sm:$0xff] }
 0x4de   : > { %5755 = vmatprep.mubr.msk.f32.mxu1 %vm2556_vm2, %v10676_v39  ;;  %v12968_v39 = vld [vmem:[#allocation43_spill] sm:$0xff] }
 0x4e1   : > { %4355 = vmatmul.mubr.f32.gmra.mrb[130].mxu1 %v10670_v60  ;;  %v12967_v60 = vld [vmem:[#allocation120_spill] sm:$0xff] }
 0x4e2   : > { %5756 = vmatprep.mubr.msk.f32.mxu1 %vm2556_vm2, %v10699_v32  ;;  %v12970_v32 = vld [vmem:[#allocation32_spill] sm:$0xff] }
 0x4e5   : > { %4360 = vmatmul.mubr.f32.gmra.mrb[132].mxu1 %v10692_v45  ;;  %v12969_v45 = vld [vmem:[#allocation42_spill] sm:$0xff] }
 0x4e6   : > { %5757 = vmatprep.mubr.msk.f32.mxu1 %vm2556_vm2, %v10719_v26  ;;  %v12972_v26 = vld [vmem:[#allocation125_spill] sm:$0xff] }
 0x4e9   : > { %4365 = vmatmul.mubr.f32.gmra.mrb[134].mxu1 %v10715_v53  ;;  %v12971_v53 = vld [vmem:[#allocation33_spill] sm:$0xff] }
 0x4ea   : > { %5758 = vmatprep.mubr.msk.f32.mxu1 %vm2556_vm2, %v10742_v43  ;;  %v12974_v43 = vld [vmem:[#allocation45_spill] sm:$0xff] }
 0x4ed   : > { %4370 = vmatmul.mubr.f32.gmra.mrb[136].mxu1 %v10736_v37  ;;  %v12973_v37 = vld [vmem:[#allocation123_spill] sm:$0xff] }
 0x4ee   : > { %5759 = vmatprep.mubr.msk.f32.mxu1 %vm2556_vm2, %v10766_v6  ;;  %v12975_v6 = vld [vmem:[#allocation44_spill] sm:$0xff] }
 0x4f1   : > { %4375 = vmatmul.mubr.f32.gmra.mrb[138].mxu1 %v12956_v61  ;;  %v13003_v61 = vld [vmem:[#allocation65_spill] sm:$0xff] }
 0x4f2   : > { %5760 = vmatprep.mubr.msk.f32.mxu1 %vm2556_vm2, %v12957_v11  ;;  %v7683_v11 = vld [vmem:[%s8030_s17 + $0x28] sm:$0xff] }
 0x4f5   : > { %4380 = vmatmul.mubr.f32.gmra.mrb[140].mxu1 %v12958_v36 }
 0x4f6   : > { %5761 = vmatprep.mubr.msk.f32.mxu1 %vm2556_vm2, %v12959_v38  ;;  %v7684_v38 = vld [vmem:[%s8030_s17 + $0x30] sm:$0xff] }
 0x4f9   : > { %4385 = vmatmul.mubr.f32.gmra.mrb[142].mxu1 %v12960_v17 }
 0x4fa   : > { %5762 = vmatprep.mubr.msk.f32.mxu1 %vm2556_vm2, %v10823_v22  ;;  %v12976_v22 = vld [vmem:[#allocation36_spill] sm:$0xff] }
 0x4fd   : > { %4390 = vmatmul.mubr.f32.gmra.mrb[144].mxu1 %v12961_v30 }
 0x4fe   : > { %5763 = vmatprep.mubr.msk.f32.mxu1 %vm2556_vm2, %v10839_v55  ;;  %v12977_v55 = vld [vmem:[#allocation37_spill] sm:$0xff] }
 0x501   : > { %4395 = vmatmul.mubr.f32.gmra.mrb[146].mxu1 %v12962_v57 }
 0x502   : > { %5764 = vmatprep.mubr.msk.f32.mxu1 %vm2556_vm2, %v12963_v54 }
 0x505   : > { %4400 = vmatmul.mubr.f32.gmra.mrb[148].mxu1 %v12965_v46 }
 0x506   : > { %5765 = vmatprep.mubr.msk.f32.mxu1 %vm2556_vm2, %v12966_v49 }
 0x509   : > { %4405 = vmatmul.mubr.f32.gmra.mrb[150].mxu1 %v12967_v60 }
 0x50a   : > { %5766 = vmatprep.mubr.msk.f32.mxu1 %vm2556_vm2, %v12968_v39 }
 0x50d   : > { %4410 = vmatmul.mubr.f32.gmra.mrb[152].mxu1 %v12969_v45  ;;  %v7686_v45 = vld [vmem:[%s8030_s17 + $0x40] sm:$0xff] }
 0x50e   : > { %5767 = vmatprep.mubr.msk.f32.mxu1 %vm2556_vm2, %v12970_v32 }
 0x511   : > { %4415 = vmatmul.mubr.f32.gmra.mrb[154].mxu1 %v12971_v53 }
 0x512   : > { %5768 = vmatprep.mubr.msk.f32.mxu1 %vm2556_vm2, %v12972_v26 }
 0x515   : > { %4420 = vmatmul.mubr.f32.gmra.mrb[156].mxu1 %v12973_v37 }
 0x516   : > { %5769 = vmatprep.mubr.msk.f32.mxu1 %vm2556_vm2, %v12974_v43 }
 0x519   : > { %4425 = vmatmul.mubr.f32.gmra.mrb[158].mxu1 %v12975_v6 }
 0x51a   : > { %5770 = vmatprep.mubr.msk.f32.mxu1 %vm2556_vm2, %v12976_v22  ;;  %v7687_v22 = vld [vmem:[%s8030_s17 + $0x48] sm:$0xff] }
 0x51d   : > { %4430 = vmatmul.mubr.f32.gmra.mrb[160].mxu1 %v12977_v55 }
 0x51e   : > { %5771 = vmatprep.mubr.msk.f32.mxu1 %vm2556_vm2, %v12978_v25 }
 0x521   : > { %4435 = vmatmul.mubr.f32.gmra.mrb[162].mxu1 %v12979_v18 }
 0x522   : > { %5772 = vmatprep.mubr.msk.f32.mxu1 %vm2556_vm2, %v12980_v28 }
 0x525   : > { %4440 = vmatmul.mubr.f32.gmra.mrb[164].mxu1 %v12981_v8 }
 0x526   : > { %5773 = vmatprep.mubr.msk.f32.mxu1 %vm2556_vm2, %v12982_v47 }
 0x529   : > { %4445 = vmatmul.mubr.f32.gmra.mrb[166].mxu1 %v12983_v7  ;;  %v5172_v7 = vld [vmem:[%s11999_s9] sm:$0xff] }
 0x52a   : > { %5774 = vmatprep.mubr.msk.f32.mxu1 %vm2556_vm2, %v12984_v19  ;;  %v5173_v19 = vld [vmem:[%s11999_s9 + $0x8] sm:$0xff] }
 0x52d   : > { %4450 = vmatmul.mubr.f32.gmra.mrb[168].mxu1 %v12985_v9  ;;  %v6978_v9 = vpack.c.bf16 %v5173_v19, %v5172_v7 }
 0x52e   : > { %5775 = vmatprep.mubr.msk.f32.mxu1 %vm2556_vm2, %v12986_v35  ;;  %v7688_v35 = vld [vmem:[%s8030_s17 + $0x50] sm:$0xff] }
 0x531   : > { %4455 = vmatmul.mubr.f32.gmra.mrb[170].mxu1 %v12987_v41 }
 0x532   : > { %5776 = vmatprep.mubr.msk.f32.mxu1 %vm2556_vm2, %v12988_v13 }
 0x535   : > { %4460 = vmatmul.mubr.f32.gmra.mrb[172].mxu1 %v12989_v50 }
 0x536   : > { %5777 = vmatprep.mubr.msk.f32.mxu1 %vm2556_vm2, %v12990_v14 }
 0x539   : > { %4465 = vmatmul.mubr.f32.gmra.mrb[174].mxu1 %v12991_v16 }
 0x53a   : > { %5778 = vmatprep.mubr.msk.f32.mxu1 %vm2556_vm2, %v12992_v44 }
 0x53d   : > { %4470 = vmatmul.mubr.f32.gmra.mrb[176].mxu1 %v12993_v4  ;;  %v7689_v4 = vld [vmem:[%s8030_s17 + $0x58] sm:$0xff] }
 0x53e   : > { %5779 = vmatprep.mubr.msk.f32.mxu1 %vm2556_vm2, %v12994_v21 }
 0x541   : > { %4475 = vmatmul.mubr.f32.gmra.mrb[178].mxu1 %v12995_v15 }
 0x542   : > { %5780 = vmatprep.mubr.msk.f32.mxu1 %vm2556_vm2, %v12996_v51 }
 0x545   : > { %4480 = vmatmul.mubr.f32.gmra.mrb[180].mxu1 %v12997_v29 }
 0x546   : > { %5781 = vmatprep.mubr.msk.f32.mxu1 %vm2556_vm2, %v12998_v12 }
 0x549   : > { %4485 = vmatmul.mubr.f32.gmra.mrb[182].mxu1 %v12999_v1 }
 0x54a   : > { %5782 = vmatprep.mubr.msk.f32.mxu1 %vm2556_vm2, %v13000_v5  ;;  %v7690_v5 = vld [vmem:[%s8030_s17 + $0x60] sm:$0xff] }
 0x54d   : > { %4490 = vmatmul.mubr.f32.gmra.mrb[184].mxu1 %v13001_v24 }
 0x54e   : > { %5783 = vmatprep.mubr.msk.f32.mxu1 %vm2556_vm2, %v13002_v31 }
 0x551   : > { %4495 = vmatmul.mubr.f32.gmra.mrb[186].mxu1 %v13003_v61 }
 0x552   : > { %5784 = vmatprep.mubr.msk.f32.mxu1 %vm2556_vm2, %v11073_v63  ;;  %v7679_v63 = vld [vmem:[%s8030_s17 + $0x8] sm:$0xff] }
 0x555   : > { %4500 = vmatmul.mubr.f32.gmra.mrb[188].mxu1 %v11068_v58  ;;  %v7678_v58 = vld [vmem:[%s8030_s17] sm:$0xff] }
 0x556   : > { %5785 = vmatprep.mubr.msk.f32.mxu1 %vm2556_vm2, %v11084_v2  ;;  %v7680_v2 = vld [vmem:[%s8030_s17 + $0x10] sm:$0xff] }
 0x559   : > { %4505 = vmatmul.mubr.f32.gmra.mrb[190].mxu1 %v11079_v48  ;;  %v5115_v48 = vadd.f32 %v7679_v63, %v7678_v58 }
 0x55a   : > { %5786 = vmatprep.mubr.msk.f32.mxu1 %vm2556_vm2, %v11095_v42  ;;  %v7681_v42 = vld [vmem:[%s8030_s17 + $0x18] sm:$0xff] }
 0x55d   : > { %4510 = vmatmul.mubr.f32.gmra.mrb[192].mxu1 %v11090_v40  ;;  %v5116_v40 = vadd.f32 %v7680_v2, %v5115_v48  ;;  %v5174_v2 = vld [vmem:[%s11999_s9 + $0x10] sm:$0xff] }
 0x55e   : > { %5787 = vmatprep.mubr.msk.f32.mxu1 %vm2556_vm2, %v11102_v56  ;;  %v3460_v56 = vpop.xlane.xlu0 %3459 }
 0x55f   : > { %7574 = vrcp.f32 %v3460_v56 }
 0x561   : > { %4515 = vmatmul.mubr.f32.gmra.mrb[194].mxu1 %v11098_v33  ;;  %v5117_v33 = vadd.f32 %v7681_v42, %v5116_v40  ;;  %v5175_v40 = vld [vmem:[%s11999_s9 + $0x18] sm:$0xff] }
 0x562   : > { %5788 = vmatprep.mubr.msk.f32.mxu1 %vm2556_vm2, %v11112_v62  ;;  %v6981_v42 = vpack.c.bf16 %v5175_v40, %v5174_v2 }
 0x565   : > { %4520 = vmatmul.mubr.f32.gmra.mrb[196].mxu1 %v11110_v0  ;;  %v7682_v0 = vld [vmem:[%s8030_s17 + $0x20] sm:$0xff] }
 0x566   : > { %5789 = vmatprep.mubr.msk.f32.mxu1 %vm2556_vm2, %v11119_v3  ;;  %v5118_v62 = vadd.f32 %v7682_v0, %v5117_v33  ;;  %v3466_v3 = vpop.xlane.xlu1 %3465  ;;  %v7691_v33 = vld [vmem:[%s8030_s17 + $0x68] sm:$0xff] }
 0x567   : > { %7576 = vrcp.f32 %v3466_v3 }
 0x568   : > { %v5119_v36 = vadd.f32 %v7683_v11, %v5118_v62 }
 0x569   : > { %4525 = vmatmul.mubr.f32.gmra.mrb[198].mxu1 %v11117_v59  ;;  %v3472_v59 = vpop.xlane.xlu0 %3471  ;;  %v7575_v30 = vpop.eup %7574 }
 0x56a   : > { %5790 = vmatprep.mubr.msk.f32.mxu1 %vm2556_vm2, %v11126_v20  ;;  %7578 = vrcp.f32 %v3472_v59  ;;  %v5120_v20 = vadd.f32 %v7684_v38, %v5119_v36  ;;  %v3478_v17 = vpop.xlane.xlu1 %3477  ;;  %v7692_v59 = vld [vmem:[%s8030_s17 + $0x70] sm:$0xff] }
 0x56b   : > { %7580 = vrcp.f32 %v3478_v17 }
 0x56c   : > { %v5121_v57 = vadd.f32 %v7685_v10, %v5120_v20 }
 0x56d   : > { %4530 = vmatmul.mubr.f32.gmra.mrb[200].mxu1 %v11124_v34  ;;  %v3484_v54 = vpop.xlane.xlu0 %3483 }
 0x56e   : > { %7582 = vrcp.f32 %v3484_v54  ;;  %v5122_v32 = vadd.f32 %v7686_v45, %v5121_v57  ;;  %v3490_v53 = vpop.xlane.xlu1 %3489  ;;  %v5177_v45 = vld [vmem:[%s11999_s9 + $0x28] sm:$0xff] }
 0x56f   : > { %7584 = vrcp.f32 %v3490_v53  ;;  %v7694_v53 = vld [vmem:[%s8030_s17 + $0x80] sm:$0xff] }
 0x570   : > { %v5123_v55 = vadd.f32 %v7687_v22, %v5122_v32 }
 0x571   : > { %v7577_v46 = vpop.eup %7576  ;;  %v3496_v25 = vpop.xlane.xlu0 %3495 }
 0x572   : > { %7586 = vrcp.f32 %v3496_v25  ;;  %v5124_v41 = vadd.f32 %v7688_v35, %v5123_v55  ;;  %v3502_v13 = vpop.xlane.xlu1 %3501  ;;  %v7695_v25 = vld [vmem:[%s8030_s17 + $0x88] sm:$0xff] }
 0x573   : > { %7588 = vrcp.f32 %v3502_v13 }
 0x574   : > { %v7579_v26 = vpop.eup %7578  ;;  %v5125_v21 = vadd.f32 %v7689_v4, %v5124_v41  ;;  %v5179_v4 = vld [vmem:[%s11999_s9 + $0x38] sm:$0xff] }
 0x575   : > { %v7581_v18 = vpop.eup %7580  ;;  %v3508_v15 = vpop.xlane.xlu0 %3507 }
 0x576   : > { %7590 = vrcp.f32 %v3508_v15  ;;  %v5126_v24 = vadd.f32 %v7690_v5, %v5125_v21  ;;  %v3514_v31 = vpop.xlane.xlu1 %3513  ;;  %v7697_v15 = vld [vmem:[%s8030_s17 + $0x98] sm:$0xff] }
 0x577   : > { %7592 = vrcp.f32 %v3514_v31  ;;  %v7698_v31 = vld [vmem:[%s8030_s17 + $0xa0] sm:$0xff] }
 0x578   : > { %v7583_v50 = vpop.eup %7582  ;;  %v5127_v56 = vadd.f32 %v7691_v33, %v5126_v24 }
 0x579   : > { %v7585_v51 = vpop.eup %7584  ;;  %v3520_v0 = vpop.xlane.xlu0 %3519 }
 0x57a   : > { %7594 = vrcp.f32 %v3520_v0  ;;  %v5128_v38 = vadd.f32 %v7692_v59, %v5127_v56  ;;  %v3526_v20 = vpop.xlane.xlu1 %3525  ;;  %v5181_v59 = vld [vmem:[%s11999_s9 + $0x48] sm:$0xff] }
 0x57b   : > { %7596 = vrcp.f32 %v3526_v20  ;;  %v11381_v20 = vld [vmem:[%s8030_s17 + $0xb0] sm:$0xff] }
 0x57c   : > { %v4286_v23 = vpop.f32.mrb[102].mxu1  ;;  %v7587_v61 = vpop.eup %7586  ;;  %13005 = vst [vmem:[#allocation151_spill] sm:$0xff] %v11381_v20 }
 0x57d   : > { %v4585_v34 = vmul.f32 %v7575_v30, %v4286_v23  ;;  %v4288_v52 = vpop.f32.mrb[103].mxu1  ;;  %v7589_v62 = vpop.eup %7588 }
 0x57e   : > { %v7693_v52 = vld [vmem:[%s8030_s17 + $0x78] sm:$0xff]  ;;  %v3532_v57 = vpop.xlane.xlu0 %3531 }
 0x57f   : > { %6591 = vmatprep.mubr.msk.f32.mxu0 %vm1523_vm0, %v4585_v34  ;;  %v5129_v10 = vadd.f32 %v7693_v52, %v5128_v38  ;;  %7598 = vrcp.f32 %v3532_v57  ;;  %v5182_v57 = vld [vmem:[%s11999_s9 + $0x50] sm:$0xff] }
 0x580   : > { %v4291_v49 = vpop.f32.mrb[104].mxu1  ;;  %v7591_v17 = vpop.eup %7590 }
 0x581   : > { %v4586_v60 = vmul.f32 %v7577_v46, %v4291_v49  ;;  %v4293_v39 = vpop.f32.mrb[105].mxu1  ;;  %v7593_v54 = vpop.eup %7592 }
 0x582   : > { %v5176_v39 = vld [vmem:[%s11999_s9 + $0x20] sm:$0xff] }
 0x583   : > { %6592 = vmatmul.mubr.msk.f32.vlgmr.msra.gmra.mrb[248].mxu0 %vm1523_vm0, %v4586_v60  ;;  %v6984_v32 = vpack.c.bf16 %v5177_v45, %v5176_v39 }
 0x584   : > { %v4296_v37 = vpop.f32.mrb[106].mxu1  ;;  %6979 = vmatpush3.bf16.msra.mxu0 %v6978_v9  ;;  %v7696_v9 = vld [vmem:[%s8030_s17 + $0x90] sm:$0xff] }
 0x585   : > { %v4587_v43 = vmul.f32 %v7579_v26, %v4296_v37  ;;  %v4298_v6 = vpop.f32.mrb[107].mxu1  ;;  %6980 = vmatprep.subr.bf16.mxu0 %v12964_v27  ;;  %v5130_v26 = vadd.f32 %v7694_v53, %v5129_v10  ;;  %v3538_v37 = vpop.xlane.xlu1 %3537 }
 0x586   : > { %7600 = vrcp.f32 %v3538_v37  ;;  %v5184_v37 = vld [vmem:[%s11999_s9 + $0x60] sm:$0xff] }
 0x587   : > { %6594 = vmatprep.mubr.msk.f32.mxu0 %vm1523_vm0, %v4587_v43  ;;  %v7595_v43 = vpop.eup %7594 }
 0x588   : > { %v4301_v28 = vpop.f32.mrb[108].mxu1  ;;  %6982 = vmatpush3.bf16.msra.mxu0 %v6981_v42  ;;  %v11370_v42 = vld [vmem:[%s8030_s17 + $0xa8] sm:$0xff] }
 0x589   : > { %v4588_v8 = vmul.f32 %v7581_v18, %v4301_v28  ;;  %v4303_v47 = vpop.f32.mrb[109].mxu1  ;;  %6983 = vmatprep.subr.bf16.mxu0 %v12964_v27  ;;  %v5131_v18 = vadd.f32 %v7695_v25, %v5130_v26  ;;  %v3544_v28 = vpop.xlane.xlu0 %3543  ;;  %13004 = vst [vmem:[#allocation149_spill] sm:$0xff] %v11370_v42 }
 0x58a   : > { %7602 = vrcp.f32 %v3544_v28  ;;  %v3550_v41 = vpop.xlane.xlu1 %3549  ;;  %v5187_v28 = vld [vmem:[%s11999_s9 + $0x78] sm:$0xff] }
 0x58b   : > { %6595 = vmatmul.mubr.msk.f32.gmra.mrb[250].mxu0 %vm1523_vm0, %v4588_v8  ;;  %v7597_v8 = vpop.eup %7596  ;;  %v5132_v35 = vadd.f32 %v7696_v9, %v5131_v18  ;;  %7604 = vrcp.f32 %v3550_v41  ;;  %v5186_v18 = vld [vmem:[%s11999_s9 + $0x70] sm:$0xff] }
 0x58c   : > { %v4306_v14 = vpop.f32.mrb[110].mxu1  ;;  %6985 = vmatpush3.bf16.msra.mxu0 %v6984_v32  ;;  %v7599_v13 = vpop.eup %7598 }
 0x58d   : > { %v4589_v16 = vmul.f32 %v7583_v50, %v4306_v14  ;;  %v4308_v44 = vpop.f32.mrb[111].mxu1  ;;  %6986 = vmatprep.subr.bf16.mxu0 %v12964_v27 }
 0x58e   : > { %v5178_v44 = vld [vmem:[%s11999_s9 + $0x30] sm:$0xff] }
 0x58f   : > { %6597 = vmatprep.mubr.msk.f32.mxu0 %vm1523_vm0, %v4589_v16  ;;  %v6987_v21 = vpack.c.bf16 %v5179_v4, %v5178_v44  ;;  %v13009_v4 = vmov 0.0  }
 0x590   : > { %v4311_v29 = vpop.f32.mrb[112].mxu1 }
 0x591   : > { %v4590_v12 = vmul.f32 %v7585_v51, %v4311_v29  ;;  %v4313_v1 = vpop.f32.mrb[113].mxu1  ;;  %v5133_v51 = vadd.f32 %v7697_v15, %v5132_v35  ;;  %v3556_v29 = vpop.xlane.xlu0 %3555  ;;  %6988 = vmatpush3.bf16.msra.mxu0 %v6987_v21  ;;  %v11417_v35 = vld [vmem:[%s8030_s17 + $0xc8] sm:$0xff]  ;;  %v11423_v21 = vld [vmem:[%s8030_s17 + $0xd0] sm:$0xff] }
 0x592   : > { %6989 = vmatprep.subr.bf16.mxu0 %v12964_v27  ;;  %7606 = vrcp.f32 %v3556_v29  ;;  %13008 = vst [vmem:[#allocation154_spill] sm:$0xff] %v11417_v35  ;;  %13010 = vst [vmem:[#allocation155_spill] sm:$0xff] %v11423_v21 }
 0x593   : > { %6598 = vmatmul.mubr.msk.f32.gmra.mrb[252].mxu0 %vm1523_vm0, %v4590_v12  ;;  %v7601_v12 = vpop.eup %7600 }
 0x594   : > { %v4316_v58 = vpop.f32.mrb[114].mxu1 }
 0x595   : > { %v4591_v63 = vmul.f32 %v7587_v61, %v4316_v58  ;;  %v4318_v48 = vpop.f32.mrb[115].mxu1  ;;  %v5134_v61 = vadd.f32 %v7698_v31, %v5133_v51  ;;  %v3562_v58 = vpop.xlane.xlu1 %3561 }
 0x596   : > { %7608 = vrcp.f32 %v3562_v58  ;;  %v3568_v56 = vpop.xlane.xlu0 %3567 }
 0x597   : > { %6600 = vmatprep.mubr.msk.f32.mxu0 %vm1523_vm0, %v4591_v63  ;;  %v7603_v63 = vpop.eup %7602  ;;  %v5135_v33 = vadd.f32 %v11370_v42, %v5134_v61  ;;  %7610 = vrcp.f32 %v3568_v56 }
 0x598   : > { %v4321_v3 = vpop.f32.mrb[116].mxu1  ;;  %v7605_v0 = vpop.eup %7604 }
 0x599   : > { %v4592_v11 = vmul.f32 %v7589_v62, %v4321_v3  ;;  %v4323_v36 = vpop.f32.mrb[117].mxu1 }
 0x59a   : > { %v5180_v36 = vld [vmem:[%s11999_s9 + $0x40] sm:$0xff]  ;;  %v3580_v39 = vpop.xlane.xlu0 %3579 }
 0x59b   : > { %6601 = vmatmul.mubr.msk.f32.gmra.mrb[254].mxu0 %vm1523_vm0, %v4592_v11  ;;  %v6990_v38 = vpack.c.bf16 %v5181_v59, %v5180_v36 }
 0x59c   : > { %v4326_v30 = vpop.f32.mrb[118].mxu1 }
 0x59d   : > { %v4593_v23 = vmul.f32 %v7591_v17, %v4326_v30  ;;  %v4328_v34 = vpop.f32.mrb[119].mxu1  ;;  %v5136_v17 = vadd.f32 %v11381_v20, %v5135_v33  ;;  %v3574_v30 = vpop.xlane.xlu1 %3573  ;;  %6991 = vmatpush3.bf16.msra.mxu0 %v6990_v38 }
 0x59e   : > { %6992 = vmatprep.subr.bf16.mxu0 %v12964_v27  ;;  %7612 = vrcp.f32 %v3574_v30 }
 0x59f   : > { %6603 = vmatprep.mubr.msk.f32.mxu0 %vm1523_vm0, %v4593_v23  ;;  %v7607_v23 = vpop.eup %7606  ;;  %7614 = vrcp.f32 %v3580_v39  ;;  %v11448_v39 = vld [vmem:[%s8030_s17 + $0xf8] sm:$0xff] }
 0x5a0   : > { %v4331_v46 = vpop.f32.mrb[120].mxu1  ;;  %v7609_v45 = vpop.eup %7608  ;;  %13015 = vst [vmem:[#allocation160_spill] sm:$0xff] %v11448_v39 }
 0x5a1   : > { %v4594_v49 = vmul.f32 %v7593_v54, %v4331_v46  ;;  %v4333_v60 = vpop.f32.mrb[121].mxu1  ;;  %v5183_v54 = vld [vmem:[%s11999_s9 + $0x58] sm:$0xff]  ;;  %v3586_v25 = vpop.xlane.xlu1 %3585 }
 0x5a2   : > { %v6993_v46 = vpack.c.bf16 %v5183_v54, %v5182_v57  ;;  %7616 = vrcp.f32 %v3586_v25 }
 0x5a3   : > { %6604 = vmatmul.mubr.msk.f32.gmra.mrb[0].mxu0 %vm1523_vm0, %v4594_v49  ;;  %v11393_v49 = vld [vmem:[%s8030_s17 + $0xb8] sm:$0xff] }
 0x5a4   : > { %v4336_v6 = vpop.f32.mrb[122].mxu1  ;;  %13006 = vst [vmem:[#allocation152_spill] sm:$0xff] %v11393_v49  ;;  %v5137_v60 = vadd.f32 %v11393_v49, %v5136_v17  ;;  %6994 = vmatpush3.bf16.msra.mxu0 %v6993_v46 }
 0x5a5   : > { %v4595_v22 = vmul.f32 %v7595_v43, %v4336_v6  ;;  %v4338_v55 = vpop.f32.mrb[123].mxu1  ;;  %6995 = vmatprep.subr.bf16.mxu0 %v12964_v27  ;;  %v5185_v43 = vld [vmem:[%s11999_s9 + $0x68] sm:$0xff]  ;;  %v3598_v15 = vpop.xlane.xlu1 %3597 }
 0x5a6   : > { %v6996_v6 = vpack.c.bf16 %v5185_v43, %v5184_v37 }
 0x5a7   : > { %6606 = vmatprep.mubr.msk.f32.mxu0 %vm1523_vm0, %v4595_v22  ;;  %v11405_v22 = vld [vmem:[%s8030_s17 + $0xc0] sm:$0xff] }
 0x5a8   : > { %v4341_v47 = vpop.f32.mrb[124].mxu1  ;;  %13007 = vst [vmem:[#allocation153_spill] sm:$0xff] %v11405_v22  ;;  %v5138_v55 = vadd.f32 %v11405_v22, %v5137_v60  ;;  %6997 = vmatpush3.bf16.msra.mxu0 %v6996_v6  ;;  %v11453_v6 = vld [vmem:[%s8030_s17 + $0x100] sm:$0xff] }
 0x5a9   : > { %v4596_v7 = vmul.f32 %v7597_v8, %v4341_v47  ;;  %v4343_v19 = vpop.f32.mrb[125].mxu1  ;;  %v7611_v8 = vpop.eup %7610  ;;  %6998 = vmatprep.subr.bf16.mxu0 %v12964_v27  ;;  %13016 = vst [vmem:[#allocation77_spill] sm:$0xff] %v11453_v6  ;;  %v5791_v22 = vld [vmem:[%s11998_s8] ss:$0 sm:$0xff] }
 0x5aa   : > { %v5139_v41 = vadd.f32 %v11417_v35, %v5138_v55  ;;  %v3610_v33 = vpop.xlane.xlu1 %3609 }
 0x5ab   : > { %6607 = vmatmul.mubr.msk.f32.gmra.mrb[2].mxu0 %vm1523_vm0, %v4596_v7  ;;  %v6999_v7 = vpack.c.bf16 %v5187_v28, %v5186_v18 }
 0x5ac   : > { %v4346_v50 = vpop.f32.mrb[126].mxu1  ;;  %v5140_v27 = vadd.f32 %v11423_v21, %v5139_v41 }
 0x5ad   : > { %v4597_v14 = vmul.f32 %v7599_v13, %v4346_v50  ;;  %v4348_v16 = vpop.f32.mrb[127].mxu1  ;;  %v3592_v13 = vpop.xlane.xlu0 %3591  ;;  %7000 = vmatpush3.bf16.msra.mxu0 %v6999_v7  ;;  %v11458_v7 = vld [vmem:[%s8030_s17 + $0x108] sm:$0xff] }
 0x5ae   : > { %v7613_v50 = vpop.eup %7612  ;;  %6701 = vmatprep.subr.mxu0 %v13009_v4  ;;  %7618 = vrcp.f32 %v3592_v13  ;;  %13017 = vst [vmem:[#allocation79_spill] sm:$0xff] %v11458_v7 }
 0x5af   : > { %6609 = vmatprep.mubr.msk.f32.mxu0 %vm1523_vm0, %v4597_v14  ;;  %v7615_v51 = vpop.eup %7614  ;;  %7620 = vrcp.f32 %v3598_v15 }
 0x5b0   : > { %v4351_v1 = vpop.f32.mrb[128].mxu1  ;;  %v7617_v61 = vpop.eup %7616 }
 0x5b1   : > { %v4598_v5 = vmul.f32 %v7601_v12, %v4351_v1  ;;  %v4353_v24 = vpop.f32.mrb[129].mxu1  ;;  %v3604_v31 = vpop.xlane.xlu0 %3603 }
 0x5b2   : > { %7622 = vrcp.f32 %v3604_v31 }
 0x5b3   : > { %6610 = vmatmul.mubr.msk.f32.gmra.mrb[4].mxu0 %vm1523_vm0, %v4598_v5  ;;  %v11428_v5 = vld [vmem:[%s8030_s17 + $0xd8] sm:$0xff]  ;;  %7624 = vrcp.f32 %v3610_v33 }
 0x5b4   : > { %v4356_v48 = vpop.f32.mrb[130].mxu1  ;;  %13011 = vst [vmem:[#allocation156_spill] sm:$0xff] %v11428_v5  ;;  %v5141_v24 = vadd.f32 %v11428_v5, %v5140_v27 }
 0x5b5   : > { %v4599_v2 = vmul.f32 %v7603_v63, %v4356_v48  ;;  %v4358_v40 = vpop.f32.mrb[131].mxu1  ;;  %v3616_v59 = vpop.xlane.xlu0 %3615 }
 0x5b6   : > { %7626 = vrcp.f32 %v3616_v59  ;;  %v11478_v59 = vld [vmem:[%s8030_s17 + $0x128] sm:$0xff] }
 0x5b7   : > { %6612 = vmatprep.mubr.msk.f32.mxu0 %vm1523_vm0, %v4599_v2  ;;  %v11433_v2 = vld [vmem:[%s8030_s17 + $0xe0] sm:$0xff]  ;;  %13021 = vst [vmem:[#allocation82_spill] sm:$0xff] %v11478_v59 }
 0x5b8   : > { %v4361_v62 = vpop.f32.mrb[132].mxu1  ;;  %13012 = vst [vmem:[#allocation157_spill] sm:$0xff] %v11433_v2  ;;  %v5142_v40 = vadd.f32 %v11433_v2, %v5141_v24  ;;  %v7619_v56 = vpop.eup %7618 }
 0x5b9   : > { %v4600_v3 = vmul.f32 %v7605_v0, %v4361_v62  ;;  %v4363_v11 = vpop.f32.mrb[133].mxu1  ;;  %v7621_v38 = vpop.eup %7620 }
 0x5ba   : > { %v11438_v11 = vld [vmem:[%s8030_s17 + $0xe8] sm:$0xff] }
 0x5bb   : > { %6613 = vmatmul.mubr.msk.f32.gmra.mrb[6].mxu0 %vm1523_vm0, %v4600_v3  ;;  %13013 = vst [vmem:[#allocation158_spill] sm:$0xff] %v11438_v11  ;;  %v5143_v36 = vadd.f32 %v11438_v11, %v5142_v40  ;;  %v11473_v40 = vld [vmem:[%s8030_s17 + $0x120] sm:$0xff] }
 0x5bc   : > { %v4366_v34 = vpop.f32.mrb[134].mxu1  ;;  %v7623_v57 = vpop.eup %7622  ;;  %13020 = vst [vmem:[#allocation80_spill] sm:$0xff] %v11473_v40  ;;  %v5261_v11 = vld [vmem:[%s12002_s12] sm:$0x1] }
 0x5bd   : > { %v4601_v52 = vmul.f32 %v7607_v23, %v4366_v34  ;;  %v4368_v10 = vpop.f32.mrb[135].mxu1  ;;  %v11443_v34 = vld [vmem:[%s8030_s17 + $0xf0] sm:$0xff] }
 0x5be   : > { %13014 = vst [vmem:[#allocation159_spill] sm:$0xff] %v11443_v34  ;;  %v3622_v10 = vpop.xlane.xlu1 %3621 }
 0x5bf   : > { %6615 = vmatprep.mubr.msk.f32.mxu0 %vm1523_vm0, %v4601_v52  ;;  %v5144_v52 = vadd.f32 %v11443_v34, %v5143_v36  ;;  %7628 = vrcp.f32 %v3622_v10 }
 0x5c0   : > { %v4371_v32 = vpop.f32.mrb[136].mxu1 }
 0x5c1   : > { %v4602_v53 = vmul.f32 %v7609_v45, %v4371_v32  ;;  %v4373_v26 = vpop.f32.mrb[137].mxu1  ;;  %v5145_v45 = vadd.f32 %v11448_v39, %v5144_v52  ;;  %v3628_v32 = vpop.xlane.xlu0 %3627 }
 0x5c2   : > { %7630 = vrcp.f32 %v3628_v32  ;;  %v3634_v25 = vpop.xlane.xlu1 %3633 }
 0x5c3   : > { %6616 = vmatmul.mubr.msk.f32.gmra.mrb[8].mxu0 %vm1523_vm0, %v4602_v53  ;;  %v7625_v53 = vpop.eup %7624  ;;  %v5146_v55 = vadd.f32 %v11453_v6, %v5145_v45  ;;  %7632 = vrcp.f32 %v3634_v25 }
 0x5c4   : > { %v4376_v47 = vpop.f32.mrb[138].mxu1  ;;  %v7627_v18 = vpop.eup %7626 }
 0x5c5   : > { %v4603_v19 = vmul.f32 %v7611_v8, %v4376_v47  ;;  %v4378_v9 = vpop.f32.mrb[139].mxu1 }
 0x5c6   : > { %v3640_v9 = vpop.xlane.xlu0 %3639  ;;  %v3646_v27 = vpop.xlane.xlu1 %3645 }
 0x5c7   : > { %6618 = vmatprep.mubr.msk.f32.mxu0 %vm1523_vm0, %v4603_v19  ;;  %v5147_v19 = vadd.f32 %v11458_v7, %v5146_v55  ;;  %7634 = vrcp.f32 %v3640_v9 }
 0x5c8   : > { %v4381_v14 = vpop.f32.mrb[140].mxu1  ;;  %7636 = vrcp.f32 %v3646_v27 }
 0x5c9   : > { %v4604_v16 = vmul.f32 %v7613_v50, %v4381_v14  ;;  %v4383_v44 = vpop.f32.mrb[141].mxu1  ;;  %v7629_v41 = vpop.eup %7628 }
 0x5ca   : > { %v3652_v31 = vpop.xlane.xlu0 %3651 }
 0x5cb   : > { %6619 = vmatmul.mubr.msk.f32.gmra.mrb[10].mxu0 %vm1523_vm0, %v4604_v16  ;;  %v11463_v16 = vld [vmem:[%s8030_s17 + $0x110] sm:$0xff]  ;;  %7638 = vrcp.f32 %v3652_v31 }
 0x5cc   : > { %v4386_v29 = vpop.f32.mrb[142].mxu1  ;;  %13018 = vst [vmem:[#allocation161_spill] sm:$0xff] %v11463_v16  ;;  %v5148_v44 = vadd.f32 %v11463_v16, %v5147_v19  ;;  %v7631_v15 = vpop.eup %7630  ;;  %v5188_v16 = vld [vmem:[%s12000_s10] sm:$0x1] }
 0x5cd   : > { %v4605_v12 = vmul.f32 %v7615_v51, %v4386_v29  ;;  %v4388_v1 = vpop.f32.mrb[143].mxu1 }
 0x5ce   : > { %v11468_v1 = vld [vmem:[%s8030_s17 + $0x118] sm:$0xff] }
 0x5cf   : > { %6621 = vmatprep.mubr.msk.f32.mxu0 %vm1523_vm0, %v4605_v12  ;;  %13019 = vst [vmem:[#allocation162_spill] sm:$0xff] %v11468_v1  ;;  %v5149_v24 = vadd.f32 %v11468_v1, %v5148_v44 }
 0x5d0   : > { %v4391_v58 = vpop.f32.mrb[144].mxu1 }
 0x5d1   : > { %v4606_v63 = vmul.f32 %v7617_v61, %v4391_v58  ;;  %v4393_v48 = vpop.f32.mrb[145].mxu1  ;;  %v7633_v61 = vpop.eup %7632  ;;  %v5150_v33 = vadd.f32 %v11473_v40, %v5149_v24  ;;  %v11503_v24 = vld [vmem:[%s8030_s17 + $0x150] sm:$0xff] }
 0x5d2   : > { %13026 = vst [vmem:[#allocation165_spill] sm:$0xff] %v11503_v24 }
 0x5d3   : > { %6622 = vmatmul.mubr.msk.f32.gmra.mrb[12].mxu0 %vm1523_vm0, %v4606_v63 }
 0x5d4   : > { %v4396_v0 = vpop.f32.mrb[146].mxu1 }
 0x5d5   : > { %v4607_v62 = vmul.f32 %v7619_v56, %v4396_v0  ;;  %v4398_v3 = vpop.f32.mrb[147].mxu1  ;;  %v3658_v56 = vpop.xlane.xlu1 %3657 }
 0x5d6   : > { %v7635_v0 = vpop.eup %7634  ;;  %7640 = vrcp.f32 %v3658_v56  ;;  %v11508_v56 = vld [vmem:[%s8030_s17 + $0x158] sm:$0xff] }
 0x5d7   : > { %6624 = vmatprep.mubr.msk.f32.mxu0 %vm1523_vm0, %v4607_v62  ;;  %13027 = vst [vmem:[#allocation166_spill] sm:$0xff] %v11508_v56 }
 0x5d8   : > { %v4401_v17 = vpop.f32.mrb[148].mxu1 }
 0x5d9   : > { %v4608_v30 = vmul.f32 %v7621_v38, %v4401_v17  ;;  %v4403_v23 = vpop.f32.mrb[149].mxu1  ;;  %v5151_v38 = vadd.f32 %v11478_v59, %v5150_v33  ;;  %v3664_v17 = vpop.xlane.xlu0 %3663 }
 0x5da   : > { %7642 = vrcp.f32 %v3664_v17 }
 0x5db   : > { %6625 = vmatmul.mubr.msk.f32.gmra.mrb[14].mxu0 %vm1523_vm0, %v4608_v30  ;;  %v7637_v30 = vpop.eup %7636 }
 0x5dc   : > { %v4406_v54 = vpop.f32.mrb[150].mxu1 }
 0x5dd   : > { %v4609_v46 = vmul.f32 %v7623_v57, %v4406_v54  ;;  %v4408_v60 = vpop.f32.mrb[151].mxu1  ;;  %v11483_v57 = vld [vmem:[%s8030_s17 + $0x130] sm:$0xff] }
 0x5de   : > { %13022 = vst [vmem:[#allocation163_spill] sm:$0xff] %v11483_v57  ;;  %v5152_v54 = vadd.f32 %v11483_v57, %v5151_v38  ;;  %v7639_v60 = vpop.eup %7638 }
 0x5df   : > { %6627 = vmatprep.mubr.msk.f32.mxu0 %vm1523_vm0, %v4609_v46  ;;  %v3670_v46 = vpop.xlane.xlu1 %3669 }
 0x5e0   : > { %v4411_v26 = vpop.f32.mrb[152].mxu1  ;;  %7644 = vrcp.f32 %v3670_v46  ;;  %v7641_v55 = vpop.eup %7640 }
 0x5e1   : > { %v4610_v37 = vmul.f32 %v7625_v53, %v4411_v26  ;;  %v4413_v43 = vpop.f32.mrb[153].mxu1  ;;  %v11488_v26 = vld [vmem:[%s8030_s17 + $0x138] sm:$0xff] }
 0x5e2   : > { %13023 = vst [vmem:[#allocation164_spill] sm:$0xff] %v11488_v26  ;;  %v3676_v43 = vpop.xlane.xlu0 %3675 }
 0x5e3   : > { %6628 = vmatmul.mubr.msk.f32.gmra.mrb[16].mxu0 %vm1523_vm0, %v4610_v37  ;;  %v5153_v37 = vadd.f32 %v11488_v26, %v5152_v54  ;;  %7646 = vrcp.f32 %v3676_v43  ;;  %v3682_v19 = vpop.xlane.xlu1 %3681 }
 0x5e4   : > { %v4416_v28 = vpop.f32.mrb[154].mxu1  ;;  %v7643_v9 = vpop.eup %7642  ;;  %7648 = vrcp.f32 %v3682_v19 }
 0x5e5   : > { %v4611_v8 = vmul.f32 %v7627_v18, %v4416_v28  ;;  %v4418_v47 = vpop.f32.mrb[155].mxu1 }
 0x5e6   : > { %v3688_v27 = vpop.xlane.xlu0 %3687 }
 0x5e7   : > { %6630 = vmatprep.mubr.msk.f32.mxu0 %vm1523_vm0, %v4611_v8  ;;  %v11493_v8 = vld [vmem:[%s8030_s17 + $0x140] sm:$0xff]  ;;  %7650 = vrcp.f32 %v3688_v27 }
 0x5e8   : > { %v4421_v13 = vpop.f32.mrb[156].mxu1  ;;  %13024 = vst [vmem:[#allocation85_spill] sm:$0xff] %v11493_v8  ;;  %v5154_v47 = vadd.f32 %v11493_v8, %v5153_v37 }
 0x5e9   : > { %v4612_v50 = vmul.f32 %v7629_v41, %v4421_v13  ;;  %v4423_v14 = vpop.f32.mrb[157].mxu1 }
 0x5ea   : > { %v11498_v14 = vld [vmem:[%s8030_s17 + $0x148] sm:$0xff] }
 0x5eb   : > { %6631 = vmatmul.mubr.msk.f32.gmra.mrb[18].mxu0 %vm1523_vm0, %v4612_v50  ;;  %13025 = vst [vmem:[#allocation87_spill] sm:$0xff] %v11498_v14  ;;  %v5155_v44 = vadd.f32 %v11498_v14, %v5154_v47 }
 0x5ec   : > { %v4426_v51 = vpop.f32.mrb[158].mxu1 }
 0x5ed   : > { %v4613_v29 = vmul.f32 %v7631_v15, %v4426_v51  ;;  %v4428_v12 = vpop.f32.mrb[159].mxu1  ;;  %v7645_v15 = vpop.eup %7644  ;;  %v5156_v31 = vadd.f32 %v11503_v24, %v5155_v44 }
 0x5ef   : > { %6633 = vmatprep.mubr.msk.f32.mxu0 %vm1523_vm0, %v4613_v29 }
 0x5f0   : > { %v4431_v58 = vpop.f32.mrb[160].mxu1 }
 0x5f1   : > { %v4614_v63 = vmul.f32 %v7633_v61, %v4431_v58  ;;  %v4433_v48 = vpop.f32.mrb[161].mxu1  ;;  %v3694_v61 = vpop.xlane.xlu1 %3693 }
 0x5f2   : > { %v7647_v58 = vpop.eup %7646  ;;  %7652 = vrcp.f32 %v3694_v61 }
 0x5f3   : > { %6634 = vmatmul.mubr.msk.f32.gmra.mrb[20].mxu0 %vm1523_vm0, %v4614_v63 }
 0x5f4   : > { %v4436_v62 = vpop.f32.mrb[162].mxu1 }
 0x5f5   : > { %v4615_v3 = vmul.f32 %v7635_v0, %v4436_v62  ;;  %v4438_v36 = vpop.f32.mrb[163].mxu1  ;;  %v5157_v0 = vadd.f32 %v11508_v56, %v5156_v31  ;;  %v3700_v62 = vpop.xlane.xlu0 %3699  ;;  %v11533_v31 = vld [vmem:[%s8030_s17 + $0x180] sm:$0xff] }
 0x5f6   : > { %7654 = vrcp.f32 %v3700_v62  ;;  %13032 = vst [vmem:[#allocation63_spill] sm:$0xff] %v11533_v31  ;;  %v11538_v62 = vld [vmem:[%s8030_s17 + $0x188] sm:$0xff] }
 0x5f7   : > { %6636 = vmatprep.mubr.msk.f32.mxu0 %vm1523_vm0, %v4615_v3  ;;  %v7649_v3 = vpop.eup %7648  ;;  %13033 = vst [vmem:[#allocation64_spill] sm:$0xff] %v11538_v62 }
 0x5f8   : > { %v4441_v23 = vpop.f32.mrb[164].mxu1 }
 0x5f9   : > { %v4616_v52 = vmul.f32 %v7637_v30, %v4441_v23  ;;  %v4443_v10 = vpop.f32.mrb[165].mxu1  ;;  %v11513_v30 = vld [vmem:[%s8030_s17 + $0x160] sm:$0xff] }
 0x5fa   : > { %13028 = vst [vmem:[#allocation60_spill] sm:$0xff] %v11513_v30  ;;  %v5158_v23 = vadd.f32 %v11513_v30, %v5157_v0  ;;  %v7651_v10 = vpop.eup %7650 }
 0x5fb   : > { %6637 = vmatmul.mubr.msk.f32.gmra.mrb[22].mxu0 %vm1523_vm0, %v4616_v52  ;;  %v3706_v52 = vpop.xlane.xlu1 %3705 }
 0x5fc   : > { %v4446_v45 = vpop.f32.mrb[166].mxu1  ;;  %7656 = vrcp.f32 %v3706_v52  ;;  %v7653_v37 = vpop.eup %7652 }
 0x5fd   : > { %v4617_v32 = vmul.f32 %v7639_v60, %v4446_v45  ;;  %v4448_v53 = vpop.f32.mrb[167].mxu1  ;;  %v11518_v45 = vld [vmem:[%s8030_s17 + $0x168] sm:$0xff] }
 0x5fe   : > { %13029 = vst [vmem:[#allocation62_spill] sm:$0xff] %v11518_v45  ;;  %v3712_v53 = vpop.xlane.xlu0 %3711 }
 0x5ff   : > { %6639 = vmatprep.mubr.msk.f32.mxu0 %vm1523_vm0, %v4617_v32  ;;  %v5159_v32 = vadd.f32 %v11518_v45, %v5158_v23  ;;  %7658 = vrcp.f32 %v3712_v53  ;;  %v3718_v47 = vpop.xlane.xlu1 %3717 }
 0x600   : > { %v4451_v25 = vpop.f32.mrb[168].mxu1  ;;  %v7655_v19 = vpop.eup %7654  ;;  %7660 = vrcp.f32 %v3718_v47 }
 0x601   : > { %v4618_v18 = vmul.f32 %v7641_v55, %v4451_v25  ;;  %v4453_v28 = vpop.f32.mrb[169].mxu1 }
 0x602   : > { %v3724_v27 = vpop.xlane.xlu0 %3723 }
 0x603   : > { %6640 = vmatmul.mubr.msk.f32.gmra.mrb[24].mxu0 %vm1523_vm0, %v4618_v18  ;;  %v11523_v18 = vld [vmem:[%s8030_s17 + $0x170] sm:$0xff]  ;;  %7662 = vrcp.f32 %v3724_v27 }
 0x604   : > { %v4456_v41 = vpop.f32.mrb[170].mxu1  ;;  %13030 = vst [vmem:[#allocation167_spill] sm:$0xff] %v11523_v18  ;;  %v5160_v28 = vadd.f32 %v11523_v18, %v5159_v32 }
 0x605   : > { %v4619_v13 = vmul.f32 %v7643_v9, %v4456_v41  ;;  %v4458_v50 = vpop.f32.mrb[171].mxu1 }
 0x606   : > { %v11528_v50 = vld [vmem:[%s8030_s17 + $0x178] sm:$0xff] }
 0x607   : > { %6642 = vmatprep.mubr.msk.f32.mxu0 %vm1523_vm0, %v4619_v13  ;;  %13031 = vst [vmem:[#allocation168_spill] sm:$0xff] %v11528_v50  ;;  %v5161_v44 = vadd.f32 %v11528_v50, %v5160_v28 }
 0x608   : > { %v4461_v51 = vpop.f32.mrb[172].mxu1 }
 0x609   : > { %v4620_v29 = vmul.f32 %v7645_v15, %v4461_v51  ;;  %v4463_v12 = vpop.f32.mrb[173].mxu1  ;;  %v7657_v15 = vpop.eup %7656  ;;  %v5162_v61 = vadd.f32 %v11533_v31, %v5161_v44 }
 0x60b   : > { %6643 = vmatmul.mubr.msk.f32.gmra.mrb[26].mxu0 %vm1523_vm0, %v4620_v29 }
 0x60c   : > { %v4466_v63 = vpop.f32.mrb[174].mxu1 }
 0x60d   : > { %v4621_v48 = vmul.f32 %v7647_v58, %v4466_v63  ;;  %v4468_v33 = vpop.f32.mrb[175].mxu1  ;;  %v3730_v58 = vpop.xlane.xlu1 %3729 }
 0x60e   : > { %v7659_v63 = vpop.eup %7658  ;;  %7664 = vrcp.f32 %v3730_v58 }
 0x60f   : > { %6645 = vmatprep.mubr.msk.f32.mxu0 %vm1523_vm0, %v4621_v48 }
 0x610   : > { %v4471_v36 = vpop.f32.mrb[176].mxu1 }
 0x611   : > { %v4622_v38 = vmul.f32 %v7649_v3, %v4471_v36  ;;  %v4473_v17 = vpop.f32.mrb[177].mxu1  ;;  %v5163_v3 = vadd.f32 %v11538_v62, %v5162_v61  ;;  %v3736_v36 = vpop.xlane.xlu0 %3735 }
 0x612   : > { %7666 = vrcp.f32 %v3736_v36 }
 0x613   : > { %6646 = vmatmul.mubr.msk.f32.gmra.mrb[28].mxu0 %vm1523_vm0, %v4622_v38  ;;  %v7661_v38 = vpop.eup %7660 }
 0x614   : > { %v4476_v54 = vpop.f32.mrb[178].mxu1 }
 0x615   : > { %v4623_v46 = vmul.f32 %v7651_v10, %v4476_v54  ;;  %v4478_v60 = vpop.f32.mrb[179].mxu1  ;;  %v5164_v10 = vrot.slane %v5163_v3, 4  ;;  %v3742_v54 = vpop.xlane.xlu1 %3741 }
 0x616   : > { %7668 = vrcp.f32 %v3742_v54 }
 0x617   : > { %6648 = vmatprep.mubr.msk.f32.mxu0 %vm1523_vm0, %v4623_v46  ;;  %v7663_v46 = vpop.eup %7662 }
 0x618   : > { %v4481_v43 = vpop.f32.mrb[180].mxu1 }
 0x619   : > { %v4624_v55 = vmul.f32 %v7653_v37, %v4481_v43  ;;  %v4483_v25 = vpop.f32.mrb[181].mxu1  ;;  %v5165_v37 = vadd.f32 %v5164_v10, %v5163_v3  ;;  %v3748_v43 = vpop.xlane.xlu0 %3747 }
 0x61a   : > { %7670 = vrcp.f32 %v3748_v43 }
 0x61b   : > { %6649 = vmatmul.mubr.msk.f32.gmra.mrb[30].mxu0 %vm1523_vm0, %v4624_v55  ;;  %v7665_v55 = vpop.eup %7664 }
 0x61c   : > { %v4486_v9 = vpop.f32.mrb[182].mxu1 }
 0x61d   : > { %v4625_v41 = vmul.f32 %v7655_v19, %v4486_v9  ;;  %v4488_v13 = vpop.f32.mrb[183].mxu1  ;;  %v5166_v19 = vrot.slane %v5165_v37, 2  ;;  %v3754_v9 = vpop.xlane.xlu1 %3753 }
 0x61e   : > { %7672 = vrcp.f32 %v3754_v9 }
 0x61f   : > { %6651 = vmatprep.mubr.msk.f32.mxu0 %vm1523_vm0, %v4625_v41  ;;  %v7667_v41 = vpop.eup %7666 }
 0x620   : > { %v4491_v51 = vpop.f32.mrb[184].mxu1 }
 0x621   : > { %v4626_v29 = vmul.f32 %v7657_v15, %v4491_v51  ;;  %v4493_v12 = vpop.f32.mrb[185].mxu1  ;;  %v5167_v15 = vadd.f32 %v5166_v19, %v5165_v37  ;;  %v7669_v51 = vpop.eup %7668 }
 0x623   : > { %6652 = vmatmul.mubr.msk.f32.gmra.mrb[32].mxu0 %vm1523_vm0, %v4626_v29  ;;  %v5168_v58 = vrot.slane %v5167_v15, 1 }
 0x624   : > { %v4496_v48 = vpop.f32.mrb[186].mxu1 }
 0x625   : > { %v4627_v33 = vmul.f32 %v7659_v63, %v4496_v48  ;;  %v4498_v0 = vpop.f32.mrb[187].mxu1  ;;  %v7671_v63 = vpop.eup %7670  ;;  %v5169_v3 = vadd.f32 %v5168_v58, %v5167_v15 }
 0x627   : > { %6654 = vmatprep.mubr.msk.f32.mxu0 %vm1523_vm0, %v4627_v33 }
 0x628   : > { %v4501_v17 = vpop.f32.mrb[188].mxu1  ;;  %v7673_v36 = vpop.eup %7672 }
 0x629   : > { %v4628_v23 = vmul.f32 %v7661_v38, %v4501_v17  ;;  %v4503_v52 = vpop.f32.mrb[189].mxu1 }
 0x62a   : > { %v5171_v52 = vmul.f32 0.0025, %v5169_v3 }
 0x62b   : > { %6655 = vmatmul.mubr.msk.f32.gmra.mrb[34].mxu0 %vm1523_vm0, %v4628_v23 }
 0x62c   : > { %v4506_v60 = vpop.f32.mrb[190].mxu1 }
 0x62d   : > { %v4629_v32 = vmul.f32 %v7663_v46, %v4506_v60  ;;  %v4508_v53 = vpop.f32.mrb[191].mxu1 }
 0x62f   : > { %6657 = vmatprep.mubr.msk.f32.mxu0 %vm1523_vm0, %v4629_v32 }
 0x630   : > { %v4511_v25 = vpop.f32.mrb[192].mxu1 }
 0x631   : > { %v4630_v28 = vmul.f32 %v7665_v55, %v4511_v25  ;;  %v4513_v47 = vpop.f32.mrb[193].mxu1 }
 0x633   : > { %6658 = vmatmul.mubr.msk.f32.gmra.mrb[36].mxu0 %vm1523_vm0, %v4630_v28 }
 0x634   : > { %v4516_v13 = vpop.f32.mrb[194].mxu1 }
 0x635   : > { %v4631_v44 = vmul.f32 %v7667_v41, %v4516_v13  ;;  %v4518_v27 = vpop.f32.mrb[195].mxu1 }
 0x636   : > { %v5260_v27 = vld [vmem:[%s12001_s11] sm:$0xff] }
 0x637   : > { %6660 = vmatprep.mubr.msk.f32.mxu0 %vm1523_vm0, %v4631_v44 }
 0x638   : > { %v4521_v29 = vpop.f32.mrb[196].mxu1 }
 0x639   : > { %v4632_v12 = vmul.f32 %v7669_v51, %v4521_v29  ;;  %v4523_v61 = vpop.f32.mrb[197].mxu1 }
 0x63b   : > { %6661 = vmatmul.mubr.msk.f32.gmra.mrb[38].mxu0 %vm1523_vm0, %v4632_v12 }
 0x63c   : > { %v4526_v48 = vpop.f32.mrb[198].mxu1 }
 0x63d   : > { %v4633_v33 = vmul.f32 %v7671_v63, %v4526_v48  ;;  %v4528_v0 = vpop.f32.mrb[199].mxu1 }
 0x63f   : > { %6663 = vmatprep.mubr.msk.f32.mxu0 %vm1523_vm0, %v4633_v33 }
 0x640   : > { %v4531_v38 = vpop.f32.mrb[200].mxu1 }
 0x641   : > { %v4634_v17 = vmul.f32 %v7673_v36, %v4531_v38  ;;  %v4533_v23 = vpop.f32.mrb[201].mxu1 }
 0x643   : > { %6664 = vmatmul.mubr.msk.f32.gmra.mrb[40].mxu0 %vm1523_vm0, %v4634_v17 }
 0x644   : > { %6698 = vmatprep.mubr.msk.f32.mxu0 %vm7852_vm3, %v13009_v4 }
 0x647   : > { %6699 = vmatmul.mubr.f32.vlgmr.msra.gmra.mrb[42].mxu0 %v5171_v52 }
 0x648   : > { %6703 = vmatprep.mubr.msk.f32.mxu0 %vm7852_vm3, %v13009_v4  ;;  %6702 = vmatpush3.msra.mxu0 %v5260_v27 }
 0x656   : > { %v11551_v10 = vpop.f32.mrb[248].mxu0 }
 0x657   : > { %v11553_v54 = vpop.f32.mrb[249].mxu0 }
 0x65e   : > { %v11555_v46 = vpop.f32.mrb[250].mxu0 }
 0x65f   : > { %v11557_v60 = vpop.f32.mrb[251].mxu0 }
 0x666   : > { %v11559_v32 = vpop.f32.mrb[252].mxu0 }
 0x667   : > { %v11561_v53 = vpop.f32.mrb[253].mxu0 }
 0x66e   : > { %v11563_v37 = vpop.f32.mrb[254].mxu0 }
 0x66f   : > { %v11565_v43 = vpop.f32.mrb[255].mxu0 }
 0x676   : > { %v11567_v55 = vpop.f32.mrb[0].mxu0 }
 0x677   : > { %v11569_v25 = vpop.f32.mrb[1].mxu0 }
 0x67e   : > { %v11571_v4 = vpop.f32.mrb[2].mxu0 }
 0x67f   : > { %v11573_v28 = vpop.f32.mrb[3].mxu0 }
 0x686   : > { %v11575_v47 = vpop.f32.mrb[4].mxu0 }
 0x687   : > { %v11577_v19 = vpop.f32.mrb[5].mxu0 }
 0x68e   : > { %v11579_v9 = vpop.f32.mrb[6].mxu0 }
 0x68f   : > { %v11581_v41 = vpop.f32.mrb[7].mxu0 }
 0x696   : > { %v11583_v13 = vpop.f32.mrb[8].mxu0 }
 0x697   : > { %v11585_v44 = vpop.f32.mrb[9].mxu0 }
 0x69e   : > { %v11590_v15 = vpop.f32.mrb[10].mxu0 }
 0x69f   : > { %v11592_v51 = vpop.f32.mrb[11].mxu0 }
 0x6a6   : > { %v11594_v29 = vpop.f32.mrb[12].mxu0 }
 0x6a7   : > { %v11596_v12 = vpop.f32.mrb[13].mxu0 }
 0x6ae   : > { %v11598_v61 = vpop.f32.mrb[14].mxu0 }
 0x6af   : > { %v11600_v58 = vpop.f32.mrb[15].mxu0 }
 0x6b6   : > { %v11602_v63 = vpop.f32.mrb[16].mxu0 }
 0x6b7   : > { %v11604_v48 = vpop.f32.mrb[17].mxu0 }
 0x6be   : > { %v11606_v33 = vpop.f32.mrb[18].mxu0 }
 0x6bf   : > { %v11608_v0 = vpop.f32.mrb[19].mxu0 }
 0x6c6   : > { %v11610_v3 = vpop.f32.mrb[20].mxu0 }
 0x6c7   : > { %v11612_v36 = vpop.f32.mrb[21].mxu0 }
 0x6ce   : > { %v11614_v38 = vpop.f32.mrb[22].mxu0 }
 0x6cf   : > { %v11616_v17 = vpop.f32.mrb[23].mxu0 }
 0x6d6   : > { %v11618_v23 = vpop.f32.mrb[24].mxu0 }
 0x6d7   : > { %v11620_v52 = vpop.f32.mrb[25].mxu0 }
 0x6de   : > { %v11622_v27 = vpop.f32.mrb[26].mxu0 }
 0x6df   : > { %v11624_v62 = vpop.f32.mrb[27].mxu0 }
 0x6e6   : > { %v11626_v31 = vpop.f32.mrb[28].mxu0 }
 0x6e7   : > { %v11628_v50 = vpop.f32.mrb[29].mxu0 }
 0x6ee   : > { %v11630_v18 = vpop.f32.mrb[30].mxu0 }
 0x6ef   : > { %v11632_v45 = vpop.f32.mrb[31].mxu0 }
 0x6f6   : > { %v11634_v30 = vpop.f32.mrb[32].mxu0 }
 0x6f7   : > { %v11636_v56 = vpop.f32.mrb[33].mxu0 }
 0x6fe   : > { %v11638_v24 = vpop.f32.mrb[34].mxu0 }
 0x6ff   : > { %v11640_v14 = vpop.f32.mrb[35].mxu0 }
 0x706   : > { %v11642_v8 = vpop.f32.mrb[36].mxu0 }
 0x707   : > { %v11644_v26 = vpop.f32.mrb[37].mxu0 }
 0x70e   : > { %v11646_v57 = vpop.f32.mrb[38].mxu0 }
 0x70f   : > { %v11648_v59 = vpop.f32.mrb[39].mxu0 }
 0x716   : > { %v11650_v40 = vpop.f32.mrb[40].mxu0 }
 0x717   : > { %v11652_v1 = vpop.f32.mrb[41].mxu0  ;;  %v5112_v42 = vadd.f32 %v11650_v40, %v5791_v22 }
 0x71a   : > { %v5255_v7 = vpop.f32.mrb[42].mxu0 }
 0x71b   : > { %v5256_v6 = vadd.f32 %v5255_v7, %v5188_v16  ;;  %v6700_v39 = vpop.f32.mrb[43].mxu0  ;;  %v4882_v7 = vadd.f32 %v11555_v46, %v5791_v22  ;;  %v4877_v16 = vadd.f32 %v5791_v22, %v11557_v60  ;;  %v4932_v46 = vadd.f32 %v11575_v47, %v5791_v22 }
 0x71c   : > { %v4872_v39 = vadd.f32 %v11551_v10, %v5791_v22  ;;  %v4922_v10 = vadd.f32 %v11571_v4, %v5791_v22  ;;  %v4927_v60 = vadd.f32 %v5791_v22, %v11577_v19  ;;  %v4972_v4 = vadd.f32 %v11594_v29, %v5791_v22 }
 0x71d   : > { %v5259_v34 = vmax.f32 %v5256_v6, 0.0  ;;  %v4867_v6 = vadd.f32 %v5791_v22, %v11553_v54  ;;  %v4917_v54 = vadd.f32 %v5791_v22, %v11573_v28  ;;  %v4967_v28 = vadd.f32 %v5791_v22, %v11596_v12 }
 0x71e   : > { %v4982_v47 = vadd.f32 %v11598_v61, %v5791_v22  ;;  %v4977_v19 = vadd.f32 %v5791_v22, %v11600_v58  ;;  %v5022_v29 = vadd.f32 %v11614_v38, %v5791_v22  ;;  %v5017_v12 = vadd.f32 %v5791_v22, %v11616_v17 }
 0x71f   : > { %6704 = vmatmul.mubr.msk.f32.vlgmr.msra.gmra.mrb[44].mxu0 %vm5262_vm4, %v5259_v34  ;;  %v5342_v34 = vlaneseq  ;;  %v5032_v61 = vadd.f32 %v11618_v23, %v5791_v22  ;;  %v5027_v58 = vadd.f32 %v5791_v22, %v11620_v52  ;;  %v5057_v38 = vadd.f32 %v5791_v22, %v11632_v45 }
 0x720   : > { %v5067_v17 = vadd.f32 %v5791_v22, %v11636_v56  ;;  %v5082_v23 = vadd.f32 %v11638_v24, %v5791_v22  ;;  %v5077_v52 = vadd.f32 %v5791_v22, %v11640_v14  ;;  %v5107_v45 = vadd.f32 %v5791_v22, %v11652_v1 }
 0x7f2   : > { %v5332_v2 = vpop.f32.mrb[44].mxu0 }
 0x7f3   : > { %v5333_v5 = vadd.f32 %v5332_v2, %v5261_v11  ;;  %v6705_v21 = vpop.f32.mrb[45].mxu0  ;;  %v4892_v2 = vadd.f32 %v11559_v32, %v5791_v22  ;;  %v4907_v11 = vadd.f32 %v5791_v22, %v11569_v25  ;;  %v4937_v32 = vadd.f32 %v5791_v22, %v11581_v41 }
 0x7f4   : > { %v4902_v21 = vadd.f32 %v11563_v37, %v5791_v22  ;;  %v4952_v37 = vadd.f32 %v11583_v13, %v5791_v22  ;;  %v4957_v25 = vadd.f32 %v5791_v22, %v11592_v51  ;;  %v4987_v41 = vadd.f32 %v5791_v22, %v11604_v48 }
 0x7f5   : > { %v5843_v35 = vmul.f32 -1.442695, %v5333_v5  ;;  %v4897_v5 = vadd.f32 %v5791_v22, %v11565_v43  ;;  %v4947_v43 = vadd.f32 %v5791_v22, %v11585_v44  ;;  %v5002_v13 = vadd.f32 %v11606_v33, %v5791_v22 }
 0x7f6   : > { %v4997_v44 = vadd.f32 %v5791_v22, %v11608_v0  ;;  %v5007_v51 = vadd.f32 %v5791_v22, %v11612_v36  ;;  %v5037_v48 = vadd.f32 %v5791_v22, %v11624_v62  ;;  %v5052_v33 = vadd.f32 %v11626_v31, %v5791_v22 }
 0x7f7   : > { %7674 = vpow2.f32 %v5843_v35  ;;  %v4887_v35 = vadd.f32 %v5791_v22, %v11561_v53  ;;  %v5343_v53 = vshrl.u32 %v5342_v34, 7  ;;  %v5047_v0 = vadd.f32 %v5791_v22, %v11628_v50 }
 0x7f8   : > { %v5087_v62 = vadd.f32 %v5791_v22, %v11644_v26  ;;  %v5102_v50 = vadd.f32 %v11646_v57, %v5791_v22 }
 0x7f9   : > { %v5344_v34 = vsub.s32 0, %v5343_v53  ;;  %v5072_v53 = vadd.f32 %v11634_v30, %v5791_v22 }
 0x801   : > { %v7675_v49 = vpop.eup %7674 }
 0x802   : > { %v5339_v20 = vadd.f32 1.0, %v7675_v49  ;;  %v4912_v49 = vadd.f32 %v11567_v55, %v5791_v22  ;;  %v4962_v55 = vadd.f32 %v11590_v15, %v5791_v22  ;;  %v5012_v15 = vadd.f32 %v11610_v3, %v5791_v22 }
 0x803   : > { %v5062_v3 = vadd.f32 %v11630_v18, %v5791_v22  ;;  %v5097_v18 = vadd.f32 %v5791_v22, %v11648_v59 }
 0x804   : > { %7676 = vrcp.f32 %v5339_v20  ;;  %v4942_v20 = vadd.f32 %v11579_v9, %v5791_v22  ;;  %v4992_v9 = vadd.f32 %v11602_v63, %v5791_v22  ;;  %v5042_v63 = vadd.f32 %v11622_v27, %v5791_v22 }
 0x805   : > { %v5092_v27 = vadd.f32 %v11642_v8, %v5791_v22 }
 0x80e   : > { %v7677_v36 = vpop.eup %7676 }
 0x80f   : > { %v5345_v31 = vrot.slane %v7677_v36, %v5344_v34 }
 0x811   : > { %v5346_v30 = vmul.f32 %v5345_v31, %v4867_v6  ;;  %v5347_v56 = vmul.f32 %v5345_v31, %v4872_v39  ;;  %v5348_v24 = vmul.f32 %v5345_v31, %v4877_v16  ;;  %v5349_v14 = vmul.f32 %v5345_v31, %v4882_v7 }
 0x812   : > { %v5350_v8 = vmul.f32 %v5345_v31, %v4887_v35  ;;  %v5351_v26 = vmul.f32 %v5345_v31, %v4892_v2  ;;  %v5352_v34 = vmul.f32 %v5345_v31, %v4897_v5  ;;  %v5353_v36 = vmul.f32 %v5345_v31, %v4902_v21 }
 0x813   : > { %v5354_v57 = vmul.f32 %v5345_v31, %v4907_v11  ;;  %v5355_v59 = vmul.f32 %v5345_v31, %v4912_v49  ;;  %v11713_v40 = vmul.f32 %v5345_v31, %v4917_v54  ;;  %v11715_v1 = vmul.f32 %v5345_v31, %v4922_v10 }
 0x814   : > { %v11717_v22 = vmul.f32 %v5345_v31, %v4927_v60  ;;  %v11719_v6 = vmul.f32 %v5345_v31, %v4932_v46  ;;  %v11721_v39 = vmul.f32 %v5345_v31, %v4937_v32  ;;  %v11723_v16 = vmul.f32 %v5345_v31, %v4942_v20 }
 0x815   : > { %v11725_v7 = vmul.f32 %v5345_v31, %v4947_v43  ;;  %v11727_v35 = vmul.f32 %v5345_v31, %v4952_v37  ;;  %v11729_v2 = vmul.f32 %v5345_v31, %v4957_v25  ;;  %v11731_v21 = vmul.f32 %v5345_v31, %v4962_v55 }
 0x816   : > { %v11733_v5 = vmul.f32 %v5345_v31, %v4967_v28  ;;  %v11735_v49 = vmul.f32 %v5345_v31, %v4972_v4  ;;  %v11737_v11 = vmul.f32 %v5345_v31, %v4977_v19  ;;  %v11739_v10 = vmul.f32 %v5345_v31, %v4982_v47 }
 0x817   : > { %v11741_v54 = vmul.f32 %v5345_v31, %v4987_v41  ;;  %v11743_v46 = vmul.f32 %v5345_v31, %v4992_v9  ;;  %v11745_v60 = vmul.f32 %v5345_v31, %v4997_v44  ;;  %v11747_v20 = vmul.f32 %v5345_v31, %v5002_v13 }
 0x818   : > { %v11749_v32 = vmul.f32 %v5345_v31, %v5007_v51  ;;  %v11751_v37 = vmul.f32 %v5345_v31, %v5012_v15  ;;  %v11753_v43 = vmul.f32 %v5345_v31, %v5017_v12  ;;  %v11755_v55 = vmul.f32 %v5345_v31, %v5022_v29 }
 0x819   : > { %v11757_v25 = vmul.f32 %v5345_v31, %v5027_v58  ;;  %v11759_v4 = vmul.f32 %v5345_v31, %v5032_v61  ;;  %v11761_v28 = vmul.f32 %v5345_v31, %v5037_v48  ;;  %v11763_v47 = vmul.f32 %v5345_v31, %v5042_v63 }
 0x81a   : > { %v11765_v19 = vmul.f32 %v5345_v31, %v5047_v0  ;;  %v11767_v9 = vmul.f32 %v5345_v31, %v5052_v33  ;;  %v11769_v41 = vmul.f32 %v5345_v31, %v5057_v38  ;;  %v11771_v13 = vmul.f32 %v5345_v31, %v5062_v3  ;;  %v7728_v0 = vld [vmem:[%s8030_s17] sm:$0xff]  ;;  %v7729_v38 = vld [vmem:[%s8030_s17 + $0x8] sm:$0xff] }
 0x81b   : > { %v11773_v44 = vmul.f32 %v5345_v31, %v5067_v17  ;;  %v11775_v15 = vmul.f32 %v5345_v31, %v5072_v53  ;;  %v11777_v51 = vmul.f32 %v5345_v31, %v5077_v52  ;;  %v11779_v29 = vmul.f32 %v5345_v31, %v5082_v23  ;;  %v7730_v17 = vld [vmem:[%s8030_s17 + $0x10] sm:$0xff]  ;;  %v7731_v52 = vld [vmem:[%s8030_s17 + $0x18] sm:$0xff] }
 0x81c   : > { %v11781_v12 = vmul.f32 %v5345_v31, %v5087_v62  ;;  %v11783_v61 = vmul.f32 %v5345_v31, %v5092_v27  ;;  %v11785_v58 = vmul.f32 %v5345_v31, %v5097_v18  ;;  %v11787_v63 = vmul.f32 %v5345_v31, %v5102_v50  ;;  %v7732_v62 = vld [vmem:[%s8030_s17 + $0x20] sm:$0xff]  ;;  %v7733_v18 = vld [vmem:[%s8030_s17 + $0x28] sm:$0xff] }
 0x81d   : > { %v11789_v48 = vmul.f32 %v5345_v31, %v5107_v45  ;;  %v11791_v33 = vmul.f32 %v5345_v31, %v5112_v42  ;;  %v5396_v3 = vadd.f32 %v7728_v0, %v5346_v30  ;;  %v5397_v53 = vadd.f32 %v7729_v38, %v5347_v56  ;;  %v7734_v42 = vld [vmem:[%s8030_s17 + $0x30] sm:$0xff]  ;;  %v7736_v0 = vld [vmem:[%s8030_s17 + $0x40] sm:$0xff]  ;;  %v7737_v56 = vld [vmem:[%s8030_s17 + $0x48] sm:$0xff] }
 0x81e   : > { %v5398_v23 = vadd.f32 %v7730_v17, %v5348_v24  ;;  %v5399_v27 = vadd.f32 %v7731_v52, %v5349_v14  ;;  %v5400_v50 = vadd.f32 %v7732_v62, %v5350_v8  ;;  %v5401_v45 = vadd.f32 %v7733_v18, %v5351_v26  ;;  %v7738_v24 = vld [vmem:[%s8030_s17 + $0x50] sm:$0xff]  ;;  %v7739_v8 = vld [vmem:[%s8030_s17 + $0x58] sm:$0xff] }
 0x81f   : > { %13034 = vst [vmem:[#allocation169_spill] sm:$0xff] %v11789_v48  ;;  %13035 = vst [vmem:[#allocation170_spill] sm:$0xff] %v11791_v33  ;;  %v5402_v31 = vadd.f32 %v7734_v42, %v5352_v34  ;;  %v7735_v33 = vld [vmem:[%s8030_s17 + $0x38] sm:$0xff]  ;;  %v5404_v48 = vadd.f32 %v7736_v0, %v5354_v57  ;;  %v5405_v38 = vadd.f32 %v7737_v56, %v5355_v59  ;;  %v7740_v34 = vld [vmem:[%s8030_s17 + $0x60] sm:$0xff] }
 0x820   : > { %v5403_v30 = vadd.f32 %v7735_v33, %v5353_v36  ;;  %5446 = vst [vmem:[%s11805_s21] sm:$0xff] %v5396_v3  ;;  %5447 = vst [vmem:[%s11805_s21 + $0x8] sm:$0xff] %v5397_v53  ;;  %v5406_v14 = vadd.f32 %v7738_v24, %v11713_v40  ;;  %v5407_v26 = vadd.f32 %v7739_v8, %v11715_v1  ;;  %v7741_v57 = vld [vmem:[%s8030_s17 + $0x68] sm:$0xff]  ;;  %v7742_v40 = vld [vmem:[%s8030_s17 + $0x70] sm:$0xff] }
 0x821   : > { %v5408_v36 = vadd.f32 %v7740_v34, %v11717_v22  ;;  %v5409_v59 = vadd.f32 %v7741_v57, %v11719_v6  ;;  %5448 = vst [vmem:[%s11805_s21 + $0x10] sm:$0xff] %v5398_v23  ;;  %5449 = vst [vmem:[%s11805_s21 + $0x18] sm:$0xff] %v5399_v27  ;;  %v5410_v1 = vadd.f32 %v7742_v40, %v11721_v39  ;;  %v7743_v33 = vld [vmem:[%s8030_s17 + $0x78] sm:$0xff]  ;;  %v7744_v22 = vld [vmem:[%s8030_s17 + $0x80] sm:$0xff] }
 0x822   : > { %5450 = vst [vmem:[%s11805_s21 + $0x20] sm:$0xff] %v5400_v50  ;;  %5451 = vst [vmem:[%s11805_s21 + $0x28] sm:$0xff] %v5401_v45  ;;  %v5411_v3 = vadd.f32 %v7743_v33, %v11723_v16  ;;  %v5412_v53 = vadd.f32 %v7744_v22, %v11725_v7  ;;  %v7745_v6 = vld [vmem:[%s8030_s17 + $0x88] sm:$0xff]  ;;  %v7746_v23 = vld [vmem:[%s8030_s17 + $0x90] sm:$0xff] }
 0x823   : > { %v5413_v17 = vadd.f32 %v7745_v6, %v11727_v35  ;;  %5452 = vst [vmem:[%s11805_s21 + $0x30] sm:$0xff] %v5402_v31  ;;  %5453 = vst [vmem:[%s11805_s21 + $0x38] sm:$0xff] %v5403_v30  ;;  %v5414_v39 = vadd.f32 %v7746_v23, %v11729_v2  ;;  %v7747_v16 = vld [vmem:[%s8030_s17 + $0x98] sm:$0xff]  ;;  %v7748_v7 = vld [vmem:[%s8030_s17 + $0xa0] sm:$0xff]  ;;  %s5510_s17 = sshll.u32 %s11805_s21, 4  ;;  %s11938_s17 = int_to_ptr.vmem [resolvable:$true] %s5510_s17 }
 0x824   : > { %5454 = vst [vmem:[%s11805_s21 + $0x40] sm:$0xff] %v5404_v48  ;;  %5455 = vst [vmem:[%s11805_s21 + $0x48] sm:$0xff] %v5405_v38  ;;  %v5415_v52 = vadd.f32 %v7747_v16, %v11731_v21  ;;  %v5416_v27 = vadd.f32 %v7748_v7, %v11733_v5  ;;  %v13036_v62 = vld [vmem:[#allocation149_spill] sm:$0xff]  ;;  %v13037_v2 = vld [vmem:[#allocation151_spill] sm:$0xff]  ;;  %s7779_s20 = scalar_lea.vmem %s11938_s17, 6400  ;;  %p7786_p8 = scmp.lt.s32.totalorder %s11938_s17, %s7784_s27 }
 0x825   : > { %v5417_v35 = vadd.f32 %v13036_v62, %v11735_v49  ;;  %5456 = vst [vmem:[%s11805_s21 + $0x50] sm:$0xff] %v5406_v14  ;;  %5457 = vst [vmem:[%s11805_s21 + $0x58] sm:$0xff] %v5407_v26  ;;  %v5418_v48 = vadd.f32 %v13037_v2, %v11737_v11  ;;  %v13038_v50 = vld [vmem:[#allocation152_spill] sm:$0xff]  ;;  %v13039_v5 = vld [vmem:[#allocation153_spill] sm:$0xff]  ;;  %p7780_p6 = scmp.ne.s32.totalorder %s11938_s17, %s7779_s20  ;;  %p7787_p10 = scmp.lt.s32.totalorder %s7785_s14, %s7779_s20 }
 0x826   : > { %5458 = vst [vmem:[%s11805_s21 + $0x60] sm:$0xff] %v5408_v36  ;;  %5459 = vst [vmem:[%s11805_s21 + $0x68] sm:$0xff] %v5409_v59  ;;  %v5419_v21 = vadd.f32 %v13038_v50, %v11739_v10  ;;  %v5420_v18 = vadd.f32 %v13039_v5, %v11741_v54  ;;  %v13040_v49 = vld [vmem:[#allocation154_spill] sm:$0xff]  ;;  %v13041_v42 = vld [vmem:[#allocation155_spill] sm:$0xff] }
 0x827   : > { %v5421_v45 = vadd.f32 %v13040_v49, %v11743_v46  ;;  %5460 = vst [vmem:[%s11805_s21 + $0x70] sm:$0xff] %v5410_v1  ;;  %5461 = vst [vmem:[%s11805_s21 + $0x78] sm:$0xff] %v5411_v3  ;;  %v5422_v11 = vadd.f32 %v13041_v42, %v11745_v60  ;;  %v13042_v31 = vld [vmem:[#allocation156_spill] sm:$0xff]  ;;  %v13043_v30 = vld [vmem:[#allocation157_spill] sm:$0xff]  ;;  %p7781_p12 = pnand %p7780_p6, %p13068_p11  ;;  %p7788_p0 = por %p7787_p10, %p7786_p8 }
 0x828   : > { %5462 = vst [vmem:[%s11805_s21 + $0x80] sm:$0xff] %v5412_v53  ;;  %5463 = vst [vmem:[%s11805_s21 + $0x88] sm:$0xff] %v5413_v17  ;;  %v5423_v10 = vadd.f32 %v13042_v31, %v11747_v20  ;;  %v5424_v54 = vadd.f32 %v13043_v30, %v11749_v32  ;;  %v13044_v0 = vld [vmem:[#allocation158_spill] sm:$0xff]  ;;  %v13045_v60 = vld [vmem:[#allocation159_spill] sm:$0xff] }
 0x829   : > { %v5425_v46 = vadd.f32 %v13044_v0, %v11751_v37  ;;  %5464 = vst [vmem:[%s11805_s21 + $0x90] sm:$0xff] %v5414_v39  ;;  %5465 = vst [vmem:[%s11805_s21 + $0x98] sm:$0xff] %v5415_v52  ;;  %v5426_v56 = vadd.f32 %v13045_v60, %v11753_v43  ;;  %v13046_v20 = vld [vmem:[#allocation160_spill] sm:$0xff]  ;;  %v13047_v32 = vld [vmem:[#allocation77_spill] sm:$0xff]  ;;  %p7782_p13 = pneg %p7781_p12 }
 0x82a   : > { %5466 = vst [vmem:[%s11805_s21 + $0xa0] sm:$0xff] %v5416_v27  ;;  %5467 = vst [vmem:[%s11805_s21 + $0xa8] sm:$0xff] %v5417_v35  ;;  %v5427_v38 = vadd.f32 %v13046_v20, %v11755_v55  ;;  %v5428_v24 = vadd.f32 %v13047_v32, %v11757_v25  ;;  %v13048_v37 = vld [vmem:[#allocation79_spill] sm:$0xff]  ;;  %v13049_v8 = vld [vmem:[#allocation161_spill] sm:$0xff] }
 0x82b   : > { %v5429_v14 = vadd.f32 %v13048_v37, %v11759_v4  ;;  %5468 = vst [vmem:[%s11805_s21 + $0xb0] sm:$0xff] %v5418_v48  ;;  %5469 = vst [vmem:[%s11805_s21 + $0xb8] sm:$0xff] %v5419_v21  ;;  %v5430_v43 = vadd.f32 %v13049_v8, %v11761_v28  ;;  %v13050_v26 = vld [vmem:[#allocation162_spill] sm:$0xff]  ;;  %v13051_v34 = vld [vmem:[#allocation80_spill] sm:$0xff]  ;;  %p7789_p2 = pnand %p7788_p0, %p7782_p13 }
 0x82c   : > { %5470 = vst [vmem:[%s11805_s21 + $0xc0] sm:$0xff] %v5420_v18  ;;  %5471 = vst [vmem:[%s11805_s21 + $0xc8] sm:$0xff] %v5421_v45  ;;  %v5431_v55 = vadd.f32 %v13050_v26, %v11763_v47  ;;  %v5432_v25 = vadd.f32 %v13051_v34, %v11765_v19  ;;  %v13052_v36 = vld [vmem:[#allocation82_spill] sm:$0xff]  ;;  %v13053_v28 = vld [vmem:[#allocation163_spill] sm:$0xff] }
 0x82d   : > { %v5433_v4 = vadd.f32 %v13052_v36, %v11767_v9  ;;  %5472 = vst [vmem:[%s11805_s21 + $0xd0] sm:$0xff] %v5422_v11  ;;  %5473 = vst [vmem:[%s11805_s21 + $0xd8] sm:$0xff] %v5423_v10  ;;  %v5434_v57 = vadd.f32 %v13053_v28, %v11769_v41  ;;  %v13054_v47 = vld [vmem:[#allocation164_spill] sm:$0xff]  ;;  %v13055_v19 = vld [vmem:[#allocation85_spill] sm:$0xff] }
 0x82e   : > { %5474 = vst [vmem:[%s11805_s21 + $0xe0] sm:$0xff] %v5424_v54  ;;  %5475 = vst [vmem:[%s11805_s21 + $0xe8] sm:$0xff] %v5425_v46  ;;  %v5435_v59 = vadd.f32 %v13054_v47, %v11771_v13  ;;  %v5436_v40 = vadd.f32 %v13055_v19, %v11773_v44  ;;  %v13056_v9 = vld [vmem:[#allocation87_spill] sm:$0xff]  ;;  %v13057_v33 = vld [vmem:[#allocation165_spill] sm:$0xff] }
 0x82f   : > { %v5437_v1 = vadd.f32 %v13056_v9, %v11775_v15  ;;  %5476 = vst [vmem:[%s11805_s21 + $0xf0] sm:$0xff] %v5426_v56  ;;  %5477 = vst [vmem:[%s11805_s21 + $0xf8] sm:$0xff] %v5427_v38  ;;  %v5438_v41 = vadd.f32 %v13057_v33, %v11777_v51  ;;  %v13058_v3 = vld [vmem:[#allocation166_spill] sm:$0xff]  ;;  %v13059_v22 = vld [vmem:[#allocation60_spill] sm:$0xff] }
 0x830   : > { %5478 = vst [vmem:[%s11805_s21 + $0x100] sm:$0xff] %v5428_v24  ;;  %5479 = vst [vmem:[%s11805_s21 + $0x108] sm:$0xff] %v5429_v14  ;;  %v5439_v13 = vadd.f32 %v13058_v3, %v11779_v29  ;;  %v5440_v44 = vadd.f32 %v13059_v22, %v11781_v12  ;;  %v13060_v53 = vld [vmem:[#allocation62_spill] sm:$0xff]  ;;  %v13061_v51 = vld [vmem:[#allocation167_spill] sm:$0xff] }
 0x831   : > { %v5441_v15 = vadd.f32 %v13060_v53, %v11783_v61  ;;  %5480 = vst [vmem:[%s11805_s21 + $0x110] sm:$0xff] %v5430_v43  ;;  %5481 = vst [vmem:[%s11805_s21 + $0x118] sm:$0xff] %v5431_v55  ;;  %v5442_v29 = vadd.f32 %v13061_v51, %v11785_v58  ;;  %v13062_v12 = vld [vmem:[#allocation168_spill] sm:$0xff]  ;;  %v13063_v6 = vld [vmem:[#allocation169_spill] sm:$0xff] }
 0x832   : > { %5482 = vst [vmem:[%s11805_s21 + $0x120] sm:$0xff] %v5432_v25  ;;  %5483 = vst [vmem:[%s11805_s21 + $0x128] sm:$0xff] %v5433_v4  ;;  %v5443_v61 = vadd.f32 %v13062_v12, %v11787_v63  ;;  %v13064_v17 = vld [vmem:[#allocation63_spill] sm:$0xff]  ;;  %v13065_v39 = vld [vmem:[#allocation170_spill] sm:$0xff] }
 0x833   : > { %v5444_v23 = vadd.f32 %v13064_v17, %v13063_v6  ;;  %v13066_v16 = vld [vmem:[#allocation64_spill] sm:$0xff]  ;;  %5484 = vst [vmem:[%s11805_s21 + $0x130] sm:$0xff] %v5434_v57  ;;  %5485 = vst [vmem:[%s11805_s21 + $0x138] sm:$0xff] %v5435_v59 }
 0x834   : > { %v5445_v52 = vadd.f32 %v13066_v16, %v13065_v39  ;;  %5486 = vst [vmem:[%s11805_s21 + $0x140] sm:$0xff] %v5436_v40  ;;  %5487 = vst [vmem:[%s11805_s21 + $0x148] sm:$0xff] %v5437_v1 }
 0x835   : > { %5488 = vst [vmem:[%s11805_s21 + $0x150] sm:$0xff] %v5438_v41  ;;  %5489 = vst [vmem:[%s11805_s21 + $0x158] sm:$0xff] %v5439_v13 }
 0x836   : > { %5490 = vst [vmem:[%s11805_s21 + $0x160] sm:$0xff] %v5440_v44  ;;  %5491 = vst [vmem:[%s11805_s21 + $0x168] sm:$0xff] %v5441_v15 }
 0x837   : > { %5492 = vst [vmem:[%s11805_s21 + $0x170] sm:$0xff] %v5442_v29  ;;  %5493 = vst [vmem:[%s11805_s21 + $0x178] sm:$0xff] %v5443_v61 }
 0x838   : > { %5494 = vst [vmem:[%s11805_s21 + $0x180] sm:$0xff] %v5444_v23  ;;  %5495 = vst [vmem:[%s11805_s21 + $0x188] sm:$0xff] %v5445_v52 }
 0x839   : > { %7792 = shalt.err (!%p7789_p2)
}
 0x83a   : > { %s7793_s16 = scalar_lea.hbm %s11924_s19, 6400  ;;  %s7797_s24 = scalar_lea.hbm %s12003_s13, 12800 }
 0x83b   : > { %p7794_p4 = scmp.ne.s32.totalorder %s11924_s19, %s7793_s16  ;;  %p7798_p9 = scmp.lt.u32.totalorder %s11924_s19, %s12003_s13 }
 0x83c   : > { %p7799_p1 = scmp.lt.u32.totalorder %s7797_s24, %s7793_s16  ;;  %p7801_p6 = scmp.lt.u32.totalorder %s7793_s16, %s11924_s19 }
 0x83d   : > { %p7795_p5 = pnand %p7794_p4, %p13068_p11 }
 0x83e   : > { %p7800_p3 = por %p7799_p1, %p7798_p9 }
 0x83f   : > { %p7796_p7 = pneg %p7795_p5 }
 0x840   : > { %p7802_p12 = por %p7801_p6, %p7800_p3 }
 0x842   : > { %p7803_p13 = pnand %p7802_p12, %p7796_p7 }
 0x844   : > { %7806 = shalt.err (!%p7803_p13)
}
 0x845   : > { %s7854_s20 = smov 128   ;;  %s7855_s15 = smov 8  }
 0x846   : > { %7123 = dma.vmem_to_hbm [thread:$0]  (%p13068_p11), %s11938_s17, 6400, %s11924_s19, %s5497_s18, %s7854_s20, %s7854_s20, %s7855_s15  }
 0x847 PF: > { %s13069_s27 = sld [smem:[#allocation8_spill]]  ;;  %s13070_s14 = sld [smem:[#allocation13_spill]] }
 0x848   : > { %p13072_p10 = scmp.ge.s32.totalorder %s7845_s28, 2 }
 0x84d   : > { %s5525_s30 = sand.u32 1, %s13069_s27   ;;  %p13071_p8 = scmp.ne.s32.totalorder %s13070_s14, 0 }
 0x84e   : > { %s5526_s16 = scalar_lea.sflag [#allocation4], %s5525_s30 }
 0x84f   : > { %p7130_p0 = pnand %p13072_p10, %p13071_p8 }
 0x851   : > { %7828 = dma.done.wait (!%p7130_p0), %s5526_s16, 6400  }
 0x852   : > { %7830 = vsyncadd (!%p7130_p0), %s5526_s16, 4294960896  ;;  %s13073_s28 = sld [smem:[#allocation10_spill]]  ;;  %s13074_s21 = sld [smem:[#allocation9_spill]] }
 0x853   : > { %s13075_s27 = sld [smem:[#allocation11_spill]]  ;;  %s13076_s25 = smov %s7837_s26 }
 0x858   : > { %p26_p2 = scmp.ge.s32.totalorder %s13073_s28, 4   ;;  %s13077_s26 = smov %s13074_s21 }
 0x85a   :  { %28 = sbr.rel (!%p26_p2) target bundleno = 5 (0x5), region = 117 }
 0x861   :  { %5531 = vsyncpa [#allocation3], 1 }
 0x862   :  { %5533 = vsyncpa [#allocation3 + $0x1], 1 }
 0x863   :  { %5534 = vsyncpa [#allocation4], 1 }
 0x864   :  { %5536 = vsyncpa [#allocation4 + $0x1], 1 }

</bundles_post_ra>
